<compile_context>
chip_gen: v7x
topology: tpu7x:2x2x1
jax: 0.10.0
libtpu: 0.0.40
codegen_flags: <defaults>
</compile_context>

<pallas_src>
import functools
import types

import numpy as np
import jax
import jax.numpy as jnp
from jax.experimental import pallas as pl
from jax.experimental.pallas import tpu as pltpu

F32 = jnp.float32
BF16 = jnp.bfloat16
NEG_INF = -1e9
INV_SQRT2 = float(1.0 / np.sqrt(2.0))


# ----------------------------------------------------------------------------
# In-kernel helpers (operate on jnp values inside Pallas kernels)
# ----------------------------------------------------------------------------

def _mm(a, b):
    """MXU matmul: bf16 operands, f32 accumulation."""
    return jnp.dot(a.astype(BF16), b.astype(BF16), preferred_element_type=F32)


def _mm_t(a, b):
    """a (M, K) x b (N, K) contracted on K -> (M, N); bf16 operands, f32 acc."""
    return jax.lax.dot_general(a.astype(BF16), b.astype(BF16),
                               (((1,), (1,)), ((), ())),
                               preferred_element_type=F32)


def _ln(x, eps=1e-5):
    """LayerNorm over the last axis (no affine) in f32."""
    mu = jnp.mean(x, axis=-1, keepdims=True)
    xc = x - mu
    var = jnp.mean(xc * xc, axis=-1, keepdims=True)
    return xc * jax.lax.rsqrt(var + eps)


def _mha(xq, xkv, bias, wq_ref, bq_ref, wk_ref, bk_ref, wv_ref, bv_ref,
         wo_ref, num_heads, scale, lead=()):
    """Multi-head attention with per-head weights.

    Weight refs have shape lead + (H, d, dh) / wo: lead + (H, dh, d); `lead`
    is a tuple of static leading indices (e.g. (0,) for a streamed layer
    block).  bias: (1, Tk) additive key-padding bias broadcast over queries.
    """
    out = None
    for h in range(num_heads):                      # static unroll, H is small
        i = lead + (h,)
        qh = _mm(xq, wq_ref[i]) + bq_ref[i]         # (Tq, dh)
        kh = _mm(xkv, wk_ref[i]) + bk_ref[i]        # (Tk, dh)
        vh = _mm(xkv, wv_ref[i]) + bv_ref[i]        # (Tk, dh)
        s = _mm_t(qh, kh) * scale + bias            # (Tq, Tk)
        s = s - jnp.max(s, axis=-1, keepdims=True)
        p = jnp.exp(s)
        p = p * pl.reciprocal(jnp.sum(p, axis=-1, keepdims=True), approx=True)
        oh = _mm(_mm(p, vh), wo_ref[i])             # (Tq, d)
        out = oh if out is None else out + oh
    return out


# ----------------------------------------------------------------------------
# Pallas kernels
# ----------------------------------------------------------------------------

def _encoder_stack_kernel(x_ref, cond_ref, kpm_ref, m_ref,
                          s1w_ref, s1b_ref,
                          wq_ref, bq_ref, wk_ref, bk_ref, wv_ref, bv_ref,
                          wo_ref, bo_ref,
                          s2w_ref, s2b_ref,
                          w1_ref, b1_ref, w2_ref, b2_ref,
                          fsw_ref, fsb_ref,
                          o_ref, x_sc,
                          *, num_heads, scale, num_layers):
    """Whole transformer-encoder stack: grid axis 1 streams the layers while
    x stays resident in VMEM scratch.  Last layer also does the final SALN
    and phone-mask multiply."""
    l = pl.program_id(1)

    @pl.when(l == 0)
    def _():
        x_sc[...] = x_ref[0].astype(F32)

    x = x_sc[...]                                   # (N, d)
    cond = cond_ref[0].astype(F32)                  # (1, d)  mean ref embedding
    kpm = kpm_ref[0].astype(F32)                    # (1, N)  1 = valid key
    bias = jnp.where(kpm == 0.0, NEG_INF, 0.0)      # built in-kernel

    # SALN 1 (style gamma/beta from the conditioning vector) + self-attention
    g1 = _mm(cond, s1w_ref[0, 0]) + s1b_ref[0, 0]
    be1 = _mm(cond, s1w_ref[0, 1]) + s1b_ref[0, 1]
    y = _ln(x) * g1 + be1
    attn = _mha(y, y, bias, wq_ref, bq_ref, wk_ref, bk_ref, wv_ref, bv_ref,
                wo_ref, num_heads, scale, lead=(0,))
    x = x + attn + bo_ref[0]

    # SALN 2 + FFN (fused w1 -> ReLU -> w2) + residual
    g2 = _mm(cond, s2w_ref[0, 0]) + s2b_ref[0, 0]
    be2 = _mm(cond, s2w_ref[0, 1]) + s2b_ref[0, 1]
    y = _ln(x) * g2 + be2
    h = jnp.maximum(_mm(y, w1_ref[0]) + b1_ref[0], 0.0)
    x = x + _mm(h, w2_ref[0]) + b2_ref[0]

    x_sc[...] = x

    @pl.when(l == num_layers - 1)
    def _():
        g = _mm(cond, fsw_ref[0]) + fsb_ref[0]
        be = _mm(cond, fsw_ref[1]) + fsb_ref[1]
        o_ref[0] = (_ln(x) * g + be) * m_ref[0].astype(F32)


def _vp_layer_kernel(*refs, num_heads, scale, ksize, t_out, pad,
                     has_cattn, has_out):
    """One variance-predictor layer, fused:
       [optional LN -> cross-attn(x, ref) -> scaled residual]
       -> Conv1d('same') via K shifted matmuls on a zero-padded VMEM scratch
       -> bias + ReLU + LN affine + mask
       [-> optional final 1-channel projection (last layer)]."""
    it = iter(refs)
    x_ref = next(it)
    m_ref = next(it)
    if has_cattn:
        r_ref = next(it)
        rkpm_ref = next(it)
        g_ref = next(it); be_ref = next(it)
        wq_ref = next(it); bq_ref = next(it)
        wk_ref = next(it); bk_ref = next(it)
        wv_ref = next(it); bv_ref = next(it)
        wo_ref = next(it); bo_ref = next(it)
    convw_ref = next(it); convb_ref = next(it)
    lng_ref = next(it); lnb_ref = next(it)
    if has_out:
        outw_ref = next(it); outb_ref = next(it)
    o_ref = next(it)
    pad_sc = next(it)

    x = x_ref[0].astype(F32)                        # (T, Cin)
    m = m_ref[0].astype(F32)                        # (T, 1)

    if has_cattn:
        r = r_ref[0].astype(F32)                    # (Tr, d)
        bias = jnp.where(rkpm_ref[0].astype(F32) == 0.0, NEG_INF, 0.0)
        y = _ln(x) * g_ref[...] + be_ref[...]
        attn = _mha(y, r, bias, wq_ref, bq_ref, wk_ref, bk_ref, wv_ref,
                    bv_ref, wo_ref, num_heads, scale) + bo_ref[...]
        x = (x + attn) * INV_SQRT2

    # Conv1d 'same': zero-pad inside VMEM (no HBM padded tensor).
    pad_sc[...] = jnp.zeros_like(pad_sc)
    pad_sc[pad:pad + t_out, :] = x
    acc = _mm(pad_sc[0:t_out, :], convw_ref[0])     # (T, Cout)
    for k in range(1, ksize):
        acc = acc + _mm(pad_sc[k:k + t_out, :], convw_ref[k])
    acc = jnp.maximum(acc + convb_ref[...], 0.0)
    y = (_ln(acc) * lng_ref[...] + lnb_ref[...]) * m

    if has_out:
        o_ref[0] = (_mm(y, outw_ref[...]) + outb_ref[...]) * m   # (T, 1)
    else:
        o_ref[0] = y


def _add_pitch_mask_kernel(x_ref, p_ref, m_ref, o_ref):
    """(x + pitch_embedding) * mask."""
    o_ref[0] = (x_ref[0].astype(F32) + p_ref[0].astype(F32)) * m_ref[0].astype(F32)


# ----------------------------------------------------------------------------
# pallas_call wrappers
# ----------------------------------------------------------------------------

def _bat_spec(a):
    """One batch element per grid step (1-D grid)."""
    nrest = a.ndim - 1
    return pl.BlockSpec((1,) + a.shape[1:], lambda b, _n=nrest: (b,) + (0,) * _n)


def _rep_spec(a):
    """Replicated (VMEM-resident) weight: same block for every grid step."""
    zeros = (0,) * a.ndim
    return pl.BlockSpec(a.shape, lambda b, _z=zeros: _z)


def transformer_encoder_stack(x, cond, kpm, m_col, stack, last_saln, num_heads):
    """All encoder layers + final SALN + mask in ONE pallas_call, grid (B, L)."""
    B, N, d = x.shape
    L = stack["wq"].shape[0]
    scale = 1.0 / float(np.sqrt(d // num_heads))
    kern = functools.partial(_encoder_stack_kernel, num_heads=num_heads,
                             scale=scale, num_layers=L)

    def bat(a):      # batched, constant across the layer axis
        nrest = a.ndim - 1
        return pl.BlockSpec((1,) + a.shape[1:],
                            lambda b, l, _n=nrest: (b,) + (0,) * _n)

    def lay(a):      # per-layer stacked weights (streamed / double-buffered)
        nrest = a.ndim - 1
        return pl.BlockSpec((1,) + a.shape[1:],
                            lambda b, l, _n=nrest: (l,) + (0,) * _n)

    def rep(a):      # fully replicated
        zeros = (0,) * a.ndim
        return pl.BlockSpec(a.shape, lambda b, l, _z=zeros: _z)

    batched = [x, cond, kpm, m_col]
    layer_ws = [stack["saln1_w"], stack["saln1_b"],
                stack["wq"], stack["bq"], stack["wk"], stack["bk"],
                stack["wv"], stack["bv"], stack["wo"], stack["bo"],
                stack["saln2_w"], stack["saln2_b"],
                stack["ffn_w1"], stack["ffn_b1"],
                stack["ffn_w2"], stack["ffn_b2"]]
    rep_ws = [last_saln["w"], last_saln["b"]]

    return pl.pallas_call(
        kern,
        grid=(B, L),
        in_specs=([bat(a) for a in batched] + [lay(a) for a in layer_ws]
                  + [rep(a) for a in rep_ws]),
        out_specs=pl.BlockSpec((1, N, d), lambda b, l: (b, 0, 0)),
        out_shape=jax.ShapeDtypeStruct((B, N, d), F32),
        scratch_shapes=[pltpu.VMEM((N, d), F32)],
        compiler_params=pltpu.CompilerParams(
            dimension_semantics=("parallel", "arbitrary")),
    )(*batched, *layer_ws, *rep_ws)


def vp_layer(x, m_col, ref, ref_kpm, p, vcfg, has_cattn, has_out):
    """One variance-predictor layer (cross-attn + conv + relu + ln [+ out])."""
    B, T, Cin = x.shape
    Cout = p["conv_w"].shape[-1]
    ksize = vcfg.kernel_size
    pad = ksize // 2
    scale = 1.0 / float(np.sqrt(p["wq"].shape[-1])) if has_cattn else 1.0
    kern = functools.partial(_vp_layer_kernel, num_heads=vcfg.attn_head,
                             scale=scale, ksize=ksize, t_out=T, pad=pad,
                             has_cattn=has_cattn, has_out=has_out)

    batched = [x, m_col] + ([ref, ref_kpm] if has_cattn else [])
    weights = []
    if has_cattn:
        weights += [p["cattn_ln_g"], p["cattn_ln_b"],
                    p["wq"], p["bq"], p["wk"], p["bk"], p["wv"], p["bv"],
                    p["wo"], p["bo"]]
    weights += [p["conv_w"], p["conv_b"], p["ln_g"], p["ln_b"]]
    if has_out:
        weights += [p["out_w"], p["out_b"]]

    out_shape = (B, T, 1) if has_out else (B, T, Cout)
    return pl.pallas_call(
        kern,
        grid=(B,),
        in_specs=[_bat_spec(a) for a in batched] + [_rep_spec(a) for a in weights],
        out_specs=pl.BlockSpec((1,) + out_shape[1:], lambda b: (b, 0, 0)),
        out_shape=jax.ShapeDtypeStruct(out_shape, F32),
        scratch_shapes=[pltpu.VMEM((T + 2 * pad, Cin), F32)],
        compiler_params=pltpu.CompilerParams(dimension_semantics=("parallel",)),
    )(*batched, *weights)


def add_pitch_mask(x, pitch_emb, m_col):
    B, T, d = x.shape
    return pl.pallas_call(
        _add_pitch_mask_kernel,
        grid=(B,),
        in_specs=[_bat_spec(x), _bat_spec(pitch_emb), _bat_spec(m_col)],
        out_specs=pl.BlockSpec((1, T, d), lambda b: (b, 0, 0)),
        out_shape=jax.ShapeDtypeStruct((B, T, d), F32),
        compiler_params=pltpu.CompilerParams(dimension_semantics=("parallel",)),
    )(x, pitch_emb, m_col)


# ----------------------------------------------------------------------------
# Model blocks (glue around the Pallas kernels)
# ----------------------------------------------------------------------------

def sinusoidal_pos(n, d):
    pos = np.arange(n)[:, None].astype(np.float64)
    i = np.arange(d)[None, :]
    angle = pos / np.power(10000.0, (2 * (i // 2)) / d)
    pe = np.where(i % 2 == 0, np.sin(angle), np.cos(angle))
    return jnp.asarray(pe, F32)


def transformer_encoder(params, cfg_enc, phone_id, phone_mask, ref_emb_t):
    B, N = phone_id.shape
    d = cfg_enc.encoder_hidden
    x = params["emb"][phone_id] + sinusoidal_pos(N, d)[None]       # (B, N, d)
    cond = jnp.mean(ref_emb_t, axis=1, keepdims=True)              # (B, 1, d)
    pm = (phone_mask.astype(F32) if phone_mask is not None
          else jnp.ones((B, N), F32))
    kpm = pm.reshape(B, 1, N)          # 1 = valid key
    m_col = pm.reshape(B, N, 1)
    return transformer_encoder_stack(x, cond, kpm, m_col,
                                     params["enc_stack"],
                                     params["encoder_last_saln"],
                                     cfg_enc.encoder_head)


def variance_predictor(x, mask, ref_emb, ref_mask, params, vcfg):
    """Shared body of Duration/Pitch predictor: cross-attn + conv stack."""
    B, T, _ = x.shape
    ref = jnp.transpose(ref_emb, (0, 2, 1))                        # (B, Tr, d)
    Tr = ref.shape[1]
    ref_kpm = ref_mask.astype(F32).reshape(B, 1, Tr)               # 1 = valid
    m = mask.astype(F32) if mask is not None else jnp.ones((B, T), F32)
    m_col = m.reshape(B, T, 1)
    n_layers = vcfg.conv_layers
    for idx in range(n_layers):
        p = dict(params["layers"][idx])
        has_cattn = (idx % vcfg.cross_attn_per_layer == 0)
        has_out = (idx == n_layers - 1)
        if has_out:
            p["out_w"] = params["out_w"]
            p["out_b"] = params["out_b"]
        x = vp_layer(x, m_col, ref, ref_kpm, p, vcfg, has_cattn, has_out)
        # dropout is a no-op (eval mode)
    return x[..., 0]                                               # (B, T)


def length_regulator(x, duration, max_len):
    """Expand phones into frames by duration (repeat-interleave + zero pad)."""
    # TODO(synk): data-dependent gather kept in plain JAX (no static-tile Pallas form).
    B, N, d = x.shape
    mel_len = jnp.sum(duration, axis=1)
    cum = jnp.cumsum(duration, axis=1)
    t = jnp.arange(max_len)
    idx = jnp.sum(cum[:, None, :] <= t[None, :, None], axis=-1)
    idx = jnp.clip(idx, 0, N - 1)
    out = jnp.take_along_axis(x, idx[:, :, None], axis=1)
    valid = (t[None, :] < mel_len[:, None])
    out = out * valid[:, :, None].astype(x.dtype)
    return out, mel_len


# ----------------------------------------------------------------------------
# PriorEncoder forward
# ----------------------------------------------------------------------------

def prior_encoder_forward(params, cfg, phone_id, duration=None, pitch=None,
                          phone_mask=None, mask=None, ref_emb=None,
                          ref_mask=None, is_inference=False, flow=False):
    if flow:
        # TODO(synk): flow=True chunked look-ahead (Python block loop) not implemented.
        raise NotImplementedError("flow=True path not implemented")

    ref_emb_t = jnp.transpose(ref_emb, (0, 2, 1))                  # (B, T', d)
    x = transformer_encoder(params, cfg.encoder, phone_id, phone_mask, ref_emb_t)

    dur_pred_log = variance_predictor(x, phone_mask, ref_emb, ref_mask,
                                      params["duration_predictor"],
                                      cfg.duration_predictor)
    dur_pred = jnp.exp(dur_pred_log) - 1.0
    dur_pred_round = jnp.maximum(jnp.round(dur_pred), 0.0).astype(jnp.int32)

    if is_inference or duration is None:
        # TODO(synk): int() on a traced value -> inference path is eager-only (not jit-able).
        max_len = int(jnp.max(jnp.sum(dur_pred_round, axis=1)))
        x, mel_len = length_regulator(x, dur_pred_round, max_len)
    else:
        x, mel_len = length_regulator(x, duration, pitch.shape[1])

    pitch_pred_log = variance_predictor(x, mask, ref_emb, ref_mask,
                                        params["pitch_predictor"],
                                        cfg.pitch_predictor)

    if is_inference or pitch is None:
        pitch_tokens = jnp.searchsorted(params["pitch_bins"],
                                        jnp.exp(pitch_pred_log), side="left")
    else:
        pitch_tokens = jnp.searchsorted(params["pitch_bins"], pitch, side="left")
    pitch_embedding = params["pitch_emb"][pitch_tokens]            # (B, T, d)

    B, T, d = x.shape
    if (not is_inference) and mask is not None:
        m_col = mask.astype(F32).reshape(B, T, 1)
    else:
        m_col = jnp.ones((B, T, 1), F32)
    x = add_pitch_mask(x, pitch_embedding.astype(F32), m_col)

    return {
        "dur_pred_round": dur_pred_round,
        "dur_pred_log": dur_pred_log,
        "dur_pred": dur_pred,
        "pitch_pred_log": pitch_pred_log,
        "pitch_token": pitch_tokens,
        "mel_len": mel_len,
        "prior_out": x,
    }


# ----------------------------------------------------------------------------
# Deterministic parameter init
# ----------------------------------------------------------------------------

def init_params(key, cfg):
    d = cfg.encoder.encoder_hidden
    keys = iter(jax.random.split(key, 512))

    def nrm(shape, std=0.02):
        return std * jax.random.normal(next(keys), shape, F32)

    def mha_params(dm, heads):
        dh = dm // heads
        return {"wq": nrm((heads, dm, dh)), "bq": jnp.zeros((heads, 1, dh), F32),
                "wk": nrm((heads, dm, dh)), "bk": jnp.zeros((heads, 1, dh), F32),
                "wv": nrm((heads, dm, dh)), "bv": jnp.zeros((heads, 1, dh), F32),
                "wo": nrm((heads, dh, dm)), "bo": jnp.zeros((1, dm), F32)}

    def saln_params(dm):
        # stacked gamma/beta projections: w (2, dm, dm), b (2, 1, dm)
        return {"w": nrm((2, dm, dm)),
                "b": jnp.stack([jnp.ones((1, dm), F32),
                                jnp.zeros((1, dm), F32)])}

    params = {}
    emb = 1e-5 * jax.random.normal(next(keys), (cfg.vocab_size, d), F32)
    params["emb"] = emb.at[0].set(0.0)                 # padding_idx = 0

    ffn = cfg.encoder.conv_filter_size
    enc_layers = []
    for _ in range(cfg.encoder.encoder_layer):
        s1, s2 = saln_params(d), saln_params(d)
        layer = {"saln1_w": s1["w"], "saln1_b": s1["b"],
                 "saln2_w": s2["w"], "saln2_b": s2["b"],
                 "ffn_w1": nrm((d, ffn)), "ffn_b1": jnp.zeros((1, ffn), F32),
                 "ffn_w2": nrm((ffn, d)), "ffn_b2": jnp.zeros((1, d), F32)}
        layer.update(mha_params(d, cfg.encoder.encoder_head))
        enc_layers.append(layer)
    # Stack per-layer weights on a leading layer axis for VMEM streaming.
    params["enc_stack"] = {k: jnp.stack([lp[k] for lp in enc_layers])
                           for k in enc_layers[0]}
    params["encoder_last_saln"] = saln_params(d)

    def vp_params(vcfg):
        layers = []
        for idx in range(vcfg.conv_layers):
            cin = vcfg.input_size if idx == 0 else vcfg.filter_size
            layer = {
                "conv_w": nrm((vcfg.kernel_size, cin, vcfg.filter_size)),
                "conv_b": jnp.zeros((1, vcfg.filter_size), F32),
                "ln_g": jnp.ones((1, vcfg.filter_size), F32),
                "ln_b": jnp.zeros((1, vcfg.filter_size), F32),
            }
            if idx % vcfg.cross_attn_per_layer == 0:
                layer.update(mha_params(vcfg.filter_size, vcfg.attn_head))
                layer["cattn_ln_g"] = jnp.ones((1, vcfg.filter_size), F32)
                layer["cattn_ln_b"] = jnp.zeros((1, vcfg.filter_size), F32)
            layers.append(layer)
        return {"layers": layers,
                "out_w": nrm((vcfg.filter_size, 1)),
                "out_b": jnp.zeros((1, 1), F32)}

    params["duration_predictor"] = vp_params(cfg.duration_predictor)
    params["pitch_predictor"] = vp_params(cfg.pitch_predictor)
    params["pitch_emb"] = nrm((cfg.pitch_bins_num, d))
    params["pitch_bins"] = jnp.exp(
        jnp.linspace(np.log(cfg.pitch_min), np.log(cfg.pitch_max),
                     cfg.pitch_bins_num - 1)).astype(F32)
    return params


# ----------------------------------------------------------------------------
# main
# ----------------------------------------------------------------------------

if __name__ == "__main__":
    NS = types.SimpleNamespace
    cfg = NS(
        vocab_size=32,
        pitch_min=50.0, pitch_max=1100.0, pitch_bins_num=256,
        encoder=NS(encoder_hidden=32, encoder_layer=2, encoder_head=2,
                   conv_filter_size=64),
        duration_predictor=NS(input_size=32, filter_size=32, kernel_size=3,
                              conv_layers=2, cross_attn_per_layer=2, attn_head=2),
        pitch_predictor=NS(input_size=32, filter_size=32, kernel_size=3,
                           conv_layers=2, cross_attn_per_layer=2, attn_head=2),
    )

    key = jax.random.PRNGKey(0)
    k_par, k_ph, k_pit, k_ref = jax.random.split(key, 4)

    params = init_params(k_par, cfg)

    B, N, Tr, d = 2, 8, 6, cfg.encoder.encoder_hidden

    phone_id = jax.random.randint(k_ph, (B, N), 1, cfg.vocab_size, dtype=jnp.int32)
    phone_id = phone_id.at[1, 6:].set(0)                  # pad tail of sample 1
    phone_mask = (phone_id != 0).astype(F32)              # (B, N), 0 = pad

    # fixed durations (deterministic frame count T = 15)
    duration = jnp.array([[2, 1, 3, 2, 1, 2, 3, 1],
                          [1, 2, 2, 3, 1, 2, 0, 0]], dtype=jnp.int32)
    mel_len_true = jnp.sum(duration, axis=1)
    T = int(jnp.max(mel_len_true))                        # 15

    pitch = jax.random.uniform(k_pit, (B, T), F32, 80.0, 400.0)
    mask = (jnp.arange(T)[None, :] < mel_len_true[:, None]).astype(F32)

    ref_emb = jax.random.normal(k_ref, (B, d, Tr), F32)   # (B, d, T')
    ref_mask = jnp.ones((B, Tr), F32).at[1, 5].set(0.0)

    fwd = jax.jit(functools.partial(prior_encoder_forward, params, cfg,
                                    is_inference=False, flow=False))
    out = fwd(phone_id, duration=duration, pitch=pitch, phone_mask=phone_mask,
              mask=mask, ref_emb=ref_emb, ref_mask=ref_mask)

    jax.block_until_ready(out["prior_out"])
    jax.block_until_ready(out["dur_pred_log"])
    jax.block_until_ready(out["pitch_pred_log"])

    assert out["prior_out"].shape == (B, T, d)
    assert out["dur_pred_log"].shape == (B, N)
    assert out["pitch_pred_log"].shape == (B, T)
    assert out["pitch_token"].shape == (B, T)
    assert out["mel_len"].shape == (B,)
    print("KERNEL_OK")
</pallas_src>

<mosaic_0001>
module attributes {stable_mosaic.version = 11 : i64} {
  func.func @_encoder_stack_kernel(%arg0: i32, %arg1: i32, %arg2: memref<1x8x32xf32, #tpu.memory_space<vmem>>, %arg3: memref<1x1x32xf32, #tpu.memory_space<vmem>>, %arg4: memref<1x1x8xf32, #tpu.memory_space<vmem>>, %arg5: memref<1x8x1xf32, #tpu.memory_space<vmem>>, %arg6: memref<1x2x32x32xf32, #tpu.memory_space<vmem>>, %arg7: memref<1x2x1x32xf32, #tpu.memory_space<vmem>>, %arg8: memref<1x2x32x16xf32, #tpu.memory_space<vmem>>, %arg9: memref<1x2x1x16xf32, #tpu.memory_space<vmem>>, %arg10: memref<1x2x32x16xf32, #tpu.memory_space<vmem>>, %arg11: memref<1x2x1x16xf32, #tpu.memory_space<vmem>>, %arg12: memref<1x2x32x16xf32, #tpu.memory_space<vmem>>, %arg13: memref<1x2x1x16xf32, #tpu.memory_space<vmem>>, %arg14: memref<1x2x16x32xf32, #tpu.memory_space<vmem>>, %arg15: memref<1x1x32xf32, #tpu.memory_space<vmem>>, %arg16: memref<1x2x32x32xf32, #tpu.memory_space<vmem>>, %arg17: memref<1x2x1x32xf32, #tpu.memory_space<vmem>>, %arg18: memref<1x32x64xf32, #tpu.memory_space<vmem>>, %arg19: memref<1x1x64xf32, #tpu.memory_space<vmem>>, %arg20: memref<1x64x32xf32, #tpu.memory_space<vmem>>, %arg21: memref<1x1x32xf32, #tpu.memory_space<vmem>>, %arg22: memref<2x32x32xf32, #tpu.memory_space<vmem>>, %arg23: memref<2x1x32xf32, #tpu.memory_space<vmem>>, %arg24: memref<1x8x32xf32, #tpu.memory_space<vmem>>, %arg25: memref<8x32xf32, #tpu.memory_space<vmem>>) attributes {dimension_semantics = [#tpu.dimension_semantics<parallel>, #tpu.dimension_semantics<arbitrary>], iteration_bounds = array<i64: 2, 2>, scalar_prefetch = 0 : i64, scratch_operands = 1 : i64, tpu.core_type = #tpu.core_type<tc>, window_params = [{transform_indices = @transform_0, window_bounds = array<i64: 1, 8, 32>}, {transform_indices = @transform_1, window_bounds = array<i64: 1, 1, 32>}, {transform_indices = @transform_2, window_bounds = array<i64: 1, 1, 8>}, {transform_indices = @transform_3, window_bounds = array<i64: 1, 8, 1>}, {transform_indices = @transform_4, window_bounds = array<i64: 1, 2, 32, 32>}, {transform_indices = @transform_5, window_bounds = array<i64: 1, 2, 1, 32>}, {transform_indices = @transform_6, window_bounds = array<i64: 1, 2, 32, 16>}, {transform_indices = @transform_7, window_bounds = array<i64: 1, 2, 1, 16>}, {transform_indices = @transform_8, window_bounds = array<i64: 1, 2, 32, 16>}, {transform_indices = @transform_9, window_bounds = array<i64: 1, 2, 1, 16>}, {transform_indices = @transform_10, window_bounds = array<i64: 1, 2, 32, 16>}, {transform_indices = @transform_11, window_bounds = array<i64: 1, 2, 1, 16>}, {transform_indices = @transform_12, window_bounds = array<i64: 1, 2, 16, 32>}, {transform_indices = @transform_13, window_bounds = array<i64: 1, 1, 32>}, {transform_indices = @transform_14, window_bounds = array<i64: 1, 2, 32, 32>}, {transform_indices = @transform_15, window_bounds = array<i64: 1, 2, 1, 32>}, {transform_indices = @transform_16, window_bounds = array<i64: 1, 32, 64>}, {transform_indices = @transform_17, window_bounds = array<i64: 1, 1, 64>}, {transform_indices = @transform_18, window_bounds = array<i64: 1, 64, 32>}, {transform_indices = @transform_19, window_bounds = array<i64: 1, 1, 32>}, {pipeline_mode = #tpu.pipeline_mode<synchronous>, transform_indices = @transform_20, window_bounds = array<i64: 2, 32, 32>}, {pipeline_mode = #tpu.pipeline_mode<synchronous>, transform_indices = @transform_21, window_bounds = array<i64: 2, 1, 32>}, {transform_indices = @transform_22, window_bounds = array<i64: 1, 8, 32>}]} {
    %c0_i32 = arith.constant 0 : i32
    %0 = arith.cmpi eq, %arg1, %c0_i32 : i32
    %1 = arith.extui %0 : i1 to i32
    %c0_i32_0 = arith.constant 0 : i32
    %2 = arith.cmpi ne, %1, %c0_i32_0 : i32
    scf.if %2 {
      %c0_150 = arith.constant 0 : index
      %c0_151 = arith.constant 0 : index
      %c0_152 = arith.constant 0 : index
      %220 = vector.load %arg2[%c0_150, %c0_151, %c0_152] : memref<1x8x32xf32, #tpu.memory_space<vmem>>, vector<1x8x32xf32>
      %221 = vector.shape_cast %220 : vector<1x8x32xf32> to vector<8x32xf32>
      %c0_153 = arith.constant 0 : index
      %c0_154 = arith.constant 0 : index
      %222 = vector.load %arg25[%c0_153, %c0_154] : memref<8x32xf32, #tpu.memory_space<vmem>>, vector<8x32xf32>
      tpu.vector_store %arg25[%c0_153, %c0_154], %221 {strides = array<i32>} : memref<8x32xf32, #tpu.memory_space<vmem>>, vector<8x32xf32>,
    } else {
    }
    %c0 = arith.constant 0 : index
    %c0_1 = arith.constant 0 : index
    %3 = vector.load %arg25[%c0, %c0_1] : memref<8x32xf32, #tpu.memory_space<vmem>>, vector<8x32xf32>
    %c0_2 = arith.constant 0 : index
    %c0_3 = arith.constant 0 : index
    %c0_4 = arith.constant 0 : index
    %4 = vector.load %arg3[%c0_2, %c0_3, %c0_4] : memref<1x1x32xf32, #tpu.memory_space<vmem>>, vector<1x1x32xf32>
    %5 = vector.shape_cast %4 : vector<1x1x32xf32> to vector<1x32xf32>
    %c0_5 = arith.constant 0 : index
    %c0_6 = arith.constant 0 : index
    %c0_7 = arith.constant 0 : index
    %6 = vector.load %arg4[%c0_5, %c0_6, %c0_7] : memref<1x1x8xf32, #tpu.memory_space<vmem>>, vector<1x1x8xf32>
    %7 = vector.shape_cast %6 : vector<1x1x8xf32> to vector<1x8xf32>
    %cst = arith.constant 0.000000e+00 : f32
    %8 = vector.broadcast %cst : f32 to vector<1x8xf32>
    %9 = arith.cmpf oeq, %7, %8 : vector<1x8xf32>
    %cst_8 = arith.constant -1.000000e+09 : f32
    %cst_9 = arith.constant 0.000000e+00 : f32
    %10 = vector.broadcast %cst_8 : f32 to vector<1x8xf32>
    %11 = vector.broadcast %cst_9 : f32 to vector<1x8xf32>
    %12 = arith.select %9, %10, %11 : vector<1x8xi1>, vector<1x8xf32>
    %c0_10 = arith.constant 0 : index
    %c0_11 = arith.constant 0 : index
    %c0_12 = arith.constant 0 : index
    %c0_13 = arith.constant 0 : index
    %13 = vector.load %arg6[%c0_10, %c0_11, %c0_12, %c0_13] : memref<1x2x32x32xf32, #tpu.memory_space<vmem>>, vector<1x1x32x32xf32>
    %14 = vector.shape_cast %13 : vector<1x1x32x32xf32> to vector<32x32xf32>
    %15 = arith.truncf %5 : vector<1x32xf32> to vector<1x32xbf16>
    %16 = arith.truncf %14 : vector<32x32xf32> to vector<32x32xbf16>
    %cst_14 = arith.constant dense<0.000000e+00> : vector<1x32xf32>
    %17 = tpu.matmul %15, %16, %cst_14 {dimension_numbers = #tpu.dot_dimension_numbers<[1], [0], [0], [1], [0, 0, 1, 1], [], []>} : vector<1x32xbf16>, vector<32x32xbf16>, vector<1x32xf32> -> vector<1x32xf32>
    %c0_15 = arith.constant 0 : index
    %c0_16 = arith.constant 0 : index
    %c0_17 = arith.constant 0 : index
    %c0_18 = arith.constant 0 : index
    %18 = vector.load %arg7[%c0_15, %c0_16, %c0_17, %c0_18] : memref<1x2x1x32xf32, #tpu.memory_space<vmem>>, vector<1x1x1x32xf32>
    %19 = vector.shape_cast %18 : vector<1x1x1x32xf32> to vector<1x32xf32>
    %20 = arith.addf %17, %19 : vector<1x32xf32>
    %c0_19 = arith.constant 0 : index
    %c1 = arith.constant 1 : index
    %c0_20 = arith.constant 0 : index
    %c0_21 = arith.constant 0 : index
    %21 = vector.load %arg6[%c0_19, %c1, %c0_20, %c0_21] : memref<1x2x32x32xf32, #tpu.memory_space<vmem>>, vector<1x1x32x32xf32>
    %22 = vector.shape_cast %21 : vector<1x1x32x32xf32> to vector<32x32xf32>
    %23 = arith.truncf %5 : vector<1x32xf32> to vector<1x32xbf16>
    %24 = arith.truncf %22 : vector<32x32xf32> to vector<32x32xbf16>
    %cst_22 = arith.constant dense<0.000000e+00> : vector<1x32xf32>
    %25 = tpu.matmul %23, %24, %cst_22 {dimension_numbers = #tpu.dot_dimension_numbers<[1], [0], [0], [1], [0, 0, 1, 1], [], []>} : vector<1x32xbf16>, vector<32x32xbf16>, vector<1x32xf32> -> vector<1x32xf32>
    %c0_23 = arith.constant 0 : index
    %c1_24 = arith.constant 1 : index
    %c0_25 = arith.constant 0 : index
    %c0_26 = arith.constant 0 : index
    %26 = vector.load %arg7[%c0_23, %c1_24, %c0_25, %c0_26] : memref<1x2x1x32xf32, #tpu.memory_space<vmem>>, vector<1x1x1x32xf32>
    %27 = vector.shape_cast %26 : vector<1x1x1x32xf32> to vector<1x32xf32>
    %28 = arith.addf %25, %27 : vector<1x32xf32>
    %cst_27 = arith.constant dense<0.000000e+00> : vector<8xf32>
    %29 = vector.multi_reduction <add>, %3, %cst_27 [1] : vector<8x32xf32> to vector<8xf32>
    %30 = vector.shape_cast %29 : vector<8xf32> to vector<8x1xf32>
    %cst_28 = arith.constant 3.200000e+01 : f32
    %31 = vector.broadcast %cst_28 : f32 to vector<8x1xf32>
    %32 = arith.divf %30, %31 : vector<8x1xf32>
    %33 = vector.broadcast %32 : vector<8x1xf32> to vector<8x32xf32>
    %34 = arith.subf %3, %33 : vector<8x32xf32>
    %35 = arith.mulf %34, %34 : vector<8x32xf32>
    %cst_29 = arith.constant dense<0.000000e+00> : vector<8xf32>
    %36 = vector.multi_reduction <add>, %35, %cst_29 [1] : vector<8x32xf32> to vector<8xf32>
    %37 = vector.shape_cast %36 : vector<8xf32> to vector<8x1xf32>
    %cst_30 = arith.constant 3.200000e+01 : f32
    %38 = vector.broadcast %cst_30 : f32 to vector<8x1xf32>
    %39 = arith.divf %37, %38 : vector<8x1xf32>
    %cst_31 = arith.constant 9.99999974E-6 : f32
    %40 = vector.broadcast %cst_31 : f32 to vector<8x1xf32>
    %41 = arith.addf %39, %40 : vector<8x1xf32>
    %42 = math.rsqrt %41 : vector<8x1xf32>
    %43 = vector.broadcast %42 : vector<8x1xf32> to vector<8x32xf32>
    %44 = arith.mulf %34, %43 : vector<8x32xf32>
    %45 = vector.broadcast %20 : vector<1x32xf32> to vector<8x32xf32>
    %46 = arith.mulf %44, %45 : vector<8x32xf32>
    %47 = vector.broadcast %28 : vector<1x32xf32> to vector<8x32xf32>
    %48 = arith.addf %46, %47 : vector<8x32xf32>
    %c0_32 = arith.constant 0 : index
    %c0_33 = arith.constant 0 : index
    %c0_34 = arith.constant 0 : index
    %c0_35 = arith.constant 0 : index
    %49 = vector.load %arg8[%c0_32, %c0_33, %c0_34, %c0_35] : memref<1x2x32x16xf32, #tpu.memory_space<vmem>>, vector<1x1x32x16xf32>
    %50 = vector.shape_cast %49 : vector<1x1x32x16xf32> to vector<32x16xf32>
    %51 = arith.truncf %48 : vector<8x32xf32> to vector<8x32xbf16>
    %52 = arith.truncf %50 : vector<32x16xf32> to vector<32x16xbf16>
    %cst_36 = arith.constant dense<0.000000e+00> : vector<8x16xf32>
    %53 = tpu.matmul %51, %52, %cst_36 {dimension_numbers = #tpu.dot_dimension_numbers<[1], [0], [0], [1], [0, 0, 1, 1], [], []>} : vector<8x32xbf16>, vector<32x16xbf16>, vector<8x16xf32> -> vector<8x16xf32>
    %c0_37 = arith.constant 0 : index
    %c0_38 = arith.constant 0 : index
    %c0_39 = arith.constant 0 : index
    %c0_40 = arith.constant 0 : index
    %54 = vector.load %arg9[%c0_37, %c0_38, %c0_39, %c0_40] : memref<1x2x1x16xf32, #tpu.memory_space<vmem>>, vector<1x1x1x16xf32>
    %55 = vector.shape_cast %54 : vector<1x1x1x16xf32> to vector<1x16xf32>
    %56 = vector.broadcast %55 : vector<1x16xf32> to vector<8x16xf32>
    %57 = arith.addf %53, %56 : vector<8x16xf32>
    %c0_41 = arith.constant 0 : index
    %c0_42 = arith.constant 0 : index
    %c0_43 = arith.constant 0 : index
    %c0_44 = arith.constant 0 : index
    %58 = vector.load %arg10[%c0_41, %c0_42, %c0_43, %c0_44] : memref<1x2x32x16xf32, #tpu.memory_space<vmem>>, vector<1x1x32x16xf32>
    %59 = vector.shape_cast %58 : vector<1x1x32x16xf32> to vector<32x16xf32>
    %60 = arith.truncf %48 : vector<8x32xf32> to vector<8x32xbf16>
    %61 = arith.truncf %59 : vector<32x16xf32> to vector<32x16xbf16>
    %cst_45 = arith.constant dense<0.000000e+00> : vector<8x16xf32>
    %62 = tpu.matmul %60, %61, %cst_45 {dimension_numbers = #tpu.dot_dimension_numbers<[1], [0], [0], [1], [0, 0, 1, 1], [], []>} : vector<8x32xbf16>, vector<32x16xbf16>, vector<8x16xf32> -> vector<8x16xf32>
    %c0_46 = arith.constant 0 : index
    %c0_47 = arith.constant 0 : index
    %c0_48 = arith.constant 0 : index
    %c0_49 = arith.constant 0 : index
    %63 = vector.load %arg11[%c0_46, %c0_47, %c0_48, %c0_49] : memref<1x2x1x16xf32, #tpu.memory_space<vmem>>, vector<1x1x1x16xf32>
    %64 = vector.shape_cast %63 : vector<1x1x1x16xf32> to vector<1x16xf32>
    %65 = vector.broadcast %64 : vector<1x16xf32> to vector<8x16xf32>
    %66 = arith.addf %62, %65 : vector<8x16xf32>
    %c0_50 = arith.constant 0 : index
    %c0_51 = arith.constant 0 : index
    %c0_52 = arith.constant 0 : index
    %c0_53 = arith.constant 0 : index
    %67 = vector.load %arg12[%c0_50, %c0_51, %c0_52, %c0_53] : memref<1x2x32x16xf32, #tpu.memory_space<vmem>>, vector<1x1x32x16xf32>
    %68 = vector.shape_cast %67 : vector<1x1x32x16xf32> to vector<32x16xf32>
    %69 = arith.truncf %48 : vector<8x32xf32> to vector<8x32xbf16>
    %70 = arith.truncf %68 : vector<32x16xf32> to vector<32x16xbf16>
    %cst_54 = arith.constant dense<0.000000e+00> : vector<8x16xf32>
    %71 = tpu.matmul %69, %70, %cst_54 {dimension_numbers = #tpu.dot_dimension_numbers<[1], [0], [0], [1], [0, 0, 1, 1], [], []>} : vector<8x32xbf16>, vector<32x16xbf16>, vector<8x16xf32> -> vector<8x16xf32>
    %c0_55 = arith.constant 0 : index
    %c0_56 = arith.constant 0 : index
    %c0_57 = arith.constant 0 : index
    %c0_58 = arith.constant 0 : index
    %72 = vector.load %arg13[%c0_55, %c0_56, %c0_57, %c0_58] : memref<1x2x1x16xf32, #tpu.memory_space<vmem>>, vector<1x1x1x16xf32>
    %73 = vector.shape_cast %72 : vector<1x1x1x16xf32> to vector<1x16xf32>
    %74 = vector.broadcast %73 : vector<1x16xf32> to vector<8x16xf32>
    %75 = arith.addf %71, %74 : vector<8x16xf32>
    %76 = arith.truncf %57 : vector<8x16xf32> to vector<8x16xbf16>
    %77 = arith.truncf %66 : vector<8x16xf32> to vector<8x16xbf16>
    %cst_59 = arith.constant dense<0.000000e+00> : vector<8x8xf32>
    %78 = tpu.matmul %76, %77, %cst_59 {dimension_numbers = #tpu.dot_dimension_numbers<[1], [1], [0], [0], [0, 0, 1, 0], [], []>} : vector<8x16xbf16>, vector<8x16xbf16>, vector<8x8xf32> -> vector<8x8xf32>
    %cst_60 = arith.constant 2.500000e-01 : f32
    %79 = vector.broadcast %cst_60 : f32 to vector<8x8xf32>
    %80 = arith.mulf %78, %79 : vector<8x8xf32>
    %81 = vector.broadcast %12 : vector<1x8xf32> to vector<8x8xf32>
    %82 = arith.addf %80, %81 : vector<8x8xf32>
    %cst_61 = arith.constant dense<0xFF800000> : vector<8xf32>
    %83 = vector.multi_reduction <maximumf>, %82, %cst_61 [1] : vector<8x8xf32> to vector<8xf32>
    %84 = vector.shape_cast %83 : vector<8xf32> to vector<8x1xf32>
    %85 = vector.broadcast %84 : vector<8x1xf32> to vector<8x8xf32>
    %86 = arith.subf %82, %85 : vector<8x8xf32>
    %87 = math.exp %86 : vector<8x8xf32>
    %cst_62 = arith.constant dense<0.000000e+00> : vector<8xf32>
    %88 = vector.multi_reduction <add>, %87, %cst_62 [1] : vector<8x8xf32> to vector<8xf32>
    %89 = vector.shape_cast %88 : vector<8xf32> to vector<8x1xf32>
    %90 = tpu.reciprocal %89 {approx = true} : vector<8x1xf32> -> vector<8x1xf32>
    %91 = vector.broadcast %90 : vector<8x1xf32> to vector<8x8xf32>
    %92 = arith.mulf %87, %91 : vector<8x8xf32>
    %93 = arith.truncf %92 : vector<8x8xf32> to vector<8x8xbf16>
    %94 = arith.truncf %75 : vector<8x16xf32> to vector<8x16xbf16>
    %cst_63 = arith.constant dense<0.000000e+00> : vector<8x16xf32>
    %95 = tpu.matmul %93, %94, %cst_63 {dimension_numbers = #tpu.dot_dimension_numbers<[1], [0], [0], [1], [0, 0, 1, 1], [], []>} : vector<8x8xbf16>, vector<8x16xbf16>, vector<8x16xf32> -> vector<8x16xf32>
    %c0_64 = arith.constant 0 : index
    %c0_65 = arith.constant 0 : index
    %c0_66 = arith.constant 0 : index
    %c0_67 = arith.constant 0 : index
    %96 = vector.load %arg14[%c0_64, %c0_65, %c0_66, %c0_67] : memref<1x2x16x32xf32, #tpu.memory_space<vmem>>, vector<1x1x16x32xf32>
    %97 = vector.shape_cast %96 : vector<1x1x16x32xf32> to vector<16x32xf32>
    %98 = arith.truncf %95 : vector<8x16xf32> to vector<8x16xbf16>
    %99 = arith.truncf %97 : vector<16x32xf32> to vector<16x32xbf16>
    %cst_68 = arith.constant dense<0.000000e+00> : vector<8x32xf32>
    %100 = tpu.matmul %98, %99, %cst_68 {dimension_numbers = #tpu.dot_dimension_numbers<[1], [0], [0], [1], [0, 0, 1, 1], [], []>} : vector<8x16xbf16>, vector<16x32xbf16>, vector<8x32xf32> -> vector<8x32xf32>
    %c0_69 = arith.constant 0 : index
    %c1_70 = arith.constant 1 : index
    %c0_71 = arith.constant 0 : index
    %c0_72 = arith.constant 0 : index
    %101 = vector.load %arg8[%c0_69, %c1_70, %c0_71, %c0_72] : memref<1x2x32x16xf32, #tpu.memory_space<vmem>>, vector<1x1x32x16xf32>
    %102 = vector.shape_cast %101 : vector<1x1x32x16xf32> to vector<32x16xf32>
    %103 = arith.truncf %48 : vector<8x32xf32> to vector<8x32xbf16>
    %104 = arith.truncf %102 : vector<32x16xf32> to vector<32x16xbf16>
    %cst_73 = arith.constant dense<0.000000e+00> : vector<8x16xf32>
    %105 = tpu.matmul %103, %104, %cst_73 {dimension_numbers = #tpu.dot_dimension_numbers<[1], [0], [0], [1], [0, 0, 1, 1], [], []>} : vector<8x32xbf16>, vector<32x16xbf16>, vector<8x16xf32> -> vector<8x16xf32>
    %c0_74 = arith.constant 0 : index
    %c1_75 = arith.constant 1 : index
    %c0_76 = arith.constant 0 : index
    %c0_77 = arith.constant 0 : index
    %106 = vector.load %arg9[%c0_74, %c1_75, %c0_76, %c0_77] : memref<1x2x1x16xf32, #tpu.memory_space<vmem>>, vector<1x1x1x16xf32>
    %107 = vector.shape_cast %106 : vector<1x1x1x16xf32> to vector<1x16xf32>
    %108 = vector.broadcast %107 : vector<1x16xf32> to vector<8x16xf32>
    %109 = arith.addf %105, %108 : vector<8x16xf32>
    %c0_78 = arith.constant 0 : index
    %c1_79 = arith.constant 1 : index
    %c0_80 = arith.constant 0 : index
    %c0_81 = arith.constant 0 : index
    %110 = vector.load %arg10[%c0_78, %c1_79, %c0_80, %c0_81] : memref<1x2x32x16xf32, #tpu.memory_space<vmem>>, vector<1x1x32x16xf32>
    %111 = vector.shape_cast %110 : vector<1x1x32x16xf32> to vector<32x16xf32>
    %112 = arith.truncf %48 : vector<8x32xf32> to vector<8x32xbf16>
    %113 = arith.truncf %111 : vector<32x16xf32> to vector<32x16xbf16>
    %cst_82 = arith.constant dense<0.000000e+00> : vector<8x16xf32>
    %114 = tpu.matmul %112, %113, %cst_82 {dimension_numbers = #tpu.dot_dimension_numbers<[1], [0], [0], [1], [0, 0, 1, 1], [], []>} : vector<8x32xbf16>, vector<32x16xbf16>, vector<8x16xf32> -> vector<8x16xf32>
    %c0_83 = arith.constant 0 : index
    %c1_84 = arith.constant 1 : index
    %c0_85 = arith.constant 0 : index
    %c0_86 = arith.constant 0 : index
    %115 = vector.load %arg11[%c0_83, %c1_84, %c0_85, %c0_86] : memref<1x2x1x16xf32, #tpu.memory_space<vmem>>, vector<1x1x1x16xf32>
    %116 = vector.shape_cast %115 : vector<1x1x1x16xf32> to vector<1x16xf32>
    %117 = vector.broadcast %116 : vector<1x16xf32> to vector<8x16xf32>
    %118 = arith.addf %114, %117 : vector<8x16xf32>
    %c0_87 = arith.constant 0 : index
    %c1_88 = arith.constant 1 : index
    %c0_89 = arith.constant 0 : index
    %c0_90 = arith.constant 0 : index
    %119 = vector.load %arg12[%c0_87, %c1_88, %c0_89, %c0_90] : memref<1x2x32x16xf32, #tpu.memory_space<vmem>>, vector<1x1x32x16xf32>
    %120 = vector.shape_cast %119 : vector<1x1x32x16xf32> to vector<32x16xf32>
    %121 = arith.truncf %48 : vector<8x32xf32> to vector<8x32xbf16>
    %122 = arith.truncf %120 : vector<32x16xf32> to vector<32x16xbf16>
    %cst_91 = arith.constant dense<0.000000e+00> : vector<8x16xf32>
    %123 = tpu.matmul %121, %122, %cst_91 {dimension_numbers = #tpu.dot_dimension_numbers<[1], [0], [0], [1], [0, 0, 1, 1], [], []>} : vector<8x32xbf16>, vector<32x16xbf16>, vector<8x16xf32> -> vector<8x16xf32>
    %c0_92 = arith.constant 0 : index
    %c1_93 = arith.constant 1 : index
    %c0_94 = arith.constant 0 : index
    %c0_95 = arith.constant 0 : index
    %124 = vector.load %arg13[%c0_92, %c1_93, %c0_94, %c0_95] : memref<1x2x1x16xf32, #tpu.memory_space<vmem>>, vector<1x1x1x16xf32>
    %125 = vector.shape_cast %124 : vector<1x1x1x16xf32> to vector<1x16xf32>
    %126 = vector.broadcast %125 : vector<1x16xf32> to vector<8x16xf32>
    %127 = arith.addf %123, %126 : vector<8x16xf32>
    %128 = arith.truncf %109 : vector<8x16xf32> to vector<8x16xbf16>
    %129 = arith.truncf %118 : vector<8x16xf32> to vector<8x16xbf16>
    %cst_96 = arith.constant dense<0.000000e+00> : vector<8x8xf32>
    %130 = tpu.matmul %128, %129, %cst_96 {dimension_numbers = #tpu.dot_dimension_numbers<[1], [1], [0], [0], [0, 0, 1, 0], [], []>} : vector<8x16xbf16>, vector<8x16xbf16>, vector<8x8xf32> -> vector<8x8xf32>
    %cst_97 = arith.constant 2.500000e-01 : f32
    %131 = vector.broadcast %cst_97 : f32 to vector<8x8xf32>
    %132 = arith.mulf %130, %131 : vector<8x8xf32>
    %133 = vector.broadcast %12 : vector<1x8xf32> to vector<8x8xf32>
    %134 = arith.addf %132, %133 : vector<8x8xf32>
    %cst_98 = arith.constant dense<0xFF800000> : vector<8xf32>
    %135 = vector.multi_reduction <maximumf>, %134, %cst_98 [1] : vector<8x8xf32> to vector<8xf32>
    %136 = vector.shape_cast %135 : vector<8xf32> to vector<8x1xf32>
    %137 = vector.broadcast %136 : vector<8x1xf32> to vector<8x8xf32>
    %138 = arith.subf %134, %137 : vector<8x8xf32>
    %139 = math.exp %138 : vector<8x8xf32>
    %cst_99 = arith.constant dense<0.000000e+00> : vector<8xf32>
    %140 = vector.multi_reduction <add>, %139, %cst_99 [1] : vector<8x8xf32> to vector<8xf32>
    %141 = vector.shape_cast %140 : vector<8xf32> to vector<8x1xf32>
    %142 = tpu.reciprocal %141 {approx = true} : vector<8x1xf32> -> vector<8x1xf32>
    %143 = vector.broadcast %142 : vector<8x1xf32> to vector<8x8xf32>
    %144 = arith.mulf %139, %143 : vector<8x8xf32>
    %145 = arith.truncf %144 : vector<8x8xf32> to vector<8x8xbf16>
    %146 = arith.truncf %127 : vector<8x16xf32> to vector<8x16xbf16>
    %cst_100 = arith.constant dense<0.000000e+00> : vector<8x16xf32>
    %147 = tpu.matmul %145, %146, %cst_100 {dimension_numbers = #tpu.dot_dimension_numbers<[1], [0], [0], [1], [0, 0, 1, 1], [], []>} : vector<8x8xbf16>, vector<8x16xbf16>, vector<8x16xf32> -> vector<8x16xf32>
    %c0_101 = arith.constant 0 : index
    %c1_102 = arith.constant 1 : index
    %c0_103 = arith.constant 0 : index
    %c0_104 = arith.constant 0 : index
    %148 = vector.load %arg14[%c0_101, %c1_102, %c0_103, %c0_104] : memref<1x2x16x32xf32, #tpu.memory_space<vmem>>, vector<1x1x16x32xf32>
    %149 = vector.shape_cast %148 : vector<1x1x16x32xf32> to vector<16x32xf32>
    %150 = arith.truncf %147 : vector<8x16xf32> to vector<8x16xbf16>
    %151 = arith.truncf %149 : vector<16x32xf32> to vector<16x32xbf16>
    %cst_105 = arith.constant dense<0.000000e+00> : vector<8x32xf32>
    %152 = tpu.matmul %150, %151, %cst_105 {dimension_numbers = #tpu.dot_dimension_numbers<[1], [0], [0], [1], [0, 0, 1, 1], [], []>} : vector<8x16xbf16>, vector<16x32xbf16>, vector<8x32xf32> -> vector<8x32xf32>
    %153 = arith.addf %100, %152 : vector<8x32xf32>
    %154 = arith.addf %3, %153 : vector<8x32xf32>
    %c0_106 = arith.constant 0 : index
    %c0_107 = arith.constant 0 : index
    %c0_108 = arith.constant 0 : index
    %155 = vector.load %arg15[%c0_106, %c0_107, %c0_108] : memref<1x1x32xf32, #tpu.memory_space<vmem>>, vector<1x1x32xf32>
    %156 = vector.shape_cast %155 : vector<1x1x32xf32> to vector<1x32xf32>
    %157 = vector.broadcast %156 : vector<1x32xf32> to vector<8x32xf32>
    %158 = arith.addf %154, %157 : vector<8x32xf32>
    %c0_109 = arith.constant 0 : index
    %c0_110 = arith.constant 0 : index
    %c0_111 = arith.constant 0 : index
    %c0_112 = arith.constant 0 : index
    %159 = vector.load %arg16[%c0_109, %c0_110, %c0_111, %c0_112] : memref<1x2x32x32xf32, #tpu.memory_space<vmem>>, vector<1x1x32x32xf32>
    %160 = vector.shape_cast %159 : vector<1x1x32x32xf32> to vector<32x32xf32>
    %161 = arith.truncf %5 : vector<1x32xf32> to vector<1x32xbf16>
    %162 = arith.truncf %160 : vector<32x32xf32> to vector<32x32xbf16>
    %cst_113 = arith.constant dense<0.000000e+00> : vector<1x32xf32>
    %163 = tpu.matmul %161, %162, %cst_113 {dimension_numbers = #tpu.dot_dimension_numbers<[1], [0], [0], [1], [0, 0, 1, 1], [], []>} : vector<1x32xbf16>, vector<32x32xbf16>, vector<1x32xf32> -> vector<1x32xf32>
    %c0_114 = arith.constant 0 : index
    %c0_115 = arith.constant 0 : index
    %c0_116 = arith.constant 0 : index
    %c0_117 = arith.constant 0 : index
    %164 = vector.load %arg17[%c0_114, %c0_115, %c0_116, %c0_117] : memref<1x2x1x32xf32, #tpu.memory_space<vmem>>, vector<1x1x1x32xf32>
    %165 = vector.shape_cast %164 : vector<1x1x1x32xf32> to vector<1x32xf32>
    %166 = arith.addf %163, %165 : vector<1x32xf32>
    %c0_118 = arith.constant 0 : index
    %c1_119 = arith.constant 1 : index
    %c0_120 = arith.constant 0 : index
    %c0_121 = arith.constant 0 : index
    %167 = vector.load %arg16[%c0_118, %c1_119, %c0_120, %c0_121] : memref<1x2x32x32xf32, #tpu.memory_space<vmem>>, vector<1x1x32x32xf32>
    %168 = vector.shape_cast %167 : vector<1x1x32x32xf32> to vector<32x32xf32>
    %169 = arith.truncf %5 : vector<1x32xf32> to vector<1x32xbf16>
    %170 = arith.truncf %168 : vector<32x32xf32> to vector<32x32xbf16>
    %cst_122 = arith.constant dense<0.000000e+00> : vector<1x32xf32>
    %171 = tpu.matmul %169, %170, %cst_122 {dimension_numbers = #tpu.dot_dimension_numbers<[1], [0], [0], [1], [0, 0, 1, 1], [], []>} : vector<1x32xbf16>, vector<32x32xbf16>, vector<1x32xf32> -> vector<1x32xf32>
    %c0_123 = arith.constant 0 : index
    %c1_124 = arith.constant 1 : index
    %c0_125 = arith.constant 0 : index
    %c0_126 = arith.constant 0 : index
    %172 = vector.load %arg17[%c0_123, %c1_124, %c0_125, %c0_126] : memref<1x2x1x32xf32, #tpu.memory_space<vmem>>, vector<1x1x1x32xf32>
    %173 = vector.shape_cast %172 : vector<1x1x1x32xf32> to vector<1x32xf32>
    %174 = arith.addf %171, %173 : vector<1x32xf32>
    %cst_127 = arith.constant dense<0.000000e+00> : vector<8xf32>
    %175 = vector.multi_reduction <add>, %158, %cst_127 [1] : vector<8x32xf32> to vector<8xf32>
    %176 = vector.shape_cast %175 : vector<8xf32> to vector<8x1xf32>
    %cst_128 = arith.constant 3.200000e+01 : f32
    %177 = vector.broadcast %cst_128 : f32 to vector<8x1xf32>
    %178 = arith.divf %176, %177 : vector<8x1xf32>
    %179 = vector.broadcast %178 : vector<8x1xf32> to vector<8x32xf32>
    %180 = arith.subf %158, %179 : vector<8x32xf32>
    %181 = arith.mulf %180, %180 : vector<8x32xf32>
    %cst_129 = arith.constant dense<0.000000e+00> : vector<8xf32>
    %182 = vector.multi_reduction <add>, %181, %cst_129 [1] : vector<8x32xf32> to vector<8xf32>
    %183 = vector.shape_cast %182 : vector<8xf32> to vector<8x1xf32>
    %cst_130 = arith.constant 3.200000e+01 : f32
    %184 = vector.broadcast %cst_130 : f32 to vector<8x1xf32>
    %185 = arith.divf %183, %184 : vector<8x1xf32>
    %cst_131 = arith.constant 9.99999974E-6 : f32
    %186 = vector.broadcast %cst_131 : f32 to vector<8x1xf32>
    %187 = arith.addf %185, %186 : vector<8x1xf32>
    %188 = math.rsqrt %187 : vector<8x1xf32>
    %189 = vector.broadcast %188 : vector<8x1xf32> to vector<8x32xf32>
    %190 = arith.mulf %180, %189 : vector<8x32xf32>
    %191 = vector.broadcast %166 : vector<1x32xf32> to vector<8x32xf32>
    %192 = arith.mulf %190, %191 : vector<8x32xf32>
    %193 = vector.broadcast %174 : vector<1x32xf32> to vector<8x32xf32>
    %194 = arith.addf %192, %193 : vector<8x32xf32>
    %c0_132 = arith.constant 0 : index
    %c0_133 = arith.constant 0 : index
    %c0_134 = arith.constant 0 : index
    %195 = vector.load %arg18[%c0_132, %c0_133, %c0_134] : memref<1x32x64xf32, #tpu.memory_space<vmem>>, vector<1x32x64xf32>
    %196 = vector.shape_cast %195 : vector<1x32x64xf32> to vector<32x64xf32>
    %197 = arith.truncf %194 : vector<8x32xf32> to vector<8x32xbf16>
    %198 = arith.truncf %196 : vector<32x64xf32> to vector<32x64xbf16>
    %cst_135 = arith.constant dense<0.000000e+00> : vector<8x64xf32>
    %199 = tpu.matmul %197, %198, %cst_135 {dimension_numbers = #tpu.dot_dimension_numbers<[1], [0], [0], [1], [0, 0, 1, 1], [], []>} : vector<8x32xbf16>, vector<32x64xbf16>, vector<8x64xf32> -> vector<8x64xf32>
    %c0_136 = arith.constant 0 : index
    %c0_137 = arith.constant 0 : index
    %c0_138 = arith.constant 0 : index
    %200 = vector.load %arg19[%c0_136, %c0_137, %c0_138] : memref<1x1x64xf32, #tpu.memory_space<vmem>>, vector<1x1x64xf32>
    %201 = vector.shape_cast %200 : vector<1x1x64xf32> to vector<1x64xf32>
    %202 = vector.broadcast %201 : vector<1x64xf32> to vector<8x64xf32>
    %203 = arith.addf %199, %202 : vector<8x64xf32>
    %cst_139 = arith.constant 0.000000e+00 : f32
    %204 = vector.broadcast %cst_139 : f32 to vector<8x64xf32>
    %205 = arith.maximumf %203, %204 : vector<8x64xf32>
    %c0_140 = arith.constant 0 : index
    %c0_141 = arith.constant 0 : index
    %c0_142 = arith.constant 0 : index
    %206 = vector.load %arg20[%c0_140, %c0_141, %c0_142] : memref<1x64x32xf32, #tpu.memory_space<vmem>>, vector<1x64x32xf32>
    %207 = vector.shape_cast %206 : vector<1x64x32xf32> to vector<64x32xf32>
    %208 = arith.truncf %205 : vector<8x64xf32> to vector<8x64xbf16>
    %209 = arith.truncf %207 : vector<64x32xf32> to vector<64x32xbf16>
    %cst_143 = arith.constant dense<0.000000e+00> : vector<8x32xf32>
    %210 = tpu.matmul %208, %209, %cst_143 {dimension_numbers = #tpu.dot_dimension_numbers<[1], [0], [0], [1], [0, 0, 1, 1], [], []>} : vector<8x64xbf16>, vector<64x32xbf16>, vector<8x32xf32> -> vector<8x32xf32>
    %211 = arith.addf %158, %210 : vector<8x32xf32>
    %c0_144 = arith.constant 0 : index
    %c0_145 = arith.constant 0 : index
    %c0_146 = arith.constant 0 : index
    %212 = vector.load %arg21[%c0_144, %c0_145, %c0_146] : memref<1x1x32xf32, #tpu.memory_space<vmem>>, vector<1x1x32xf32>
    %213 = vector.shape_cast %212 : vector<1x1x32xf32> to vector<1x32xf32>
    %214 = vector.broadcast %213 : vector<1x32xf32> to vector<8x32xf32>
    %215 = arith.addf %211, %214 : vector<8x32xf32>
    %c0_147 = arith.constant 0 : index
    %c0_148 = arith.constant 0 : index
    %216 = vector.load %arg25[%c0_147, %c0_148] : memref<8x32xf32, #tpu.memory_space<vmem>>, vector<8x32xf32>
    tpu.vector_store %arg25[%c0_147, %c0_148], %215 {strides = array<i32>} : memref<8x32xf32, #tpu.memory_space<vmem>>, vector<8x32xf32>,
    %c1_i32 = arith.constant 1 : i32
    %217 = arith.cmpi eq, %arg1, %c1_i32 : i32
    %218 = arith.extui %217 : i1 to i32
    %c0_i32_149 = arith.constant 0 : i32
    %219 = arith.cmpi ne, %218, %c0_i32_149 : i32
    scf.if %219 {
      %c0_150 = arith.constant 0 : index
      %c0_151 = arith.constant 0 : index
      %c0_152 = arith.constant 0 : index
      %220 = vector.load %arg22[%c0_150, %c0_151, %c0_152] : memref<2x32x32xf32, #tpu.memory_space<vmem>>, vector<1x32x32xf32>
      %221 = vector.shape_cast %220 : vector<1x32x32xf32> to vector<32x32xf32>
      %222 = arith.truncf %5 : vector<1x32xf32> to vector<1x32xbf16>
      %223 = arith.truncf %221 : vector<32x32xf32> to vector<32x32xbf16>
      %cst_153 = arith.constant dense<0.000000e+00> : vector<1x32xf32>
      %224 = tpu.matmul %222, %223, %cst_153 {dimension_numbers = #tpu.dot_dimension_numbers<[1], [0], [0], [1], [0, 0, 1, 1], [], []>} : vector<1x32xbf16>, vector<32x32xbf16>, vector<1x32xf32> -> vector<1x32xf32>
      %c0_154 = arith.constant 0 : index
      %c0_155 = arith.constant 0 : index
      %c0_156 = arith.constant 0 : index
      %225 = vector.load %arg23[%c0_154, %c0_155, %c0_156] : memref<2x1x32xf32, #tpu.memory_space<vmem>>, vector<1x1x32xf32>
      %226 = vector.shape_cast %225 : vector<1x1x32xf32> to vector<1x32xf32>
      %227 = arith.addf %224, %226 : vector<1x32xf32>
      %c1_157 = arith.constant 1 : index
      %c0_158 = arith.constant 0 : index
      %c0_159 = arith.constant 0 : index
      %228 = vector.load %arg22[%c1_157, %c0_158, %c0_159] : memref<2x32x32xf32, #tpu.memory_space<vmem>>, vector<1x32x32xf32>
      %229 = vector.shape_cast %228 : vector<1x32x32xf32> to vector<32x32xf32>
      %230 = arith.truncf %5 : vector<1x32xf32> to vector<1x32xbf16>
      %231 = arith.truncf %229 : vector<32x32xf32> to vector<32x32xbf16>
      %cst_160 = arith.constant dense<0.000000e+00> : vector<1x32xf32>
      %232 = tpu.matmul %230, %231, %cst_160 {dimension_numbers = #tpu.dot_dimension_numbers<[1], [0], [0], [1], [0, 0, 1, 1], [], []>} : vector<1x32xbf16>, vector<32x32xbf16>, vector<1x32xf32> -> vector<1x32xf32>
      %c1_161 = arith.constant 1 : index
      %c0_162 = arith.constant 0 : index
      %c0_163 = arith.constant 0 : index
      %233 = vector.load %arg23[%c1_161, %c0_162, %c0_163] : memref<2x1x32xf32, #tpu.memory_space<vmem>>, vector<1x1x32xf32>
      %234 = vector.shape_cast %233 : vector<1x1x32xf32> to vector<1x32xf32>
      %235 = arith.addf %232, %234 : vector<1x32xf32>
      %cst_164 = arith.constant dense<0.000000e+00> : vector<8xf32>
      %236 = vector.multi_reduction <add>, %215, %cst_164 [1] : vector<8x32xf32> to vector<8xf32>
      %237 = vector.shape_cast %236 : vector<8xf32> to vector<8x1xf32>
      %cst_165 = arith.constant 3.200000e+01 : f32
      %238 = vector.broadcast %cst_165 : f32 to vector<8x1xf32>
      %239 = arith.divf %237, %238 : vector<8x1xf32>
      %240 = vector.broadcast %239 : vector<8x1xf32> to vector<8x32xf32>
      %241 = arith.subf %215, %240 : vector<8x32xf32>
      %242 = arith.mulf %241, %241 : vector<8x32xf32>
      %cst_166 = arith.constant dense<0.000000e+00> : vector<8xf32>
      %243 = vector.multi_reduction <add>, %242, %cst_166 [1] : vector<8x32xf32> to vector<8xf32>
      %244 = vector.shape_cast %243 : vector<8xf32> to vector<8x1xf32>
      %cst_167 = arith.constant 3.200000e+01 : f32
      %245 = vector.broadcast %cst_167 : f32 to vector<8x1xf32>
      %246 = arith.divf %244, %245 : vector<8x1xf32>
      %cst_168 = arith.constant 9.99999974E-6 : f32
      %247 = vector.broadcast %cst_168 : f32 to vector<8x1xf32>
      %248 = arith.addf %246, %247 : vector<8x1xf32>
      %249 = math.rsqrt %248 : vector<8x1xf32>
      %250 = vector.broadcast %249 : vector<8x1xf32> to vector<8x32xf32>
      %251 = arith.mulf %241, %250 : vector<8x32xf32>
      %252 = vector.broadcast %227 : vector<1x32xf32> to vector<8x32xf32>
      %253 = arith.mulf %251, %252 : vector<8x32xf32>
      %254 = vector.broadcast %235 : vector<1x32xf32> to vector<8x32xf32>
      %255 = arith.addf %253, %254 : vector<8x32xf32>
      %c0_169 = arith.constant 0 : index
      %c0_170 = arith.constant 0 : index
      %c0_171 = arith.constant 0 : index
      %256 = vector.load %arg5[%c0_169, %c0_170, %c0_171] : memref<1x8x1xf32, #tpu.memory_space<vmem>>, vector<1x8x1xf32>
      %257 = vector.shape_cast %256 : vector<1x8x1xf32> to vector<8x1xf32>
      %258 = vector.broadcast %257 : vector<8x1xf32> to vector<8x32xf32>
      %259 = arith.mulf %255, %258 : vector<8x32xf32>
      %c0_172 = arith.constant 0 : index
      %c0_173 = arith.constant 0 : index
      %c0_174 = arith.constant 0 : index
      %260 = vector.load %arg24[%c0_172, %c0_173, %c0_174] : memref<1x8x32xf32, #tpu.memory_space<vmem>>, vector<1x8x32xf32>
      %261 = vector.shape_cast %260 : vector<1x8x32xf32> to vector<8x32xf32>
      %262 = vector.shape_cast %259 : vector<8x32xf32> to vector<1x8x32xf32>
      tpu.vector_store %arg24[%c0_172, %c0_173, %c0_174], %262 {strides = array<i32>} : memref<1x8x32xf32, #tpu.memory_space<vmem>>, vector<1x8x32xf32>,
    } else {
    }
    return
  }
  func.func @transform_0(%arg0: i32, %arg1: i32) -> (i32, i32, i32) {
    %c0_i32 = arith.constant 0 : i32
    %c0_i32_0 = arith.constant 0 : i32
    %c0_i32_1 = arith.constant 0 : i32
    return %arg0, %c0_i32, %c0_i32_0 : i32, i32, i32
  }
  func.func @transform_1(%arg0: i32, %arg1: i32) -> (i32, i32, i32) {
    %c0_i32 = arith.constant 0 : i32
    %c0_i32_0 = arith.constant 0 : i32
    %c0_i32_1 = arith.constant 0 : i32
    return %arg0, %c0_i32, %c0_i32_0 : i32, i32, i32
  }
  func.func @transform_2(%arg0: i32, %arg1: i32) -> (i32, i32, i32) {
    %c0_i32 = arith.constant 0 : i32
    %c0_i32_0 = arith.constant 0 : i32
    %c0_i32_1 = arith.constant 0 : i32
    return %arg0, %c0_i32, %c0_i32_0 : i32, i32, i32
  }
  func.func @transform_3(%arg0: i32, %arg1: i32) -> (i32, i32, i32) {
    %c0_i32 = arith.constant 0 : i32
    %c0_i32_0 = arith.constant 0 : i32
    %c0_i32_1 = arith.constant 0 : i32
    return %arg0, %c0_i32, %c0_i32_0 : i32, i32, i32
  }
  func.func @transform_4(%arg0: i32, %arg1: i32) -> (i32, i32, i32, i32) {
    %c0_i32 = arith.constant 0 : i32
    %c0_i32_0 = arith.constant 0 : i32
    %c0_i32_1 = arith.constant 0 : i32
    %c0_i32_2 = arith.constant 0 : i32
    return %arg1, %c0_i32, %c0_i32_0, %c0_i32_1 : i32, i32, i32, i32
  }
  func.func @transform_5(%arg0: i32, %arg1: i32) -> (i32, i32, i32, i32) {
    %c0_i32 = arith.constant 0 : i32
    %c0_i32_0 = arith.constant 0 : i32
    %c0_i32_1 = arith.constant 0 : i32
    %c0_i32_2 = arith.constant 0 : i32
    return %arg1, %c0_i32, %c0_i32_0, %c0_i32_1 : i32, i32, i32, i32
  }
  func.func @transform_6(%arg0: i32, %arg1: i32) -> (i32, i32, i32, i32) {
    %c0_i32 = arith.constant 0 : i32
    %c0_i32_0 = arith.constant 0 : i32
    %c0_i32_1 = arith.constant 0 : i32
    %c0_i32_2 = arith.constant 0 : i32
    return %arg1, %c0_i32, %c0_i32_0, %c0_i32_1 : i32, i32, i32, i32
  }
  func.func @transform_7(%arg0: i32, %arg1: i32) -> (i32, i32, i32, i32) {
    %c0_i32 = arith.constant 0 : i32
    %c0_i32_0 = arith.constant 0 : i32
    %c0_i32_1 = arith.constant 0 : i32
    %c0_i32_2 = arith.constant 0 : i32
    return %arg1, %c0_i32, %c0_i32_0, %c0_i32_1 : i32, i32, i32, i32
  }
  func.func @transform_8(%arg0: i32, %arg1: i32) -> (i32, i32, i32, i32) {
    %c0_i32 = arith.constant 0 : i32
    %c0_i32_0 = arith.constant 0 : i32
    %c0_i32_1 = arith.constant 0 : i32
    %c0_i32_2 = arith.constant 0 : i32
    return %arg1, %c0_i32, %c0_i32_0, %c0_i32_1 : i32, i32, i32, i32
  }
  func.func @transform_9(%arg0: i32, %arg1: i32) -> (i32, i32, i32, i32) {
    %c0_i32 = arith.constant 0 : i32
    %c0_i32_0 = arith.constant 0 : i32
    %c0_i32_1 = arith.constant 0 : i32
    %c0_i32_2 = arith.constant 0 : i32
    return %arg1, %c0_i32, %c0_i32_0, %c0_i32_1 : i32, i32, i32, i32
  }
  func.func @transform_10(%arg0: i32, %arg1: i32) -> (i32, i32, i32, i32) {
    %c0_i32 = arith.constant 0 : i32
    %c0_i32_0 = arith.constant 0 : i32
    %c0_i32_1 = arith.constant 0 : i32
    %c0_i32_2 = arith.constant 0 : i32
    return %arg1, %c0_i32, %c0_i32_0, %c0_i32_1 : i32, i32, i32, i32
  }
  func.func @transform_11(%arg0: i32, %arg1: i32) -> (i32, i32, i32, i32) {
    %c0_i32 = arith.constant 0 : i32
    %c0_i32_0 = arith.constant 0 : i32
    %c0_i32_1 = arith.constant 0 : i32
    %c0_i32_2 = arith.constant 0 : i32
    return %arg1, %c0_i32, %c0_i32_0, %c0_i32_1 : i32, i32, i32, i32
  }
  func.func @transform_12(%arg0: i32, %arg1: i32) -> (i32, i32, i32, i32) {
    %c0_i32 = arith.constant 0 : i32
    %c0_i32_0 = arith.constant 0 : i32
    %c0_i32_1 = arith.constant 0 : i32
    %c0_i32_2 = arith.constant 0 : i32
    return %arg1, %c0_i32, %c0_i32_0, %c0_i32_1 : i32, i32, i32, i32
  }
  func.func @transform_13(%arg0: i32, %arg1: i32) -> (i32, i32, i32) {
    %c0_i32 = arith.constant 0 : i32
    %c0_i32_0 = arith.constant 0 : i32
    %c0_i32_1 = arith.constant 0 : i32
    return %arg1, %c0_i32, %c0_i32_0 : i32, i32, i32
  }
  func.func @transform_14(%arg0: i32, %arg1: i32) -> (i32, i32, i32, i32) {
    %c0_i32 = arith.constant 0 : i32
    %c0_i32_0 = arith.constant 0 : i32
    %c0_i32_1 = arith.constant 0 : i32
    %c0_i32_2 = arith.constant 0 : i32
    return %arg1, %c0_i32, %c0_i32_0, %c0_i32_1 : i32, i32, i32, i32
  }
  func.func @transform_15(%arg0: i32, %arg1: i32) -> (i32, i32, i32, i32) {
    %c0_i32 = arith.constant 0 : i32
    %c0_i32_0 = arith.constant 0 : i32
    %c0_i32_1 = arith.constant 0 : i32
    %c0_i32_2 = arith.constant 0 : i32
    return %arg1, %c0_i32, %c0_i32_0, %c0_i32_1 : i32, i32, i32, i32
  }
  func.func @transform_16(%arg0: i32, %arg1: i32) -> (i32, i32, i32) {
    %c0_i32 = arith.constant 0 : i32
    %c0_i32_0 = arith.constant 0 : i32
    %c0_i32_1 = arith.constant 0 : i32
    return %arg1, %c0_i32, %c0_i32_0 : i32, i32, i32
  }
  func.func @transform_17(%arg0: i32, %arg1: i32) -> (i32, i32, i32) {
    %c0_i32 = arith.constant 0 : i32
    %c0_i32_0 = arith.constant 0 : i32
    %c0_i32_1 = arith.constant 0 : i32
    return %arg1, %c0_i32, %c0_i32_0 : i32, i32, i32
  }
  func.func @transform_18(%arg0: i32, %arg1: i32) -> (i32, i32, i32) {
    %c0_i32 = arith.constant 0 : i32
    %c0_i32_0 = arith.constant 0 : i32
    %c0_i32_1 = arith.constant 0 : i32
    return %arg1, %c0_i32, %c0_i32_0 : i32, i32, i32
  }
  func.func @transform_19(%arg0: i32, %arg1: i32) -> (i32, i32, i32) {
    %c0_i32 = arith.constant 0 : i32
    %c0_i32_0 = arith.constant 0 : i32
    %c0_i32_1 = arith.constant 0 : i32
    return %arg1, %c0_i32, %c0_i32_0 : i32, i32, i32
  }
  func.func @transform_20(%arg0: i32, %arg1: i32) -> (i32, i32, i32) {
    %c0_i32 = arith.constant 0 : i32
    %c0_i32_0 = arith.constant 0 : i32
    %c0_i32_1 = arith.constant 0 : i32
    %c0_i32_2 = arith.constant 0 : i32
    return %c0_i32, %c0_i32_0, %c0_i32_1 : i32, i32, i32
  }
  func.func @transform_21(%arg0: i32, %arg1: i32) -> (i32, i32, i32) {
    %c0_i32 = arith.constant 0 : i32
    %c0_i32_0 = arith.constant 0 : i32
    %c0_i32_1 = arith.constant 0 : i32
    %c0_i32_2 = arith.constant 0 : i32
    return %c0_i32, %c0_i32_0, %c0_i32_1 : i32, i32, i32
  }
  func.func @transform_22(%arg0: i32, %arg1: i32) -> (i32, i32, i32) {
    %c0_i32 = arith.constant 0 : i32
    %c0_i32_0 = arith.constant 0 : i32
    %c0_i32_1 = arith.constant 0 : i32
    return %arg0, %c0_i32, %c0_i32_0 : i32, i32, i32
  }
}

module attributes {stable_mosaic.version = 11 : i64} {
  func.func @_vp_layer_kernel(%arg0: i32, %arg1: memref<1x8x32xf32, #tpu.memory_space<vmem>>, %arg2: memref<1x8x1xf32, #tpu.memory_space<vmem>>, %arg3: memref<1x6x32xf32, #tpu.memory_space<vmem>>, %arg4: memref<1x1x6xf32, #tpu.memory_space<vmem>>, %arg5: memref<1x32xf32, #tpu.memory_space<vmem>>, %arg6: memref<1x32xf32, #tpu.memory_space<vmem>>, %arg7: memref<2x32x16xf32, #tpu.memory_space<vmem>>, %arg8: memref<2x1x16xf32, #tpu.memory_space<vmem>>, %arg9: memref<2x32x16xf32, #tpu.memory_space<vmem>>, %arg10: memref<2x1x16xf32, #tpu.memory_space<vmem>>, %arg11: memref<2x32x16xf32, #tpu.memory_space<vmem>>, %arg12: memref<2x1x16xf32, #tpu.memory_space<vmem>>, %arg13: memref<2x16x32xf32, #tpu.memory_space<vmem>>, %arg14: memref<1x32xf32, #tpu.memory_space<vmem>>, %arg15: memref<3x32x32xf32, #tpu.memory_space<vmem>>, %arg16: memref<1x32xf32, #tpu.memory_space<vmem>>, %arg17: memref<1x32xf32, #tpu.memory_space<vmem>>, %arg18: memref<1x32xf32, #tpu.memory_space<vmem>>, %arg19: memref<1x8x32xf32, #tpu.memory_space<vmem>>, %arg20: memref<10x32xf32, #tpu.memory_space<vmem>>) attributes {dimension_semantics = [#tpu.dimension_semantics<parallel>], iteration_bounds = array<i64: 2>, scalar_prefetch = 0 : i64, scratch_operands = 1 : i64, tpu.core_type = #tpu.core_type<tc>, window_params = [{transform_indices = @transform_0, window_bounds = array<i64: 1, 8, 32>}, {transform_indices = @transform_1, window_bounds = array<i64: 1, 8, 1>}, {transform_indices = @transform_2, window_bounds = array<i64: 1, 6, 32>}, {transform_indices = @transform_3, window_bounds = array<i64: 1, 1, 6>}, {pipeline_mode = #tpu.pipeline_mode<synchronous>, transform_indices = @transform_4, window_bounds = array<i64: 1, 32>}, {pipeline_mode = #tpu.pipeline_mode<synchronous>, transform_indices = @transform_5, window_bounds = array<i64: 1, 32>}, {pipeline_mode = #tpu.pipeline_mode<synchronous>, transform_indices = @transform_6, window_bounds = array<i64: 2, 32, 16>}, {pipeline_mode = #tpu.pipeline_mode<synchronous>, transform_indices = @transform_7, window_bounds = array<i64: 2, 1, 16>}, {pipeline_mode = #tpu.pipeline_mode<synchronous>, transform_indices = @transform_8, window_bounds = array<i64: 2, 32, 16>}, {pipeline_mode = #tpu.pipeline_mode<synchronous>, transform_indices = @transform_9, window_bounds = array<i64: 2, 1, 16>}, {pipeline_mode = #tpu.pipeline_mode<synchronous>, transform_indices = @transform_10, window_bounds = array<i64: 2, 32, 16>}, {pipeline_mode = #tpu.pipeline_mode<synchronous>, transform_indices = @transform_11, window_bounds = array<i64: 2, 1, 16>}, {pipeline_mode = #tpu.pipeline_mode<synchronous>, transform_indices = @transform_12, window_bounds = array<i64: 2, 16, 32>}, {pipeline_mode = #tpu.pipeline_mode<synchronous>, transform_indices = @transform_13, window_bounds = array<i64: 1, 32>}, {pipeline_mode = #tpu.pipeline_mode<synchronous>, transform_indices = @transform_14, window_bounds = array<i64: 3, 32, 32>}, {pipeline_mode = #tpu.pipeline_mode<synchronous>, transform_indices = @transform_15, window_bounds = array<i64: 1, 32>}, {pipeline_mode = #tpu.pipeline_mode<synchronous>, transform_indices = @transform_16, window_bounds = array<i64: 1, 32>}, {pipeline_mode = #tpu.pipeline_mode<synchronous>, transform_indices = @transform_17, window_bounds = array<i64: 1, 32>}, {transform_indices = @transform_18, window_bounds = array<i64: 1, 8, 32>}]} {
    %c0 = arith.constant 0 : index
    %c0_0 = arith.constant 0 : index
    %c0_1 = arith.constant 0 : index
    %0 = vector.load %arg1[%c0, %c0_0, %c0_1] : memref<1x8x32xf32, #tpu.memory_space<vmem>>, vector<1x8x32xf32>
    %1 = vector.shape_cast %0 : vector<1x8x32xf32> to vector<8x32xf32>
    %c0_2 = arith.constant 0 : index
    %c0_3 = arith.constant 0 : index
    %c0_4 = arith.constant 0 : index
    %2 = vector.load %arg2[%c0_2, %c0_3, %c0_4] : memref<1x8x1xf32, #tpu.memory_space<vmem>>, vector<1x8x1xf32>
    %3 = vector.shape_cast %2 : vector<1x8x1xf32> to vector<8x1xf32>
    %c0_5 = arith.constant 0 : index
    %c0_6 = arith.constant 0 : index
    %c0_7 = arith.constant 0 : index
    %4 = vector.load %arg3[%c0_5, %c0_6, %c0_7] : memref<1x6x32xf32, #tpu.memory_space<vmem>>, vector<1x6x32xf32>
    %5 = vector.shape_cast %4 : vector<1x6x32xf32> to vector<6x32xf32>
    %c0_8 = arith.constant 0 : index
    %c0_9 = arith.constant 0 : index
    %c0_10 = arith.constant 0 : index
    %6 = vector.load %arg4[%c0_8, %c0_9, %c0_10] : memref<1x1x6xf32, #tpu.memory_space<vmem>>, vector<1x1x6xf32>
    %7 = vector.shape_cast %6 : vector<1x1x6xf32> to vector<1x6xf32>
    %cst = arith.constant 0.000000e+00 : f32
    %8 = vector.broadcast %cst : f32 to vector<1x6xf32>
    %9 = arith.cmpf oeq, %7, %8 : vector<1x6xf32>
    %cst_11 = arith.constant -1.000000e+09 : f32
    %cst_12 = arith.constant 0.000000e+00 : f32
    %10 = vector.broadcast %cst_11 : f32 to vector<1x6xf32>
    %11 = vector.broadcast %cst_12 : f32 to vector<1x6xf32>
    %12 = arith.select %9, %10, %11 : vector<1x6xi1>, vector<1x6xf32>
    %cst_13 = arith.constant dense<0.000000e+00> : vector<8xf32>
    %13 = vector.multi_reduction <add>, %1, %cst_13 [1] : vector<8x32xf32> to vector<8xf32>
    %14 = vector.shape_cast %13 : vector<8xf32> to vector<8x1xf32>
    %cst_14 = arith.constant 3.200000e+01 : f32
    %15 = vector.broadcast %cst_14 : f32 to vector<8x1xf32>
    %16 = arith.divf %14, %15 : vector<8x1xf32>
    %17 = vector.broadcast %16 : vector<8x1xf32> to vector<8x32xf32>
    %18 = arith.subf %1, %17 : vector<8x32xf32>
    %19 = arith.mulf %18, %18 : vector<8x32xf32>
    %cst_15 = arith.constant dense<0.000000e+00> : vector<8xf32>
    %20 = vector.multi_reduction <add>, %19, %cst_15 [1] : vector<8x32xf32> to vector<8xf32>
    %21 = vector.shape_cast %20 : vector<8xf32> to vector<8x1xf32>
    %cst_16 = arith.constant 3.200000e+01 : f32
    %22 = vector.broadcast %cst_16 : f32 to vector<8x1xf32>
    %23 = arith.divf %21, %22 : vector<8x1xf32>
    %cst_17 = arith.constant 9.99999974E-6 : f32
    %24 = vector.broadcast %cst_17 : f32 to vector<8x1xf32>
    %25 = arith.addf %23, %24 : vector<8x1xf32>
    %26 = math.rsqrt %25 : vector<8x1xf32>
    %27 = vector.broadcast %26 : vector<8x1xf32> to vector<8x32xf32>
    %28 = arith.mulf %18, %27 : vector<8x32xf32>
    %c0_18 = arith.constant 0 : index
    %c0_19 = arith.constant 0 : index
    %29 = vector.load %arg5[%c0_18, %c0_19] : memref<1x32xf32, #tpu.memory_space<vmem>>, vector<1x32xf32>
    %30 = vector.broadcast %29 : vector<1x32xf32> to vector<8x32xf32>
    %31 = arith.mulf %28, %30 : vector<8x32xf32>
    %c0_20 = arith.constant 0 : index
    %c0_21 = arith.constant 0 : index
    %32 = vector.load %arg6[%c0_20, %c0_21] : memref<1x32xf32, #tpu.memory_space<vmem>>, vector<1x32xf32>
    %33 = vector.broadcast %32 : vector<1x32xf32> to vector<8x32xf32>
    %34 = arith.addf %31, %33 : vector<8x32xf32>
    %c0_22 = arith.constant 0 : index
    %c0_23 = arith.constant 0 : index
    %c0_24 = arith.constant 0 : index
    %35 = vector.load %arg7[%c0_22, %c0_23, %c0_24] : memref<2x32x16xf32, #tpu.memory_space<vmem>>, vector<1x32x16xf32>
    %36 = vector.shape_cast %35 : vector<1x32x16xf32> to vector<32x16xf32>
    %37 = arith.truncf %34 : vector<8x32xf32> to vector<8x32xbf16>
    %38 = arith.truncf %36 : vector<32x16xf32> to vector<32x16xbf16>
    %cst_25 = arith.constant dense<0.000000e+00> : vector<8x16xf32>
    %39 = tpu.matmul %37, %38, %cst_25 {dimension_numbers = #tpu.dot_dimension_numbers<[1], [0], [0], [1], [0, 0, 1, 1], [], []>} : vector<8x32xbf16>, vector<32x16xbf16>, vector<8x16xf32> -> vector<8x16xf32>
    %c0_26 = arith.constant 0 : index
    %c0_27 = arith.constant 0 : index
    %c0_28 = arith.constant 0 : index
    %40 = vector.load %arg8[%c0_26, %c0_27, %c0_28] : memref<2x1x16xf32, #tpu.memory_space<vmem>>, vector<1x1x16xf32>
    %41 = vector.shape_cast %40 : vector<1x1x16xf32> to vector<1x16xf32>
    %42 = vector.broadcast %41 : vector<1x16xf32> to vector<8x16xf32>
    %43 = arith.addf %39, %42 : vector<8x16xf32>
    %c0_29 = arith.constant 0 : index
    %c0_30 = arith.constant 0 : index
    %c0_31 = arith.constant 0 : index
    %44 = vector.load %arg9[%c0_29, %c0_30, %c0_31] : memref<2x32x16xf32, #tpu.memory_space<vmem>>, vector<1x32x16xf32>
    %45 = vector.shape_cast %44 : vector<1x32x16xf32> to vector<32x16xf32>
    %46 = arith.truncf %5 : vector<6x32xf32> to vector<6x32xbf16>
    %47 = arith.truncf %45 : vector<32x16xf32> to vector<32x16xbf16>
    %cst_32 = arith.constant dense<0.000000e+00> : vector<6x16xf32>
    %48 = tpu.matmul %46, %47, %cst_32 {dimension_numbers = #tpu.dot_dimension_numbers<[1], [0], [0], [1], [0, 0, 1, 1], [], []>} : vector<6x32xbf16>, vector<32x16xbf16>, vector<6x16xf32> -> vector<6x16xf32>
    %c0_33 = arith.constant 0 : index
    %c0_34 = arith.constant 0 : index
    %c0_35 = arith.constant 0 : index
    %49 = vector.load %arg10[%c0_33, %c0_34, %c0_35] : memref<2x1x16xf32, #tpu.memory_space<vmem>>, vector<1x1x16xf32>
    %50 = vector.shape_cast %49 : vector<1x1x16xf32> to vector<1x16xf32>
    %51 = vector.broadcast %50 : vector<1x16xf32> to vector<6x16xf32>
    %52 = arith.addf %48, %51 : vector<6x16xf32>
    %c0_36 = arith.constant 0 : index
    %c0_37 = arith.constant 0 : index
    %c0_38 = arith.constant 0 : index
    %53 = vector.load %arg11[%c0_36, %c0_37, %c0_38] : memref<2x32x16xf32, #tpu.memory_space<vmem>>, vector<1x32x16xf32>
    %54 = vector.shape_cast %53 : vector<1x32x16xf32> to vector<32x16xf32>
    %55 = arith.truncf %5 : vector<6x32xf32> to vector<6x32xbf16>
    %56 = arith.truncf %54 : vector<32x16xf32> to vector<32x16xbf16>
    %cst_39 = arith.constant dense<0.000000e+00> : vector<6x16xf32>
    %57 = tpu.matmul %55, %56, %cst_39 {dimension_numbers = #tpu.dot_dimension_numbers<[1], [0], [0], [1], [0, 0, 1, 1], [], []>} : vector<6x32xbf16>, vector<32x16xbf16>, vector<6x16xf32> -> vector<6x16xf32>
    %c0_40 = arith.constant 0 : index
    %c0_41 = arith.constant 0 : index
    %c0_42 = arith.constant 0 : index
    %58 = vector.load %arg12[%c0_40, %c0_41, %c0_42] : memref<2x1x16xf32, #tpu.memory_space<vmem>>, vector<1x1x16xf32>
    %59 = vector.shape_cast %58 : vector<1x1x16xf32> to vector<1x16xf32>
    %60 = vector.broadcast %59 : vector<1x16xf32> to vector<6x16xf32>
    %61 = arith.addf %57, %60 : vector<6x16xf32>
    %62 = arith.truncf %43 : vector<8x16xf32> to vector<8x16xbf16>
    %63 = arith.truncf %52 : vector<6x16xf32> to vector<6x16xbf16>
    %cst_43 = arith.constant dense<0.000000e+00> : vector<8x6xf32>
    %64 = tpu.matmul %62, %63, %cst_43 {dimension_numbers = #tpu.dot_dimension_numbers<[1], [1], [0], [0], [0, 0, 1, 0], [], []>} : vector<8x16xbf16>, vector<6x16xbf16>, vector<8x6xf32> -> vector<8x6xf32>
    %cst_44 = arith.constant 2.500000e-01 : f32
    %65 = vector.broadcast %cst_44 : f32 to vector<8x6xf32>
    %66 = arith.mulf %64, %65 : vector<8x6xf32>
    %67 = vector.broadcast %12 : vector<1x6xf32> to vector<8x6xf32>
    %68 = arith.addf %66, %67 : vector<8x6xf32>
    %cst_45 = arith.constant dense<0xFF800000> : vector<8xf32>
    %69 = vector.multi_reduction <maximumf>, %68, %cst_45 [1] : vector<8x6xf32> to vector<8xf32>
    %70 = vector.shape_cast %69 : vector<8xf32> to vector<8x1xf32>
    %71 = vector.broadcast %70 : vector<8x1xf32> to vector<8x6xf32>
    %72 = arith.subf %68, %71 : vector<8x6xf32>
    %73 = math.exp %72 : vector<8x6xf32>
    %cst_46 = arith.constant dense<0.000000e+00> : vector<8xf32>
    %74 = vector.multi_reduction <add>, %73, %cst_46 [1] : vector<8x6xf32> to vector<8xf32>
    %75 = vector.shape_cast %74 : vector<8xf32> to vector<8x1xf32>
    %76 = tpu.reciprocal %75 {approx = true} : vector<8x1xf32> -> vector<8x1xf32>
    %77 = vector.broadcast %76 : vector<8x1xf32> to vector<8x6xf32>
    %78 = arith.mulf %73, %77 : vector<8x6xf32>
    %79 = arith.truncf %78 : vector<8x6xf32> to vector<8x6xbf16>
    %80 = arith.truncf %61 : vector<6x16xf32> to vector<6x16xbf16>
    %cst_47 = arith.constant dense<0.000000e+00> : vector<8x16xf32>
    %81 = tpu.matmul %79, %80, %cst_47 {dimension_numbers = #tpu.dot_dimension_numbers<[1], [0], [0], [1], [0, 0, 1, 1], [], []>} : vector<8x6xbf16>, vector<6x16xbf16>, vector<8x16xf32> -> vector<8x16xf32>
    %c0_48 = arith.constant 0 : index
    %c0_49 = arith.constant 0 : index
    %c0_50 = arith.constant 0 : index
    %82 = vector.load %arg13[%c0_48, %c0_49, %c0_50] : memref<2x16x32xf32, #tpu.memory_space<vmem>>, vector<1x16x32xf32>
    %83 = vector.shape_cast %82 : vector<1x16x32xf32> to vector<16x32xf32>
    %84 = arith.truncf %81 : vector<8x16xf32> to vector<8x16xbf16>
    %85 = arith.truncf %83 : vector<16x32xf32> to vector<16x32xbf16>
    %cst_51 = arith.constant dense<0.000000e+00> : vector<8x32xf32>
    %86 = tpu.matmul %84, %85, %cst_51 {dimension_numbers = #tpu.dot_dimension_numbers<[1], [0], [0], [1], [0, 0, 1, 1], [], []>} : vector<8x16xbf16>, vector<16x32xbf16>, vector<8x32xf32> -> vector<8x32xf32>
    %c1 = arith.constant 1 : index
    %c0_52 = arith.constant 0 : index
    %c0_53 = arith.constant 0 : index
    %87 = vector.load %arg7[%c1, %c0_52, %c0_53] : memref<2x32x16xf32, #tpu.memory_space<vmem>>, vector<1x32x16xf32>
    %88 = vector.shape_cast %87 : vector<1x32x16xf32> to vector<32x16xf32>
    %89 = arith.truncf %34 : vector<8x32xf32> to vector<8x32xbf16>
    %90 = arith.truncf %88 : vector<32x16xf32> to vector<32x16xbf16>
    %cst_54 = arith.constant dense<0.000000e+00> : vector<8x16xf32>
    %91 = tpu.matmul %89, %90, %cst_54 {dimension_numbers = #tpu.dot_dimension_numbers<[1], [0], [0], [1], [0, 0, 1, 1], [], []>} : vector<8x32xbf16>, vector<32x16xbf16>, vector<8x16xf32> -> vector<8x16xf32>
    %c1_55 = arith.constant 1 : index
    %c0_56 = arith.constant 0 : index
    %c0_57 = arith.constant 0 : index
    %92 = vector.load %arg8[%c1_55, %c0_56, %c0_57] : memref<2x1x16xf32, #tpu.memory_space<vmem>>, vector<1x1x16xf32>
    %93 = vector.shape_cast %92 : vector<1x1x16xf32> to vector<1x16xf32>
    %94 = vector.broadcast %93 : vector<1x16xf32> to vector<8x16xf32>
    %95 = arith.addf %91, %94 : vector<8x16xf32>
    %c1_58 = arith.constant 1 : index
    %c0_59 = arith.constant 0 : index
    %c0_60 = arith.constant 0 : index
    %96 = vector.load %arg9[%c1_58, %c0_59, %c0_60] : memref<2x32x16xf32, #tpu.memory_space<vmem>>, vector<1x32x16xf32>
    %97 = vector.shape_cast %96 : vector<1x32x16xf32> to vector<32x16xf32>
    %98 = arith.truncf %5 : vector<6x32xf32> to vector<6x32xbf16>
    %99 = arith.truncf %97 : vector<32x16xf32> to vector<32x16xbf16>
    %cst_61 = arith.constant dense<0.000000e+00> : vector<6x16xf32>
    %100 = tpu.matmul %98, %99, %cst_61 {dimension_numbers = #tpu.dot_dimension_numbers<[1], [0], [0], [1], [0, 0, 1, 1], [], []>} : vector<6x32xbf16>, vector<32x16xbf16>, vector<6x16xf32> -> vector<6x16xf32>
    %c1_62 = arith.constant 1 : index
    %c0_63 = arith.constant 0 : index
    %c0_64 = arith.constant 0 : index
    %101 = vector.load %arg10[%c1_62, %c0_63, %c0_64] : memref<2x1x16xf32, #tpu.memory_space<vmem>>, vector<1x1x16xf32>
    %102 = vector.shape_cast %101 : vector<1x1x16xf32> to vector<1x16xf32>
    %103 = vector.broadcast %102 : vector<1x16xf32> to vector<6x16xf32>
    %104 = arith.addf %100, %103 : vector<6x16xf32>
    %c1_65 = arith.constant 1 : index
    %c0_66 = arith.constant 0 : index
    %c0_67 = arith.constant 0 : index
    %105 = vector.load %arg11[%c1_65, %c0_66, %c0_67] : memref<2x32x16xf32, #tpu.memory_space<vmem>>, vector<1x32x16xf32>
    %106 = vector.shape_cast %105 : vector<1x32x16xf32> to vector<32x16xf32>
    %107 = arith.truncf %5 : vector<6x32xf32> to vector<6x32xbf16>
    %108 = arith.truncf %106 : vector<32x16xf32> to vector<32x16xbf16>
    %cst_68 = arith.constant dense<0.000000e+00> : vector<6x16xf32>
    %109 = tpu.matmul %107, %108, %cst_68 {dimension_numbers = #tpu.dot_dimension_numbers<[1], [0], [0], [1], [0, 0, 1, 1], [], []>} : vector<6x32xbf16>, vector<32x16xbf16>, vector<6x16xf32> -> vector<6x16xf32>
    %c1_69 = arith.constant 1 : index
    %c0_70 = arith.constant 0 : index
    %c0_71 = arith.constant 0 : index
    %110 = vector.load %arg12[%c1_69, %c0_70, %c0_71] : memref<2x1x16xf32, #tpu.memory_space<vmem>>, vector<1x1x16xf32>
    %111 = vector.shape_cast %110 : vector<1x1x16xf32> to vector<1x16xf32>
    %112 = vector.broadcast %111 : vector<1x16xf32> to vector<6x16xf32>
    %113 = arith.addf %109, %112 : vector<6x16xf32>
    %114 = arith.truncf %95 : vector<8x16xf32> to vector<8x16xbf16>
    %115 = arith.truncf %104 : vector<6x16xf32> to vector<6x16xbf16>
    %cst_72 = arith.constant dense<0.000000e+00> : vector<8x6xf32>
    %116 = tpu.matmul %114, %115, %cst_72 {dimension_numbers = #tpu.dot_dimension_numbers<[1], [1], [0], [0], [0, 0, 1, 0], [], []>} : vector<8x16xbf16>, vector<6x16xbf16>, vector<8x6xf32> -> vector<8x6xf32>
    %cst_73 = arith.constant 2.500000e-01 : f32
    %117 = vector.broadcast %cst_73 : f32 to vector<8x6xf32>
    %118 = arith.mulf %116, %117 : vector<8x6xf32>
    %119 = vector.broadcast %12 : vector<1x6xf32> to vector<8x6xf32>
    %120 = arith.addf %118, %119 : vector<8x6xf32>
    %cst_74 = arith.constant dense<0xFF800000> : vector<8xf32>
    %121 = vector.multi_reduction <maximumf>, %120, %cst_74 [1] : vector<8x6xf32> to vector<8xf32>
    %122 = vector.shape_cast %121 : vector<8xf32> to vector<8x1xf32>
    %123 = vector.broadcast %122 : vector<8x1xf32> to vector<8x6xf32>
    %124 = arith.subf %120, %123 : vector<8x6xf32>
    %125 = math.exp %124 : vector<8x6xf32>
    %cst_75 = arith.constant dense<0.000000e+00> : vector<8xf32>
    %126 = vector.multi_reduction <add>, %125, %cst_75 [1] : vector<8x6xf32> to vector<8xf32>
    %127 = vector.shape_cast %126 : vector<8xf32> to vector<8x1xf32>
    %128 = tpu.reciprocal %127 {approx = true} : vector<8x1xf32> -> vector<8x1xf32>
    %129 = vector.broadcast %128 : vector<8x1xf32> to vector<8x6xf32>
    %130 = arith.mulf %125, %129 : vector<8x6xf32>
    %131 = arith.truncf %130 : vector<8x6xf32> to vector<8x6xbf16>
    %132 = arith.truncf %113 : vector<6x16xf32> to vector<6x16xbf16>
    %cst_76 = arith.constant dense<0.000000e+00> : vector<8x16xf32>
    %133 = tpu.matmul %131, %132, %cst_76 {dimension_numbers = #tpu.dot_dimension_numbers<[1], [0], [0], [1], [0, 0, 1, 1], [], []>} : vector<8x6xbf16>, vector<6x16xbf16>, vector<8x16xf32> -> vector<8x16xf32>
    %c1_77 = arith.constant 1 : index
    %c0_78 = arith.constant 0 : index
    %c0_79 = arith.constant 0 : index
    %134 = vector.load %arg13[%c1_77, %c0_78, %c0_79] : memref<2x16x32xf32, #tpu.memory_space<vmem>>, vector<1x16x32xf32>
    %135 = vector.shape_cast %134 : vector<1x16x32xf32> to vector<16x32xf32>
    %136 = arith.truncf %133 : vector<8x16xf32> to vector<8x16xbf16>
    %137 = arith.truncf %135 : vector<16x32xf32> to vector<16x32xbf16>
    %cst_80 = arith.constant dense<0.000000e+00> : vector<8x32xf32>
    %138 = tpu.matmul %136, %137, %cst_80 {dimension_numbers = #tpu.dot_dimension_numbers<[1], [0], [0], [1], [0, 0, 1, 1], [], []>} : vector<8x16xbf16>, vector<16x32xbf16>, vector<8x32xf32> -> vector<8x32xf32>
    %139 = arith.addf %86, %138 : vector<8x32xf32>
    %c0_81 = arith.constant 0 : index
    %c0_82 = arith.constant 0 : index
    %140 = vector.load %arg14[%c0_81, %c0_82] : memref<1x32xf32, #tpu.memory_space<vmem>>, vector<1x32xf32>
    %141 = vector.broadcast %140 : vector<1x32xf32> to vector<8x32xf32>
    %142 = arith.addf %139, %141 : vector<8x32xf32>
    %143 = arith.addf %1, %142 : vector<8x32xf32>
    %cst_83 = arith.constant 0.707106769 : f32
    %144 = vector.broadcast %cst_83 : f32 to vector<8x32xf32>
    %145 = arith.mulf %143, %144 : vector<8x32xf32>
    %cst_84 = arith.constant 0.000000e+00 : f32
    %146 = vector.broadcast %cst_84 : f32 to vector<10x32xf32>
    %c0_85 = arith.constant 0 : index
    %c0_86 = arith.constant 0 : index
    %147 = vector.load %arg20[%c0_85, %c0_86] : memref<10x32xf32, #tpu.memory_space<vmem>>, vector<10x32xf32>
    tpu.vector_store %arg20[%c0_85, %c0_86], %146 {strides = array<i32>} : memref<10x32xf32, #tpu.memory_space<vmem>>, vector<10x32xf32>,
    %c1_87 = arith.constant 1 : index
    %c0_88 = arith.constant 0 : index
    %148 = vector.load %arg20[%c1_87, %c0_88] : memref<10x32xf32, #tpu.memory_space<vmem>>, vector<8x32xf32>
    tpu.vector_store %arg20[%c1_87, %c0_88], %145 {strides = array<i32>} : memref<10x32xf32, #tpu.memory_space<vmem>>, vector<8x32xf32>,
    %c0_89 = arith.constant 0 : index
    %c0_90 = arith.constant 0 : index
    %149 = vector.load %arg20[%c0_89, %c0_90] : memref<10x32xf32, #tpu.memory_space<vmem>>, vector<8x32xf32>
    %c0_91 = arith.constant 0 : index
    %c0_92 = arith.constant 0 : index
    %c0_93 = arith.constant 0 : index
    %150 = vector.load %arg15[%c0_91, %c0_92, %c0_93] : memref<3x32x32xf32, #tpu.memory_space<vmem>>, vector<1x32x32xf32>
    %151 = vector.shape_cast %150 : vector<1x32x32xf32> to vector<32x32xf32>
    %152 = arith.truncf %149 : vector<8x32xf32> to vector<8x32xbf16>
    %153 = arith.truncf %151 : vector<32x32xf32> to vector<32x32xbf16>
    %cst_94 = arith.constant dense<0.000000e+00> : vector<8x32xf32>
    %154 = tpu.matmul %152, %153, %cst_94 {dimension_numbers = #tpu.dot_dimension_numbers<[1], [0], [0], [1], [0, 0, 1, 1], [], []>} : vector<8x32xbf16>, vector<32x32xbf16>, vector<8x32xf32> -> vector<8x32xf32>
    %c1_95 = arith.constant 1 : index
    %c0_96 = arith.constant 0 : index
    %155 = vector.load %arg20[%c1_95, %c0_96] : memref<10x32xf32, #tpu.memory_space<vmem>>, vector<8x32xf32>
    %c1_97 = arith.constant 1 : index
    %c0_98 = arith.constant 0 : index
    %c0_99 = arith.constant 0 : index
    %156 = vector.load %arg15[%c1_97, %c0_98, %c0_99] : memref<3x32x32xf32, #tpu.memory_space<vmem>>, vector<1x32x32xf32>
    %157 = vector.shape_cast %156 : vector<1x32x32xf32> to vector<32x32xf32>
    %158 = arith.truncf %155 : vector<8x32xf32> to vector<8x32xbf16>
    %159 = arith.truncf %157 : vector<32x32xf32> to vector<32x32xbf16>
    %cst_100 = arith.constant dense<0.000000e+00> : vector<8x32xf32>
    %160 = tpu.matmul %158, %159, %cst_100 {dimension_numbers = #tpu.dot_dimension_numbers<[1], [0], [0], [1], [0, 0, 1, 1], [], []>} : vector<8x32xbf16>, vector<32x32xbf16>, vector<8x32xf32> -> vector<8x32xf32>
    %161 = arith.addf %154, %160 : vector<8x32xf32>
    %c2 = arith.constant 2 : index
    %c0_101 = arith.constant 0 : index
    %162 = vector.load %arg20[%c2, %c0_101] : memref<10x32xf32, #tpu.memory_space<vmem>>, vector<8x32xf32>
    %c2_102 = arith.constant 2 : index
    %c0_103 = arith.constant 0 : index
    %c0_104 = arith.constant 0 : index
    %163 = vector.load %arg15[%c2_102, %c0_103, %c0_104] : memref<3x32x32xf32, #tpu.memory_space<vmem>>, vector<1x32x32xf32>
    %164 = vector.shape_cast %163 : vector<1x32x32xf32> to vector<32x32xf32>
    %165 = arith.truncf %162 : vector<8x32xf32> to vector<8x32xbf16>
    %166 = arith.truncf %164 : vector<32x32xf32> to vector<32x32xbf16>
    %cst_105 = arith.constant dense<0.000000e+00> : vector<8x32xf32>
    %167 = tpu.matmul %165, %166, %cst_105 {dimension_numbers = #tpu.dot_dimension_numbers<[1], [0], [0], [1], [0, 0, 1, 1], [], []>} : vector<8x32xbf16>, vector<32x32xbf16>, vector<8x32xf32> -> vector<8x32xf32>
    %168 = arith.addf %161, %167 : vector<8x32xf32>
    %c0_106 = arith.constant 0 : index
    %c0_107 = arith.constant 0 : index
    %169 = vector.load %arg16[%c0_106, %c0_107] : memref<1x32xf32, #tpu.memory_space<vmem>>, vector<1x32xf32>
    %170 = vector.broadcast %169 : vector<1x32xf32> to vector<8x32xf32>
    %171 = arith.addf %168, %170 : vector<8x32xf32>
    %cst_108 = arith.constant 0.000000e+00 : f32
    %172 = vector.broadcast %cst_108 : f32 to vector<8x32xf32>
    %173 = arith.maximumf %171, %172 : vector<8x32xf32>
    %cst_109 = arith.constant dense<0.000000e+00> : vector<8xf32>
    %174 = vector.multi_reduction <add>, %173, %cst_109 [1] : vector<8x32xf32> to vector<8xf32>
    %175 = vector.shape_cast %174 : vector<8xf32> to vector<8x1xf32>
    %cst_110 = arith.constant 3.200000e+01 : f32
    %176 = vector.broadcast %cst_110 : f32 to vector<8x1xf32>
    %177 = arith.divf %175, %176 : vector<8x1xf32>
    %178 = vector.broadcast %177 : vector<8x1xf32> to vector<8x32xf32>
    %179 = arith.subf %173, %178 : vector<8x32xf32>
    %180 = arith.mulf %179, %179 : vector<8x32xf32>
    %cst_111 = arith.constant dense<0.000000e+00> : vector<8xf32>
    %181 = vector.multi_reduction <add>, %180, %cst_111 [1] : vector<8x32xf32> to vector<8xf32>
    %182 = vector.shape_cast %181 : vector<8xf32> to vector<8x1xf32>
    %cst_112 = arith.constant 3.200000e+01 : f32
    %183 = vector.broadcast %cst_112 : f32 to vector<8x1xf32>
    %184 = arith.divf %182, %183 : vector<8x1xf32>
    %cst_113 = arith.constant 9.99999974E-6 : f32
    %185 = vector.broadcast %cst_113 : f32 to vector<8x1xf32>
    %186 = arith.addf %184, %185 : vector<8x1xf32>
    %187 = math.rsqrt %186 : vector<8x1xf32>
    %188 = vector.broadcast %187 : vector<8x1xf32> to vector<8x32xf32>
    %189 = arith.mulf %179, %188 : vector<8x32xf32>
    %c0_114 = arith.constant 0 : index
    %c0_115 = arith.constant 0 : index
    %190 = vector.load %arg17[%c0_114, %c0_115] : memref<1x32xf32, #tpu.memory_space<vmem>>, vector<1x32xf32>
    %191 = vector.broadcast %190 : vector<1x32xf32> to vector<8x32xf32>
    %192 = arith.mulf %189, %191 : vector<8x32xf32>
    %c0_116 = arith.constant 0 : index
    %c0_117 = arith.constant 0 : index
    %193 = vector.load %arg18[%c0_116, %c0_117] : memref<1x32xf32, #tpu.memory_space<vmem>>, vector<1x32xf32>
    %194 = vector.broadcast %193 : vector<1x32xf32> to vector<8x32xf32>
    %195 = arith.addf %192, %194 : vector<8x32xf32>
    %196 = vector.broadcast %3 : vector<8x1xf32> to vector<8x32xf32>
    %197 = arith.mulf %195, %196 : vector<8x32xf32>
    %c0_118 = arith.constant 0 : index
    %c0_119 = arith.constant 0 : index
    %c0_120 = arith.constant 0 : index
    %198 = vector.load %arg19[%c0_118, %c0_119, %c0_120] : memref<1x8x32xf32, #tpu.memory_space<vmem>>, vector<1x8x32xf32>
    %199 = vector.shape_cast %198 : vector<1x8x32xf32> to vector<8x32xf32>
    %200 = vector.shape_cast %197 : vector<8x32xf32> to vector<1x8x32xf32>
    tpu.vector_store %arg19[%c0_118, %c0_119, %c0_120], %200 {strides = array<i32>} : memref<1x8x32xf32, #tpu.memory_space<vmem>>, vector<1x8x32xf32>,
    return
  }
  func.func @transform_0(%arg0: i32) -> (i32, i32, i32) {
    %c0_i32 = arith.constant 0 : i32
    %c0_i32_0 = arith.constant 0 : i32
    %c0_i32_1 = arith.constant 0 : i32
    return %arg0, %c0_i32, %c0_i32_0 : i32, i32, i32
  }
  func.func @transform_1(%arg0: i32) -> (i32, i32, i32) {
    %c0_i32 = arith.constant 0 : i32
    %c0_i32_0 = arith.constant 0 : i32
    %c0_i32_1 = arith.constant 0 : i32
    return %arg0, %c0_i32, %c0_i32_0 : i32, i32, i32
  }
  func.func @transform_2(%arg0: i32) -> (i32, i32, i32) {
    %c0_i32 = arith.constant 0 : i32
    %c0_i32_0 = arith.constant 0 : i32
    %c0_i32_1 = arith.constant 0 : i32
    return %arg0, %c0_i32, %c0_i32_0 : i32, i32, i32
  }
  func.func @transform_3(%arg0: i32) -> (i32, i32, i32) {
    %c0_i32 = arith.constant 0 : i32
    %c0_i32_0 = arith.constant 0 : i32
    %c0_i32_1 = arith.constant 0 : i32
    return %arg0, %c0_i32, %c0_i32_0 : i32, i32, i32
  }
  func.func @transform_4(%arg0: i32) -> (i32, i32) {
    %c0_i32 = arith.constant 0 : i32
    %c0_i32_0 = arith.constant 0 : i32
    %c0_i32_1 = arith.constant 0 : i32
    return %c0_i32, %c0_i32_0 : i32, i32
  }
  func.func @transform_5(%arg0: i32) -> (i32, i32) {
    %c0_i32 = arith.constant 0 : i32
    %c0_i32_0 = arith.constant 0 : i32
    %c0_i32_1 = arith.constant 0 : i32
    return %c0_i32, %c0_i32_0 : i32, i32
  }
  func.func @transform_6(%arg0: i32) -> (i32, i32, i32) {
    %c0_i32 = arith.constant 0 : i32
    %c0_i32_0 = arith.constant 0 : i32
    %c0_i32_1 = arith.constant 0 : i32
    %c0_i32_2 = arith.constant 0 : i32
    return %c0_i32, %c0_i32_0, %c0_i32_1 : i32, i32, i32
  }
  func.func @transform_7(%arg0: i32) -> (i32, i32, i32) {
    %c0_i32 = arith.constant 0 : i32
    %c0_i32_0 = arith.constant 0 : i32
    %c0_i32_1 = arith.constant 0 : i32
    %c0_i32_2 = arith.constant 0 : i32
    return %c0_i32, %c0_i32_0, %c0_i32_1 : i32, i32, i32
  }
  func.func @transform_8(%arg0: i32) -> (i32, i32, i32) {
    %c0_i32 = arith.constant 0 : i32
    %c0_i32_0 = arith.constant 0 : i32
    %c0_i32_1 = arith.constant 0 : i32
    %c0_i32_2 = arith.constant 0 : i32
    return %c0_i32, %c0_i32_0, %c0_i32_1 : i32, i32, i32
  }
  func.func @transform_9(%arg0: i32) -> (i32, i32, i32) {
    %c0_i32 = arith.constant 0 : i32
    %c0_i32_0 = arith.constant 0 : i32
    %c0_i32_1 = arith.constant 0 : i32
    %c0_i32_2 = arith.constant 0 : i32
    return %c0_i32, %c0_i32_0, %c0_i32_1 : i32, i32, i32
  }
  func.func @transform_10(%arg0: i32) -> (i32, i32, i32) {
    %c0_i32 = arith.constant 0 : i32
    %c0_i32_0 = arith.constant 0 : i32
    %c0_i32_1 = arith.constant 0 : i32
    %c0_i32_2 = arith.constant 0 : i32
    return %c0_i32, %c0_i32_0, %c0_i32_1 : i32, i32, i32
  }
  func.func @transform_11(%arg0: i32) -> (i32, i32, i32) {
    %c0_i32 = arith.constant 0 : i32
    %c0_i32_0 = arith.constant 0 : i32
    %c0_i32_1 = arith.constant 0 : i32
    %c0_i32_2 = arith.constant 0 : i32
    return %c0_i32, %c0_i32_0, %c0_i32_1 : i32, i32, i32
  }
  func.func @transform_12(%arg0: i32) -> (i32, i32, i32) {
    %c0_i32 = arith.constant 0 : i32
    %c0_i32_0 = arith.constant 0 : i32
    %c0_i32_1 = arith.constant 0 : i32
    %c0_i32_2 = arith.constant 0 : i32
    return %c0_i32, %c0_i32_0, %c0_i32_1 : i32, i32, i32
  }
  func.func @transform_13(%arg0: i32) -> (i32, i32) {
    %c0_i32 = arith.constant 0 : i32
    %c0_i32_0 = arith.constant 0 : i32
    %c0_i32_1 = arith.constant 0 : i32
    return %c0_i32, %c0_i32_0 : i32, i32
  }
  func.func @transform_14(%arg0: i32) -> (i32, i32, i32) {
    %c0_i32 = arith.constant 0 : i32
    %c0_i32_0 = arith.constant 0 : i32
    %c0_i32_1 = arith.constant 0 : i32
    %c0_i32_2 = arith.constant 0 : i32
    return %c0_i32, %c0_i32_0, %c0_i32_1 : i32, i32, i32
  }
  func.func @transform_15(%arg0: i32) -> (i32, i32) {
    %c0_i32 = arith.constant 0 : i32
    %c0_i32_0 = arith.constant 0 : i32
    %c0_i32_1 = arith.constant 0 : i32
    return %c0_i32, %c0_i32_0 : i32, i32
  }
  func.func @transform_16(%arg0: i32) -> (i32, i32) {
    %c0_i32 = arith.constant 0 : i32
    %c0_i32_0 = arith.constant 0 : i32
    %c0_i32_1 = arith.constant 0 : i32
    return %c0_i32, %c0_i32_0 : i32, i32
  }
  func.func @transform_17(%arg0: i32) -> (i32, i32) {
    %c0_i32 = arith.constant 0 : i32
    %c0_i32_0 = arith.constant 0 : i32
    %c0_i32_1 = arith.constant 0 : i32
    return %c0_i32, %c0_i32_0 : i32, i32
  }
  func.func @transform_18(%arg0: i32) -> (i32, i32, i32) {
    %c0_i32 = arith.constant 0 : i32
    %c0_i32_0 = arith.constant 0 : i32
    %c0_i32_1 = arith.constant 0 : i32
    return %arg0, %c0_i32, %c0_i32_0 : i32, i32, i32
  }
}

module attributes {stable_mosaic.version = 11 : i64} {
  func.func @_vp_layer_kernel(%arg0: i32, %arg1: memref<1x8x32xf32, #tpu.memory_space<vmem>>, %arg2: memref<1x8x1xf32, #tpu.memory_space<vmem>>, %arg3: memref<3x32x32xf32, #tpu.memory_space<vmem>>, %arg4: memref<1x32xf32, #tpu.memory_space<vmem>>, %arg5: memref<1x32xf32, #tpu.memory_space<vmem>>, %arg6: memref<1x32xf32, #tpu.memory_space<vmem>>, %arg7: memref<32x1xf32, #tpu.memory_space<vmem>>, %arg8: memref<1x1xf32, #tpu.memory_space<vmem>>, %arg9: memref<1x8x1xf32, #tpu.memory_space<vmem>>, %arg10: memref<10x32xf32, #tpu.memory_space<vmem>>) attributes {dimension_semantics = [#tpu.dimension_semantics<parallel>], iteration_bounds = array<i64: 2>, scalar_prefetch = 0 : i64, scratch_operands = 1 : i64, tpu.core_type = #tpu.core_type<tc>, window_params = [{transform_indices = @transform_0, window_bounds = array<i64: 1, 8, 32>}, {transform_indices = @transform_1, window_bounds = array<i64: 1, 8, 1>}, {pipeline_mode = #tpu.pipeline_mode<synchronous>, transform_indices = @transform_2, window_bounds = array<i64: 3, 32, 32>}, {pipeline_mode = #tpu.pipeline_mode<synchronous>, transform_indices = @transform_3, window_bounds = array<i64: 1, 32>}, {pipeline_mode = #tpu.pipeline_mode<synchronous>, transform_indices = @transform_4, window_bounds = array<i64: 1, 32>}, {pipeline_mode = #tpu.pipeline_mode<synchronous>, transform_indices = @transform_5, window_bounds = array<i64: 1, 32>}, {pipeline_mode = #tpu.pipeline_mode<synchronous>, transform_indices = @transform_6, window_bounds = array<i64: 32, 1>}, {pipeline_mode = #tpu.pipeline_mode<synchronous>, transform_indices = @transform_7, window_bounds = array<i64: 1, 1>}, {transform_indices = @transform_8, window_bounds = array<i64: 1, 8, 1>}]} {
    %c0 = arith.constant 0 : index
    %c0_0 = arith.constant 0 : index
    %c0_1 = arith.constant 0 : index
    %0 = vector.load %arg1[%c0, %c0_0, %c0_1] : memref<1x8x32xf32, #tpu.memory_space<vmem>>, vector<1x8x32xf32>
    %1 = vector.shape_cast %0 : vector<1x8x32xf32> to vector<8x32xf32>
    %c0_2 = arith.constant 0 : index
    %c0_3 = arith.constant 0 : index
    %c0_4 = arith.constant 0 : index
    %2 = vector.load %arg2[%c0_2, %c0_3, %c0_4] : memref<1x8x1xf32, #tpu.memory_space<vmem>>, vector<1x8x1xf32>
    %3 = vector.shape_cast %2 : vector<1x8x1xf32> to vector<8x1xf32>
    %cst = arith.constant 0.000000e+00 : f32
    %4 = vector.broadcast %cst : f32 to vector<10x32xf32>
    %c0_5 = arith.constant 0 : index
    %c0_6 = arith.constant 0 : index
    %5 = vector.load %arg10[%c0_5, %c0_6] : memref<10x32xf32, #tpu.memory_space<vmem>>, vector<10x32xf32>
    tpu.vector_store %arg10[%c0_5, %c0_6], %4 {strides = array<i32>} : memref<10x32xf32, #tpu.memory_space<vmem>>, vector<10x32xf32>,
    %c1 = arith.constant 1 : index
    %c0_7 = arith.constant 0 : index
    %6 = vector.load %arg10[%c1, %c0_7] : memref<10x32xf32, #tpu.memory_space<vmem>>, vector<8x32xf32>
    tpu.vector_store %arg10[%c1, %c0_7], %1 {strides = array<i32>} : memref<10x32xf32, #tpu.memory_space<vmem>>, vector<8x32xf32>,
    %c0_8 = arith.constant 0 : index
    %c0_9 = arith.constant 0 : index
    %7 = vector.load %arg10[%c0_8, %c0_9] : memref<10x32xf32, #tpu.memory_space<vmem>>, vector<8x32xf32>
    %c0_10 = arith.constant 0 : index
    %c0_11 = arith.constant 0 : index
    %c0_12 = arith.constant 0 : index
    %8 = vector.load %arg3[%c0_10, %c0_11, %c0_12] : memref<3x32x32xf32, #tpu.memory_space<vmem>>, vector<1x32x32xf32>
    %9 = vector.shape_cast %8 : vector<1x32x32xf32> to vector<32x32xf32>
    %10 = arith.truncf %7 : vector<8x32xf32> to vector<8x32xbf16>
    %11 = arith.truncf %9 : vector<32x32xf32> to vector<32x32xbf16>
    %cst_13 = arith.constant dense<0.000000e+00> : vector<8x32xf32>
    %12 = tpu.matmul %10, %11, %cst_13 {dimension_numbers = #tpu.dot_dimension_numbers<[1], [0], [0], [1], [0, 0, 1, 1], [], []>} : vector<8x32xbf16>, vector<32x32xbf16>, vector<8x32xf32> -> vector<8x32xf32>
    %c1_14 = arith.constant 1 : index
    %c0_15 = arith.constant 0 : index
    %13 = vector.load %arg10[%c1_14, %c0_15] : memref<10x32xf32, #tpu.memory_space<vmem>>, vector<8x32xf32>
    %c1_16 = arith.constant 1 : index
    %c0_17 = arith.constant 0 : index
    %c0_18 = arith.constant 0 : index
    %14 = vector.load %arg3[%c1_16, %c0_17, %c0_18] : memref<3x32x32xf32, #tpu.memory_space<vmem>>, vector<1x32x32xf32>
    %15 = vector.shape_cast %14 : vector<1x32x32xf32> to vector<32x32xf32>
    %16 = arith.truncf %13 : vector<8x32xf32> to vector<8x32xbf16>
    %17 = arith.truncf %15 : vector<32x32xf32> to vector<32x32xbf16>
    %cst_19 = arith.constant dense<0.000000e+00> : vector<8x32xf32>
    %18 = tpu.matmul %16, %17, %cst_19 {dimension_numbers = #tpu.dot_dimension_numbers<[1], [0], [0], [1], [0, 0, 1, 1], [], []>} : vector<8x32xbf16>, vector<32x32xbf16>, vector<8x32xf32> -> vector<8x32xf32>
    %19 = arith.addf %12, %18 : vector<8x32xf32>
    %c2 = arith.constant 2 : index
    %c0_20 = arith.constant 0 : index
    %20 = vector.load %arg10[%c2, %c0_20] : memref<10x32xf32, #tpu.memory_space<vmem>>, vector<8x32xf32>
    %c2_21 = arith.constant 2 : index
    %c0_22 = arith.constant 0 : index
    %c0_23 = arith.constant 0 : index
    %21 = vector.load %arg3[%c2_21, %c0_22, %c0_23] : memref<3x32x32xf32, #tpu.memory_space<vmem>>, vector<1x32x32xf32>
    %22 = vector.shape_cast %21 : vector<1x32x32xf32> to vector<32x32xf32>
    %23 = arith.truncf %20 : vector<8x32xf32> to vector<8x32xbf16>
    %24 = arith.truncf %22 : vector<32x32xf32> to vector<32x32xbf16>
    %cst_24 = arith.constant dense<0.000000e+00> : vector<8x32xf32>
    %25 = tpu.matmul %23, %24, %cst_24 {dimension_numbers = #tpu.dot_dimension_numbers<[1], [0], [0], [1], [0, 0, 1, 1], [], []>} : vector<8x32xbf16>, vector<32x32xbf16>, vector<8x32xf32> -> vector<8x32xf32>
    %26 = arith.addf %19, %25 : vector<8x32xf32>
    %c0_25 = arith.constant 0 : index
    %c0_26 = arith.constant 0 : index
    %27 = vector.load %arg4[%c0_25, %c0_26] : memref<1x32xf32, #tpu.memory_space<vmem>>, vector<1x32xf32>
    %28 = vector.broadcast %27 : vector<1x32xf32> to vector<8x32xf32>
    %29 = arith.addf %26, %28 : vector<8x32xf32>
    %cst_27 = arith.constant 0.000000e+00 : f32
    %30 = vector.broadcast %cst_27 : f32 to vector<8x32xf32>
    %31 = arith.maximumf %29, %30 : vector<8x32xf32>
    %cst_28 = arith.constant dense<0.000000e+00> : vector<8xf32>
    %32 = vector.multi_reduction <add>, %31, %cst_28 [1] : vector<8x32xf32> to vector<8xf32>
    %33 = vector.shape_cast %32 : vector<8xf32> to vector<8x1xf32>
    %cst_29 = arith.constant 3.200000e+01 : f32
    %34 = vector.broadcast %cst_29 : f32 to vector<8x1xf32>
    %35 = arith.divf %33, %34 : vector<8x1xf32>
    %36 = vector.broadcast %35 : vector<8x1xf32> to vector<8x32xf32>
    %37 = arith.subf %31, %36 : vector<8x32xf32>
    %38 = arith.mulf %37, %37 : vector<8x32xf32>
    %cst_30 = arith.constant dense<0.000000e+00> : vector<8xf32>
    %39 = vector.multi_reduction <add>, %38, %cst_30 [1] : vector<8x32xf32> to vector<8xf32>
    %40 = vector.shape_cast %39 : vector<8xf32> to vector<8x1xf32>
    %cst_31 = arith.constant 3.200000e+01 : f32
    %41 = vector.broadcast %cst_31 : f32 to vector<8x1xf32>
    %42 = arith.divf %40, %41 : vector<8x1xf32>
    %cst_32 = arith.constant 9.99999974E-6 : f32
    %43 = vector.broadcast %cst_32 : f32 to vector<8x1xf32>
    %44 = arith.addf %42, %43 : vector<8x1xf32>
    %45 = math.rsqrt %44 : vector<8x1xf32>
    %46 = vector.broadcast %45 : vector<8x1xf32> to vector<8x32xf32>
    %47 = arith.mulf %37, %46 : vector<8x32xf32>
    %c0_33 = arith.constant 0 : index
    %c0_34 = arith.constant 0 : index
    %48 = vector.load %arg5[%c0_33, %c0_34] : memref<1x32xf32, #tpu.memory_space<vmem>>, vector<1x32xf32>
    %49 = vector.broadcast %48 : vector<1x32xf32> to vector<8x32xf32>
    %50 = arith.mulf %47, %49 : vector<8x32xf32>
    %c0_35 = arith.constant 0 : index
    %c0_36 = arith.constant 0 : index
    %51 = vector.load %arg6[%c0_35, %c0_36] : memref<1x32xf32, #tpu.memory_space<vmem>>, vector<1x32xf32>
    %52 = vector.broadcast %51 : vector<1x32xf32> to vector<8x32xf32>
    %53 = arith.addf %50, %52 : vector<8x32xf32>
    %54 = vector.broadcast %3 : vector<8x1xf32> to vector<8x32xf32>
    %55 = arith.mulf %53, %54 : vector<8x32xf32>
    %c0_37 = arith.constant 0 : index
    %c0_38 = arith.constant 0 : index
    %56 = vector.load %arg7[%c0_37, %c0_38] : memref<32x1xf32, #tpu.memory_space<vmem>>, vector<32x1xf32>
    %57 = arith.truncf %55 : vector<8x32xf32> to vector<8x32xbf16>
    %58 = arith.truncf %56 : vector<32x1xf32> to vector<32x1xbf16>
    %cst_39 = arith.constant dense<0.000000e+00> : vector<8x1xf32>
    %59 = tpu.matmul %57, %58, %cst_39 {dimension_numbers = #tpu.dot_dimension_numbers<[1], [0], [0], [1], [0, 0, 1, 1], [], []>} : vector<8x32xbf16>, vector<32x1xbf16>, vector<8x1xf32> -> vector<8x1xf32>
    %c0_40 = arith.constant 0 : index
    %c0_41 = arith.constant 0 : index
    %60 = vector.load %arg8[%c0_40, %c0_41] : memref<1x1xf32, #tpu.memory_space<vmem>>, vector<1x1xf32>
    %61 = vector.broadcast %60 : vector<1x1xf32> to vector<8x1xf32>
    %62 = arith.addf %59, %61 : vector<8x1xf32>
    %63 = arith.mulf %62, %3 : vector<8x1xf32>
    %c0_42 = arith.constant 0 : index
    %c0_43 = arith.constant 0 : index
    %c0_44 = arith.constant 0 : index
    %64 = vector.load %arg9[%c0_42, %c0_43, %c0_44] : memref<1x8x1xf32, #tpu.memory_space<vmem>>, vector<1x8x1xf32>
    %65 = vector.shape_cast %64 : vector<1x8x1xf32> to vector<8x1xf32>
    %66 = vector.shape_cast %63 : vector<8x1xf32> to vector<1x8x1xf32>
    tpu.vector_store %arg9[%c0_42, %c0_43, %c0_44], %66 {strides = array<i32>} : memref<1x8x1xf32, #tpu.memory_space<vmem>>, vector<1x8x1xf32>,
    return
  }
  func.func @transform_0(%arg0: i32) -> (i32, i32, i32) {
    %c0_i32 = arith.constant 0 : i32
    %c0_i32_0 = arith.constant 0 : i32
    %c0_i32_1 = arith.constant 0 : i32
    return %arg0, %c0_i32, %c0_i32_0 : i32, i32, i32
  }
  func.func @transform_1(%arg0: i32) -> (i32, i32, i32) {
    %c0_i32 = arith.constant 0 : i32
    %c0_i32_0 = arith.constant 0 : i32
    %c0_i32_1 = arith.constant 0 : i32
    return %arg0, %c0_i32, %c0_i32_0 : i32, i32, i32
  }
  func.func @transform_2(%arg0: i32) -> (i32, i32, i32) {
    %c0_i32 = arith.constant 0 : i32
    %c0_i32_0 = arith.constant 0 : i32
    %c0_i32_1 = arith.constant 0 : i32
    %c0_i32_2 = arith.constant 0 : i32
    return %c0_i32, %c0_i32_0, %c0_i32_1 : i32, i32, i32
  }
  func.func @transform_3(%arg0: i32) -> (i32, i32) {
    %c0_i32 = arith.constant 0 : i32
    %c0_i32_0 = arith.constant 0 : i32
    %c0_i32_1 = arith.constant 0 : i32
    return %c0_i32, %c0_i32_0 : i32, i32
  }
  func.func @transform_4(%arg0: i32) -> (i32, i32) {
    %c0_i32 = arith.constant 0 : i32
    %c0_i32_0 = arith.constant 0 : i32
    %c0_i32_1 = arith.constant 0 : i32
    return %c0_i32, %c0_i32_0 : i32, i32
  }
  func.func @transform_5(%arg0: i32) -> (i32, i32) {
    %c0_i32 = arith.constant 0 : i32
    %c0_i32_0 = arith.constant 0 : i32
    %c0_i32_1 = arith.constant 0 : i32
    return %c0_i32, %c0_i32_0 : i32, i32
  }
  func.func @transform_6(%arg0: i32) -> (i32, i32) {
    %c0_i32 = arith.constant 0 : i32
    %c0_i32_0 = arith.constant 0 : i32
    %c0_i32_1 = arith.constant 0 : i32
    return %c0_i32, %c0_i32_0 : i32, i32
  }
  func.func @transform_7(%arg0: i32) -> (i32, i32) {
    %c0_i32 = arith.constant 0 : i32
    %c0_i32_0 = arith.constant 0 : i32
    %c0_i32_1 = arith.constant 0 : i32
    return %c0_i32, %c0_i32_0 : i32, i32
  }
  func.func @transform_8(%arg0: i32) -> (i32, i32, i32) {
    %c0_i32 = arith.constant 0 : i32
    %c0_i32_0 = arith.constant 0 : i32
    %c0_i32_1 = arith.constant 0 : i32
    return %arg0, %c0_i32, %c0_i32_0 : i32, i32, i32
  }
}

module attributes {stable_mosaic.version = 11 : i64} {
  func.func @_vp_layer_kernel(%arg0: i32, %arg1: memref<1x15x32xf32, #tpu.memory_space<vmem>>, %arg2: memref<1x15x1xf32, #tpu.memory_space<vmem>>, %arg3: memref<1x6x32xf32, #tpu.memory_space<vmem>>, %arg4: memref<1x1x6xf32, #tpu.memory_space<vmem>>, %arg5: memref<1x32xf32, #tpu.memory_space<vmem>>, %arg6: memref<1x32xf32, #tpu.memory_space<vmem>>, %arg7: memref<2x32x16xf32, #tpu.memory_space<vmem>>, %arg8: memref<2x1x16xf32, #tpu.memory_space<vmem>>, %arg9: memref<2x32x16xf32, #tpu.memory_space<vmem>>, %arg10: memref<2x1x16xf32, #tpu.memory_space<vmem>>, %arg11: memref<2x32x16xf32, #tpu.memory_space<vmem>>, %arg12: memref<2x1x16xf32, #tpu.memory_space<vmem>>, %arg13: memref<2x16x32xf32, #tpu.memory_space<vmem>>, %arg14: memref<1x32xf32, #tpu.memory_space<vmem>>, %arg15: memref<3x32x32xf32, #tpu.memory_space<vmem>>, %arg16: memref<1x32xf32, #tpu.memory_space<vmem>>, %arg17: memref<1x32xf32, #tpu.memory_space<vmem>>, %arg18: memref<1x32xf32, #tpu.memory_space<vmem>>, %arg19: memref<1x15x32xf32, #tpu.memory_space<vmem>>, %arg20: memref<17x32xf32, #tpu.memory_space<vmem>>) attributes {dimension_semantics = [#tpu.dimension_semantics<parallel>], iteration_bounds = array<i64: 2>, scalar_prefetch = 0 : i64, scratch_operands = 1 : i64, tpu.core_type = #tpu.core_type<tc>, window_params = [{transform_indices = @transform_0, window_bounds = array<i64: 1, 15, 32>}, {transform_indices = @transform_1, window_bounds = array<i64: 1, 15, 1>}, {transform_indices = @transform_2, window_bounds = array<i64: 1, 6, 32>}, {transform_indices = @transform_3, window_bounds = array<i64: 1, 1, 6>}, {pipeline_mode = #tpu.pipeline_mode<synchronous>, transform_indices = @transform_4, window_bounds = array<i64: 1, 32>}, {pipeline_mode = #tpu.pipeline_mode<synchronous>, transform_indices = @transform_5, window_bounds = array<i64: 1, 32>}, {pipeline_mode = #tpu.pipeline_mode<synchronous>, transform_indices = @transform_6, window_bounds = array<i64: 2, 32, 16>}, {pipeline_mode = #tpu.pipeline_mode<synchronous>, transform_indices = @transform_7, window_bounds = array<i64: 2, 1, 16>}, {pipeline_mode = #tpu.pipeline_mode<synchronous>, transform_indices = @transform_8, window_bounds = array<i64: 2, 32, 16>}, {pipeline_mode = #tpu.pipeline_mode<synchronous>, transform_indices = @transform_9, window_bounds = array<i64: 2, 1, 16>}, {pipeline_mode = #tpu.pipeline_mode<synchronous>, transform_indices = @transform_10, window_bounds = array<i64: 2, 32, 16>}, {pipeline_mode = #tpu.pipeline_mode<synchronous>, transform_indices = @transform_11, window_bounds = array<i64: 2, 1, 16>}, {pipeline_mode = #tpu.pipeline_mode<synchronous>, transform_indices = @transform_12, window_bounds = array<i64: 2, 16, 32>}, {pipeline_mode = #tpu.pipeline_mode<synchronous>, transform_indices = @transform_13, window_bounds = array<i64: 1, 32>}, {pipeline_mode = #tpu.pipeline_mode<synchronous>, transform_indices = @transform_14, window_bounds = array<i64: 3, 32, 32>}, {pipeline_mode = #tpu.pipeline_mode<synchronous>, transform_indices = @transform_15, window_bounds = array<i64: 1, 32>}, {pipeline_mode = #tpu.pipeline_mode<synchronous>, transform_indices = @transform_16, window_bounds = array<i64: 1, 32>}, {pipeline_mode = #tpu.pipeline_mode<synchronous>, transform_indices = @transform_17, window_bounds = array<i64: 1, 32>}, {transform_indices = @transform_18, window_bounds = array<i64: 1, 15, 32>}]} {
    %c0 = arith.constant 0 : index
    %c0_0 = arith.constant 0 : index
    %c0_1 = arith.constant 0 : index
    %0 = vector.load %arg1[%c0, %c0_0, %c0_1] : memref<1x15x32xf32, #tpu.memory_space<vmem>>, vector<1x15x32xf32>
    %1 = vector.shape_cast %0 : vector<1x15x32xf32> to vector<15x32xf32>
    %c0_2 = arith.constant 0 : index
    %c0_3 = arith.constant 0 : index
    %c0_4 = arith.constant 0 : index
    %2 = vector.load %arg2[%c0_2, %c0_3, %c0_4] : memref<1x15x1xf32, #tpu.memory_space<vmem>>, vector<1x15x1xf32>
    %3 = vector.shape_cast %2 : vector<1x15x1xf32> to vector<15x1xf32>
    %c0_5 = arith.constant 0 : index
    %c0_6 = arith.constant 0 : index
    %c0_7 = arith.constant 0 : index
    %4 = vector.load %arg3[%c0_5, %c0_6, %c0_7] : memref<1x6x32xf32, #tpu.memory_space<vmem>>, vector<1x6x32xf32>
    %5 = vector.shape_cast %4 : vector<1x6x32xf32> to vector<6x32xf32>
    %c0_8 = arith.constant 0 : index
    %c0_9 = arith.constant 0 : index
    %c0_10 = arith.constant 0 : index
    %6 = vector.load %arg4[%c0_8, %c0_9, %c0_10] : memref<1x1x6xf32, #tpu.memory_space<vmem>>, vector<1x1x6xf32>
    %7 = vector.shape_cast %6 : vector<1x1x6xf32> to vector<1x6xf32>
    %cst = arith.constant 0.000000e+00 : f32
    %8 = vector.broadcast %cst : f32 to vector<1x6xf32>
    %9 = arith.cmpf oeq, %7, %8 : vector<1x6xf32>
    %cst_11 = arith.constant -1.000000e+09 : f32
    %cst_12 = arith.constant 0.000000e+00 : f32
    %10 = vector.broadcast %cst_11 : f32 to vector<1x6xf32>
    %11 = vector.broadcast %cst_12 : f32 to vector<1x6xf32>
    %12 = arith.select %9, %10, %11 : vector<1x6xi1>, vector<1x6xf32>
    %cst_13 = arith.constant dense<0.000000e+00> : vector<15xf32>
    %13 = vector.multi_reduction <add>, %1, %cst_13 [1] : vector<15x32xf32> to vector<15xf32>
    %14 = vector.shape_cast %13 : vector<15xf32> to vector<15x1xf32>
    %cst_14 = arith.constant 3.200000e+01 : f32
    %15 = vector.broadcast %cst_14 : f32 to vector<15x1xf32>
    %16 = arith.divf %14, %15 : vector<15x1xf32>
    %17 = vector.broadcast %16 : vector<15x1xf32> to vector<15x32xf32>
    %18 = arith.subf %1, %17 : vector<15x32xf32>
    %19 = arith.mulf %18, %18 : vector<15x32xf32>
    %cst_15 = arith.constant dense<0.000000e+00> : vector<15xf32>
    %20 = vector.multi_reduction <add>, %19, %cst_15 [1] : vector<15x32xf32> to vector<15xf32>
    %21 = vector.shape_cast %20 : vector<15xf32> to vector<15x1xf32>
    %cst_16 = arith.constant 3.200000e+01 : f32
    %22 = vector.broadcast %cst_16 : f32 to vector<15x1xf32>
    %23 = arith.divf %21, %22 : vector<15x1xf32>
    %cst_17 = arith.constant 9.99999974E-6 : f32
    %24 = vector.broadcast %cst_17 : f32 to vector<15x1xf32>
    %25 = arith.addf %23, %24 : vector<15x1xf32>
    %26 = math.rsqrt %25 : vector<15x1xf32>
    %27 = vector.broadcast %26 : vector<15x1xf32> to vector<15x32xf32>
    %28 = arith.mulf %18, %27 : vector<15x32xf32>
    %c0_18 = arith.constant 0 : index
    %c0_19 = arith.constant 0 : index
    %29 = vector.load %arg5[%c0_18, %c0_19] : memref<1x32xf32, #tpu.memory_space<vmem>>, vector<1x32xf32>
    %30 = vector.broadcast %29 : vector<1x32xf32> to vector<15x32xf32>
    %31 = arith.mulf %28, %30 : vector<15x32xf32>
    %c0_20 = arith.constant 0 : index
    %c0_21 = arith.constant 0 : index
    %32 = vector.load %arg6[%c0_20, %c0_21] : memref<1x32xf32, #tpu.memory_space<vmem>>, vector<1x32xf32>
    %33 = vector.broadcast %32 : vector<1x32xf32> to vector<15x32xf32>
    %34 = arith.addf %31, %33 : vector<15x32xf32>
    %c0_22 = arith.constant 0 : index
    %c0_23 = arith.constant 0 : index
    %c0_24 = arith.constant 0 : index
    %35 = vector.load %arg7[%c0_22, %c0_23, %c0_24] : memref<2x32x16xf32, #tpu.memory_space<vmem>>, vector<1x32x16xf32>
    %36 = vector.shape_cast %35 : vector<1x32x16xf32> to vector<32x16xf32>
    %37 = arith.truncf %34 : vector<15x32xf32> to vector<15x32xbf16>
    %38 = arith.truncf %36 : vector<32x16xf32> to vector<32x16xbf16>
    %cst_25 = arith.constant dense<0.000000e+00> : vector<15x16xf32>
    %39 = tpu.matmul %37, %38, %cst_25 {dimension_numbers = #tpu.dot_dimension_numbers<[1], [0], [0], [1], [0, 0, 1, 1], [], []>} : vector<15x32xbf16>, vector<32x16xbf16>, vector<15x16xf32> -> vector<15x16xf32>
    %c0_26 = arith.constant 0 : index
    %c0_27 = arith.constant 0 : index
    %c0_28 = arith.constant 0 : index
    %40 = vector.load %arg8[%c0_26, %c0_27, %c0_28] : memref<2x1x16xf32, #tpu.memory_space<vmem>>, vector<1x1x16xf32>
    %41 = vector.shape_cast %40 : vector<1x1x16xf32> to vector<1x16xf32>
    %42 = vector.broadcast %41 : vector<1x16xf32> to vector<15x16xf32>
    %43 = arith.addf %39, %42 : vector<15x16xf32>
    %c0_29 = arith.constant 0 : index
    %c0_30 = arith.constant 0 : index
    %c0_31 = arith.constant 0 : index
    %44 = vector.load %arg9[%c0_29, %c0_30, %c0_31] : memref<2x32x16xf32, #tpu.memory_space<vmem>>, vector<1x32x16xf32>
    %45 = vector.shape_cast %44 : vector<1x32x16xf32> to vector<32x16xf32>
    %46 = arith.truncf %5 : vector<6x32xf32> to vector<6x32xbf16>
    %47 = arith.truncf %45 : vector<32x16xf32> to vector<32x16xbf16>
    %cst_32 = arith.constant dense<0.000000e+00> : vector<6x16xf32>
    %48 = tpu.matmul %46, %47, %cst_32 {dimension_numbers = #tpu.dot_dimension_numbers<[1], [0], [0], [1], [0, 0, 1, 1], [], []>} : vector<6x32xbf16>, vector<32x16xbf16>, vector<6x16xf32> -> vector<6x16xf32>
    %c0_33 = arith.constant 0 : index
    %c0_34 = arith.constant 0 : index
    %c0_35 = arith.constant 0 : index
    %49 = vector.load %arg10[%c0_33, %c0_34, %c0_35] : memref<2x1x16xf32, #tpu.memory_space<vmem>>, vector<1x1x16xf32>
    %50 = vector.shape_cast %49 : vector<1x1x16xf32> to vector<1x16xf32>
    %51 = vector.broadcast %50 : vector<1x16xf32> to vector<6x16xf32>
    %52 = arith.addf %48, %51 : vector<6x16xf32>
    %c0_36 = arith.constant 0 : index
    %c0_37 = arith.constant 0 : index
    %c0_38 = arith.constant 0 : index
    %53 = vector.load %arg11[%c0_36, %c0_37, %c0_38] : memref<2x32x16xf32, #tpu.memory_space<vmem>>, vector<1x32x16xf32>
    %54 = vector.shape_cast %53 : vector<1x32x16xf32> to vector<32x16xf32>
    %55 = arith.truncf %5 : vector<6x32xf32> to vector<6x32xbf16>
    %56 = arith.truncf %54 : vector<32x16xf32> to vector<32x16xbf16>
    %cst_39 = arith.constant dense<0.000000e+00> : vector<6x16xf32>
    %57 = tpu.matmul %55, %56, %cst_39 {dimension_numbers = #tpu.dot_dimension_numbers<[1], [0], [0], [1], [0, 0, 1, 1], [], []>} : vector<6x32xbf16>, vector<32x16xbf16>, vector<6x16xf32> -> vector<6x16xf32>
    %c0_40 = arith.constant 0 : index
    %c0_41 = arith.constant 0 : index
    %c0_42 = arith.constant 0 : index
    %58 = vector.load %arg12[%c0_40, %c0_41, %c0_42] : memref<2x1x16xf32, #tpu.memory_space<vmem>>, vector<1x1x16xf32>
    %59 = vector.shape_cast %58 : vector<1x1x16xf32> to vector<1x16xf32>
    %60 = vector.broadcast %59 : vector<1x16xf32> to vector<6x16xf32>
    %61 = arith.addf %57, %60 : vector<6x16xf32>
    %62 = arith.truncf %43 : vector<15x16xf32> to vector<15x16xbf16>
    %63 = arith.truncf %52 : vector<6x16xf32> to vector<6x16xbf16>
    %cst_43 = arith.constant dense<0.000000e+00> : vector<15x6xf32>
    %64 = tpu.matmul %62, %63, %cst_43 {dimension_numbers = #tpu.dot_dimension_numbers<[1], [1], [0], [0], [0, 0, 1, 0], [], []>} : vector<15x16xbf16>, vector<6x16xbf16>, vector<15x6xf32> -> vector<15x6xf32>
    %cst_44 = arith.constant 2.500000e-01 : f32
    %65 = vector.broadcast %cst_44 : f32 to vector<15x6xf32>
    %66 = arith.mulf %64, %65 : vector<15x6xf32>
    %67 = vector.broadcast %12 : vector<1x6xf32> to vector<15x6xf32>
    %68 = arith.addf %66, %67 : vector<15x6xf32>
    %cst_45 = arith.constant dense<0xFF800000> : vector<15xf32>
    %69 = vector.multi_reduction <maximumf>, %68, %cst_45 [1] : vector<15x6xf32> to vector<15xf32>
    %70 = vector.shape_cast %69 : vector<15xf32> to vector<15x1xf32>
    %71 = vector.broadcast %70 : vector<15x1xf32> to vector<15x6xf32>
    %72 = arith.subf %68, %71 : vector<15x6xf32>
    %73 = math.exp %72 : vector<15x6xf32>
    %cst_46 = arith.constant dense<0.000000e+00> : vector<15xf32>
    %74 = vector.multi_reduction <add>, %73, %cst_46 [1] : vector<15x6xf32> to vector<15xf32>
    %75 = vector.shape_cast %74 : vector<15xf32> to vector<15x1xf32>
    %76 = tpu.reciprocal %75 {approx = true} : vector<15x1xf32> -> vector<15x1xf32>
    %77 = vector.broadcast %76 : vector<15x1xf32> to vector<15x6xf32>
    %78 = arith.mulf %73, %77 : vector<15x6xf32>
    %79 = arith.truncf %78 : vector<15x6xf32> to vector<15x6xbf16>
    %80 = arith.truncf %61 : vector<6x16xf32> to vector<6x16xbf16>
    %cst_47 = arith.constant dense<0.000000e+00> : vector<15x16xf32>
    %81 = tpu.matmul %79, %80, %cst_47 {dimension_numbers = #tpu.dot_dimension_numbers<[1], [0], [0], [1], [0, 0, 1, 1], [], []>} : vector<15x6xbf16>, vector<6x16xbf16>, vector<15x16xf32> -> vector<15x16xf32>
    %c0_48 = arith.constant 0 : index
    %c0_49 = arith.constant 0 : index
    %c0_50 = arith.constant 0 : index
    %82 = vector.load %arg13[%c0_48, %c0_49, %c0_50] : memref<2x16x32xf32, #tpu.memory_space<vmem>>, vector<1x16x32xf32>
    %83 = vector.shape_cast %82 : vector<1x16x32xf32> to vector<16x32xf32>
    %84 = arith.truncf %81 : vector<15x16xf32> to vector<15x16xbf16>
    %85 = arith.truncf %83 : vector<16x32xf32> to vector<16x32xbf16>
    %cst_51 = arith.constant dense<0.000000e+00> : vector<15x32xf32>
    %86 = tpu.matmul %84, %85, %cst_51 {dimension_numbers = #tpu.dot_dimension_numbers<[1], [0], [0], [1], [0, 0, 1, 1], [], []>} : vector<15x16xbf16>, vector<16x32xbf16>, vector<15x32xf32> -> vector<15x32xf32>
    %c1 = arith.constant 1 : index
    %c0_52 = arith.constant 0 : index
    %c0_53 = arith.constant 0 : index
    %87 = vector.load %arg7[%c1, %c0_52, %c0_53] : memref<2x32x16xf32, #tpu.memory_space<vmem>>, vector<1x32x16xf32>
    %88 = vector.shape_cast %87 : vector<1x32x16xf32> to vector<32x16xf32>
    %89 = arith.truncf %34 : vector<15x32xf32> to vector<15x32xbf16>
    %90 = arith.truncf %88 : vector<32x16xf32> to vector<32x16xbf16>
    %cst_54 = arith.constant dense<0.000000e+00> : vector<15x16xf32>
    %91 = tpu.matmul %89, %90, %cst_54 {dimension_numbers = #tpu.dot_dimension_numbers<[1], [0], [0], [1], [0, 0, 1, 1], [], []>} : vector<15x32xbf16>, vector<32x16xbf16>, vector<15x16xf32> -> vector<15x16xf32>
    %c1_55 = arith.constant 1 : index
    %c0_56 = arith.constant 0 : index
    %c0_57 = arith.constant 0 : index
    %92 = vector.load %arg8[%c1_55, %c0_56, %c0_57] : memref<2x1x16xf32, #tpu.memory_space<vmem>>, vector<1x1x16xf32>
    %93 = vector.shape_cast %92 : vector<1x1x16xf32> to vector<1x16xf32>
    %94 = vector.broadcast %93 : vector<1x16xf32> to vector<15x16xf32>
    %95 = arith.addf %91, %94 : vector<15x16xf32>
    %c1_58 = arith.constant 1 : index
    %c0_59 = arith.constant 0 : index
    %c0_60 = arith.constant 0 : index
    %96 = vector.load %arg9[%c1_58, %c0_59, %c0_60] : memref<2x32x16xf32, #tpu.memory_space<vmem>>, vector<1x32x16xf32>
    %97 = vector.shape_cast %96 : vector<1x32x16xf32> to vector<32x16xf32>
    %98 = arith.truncf %5 : vector<6x32xf32> to vector<6x32xbf16>
    %99 = arith.truncf %97 : vector<32x16xf32> to vector<32x16xbf16>
    %cst_61 = arith.constant dense<0.000000e+00> : vector<6x16xf32>
    %100 = tpu.matmul %98, %99, %cst_61 {dimension_numbers = #tpu.dot_dimension_numbers<[1], [0], [0], [1], [0, 0, 1, 1], [], []>} : vector<6x32xbf16>, vector<32x16xbf16>, vector<6x16xf32> -> vector<6x16xf32>
    %c1_62 = arith.constant 1 : index
    %c0_63 = arith.constant 0 : index
    %c0_64 = arith.constant 0 : index
    %101 = vector.load %arg10[%c1_62, %c0_63, %c0_64] : memref<2x1x16xf32, #tpu.memory_space<vmem>>, vector<1x1x16xf32>
    %102 = vector.shape_cast %101 : vector<1x1x16xf32> to vector<1x16xf32>
    %103 = vector.broadcast %102 : vector<1x16xf32> to vector<6x16xf32>
    %104 = arith.addf %100, %103 : vector<6x16xf32>
    %c1_65 = arith.constant 1 : index
    %c0_66 = arith.constant 0 : index
    %c0_67 = arith.constant 0 : index
    %105 = vector.load %arg11[%c1_65, %c0_66, %c0_67] : memref<2x32x16xf32, #tpu.memory_space<vmem>>, vector<1x32x16xf32>
    %106 = vector.shape_cast %105 : vector<1x32x16xf32> to vector<32x16xf32>
    %107 = arith.truncf %5 : vector<6x32xf32> to vector<6x32xbf16>
    %108 = arith.truncf %106 : vector<32x16xf32> to vector<32x16xbf16>
    %cst_68 = arith.constant dense<0.000000e+00> : vector<6x16xf32>
    %109 = tpu.matmul %107, %108, %cst_68 {dimension_numbers = #tpu.dot_dimension_numbers<[1], [0], [0], [1], [0, 0, 1, 1], [], []>} : vector<6x32xbf16>, vector<32x16xbf16>, vector<6x16xf32> -> vector<6x16xf32>
    %c1_69 = arith.constant 1 : index
    %c0_70 = arith.constant 0 : index
    %c0_71 = arith.constant 0 : index
    %110 = vector.load %arg12[%c1_69, %c0_70, %c0_71] : memref<2x1x16xf32, #tpu.memory_space<vmem>>, vector<1x1x16xf32>
    %111 = vector.shape_cast %110 : vector<1x1x16xf32> to vector<1x16xf32>
    %112 = vector.broadcast %111 : vector<1x16xf32> to vector<6x16xf32>
    %113 = arith.addf %109, %112 : vector<6x16xf32>
    %114 = arith.truncf %95 : vector<15x16xf32> to vector<15x16xbf16>
    %115 = arith.truncf %104 : vector<6x16xf32> to vector<6x16xbf16>
    %cst_72 = arith.constant dense<0.000000e+00> : vector<15x6xf32>
    %116 = tpu.matmul %114, %115, %cst_72 {dimension_numbers = #tpu.dot_dimension_numbers<[1], [1], [0], [0], [0, 0, 1, 0], [], []>} : vector<15x16xbf16>, vector<6x16xbf16>, vector<15x6xf32> -> vector<15x6xf32>
    %cst_73 = arith.constant 2.500000e-01 : f32
    %117 = vector.broadcast %cst_73 : f32 to vector<15x6xf32>
    %118 = arith.mulf %116, %117 : vector<15x6xf32>
    %119 = vector.broadcast %12 : vector<1x6xf32> to vector<15x6xf32>
    %120 = arith.addf %118, %119 : vector<15x6xf32>
    %cst_74 = arith.constant dense<0xFF800000> : vector<15xf32>
    %121 = vector.multi_reduction <maximumf>, %120, %cst_74 [1] : vector<15x6xf32> to vector<15xf32>
    %122 = vector.shape_cast %121 : vector<15xf32> to vector<15x1xf32>
    %123 = vector.broadcast %122 : vector<15x1xf32> to vector<15x6xf32>
    %124 = arith.subf %120, %123 : vector<15x6xf32>
    %125 = math.exp %124 : vector<15x6xf32>
    %cst_75 = arith.constant dense<0.000000e+00> : vector<15xf32>
    %126 = vector.multi_reduction <add>, %125, %cst_75 [1] : vector<15x6xf32> to vector<15xf32>
    %127 = vector.shape_cast %126 : vector<15xf32> to vector<15x1xf32>
    %128 = tpu.reciprocal %127 {approx = true} : vector<15x1xf32> -> vector<15x1xf32>
    %129 = vector.broadcast %128 : vector<15x1xf32> to vector<15x6xf32>
    %130 = arith.mulf %125, %129 : vector<15x6xf32>
    %131 = arith.truncf %130 : vector<15x6xf32> to vector<15x6xbf16>
    %132 = arith.truncf %113 : vector<6x16xf32> to vector<6x16xbf16>
    %cst_76 = arith.constant dense<0.000000e+00> : vector<15x16xf32>
    %133 = tpu.matmul %131, %132, %cst_76 {dimension_numbers = #tpu.dot_dimension_numbers<[1], [0], [0], [1], [0, 0, 1, 1], [], []>} : vector<15x6xbf16>, vector<6x16xbf16>, vector<15x16xf32> -> vector<15x16xf32>
    %c1_77 = arith.constant 1 : index
    %c0_78 = arith.constant 0 : index
    %c0_79 = arith.constant 0 : index
    %134 = vector.load %arg13[%c1_77, %c0_78, %c0_79] : memref<2x16x32xf32, #tpu.memory_space<vmem>>, vector<1x16x32xf32>
    %135 = vector.shape_cast %134 : vector<1x16x32xf32> to vector<16x32xf32>
    %136 = arith.truncf %133 : vector<15x16xf32> to vector<15x16xbf16>
    %137 = arith.truncf %135 : vector<16x32xf32> to vector<16x32xbf16>
    %cst_80 = arith.constant dense<0.000000e+00> : vector<15x32xf32>
    %138 = tpu.matmul %136, %137, %cst_80 {dimension_numbers = #tpu.dot_dimension_numbers<[1], [0], [0], [1], [0, 0, 1, 1], [], []>} : vector<15x16xbf16>, vector<16x32xbf16>, vector<15x32xf32> -> vector<15x32xf32>
    %139 = arith.addf %86, %138 : vector<15x32xf32>
    %c0_81 = arith.constant 0 : index
    %c0_82 = arith.constant 0 : index
    %140 = vector.load %arg14[%c0_81, %c0_82] : memref<1x32xf32, #tpu.memory_space<vmem>>, vector<1x32xf32>
    %141 = vector.broadcast %140 : vector<1x32xf32> to vector<15x32xf32>
    %142 = arith.addf %139, %141 : vector<15x32xf32>
    %143 = arith.addf %1, %142 : vector<15x32xf32>
    %cst_83 = arith.constant 0.707106769 : f32
    %144 = vector.broadcast %cst_83 : f32 to vector<15x32xf32>
    %145 = arith.mulf %143, %144 : vector<15x32xf32>
    %cst_84 = arith.constant 0.000000e+00 : f32
    %146 = vector.broadcast %cst_84 : f32 to vector<17x32xf32>
    %c0_85 = arith.constant 0 : index
    %c0_86 = arith.constant 0 : index
    %147 = vector.load %arg20[%c0_85, %c0_86] : memref<17x32xf32, #tpu.memory_space<vmem>>, vector<17x32xf32>
    tpu.vector_store %arg20[%c0_85, %c0_86], %146 {strides = array<i32>} : memref<17x32xf32, #tpu.memory_space<vmem>>, vector<17x32xf32>,
    %c1_87 = arith.constant 1 : index
    %c0_88 = arith.constant 0 : index
    %148 = vector.load %arg20[%c1_87, %c0_88] : memref<17x32xf32, #tpu.memory_space<vmem>>, vector<15x32xf32>
    tpu.vector_store %arg20[%c1_87, %c0_88], %145 {strides = array<i32>} : memref<17x32xf32, #tpu.memory_space<vmem>>, vector<15x32xf32>,
    %c0_89 = arith.constant 0 : index
    %c0_90 = arith.constant 0 : index
    %149 = vector.load %arg20[%c0_89, %c0_90] : memref<17x32xf32, #tpu.memory_space<vmem>>, vector<15x32xf32>
    %c0_91 = arith.constant 0 : index
    %c0_92 = arith.constant 0 : index
    %c0_93 = arith.constant 0 : index
    %150 = vector.load %arg15[%c0_91, %c0_92, %c0_93] : memref<3x32x32xf32, #tpu.memory_space<vmem>>, vector<1x32x32xf32>
    %151 = vector.shape_cast %150 : vector<1x32x32xf32> to vector<32x32xf32>
    %152 = arith.truncf %149 : vector<15x32xf32> to vector<15x32xbf16>
    %153 = arith.truncf %151 : vector<32x32xf32> to vector<32x32xbf16>
    %cst_94 = arith.constant dense<0.000000e+00> : vector<15x32xf32>
    %154 = tpu.matmul %152, %153, %cst_94 {dimension_numbers = #tpu.dot_dimension_numbers<[1], [0], [0], [1], [0, 0, 1, 1], [], []>} : vector<15x32xbf16>, vector<32x32xbf16>, vector<15x32xf32> -> vector<15x32xf32>
    %c1_95 = arith.constant 1 : index
    %c0_96 = arith.constant 0 : index
    %155 = vector.load %arg20[%c1_95, %c0_96] : memref<17x32xf32, #tpu.memory_space<vmem>>, vector<15x32xf32>
    %c1_97 = arith.constant 1 : index
    %c0_98 = arith.constant 0 : index
    %c0_99 = arith.constant 0 : index
    %156 = vector.load %arg15[%c1_97, %c0_98, %c0_99] : memref<3x32x32xf32, #tpu.memory_space<vmem>>, vector<1x32x32xf32>
    %157 = vector.shape_cast %156 : vector<1x32x32xf32> to vector<32x32xf32>
    %158 = arith.truncf %155 : vector<15x32xf32> to vector<15x32xbf16>
    %159 = arith.truncf %157 : vector<32x32xf32> to vector<32x32xbf16>
    %cst_100 = arith.constant dense<0.000000e+00> : vector<15x32xf32>
    %160 = tpu.matmul %158, %159, %cst_100 {dimension_numbers = #tpu.dot_dimension_numbers<[1], [0], [0], [1], [0, 0, 1, 1], [], []>} : vector<15x32xbf16>, vector<32x32xbf16>, vector<15x32xf32> -> vector<15x32xf32>
    %161 = arith.addf %154, %160 : vector<15x32xf32>
    %c2 = arith.constant 2 : index
    %c0_101 = arith.constant 0 : index
    %162 = vector.load %arg20[%c2, %c0_101] : memref<17x32xf32, #tpu.memory_space<vmem>>, vector<15x32xf32>
    %c2_102 = arith.constant 2 : index
    %c0_103 = arith.constant 0 : index
    %c0_104 = arith.constant 0 : index
    %163 = vector.load %arg15[%c2_102, %c0_103, %c0_104] : memref<3x32x32xf32, #tpu.memory_space<vmem>>, vector<1x32x32xf32>
    %164 = vector.shape_cast %163 : vector<1x32x32xf32> to vector<32x32xf32>
    %165 = arith.truncf %162 : vector<15x32xf32> to vector<15x32xbf16>
    %166 = arith.truncf %164 : vector<32x32xf32> to vector<32x32xbf16>
    %cst_105 = arith.constant dense<0.000000e+00> : vector<15x32xf32>
    %167 = tpu.matmul %165, %166, %cst_105 {dimension_numbers = #tpu.dot_dimension_numbers<[1], [0], [0], [1], [0, 0, 1, 1], [], []>} : vector<15x32xbf16>, vector<32x32xbf16>, vector<15x32xf32> -> vector<15x32xf32>
    %168 = arith.addf %161, %167 : vector<15x32xf32>
    %c0_106 = arith.constant 0 : index
    %c0_107 = arith.constant 0 : index
    %169 = vector.load %arg16[%c0_106, %c0_107] : memref<1x32xf32, #tpu.memory_space<vmem>>, vector<1x32xf32>
    %170 = vector.broadcast %169 : vector<1x32xf32> to vector<15x32xf32>
    %171 = arith.addf %168, %170 : vector<15x32xf32>
    %cst_108 = arith.constant 0.000000e+00 : f32
    %172 = vector.broadcast %cst_108 : f32 to vector<15x32xf32>
    %173 = arith.maximumf %171, %172 : vector<15x32xf32>
    %cst_109 = arith.constant dense<0.000000e+00> : vector<15xf32>
    %174 = vector.multi_reduction <add>, %173, %cst_109 [1] : vector<15x32xf32> to vector<15xf32>
    %175 = vector.shape_cast %174 : vector<15xf32> to vector<15x1xf32>
    %cst_110 = arith.constant 3.200000e+01 : f32
    %176 = vector.broadcast %cst_110 : f32 to vector<15x1xf32>
    %177 = arith.divf %175, %176 : vector<15x1xf32>
    %178 = vector.broadcast %177 : vector<15x1xf32> to vector<15x32xf32>
    %179 = arith.subf %173, %178 : vector<15x32xf32>
    %180 = arith.mulf %179, %179 : vector<15x32xf32>
    %cst_111 = arith.constant dense<0.000000e+00> : vector<15xf32>
    %181 = vector.multi_reduction <add>, %180, %cst_111 [1] : vector<15x32xf32> to vector<15xf32>
    %182 = vector.shape_cast %181 : vector<15xf32> to vector<15x1xf32>
    %cst_112 = arith.constant 3.200000e+01 : f32
    %183 = vector.broadcast %cst_112 : f32 to vector<15x1xf32>
    %184 = arith.divf %182, %183 : vector<15x1xf32>
    %cst_113 = arith.constant 9.99999974E-6 : f32
    %185 = vector.broadcast %cst_113 : f32 to vector<15x1xf32>
    %186 = arith.addf %184, %185 : vector<15x1xf32>
    %187 = math.rsqrt %186 : vector<15x1xf32>
    %188 = vector.broadcast %187 : vector<15x1xf32> to vector<15x32xf32>
    %189 = arith.mulf %179, %188 : vector<15x32xf32>
    %c0_114 = arith.constant 0 : index
    %c0_115 = arith.constant 0 : index
    %190 = vector.load %arg17[%c0_114, %c0_115] : memref<1x32xf32, #tpu.memory_space<vmem>>, vector<1x32xf32>
    %191 = vector.broadcast %190 : vector<1x32xf32> to vector<15x32xf32>
    %192 = arith.mulf %189, %191 : vector<15x32xf32>
    %c0_116 = arith.constant 0 : index
    %c0_117 = arith.constant 0 : index
    %193 = vector.load %arg18[%c0_116, %c0_117] : memref<1x32xf32, #tpu.memory_space<vmem>>, vector<1x32xf32>
    %194 = vector.broadcast %193 : vector<1x32xf32> to vector<15x32xf32>
    %195 = arith.addf %192, %194 : vector<15x32xf32>
    %196 = vector.broadcast %3 : vector<15x1xf32> to vector<15x32xf32>
    %197 = arith.mulf %195, %196 : vector<15x32xf32>
    %c0_118 = arith.constant 0 : index
    %c0_119 = arith.constant 0 : index
    %c0_120 = arith.constant 0 : index
    %198 = vector.load %arg19[%c0_118, %c0_119, %c0_120] : memref<1x15x32xf32, #tpu.memory_space<vmem>>, vector<1x15x32xf32>
    %199 = vector.shape_cast %198 : vector<1x15x32xf32> to vector<15x32xf32>
    %200 = vector.shape_cast %197 : vector<15x32xf32> to vector<1x15x32xf32>
    tpu.vector_store %arg19[%c0_118, %c0_119, %c0_120], %200 {strides = array<i32>} : memref<1x15x32xf32, #tpu.memory_space<vmem>>, vector<1x15x32xf32>,
    return
  }
  func.func @transform_0(%arg0: i32) -> (i32, i32, i32) {
    %c0_i32 = arith.constant 0 : i32
    %c0_i32_0 = arith.constant 0 : i32
    %c0_i32_1 = arith.constant 0 : i32
    return %arg0, %c0_i32, %c0_i32_0 : i32, i32, i32
  }
  func.func @transform_1(%arg0: i32) -> (i32, i32, i32) {
    %c0_i32 = arith.constant 0 : i32
    %c0_i32_0 = arith.constant 0 : i32
    %c0_i32_1 = arith.constant 0 : i32
    return %arg0, %c0_i32, %c0_i32_0 : i32, i32, i32
  }
  func.func @transform_2(%arg0: i32) -> (i32, i32, i32) {
    %c0_i32 = arith.constant 0 : i32
    %c0_i32_0 = arith.constant 0 : i32
    %c0_i32_1 = arith.constant 0 : i32
    return %arg0, %c0_i32, %c0_i32_0 : i32, i32, i32
  }
  func.func @transform_3(%arg0: i32) -> (i32, i32, i32) {
    %c0_i32 = arith.constant 0 : i32
    %c0_i32_0 = arith.constant 0 : i32
    %c0_i32_1 = arith.constant 0 : i32
    return %arg0, %c0_i32, %c0_i32_0 : i32, i32, i32
  }
  func.func @transform_4(%arg0: i32) -> (i32, i32) {
    %c0_i32 = arith.constant 0 : i32
    %c0_i32_0 = arith.constant 0 : i32
    %c0_i32_1 = arith.constant 0 : i32
    return %c0_i32, %c0_i32_0 : i32, i32
  }
  func.func @transform_5(%arg0: i32) -> (i32, i32) {
    %c0_i32 = arith.constant 0 : i32
    %c0_i32_0 = arith.constant 0 : i32
    %c0_i32_1 = arith.constant 0 : i32
    return %c0_i32, %c0_i32_0 : i32, i32
  }
  func.func @transform_6(%arg0: i32) -> (i32, i32, i32) {
    %c0_i32 = arith.constant 0 : i32
    %c0_i32_0 = arith.constant 0 : i32
    %c0_i32_1 = arith.constant 0 : i32
    %c0_i32_2 = arith.constant 0 : i32
    return %c0_i32, %c0_i32_0, %c0_i32_1 : i32, i32, i32
  }
  func.func @transform_7(%arg0: i32) -> (i32, i32, i32) {
    %c0_i32 = arith.constant 0 : i32
    %c0_i32_0 = arith.constant 0 : i32
    %c0_i32_1 = arith.constant 0 : i32
    %c0_i32_2 = arith.constant 0 : i32
    return %c0_i32, %c0_i32_0, %c0_i32_1 : i32, i32, i32
  }
  func.func @transform_8(%arg0: i32) -> (i32, i32, i32) {
    %c0_i32 = arith.constant 0 : i32
    %c0_i32_0 = arith.constant 0 : i32
    %c0_i32_1 = arith.constant 0 : i32
    %c0_i32_2 = arith.constant 0 : i32
    return %c0_i32, %c0_i32_0, %c0_i32_1 : i32, i32, i32
  }
  func.func @transform_9(%arg0: i32) -> (i32, i32, i32) {
    %c0_i32 = arith.constant 0 : i32
    %c0_i32_0 = arith.constant 0 : i32
    %c0_i32_1 = arith.constant 0 : i32
    %c0_i32_2 = arith.constant 0 : i32
    return %c0_i32, %c0_i32_0, %c0_i32_1 : i32, i32, i32
  }
  func.func @transform_10(%arg0: i32) -> (i32, i32, i32) {
    %c0_i32 = arith.constant 0 : i32
    %c0_i32_0 = arith.constant 0 : i32
    %c0_i32_1 = arith.constant 0 : i32
    %c0_i32_2 = arith.constant 0 : i32
    return %c0_i32, %c0_i32_0, %c0_i32_1 : i32, i32, i32
  }
  func.func @transform_11(%arg0: i32) -> (i32, i32, i32) {
    %c0_i32 = arith.constant 0 : i32
    %c0_i32_0 = arith.constant 0 : i32
    %c0_i32_1 = arith.constant 0 : i32
    %c0_i32_2 = arith.constant 0 : i32
    return %c0_i32, %c0_i32_0, %c0_i32_1 : i32, i32, i32
  }
  func.func @transform_12(%arg0: i32) -> (i32, i32, i32) {
    %c0_i32 = arith.constant 0 : i32
    %c0_i32_0 = arith.constant 0 : i32
    %c0_i32_1 = arith.constant 0 : i32
    %c0_i32_2 = arith.constant 0 : i32
    return %c0_i32, %c0_i32_0, %c0_i32_1 : i32, i32, i32
  }
  func.func @transform_13(%arg0: i32) -> (i32, i32) {
    %c0_i32 = arith.constant 0 : i32
    %c0_i32_0 = arith.constant 0 : i32
    %c0_i32_1 = arith.constant 0 : i32
    return %c0_i32, %c0_i32_0 : i32, i32
  }
  func.func @transform_14(%arg0: i32) -> (i32, i32, i32) {
    %c0_i32 = arith.constant 0 : i32
    %c0_i32_0 = arith.constant 0 : i32
    %c0_i32_1 = arith.constant 0 : i32
    %c0_i32_2 = arith.constant 0 : i32
    return %c0_i32, %c0_i32_0, %c0_i32_1 : i32, i32, i32
  }
  func.func @transform_15(%arg0: i32) -> (i32, i32) {
    %c0_i32 = arith.constant 0 : i32
    %c0_i32_0 = arith.constant 0 : i32
    %c0_i32_1 = arith.constant 0 : i32
    return %c0_i32, %c0_i32_0 : i32, i32
  }
  func.func @transform_16(%arg0: i32) -> (i32, i32) {
    %c0_i32 = arith.constant 0 : i32
    %c0_i32_0 = arith.constant 0 : i32
    %c0_i32_1 = arith.constant 0 : i32
    return %c0_i32, %c0_i32_0 : i32, i32
  }
  func.func @transform_17(%arg0: i32) -> (i32, i32) {
    %c0_i32 = arith.constant 0 : i32
    %c0_i32_0 = arith.constant 0 : i32
    %c0_i32_1 = arith.constant 0 : i32
    return %c0_i32, %c0_i32_0 : i32, i32
  }
  func.func @transform_18(%arg0: i32) -> (i32, i32, i32) {
    %c0_i32 = arith.constant 0 : i32
    %c0_i32_0 = arith.constant 0 : i32
    %c0_i32_1 = arith.constant 0 : i32
    return %arg0, %c0_i32, %c0_i32_0 : i32, i32, i32
  }
}

module attributes {stable_mosaic.version = 11 : i64} {
  func.func @_vp_layer_kernel(%arg0: i32, %arg1: memref<1x15x32xf32, #tpu.memory_space<vmem>>, %arg2: memref<1x15x1xf32, #tpu.memory_space<vmem>>, %arg3: memref<3x32x32xf32, #tpu.memory_space<vmem>>, %arg4: memref<1x32xf32, #tpu.memory_space<vmem>>, %arg5: memref<1x32xf32, #tpu.memory_space<vmem>>, %arg6: memref<1x32xf32, #tpu.memory_space<vmem>>, %arg7: memref<32x1xf32, #tpu.memory_space<vmem>>, %arg8: memref<1x1xf32, #tpu.memory_space<vmem>>, %arg9: memref<1x15x1xf32, #tpu.memory_space<vmem>>, %arg10: memref<17x32xf32, #tpu.memory_space<vmem>>) attributes {dimension_semantics = [#tpu.dimension_semantics<parallel>], iteration_bounds = array<i64: 2>, scalar_prefetch = 0 : i64, scratch_operands = 1 : i64, tpu.core_type = #tpu.core_type<tc>, window_params = [{transform_indices = @transform_0, window_bounds = array<i64: 1, 15, 32>}, {transform_indices = @transform_1, window_bounds = array<i64: 1, 15, 1>}, {pipeline_mode = #tpu.pipeline_mode<synchronous>, transform_indices = @transform_2, window_bounds = array<i64: 3, 32, 32>}, {pipeline_mode = #tpu.pipeline_mode<synchronous>, transform_indices = @transform_3, window_bounds = array<i64: 1, 32>}, {pipeline_mode = #tpu.pipeline_mode<synchronous>, transform_indices = @transform_4, window_bounds = array<i64: 1, 32>}, {pipeline_mode = #tpu.pipeline_mode<synchronous>, transform_indices = @transform_5, window_bounds = array<i64: 1, 32>}, {pipeline_mode = #tpu.pipeline_mode<synchronous>, transform_indices = @transform_6, window_bounds = array<i64: 32, 1>}, {pipeline_mode = #tpu.pipeline_mode<synchronous>, transform_indices = @transform_7, window_bounds = array<i64: 1, 1>}, {transform_indices = @transform_8, window_bounds = array<i64: 1, 15, 1>}]} {
    %c0 = arith.constant 0 : index
    %c0_0 = arith.constant 0 : index
    %c0_1 = arith.constant 0 : index
    %0 = vector.load %arg1[%c0, %c0_0, %c0_1] : memref<1x15x32xf32, #tpu.memory_space<vmem>>, vector<1x15x32xf32>
    %1 = vector.shape_cast %0 : vector<1x15x32xf32> to vector<15x32xf32>
    %c0_2 = arith.constant 0 : index
    %c0_3 = arith.constant 0 : index
    %c0_4 = arith.constant 0 : index
    %2 = vector.load %arg2[%c0_2, %c0_3, %c0_4] : memref<1x15x1xf32, #tpu.memory_space<vmem>>, vector<1x15x1xf32>
    %3 = vector.shape_cast %2 : vector<1x15x1xf32> to vector<15x1xf32>
    %cst = arith.constant 0.000000e+00 : f32
    %4 = vector.broadcast %cst : f32 to vector<17x32xf32>
    %c0_5 = arith.constant 0 : index
    %c0_6 = arith.constant 0 : index
    %5 = vector.load %arg10[%c0_5, %c0_6] : memref<17x32xf32, #tpu.memory_space<vmem>>, vector<17x32xf32>
    tpu.vector_store %arg10[%c0_5, %c0_6], %4 {strides = array<i32>} : memref<17x32xf32, #tpu.memory_space<vmem>>, vector<17x32xf32>,
    %c1 = arith.constant 1 : index
    %c0_7 = arith.constant 0 : index
    %6 = vector.load %arg10[%c1, %c0_7] : memref<17x32xf32, #tpu.memory_space<vmem>>, vector<15x32xf32>
    tpu.vector_store %arg10[%c1, %c0_7], %1 {strides = array<i32>} : memref<17x32xf32, #tpu.memory_space<vmem>>, vector<15x32xf32>,
    %c0_8 = arith.constant 0 : index
    %c0_9 = arith.constant 0 : index
    %7 = vector.load %arg10[%c0_8, %c0_9] : memref<17x32xf32, #tpu.memory_space<vmem>>, vector<15x32xf32>
    %c0_10 = arith.constant 0 : index
    %c0_11 = arith.constant 0 : index
    %c0_12 = arith.constant 0 : index
    %8 = vector.load %arg3[%c0_10, %c0_11, %c0_12] : memref<3x32x32xf32, #tpu.memory_space<vmem>>, vector<1x32x32xf32>
    %9 = vector.shape_cast %8 : vector<1x32x32xf32> to vector<32x32xf32>
    %10 = arith.truncf %7 : vector<15x32xf32> to vector<15x32xbf16>
    %11 = arith.truncf %9 : vector<32x32xf32> to vector<32x32xbf16>
    %cst_13 = arith.constant dense<0.000000e+00> : vector<15x32xf32>
    %12 = tpu.matmul %10, %11, %cst_13 {dimension_numbers = #tpu.dot_dimension_numbers<[1], [0], [0], [1], [0, 0, 1, 1], [], []>} : vector<15x32xbf16>, vector<32x32xbf16>, vector<15x32xf32> -> vector<15x32xf32>
    %c1_14 = arith.constant 1 : index
    %c0_15 = arith.constant 0 : index
    %13 = vector.load %arg10[%c1_14, %c0_15] : memref<17x32xf32, #tpu.memory_space<vmem>>, vector<15x32xf32>
    %c1_16 = arith.constant 1 : index
    %c0_17 = arith.constant 0 : index
    %c0_18 = arith.constant 0 : index
    %14 = vector.load %arg3[%c1_16, %c0_17, %c0_18] : memref<3x32x32xf32, #tpu.memory_space<vmem>>, vector<1x32x32xf32>
    %15 = vector.shape_cast %14 : vector<1x32x32xf32> to vector<32x32xf32>
    %16 = arith.truncf %13 : vector<15x32xf32> to vector<15x32xbf16>
    %17 = arith.truncf %15 : vector<32x32xf32> to vector<32x32xbf16>
    %cst_19 = arith.constant dense<0.000000e+00> : vector<15x32xf32>
    %18 = tpu.matmul %16, %17, %cst_19 {dimension_numbers = #tpu.dot_dimension_numbers<[1], [0], [0], [1], [0, 0, 1, 1], [], []>} : vector<15x32xbf16>, vector<32x32xbf16>, vector<15x32xf32> -> vector<15x32xf32>
    %19 = arith.addf %12, %18 : vector<15x32xf32>
    %c2 = arith.constant 2 : index
    %c0_20 = arith.constant 0 : index
    %20 = vector.load %arg10[%c2, %c0_20] : memref<17x32xf32, #tpu.memory_space<vmem>>, vector<15x32xf32>
    %c2_21 = arith.constant 2 : index
    %c0_22 = arith.constant 0 : index
    %c0_23 = arith.constant 0 : index
    %21 = vector.load %arg3[%c2_21, %c0_22, %c0_23] : memref<3x32x32xf32, #tpu.memory_space<vmem>>, vector<1x32x32xf32>
    %22 = vector.shape_cast %21 : vector<1x32x32xf32> to vector<32x32xf32>
    %23 = arith.truncf %20 : vector<15x32xf32> to vector<15x32xbf16>
    %24 = arith.truncf %22 : vector<32x32xf32> to vector<32x32xbf16>
    %cst_24 = arith.constant dense<0.000000e+00> : vector<15x32xf32>
    %25 = tpu.matmul %23, %24, %cst_24 {dimension_numbers = #tpu.dot_dimension_numbers<[1], [0], [0], [1], [0, 0, 1, 1], [], []>} : vector<15x32xbf16>, vector<32x32xbf16>, vector<15x32xf32> -> vector<15x32xf32>
    %26 = arith.addf %19, %25 : vector<15x32xf32>
    %c0_25 = arith.constant 0 : index
    %c0_26 = arith.constant 0 : index
    %27 = vector.load %arg4[%c0_25, %c0_26] : memref<1x32xf32, #tpu.memory_space<vmem>>, vector<1x32xf32>
    %28 = vector.broadcast %27 : vector<1x32xf32> to vector<15x32xf32>
    %29 = arith.addf %26, %28 : vector<15x32xf32>
    %cst_27 = arith.constant 0.000000e+00 : f32
    %30 = vector.broadcast %cst_27 : f32 to vector<15x32xf32>
    %31 = arith.maximumf %29, %30 : vector<15x32xf32>
    %cst_28 = arith.constant dense<0.000000e+00> : vector<15xf32>
    %32 = vector.multi_reduction <add>, %31, %cst_28 [1] : vector<15x32xf32> to vector<15xf32>
    %33 = vector.shape_cast %32 : vector<15xf32> to vector<15x1xf32>
    %cst_29 = arith.constant 3.200000e+01 : f32
    %34 = vector.broadcast %cst_29 : f32 to vector<15x1xf32>
    %35 = arith.divf %33, %34 : vector<15x1xf32>
    %36 = vector.broadcast %35 : vector<15x1xf32> to vector<15x32xf32>
    %37 = arith.subf %31, %36 : vector<15x32xf32>
    %38 = arith.mulf %37, %37 : vector<15x32xf32>
    %cst_30 = arith.constant dense<0.000000e+00> : vector<15xf32>
    %39 = vector.multi_reduction <add>, %38, %cst_30 [1] : vector<15x32xf32> to vector<15xf32>
    %40 = vector.shape_cast %39 : vector<15xf32> to vector<15x1xf32>
    %cst_31 = arith.constant 3.200000e+01 : f32
    %41 = vector.broadcast %cst_31 : f32 to vector<15x1xf32>
    %42 = arith.divf %40, %41 : vector<15x1xf32>
    %cst_32 = arith.constant 9.99999974E-6 : f32
    %43 = vector.broadcast %cst_32 : f32 to vector<15x1xf32>
    %44 = arith.addf %42, %43 : vector<15x1xf32>
    %45 = math.rsqrt %44 : vector<15x1xf32>
    %46 = vector.broadcast %45 : vector<15x1xf32> to vector<15x32xf32>
    %47 = arith.mulf %37, %46 : vector<15x32xf32>
    %c0_33 = arith.constant 0 : index
    %c0_34 = arith.constant 0 : index
    %48 = vector.load %arg5[%c0_33, %c0_34] : memref<1x32xf32, #tpu.memory_space<vmem>>, vector<1x32xf32>
    %49 = vector.broadcast %48 : vector<1x32xf32> to vector<15x32xf32>
    %50 = arith.mulf %47, %49 : vector<15x32xf32>
    %c0_35 = arith.constant 0 : index
    %c0_36 = arith.constant 0 : index
    %51 = vector.load %arg6[%c0_35, %c0_36] : memref<1x32xf32, #tpu.memory_space<vmem>>, vector<1x32xf32>
    %52 = vector.broadcast %51 : vector<1x32xf32> to vector<15x32xf32>
    %53 = arith.addf %50, %52 : vector<15x32xf32>
    %54 = vector.broadcast %3 : vector<15x1xf32> to vector<15x32xf32>
    %55 = arith.mulf %53, %54 : vector<15x32xf32>
    %c0_37 = arith.constant 0 : index
    %c0_38 = arith.constant 0 : index
    %56 = vector.load %arg7[%c0_37, %c0_38] : memref<32x1xf32, #tpu.memory_space<vmem>>, vector<32x1xf32>
    %57 = arith.truncf %55 : vector<15x32xf32> to vector<15x32xbf16>
    %58 = arith.truncf %56 : vector<32x1xf32> to vector<32x1xbf16>
    %cst_39 = arith.constant dense<0.000000e+00> : vector<15x1xf32>
    %59 = tpu.matmul %57, %58, %cst_39 {dimension_numbers = #tpu.dot_dimension_numbers<[1], [0], [0], [1], [0, 0, 1, 1], [], []>} : vector<15x32xbf16>, vector<32x1xbf16>, vector<15x1xf32> -> vector<15x1xf32>
    %c0_40 = arith.constant 0 : index
    %c0_41 = arith.constant 0 : index
    %60 = vector.load %arg8[%c0_40, %c0_41] : memref<1x1xf32, #tpu.memory_space<vmem>>, vector<1x1xf32>
    %61 = vector.broadcast %60 : vector<1x1xf32> to vector<15x1xf32>
    %62 = arith.addf %59, %61 : vector<15x1xf32>
    %63 = arith.mulf %62, %3 : vector<15x1xf32>
    %c0_42 = arith.constant 0 : index
    %c0_43 = arith.constant 0 : index
    %c0_44 = arith.constant 0 : index
    %64 = vector.load %arg9[%c0_42, %c0_43, %c0_44] : memref<1x15x1xf32, #tpu.memory_space<vmem>>, vector<1x15x1xf32>
    %65 = vector.shape_cast %64 : vector<1x15x1xf32> to vector<15x1xf32>
    %66 = vector.shape_cast %63 : vector<15x1xf32> to vector<1x15x1xf32>
    tpu.vector_store %arg9[%c0_42, %c0_43, %c0_44], %66 {strides = array<i32>} : memref<1x15x1xf32, #tpu.memory_space<vmem>>, vector<1x15x1xf32>,
    return
  }
  func.func @transform_0(%arg0: i32) -> (i32, i32, i32) {
    %c0_i32 = arith.constant 0 : i32
    %c0_i32_0 = arith.constant 0 : i32
    %c0_i32_1 = arith.constant 0 : i32
    return %arg0, %c0_i32, %c0_i32_0 : i32, i32, i32
  }
  func.func @transform_1(%arg0: i32) -> (i32, i32, i32) {
    %c0_i32 = arith.constant 0 : i32
    %c0_i32_0 = arith.constant 0 : i32
    %c0_i32_1 = arith.constant 0 : i32
    return %arg0, %c0_i32, %c0_i32_0 : i32, i32, i32
  }
  func.func @transform_2(%arg0: i32) -> (i32, i32, i32) {
    %c0_i32 = arith.constant 0 : i32
    %c0_i32_0 = arith.constant 0 : i32
    %c0_i32_1 = arith.constant 0 : i32
    %c0_i32_2 = arith.constant 0 : i32
    return %c0_i32, %c0_i32_0, %c0_i32_1 : i32, i32, i32
  }
  func.func @transform_3(%arg0: i32) -> (i32, i32) {
    %c0_i32 = arith.constant 0 : i32
    %c0_i32_0 = arith.constant 0 : i32
    %c0_i32_1 = arith.constant 0 : i32
    return %c0_i32, %c0_i32_0 : i32, i32
  }
  func.func @transform_4(%arg0: i32) -> (i32, i32) {
    %c0_i32 = arith.constant 0 : i32
    %c0_i32_0 = arith.constant 0 : i32
    %c0_i32_1 = arith.constant 0 : i32
    return %c0_i32, %c0_i32_0 : i32, i32
  }
  func.func @transform_5(%arg0: i32) -> (i32, i32) {
    %c0_i32 = arith.constant 0 : i32
    %c0_i32_0 = arith.constant 0 : i32
    %c0_i32_1 = arith.constant 0 : i32
    return %c0_i32, %c0_i32_0 : i32, i32
  }
  func.func @transform_6(%arg0: i32) -> (i32, i32) {
    %c0_i32 = arith.constant 0 : i32
    %c0_i32_0 = arith.constant 0 : i32
    %c0_i32_1 = arith.constant 0 : i32
    return %c0_i32, %c0_i32_0 : i32, i32
  }
  func.func @transform_7(%arg0: i32) -> (i32, i32) {
    %c0_i32 = arith.constant 0 : i32
    %c0_i32_0 = arith.constant 0 : i32
    %c0_i32_1 = arith.constant 0 : i32
    return %c0_i32, %c0_i32_0 : i32, i32
  }
  func.func @transform_8(%arg0: i32) -> (i32, i32, i32) {
    %c0_i32 = arith.constant 0 : i32
    %c0_i32_0 = arith.constant 0 : i32
    %c0_i32_1 = arith.constant 0 : i32
    return %arg0, %c0_i32, %c0_i32_0 : i32, i32, i32
  }
}

module attributes {stable_mosaic.version = 11 : i64} {
  func.func @_add_pitch_mask_kernel(%arg0: i32, %arg1: memref<1x15x32xf32, #tpu.memory_space<vmem>>, %arg2: memref<1x15x32xf32, #tpu.memory_space<vmem>>, %arg3: memref<1x15x1xf32, #tpu.memory_space<vmem>>, %arg4: memref<1x15x32xf32, #tpu.memory_space<vmem>>) attributes {dimension_semantics = [#tpu.dimension_semantics<parallel>], iteration_bounds = array<i64: 2>, scalar_prefetch = 0 : i64, scratch_operands = 0 : i64, tpu.core_type = #tpu.core_type<tc>, window_params = [{transform_indices = @transform_0, window_bounds = array<i64: 1, 15, 32>}, {transform_indices = @transform_1, window_bounds = array<i64: 1, 15, 32>}, {transform_indices = @transform_2, window_bounds = array<i64: 1, 15, 1>}, {transform_indices = @transform_3, window_bounds = array<i64: 1, 15, 32>}]} {
    %c0 = arith.constant 0 : index
    %c0_0 = arith.constant 0 : index
    %c0_1 = arith.constant 0 : index
    %0 = vector.load %arg1[%c0, %c0_0, %c0_1] : memref<1x15x32xf32, #tpu.memory_space<vmem>>, vector<1x15x32xf32>
    %1 = vector.shape_cast %0 : vector<1x15x32xf32> to vector<15x32xf32>
    %c0_2 = arith.constant 0 : index
    %c0_3 = arith.constant 0 : index
    %c0_4 = arith.constant 0 : index
    %2 = vector.load %arg2[%c0_2, %c0_3, %c0_4] : memref<1x15x32xf32, #tpu.memory_space<vmem>>, vector<1x15x32xf32>
    %3 = vector.shape_cast %2 : vector<1x15x32xf32> to vector<15x32xf32>
    %4 = arith.addf %1, %3 : vector<15x32xf32>
    %c0_5 = arith.constant 0 : index
    %c0_6 = arith.constant 0 : index
    %c0_7 = arith.constant 0 : index
    %5 = vector.load %arg3[%c0_5, %c0_6, %c0_7] : memref<1x15x1xf32, #tpu.memory_space<vmem>>, vector<1x15x1xf32>
    %6 = vector.shape_cast %5 : vector<1x15x1xf32> to vector<15x1xf32>
    %7 = vector.broadcast %6 : vector<15x1xf32> to vector<15x32xf32>
    %8 = arith.mulf %4, %7 : vector<15x32xf32>
    %c0_8 = arith.constant 0 : index
    %c0_9 = arith.constant 0 : index
    %c0_10 = arith.constant 0 : index
    %9 = vector.load %arg4[%c0_8, %c0_9, %c0_10] : memref<1x15x32xf32, #tpu.memory_space<vmem>>, vector<1x15x32xf32>
    %10 = vector.shape_cast %9 : vector<1x15x32xf32> to vector<15x32xf32>
    %11 = vector.shape_cast %8 : vector<15x32xf32> to vector<1x15x32xf32>
    tpu.vector_store %arg4[%c0_8, %c0_9, %c0_10], %11 {strides = array<i32>} : memref<1x15x32xf32, #tpu.memory_space<vmem>>, vector<1x15x32xf32>,
    return
  }
  func.func @transform_0(%arg0: i32) -> (i32, i32, i32) {
    %c0_i32 = arith.constant 0 : i32
    %c0_i32_0 = arith.constant 0 : i32
    %c0_i32_1 = arith.constant 0 : i32
    return %arg0, %c0_i32, %c0_i32_0 : i32, i32, i32
  }
  func.func @transform_1(%arg0: i32) -> (i32, i32, i32) {
    %c0_i32 = arith.constant 0 : i32
    %c0_i32_0 = arith.constant 0 : i32
    %c0_i32_1 = arith.constant 0 : i32
    return %arg0, %c0_i32, %c0_i32_0 : i32, i32, i32
  }
  func.func @transform_2(%arg0: i32) -> (i32, i32, i32) {
    %c0_i32 = arith.constant 0 : i32
    %c0_i32_0 = arith.constant 0 : i32
    %c0_i32_1 = arith.constant 0 : i32
    return %arg0, %c0_i32, %c0_i32_0 : i32, i32, i32
  }
  func.func @transform_3(%arg0: i32) -> (i32, i32, i32) {
    %c0_i32 = arith.constant 0 : i32
    %c0_i32_0 = arith.constant 0 : i32
    %c0_i32_1 = arith.constant 0 : i32
    return %arg0, %c0_i32, %c0_i32_0 : i32, i32, i32
  }
}

</mosaic_0001>

<bundles_post_ra>
// kernel: prior_encoder_forward.8
= control target key start
LH: loop header
LB: loop body
LE: loop exit
PB: predicated region body
PF: predicated region fallthrough
CT: control target
= control target key end

     0   :  { %s798_s29 = smov 0   ;;  %s912_s0 = inlined_call_operand.vmem [shape: f32[2,8,32], index: 0, kind: input, shape index: {}]   ;;  %s913_s1 = inlined_call_operand.vmem [shape: f32[2,8,1], index: 1, kind: input, shape index: {}]   ;;  %s914_s2 = inlined_call_operand.vmem [shape: f32[3,32,32], index: 2, kind: input, shape index: {}]   ;;  %s915_s3 = inlined_call_operand.vmem [shape: f32[1,32], index: 3, kind: input, shape index: {}, may-alias: {3,5}]   ;;  %s916_s4 = inlined_call_operand.vmem [shape: f32[1,32], index: 4, kind: input, shape index: {}]   ;;  %s917_s5 = inlined_call_operand.vmem [shape: f32[1,32], index: 5, kind: input, shape index: {}, may-alias: {3,5}]   ;;  %s918_s6 = inlined_call_operand.vmem [shape: f32[32,1], index: 6, kind: input, shape index: {}]   ;;  %s919_s7 = inlined_call_operand.<no memory space> [shape: f32[1,1], index: 7, kind: input, shape index: {}]   ;;  %s920_s8 = inlined_call_operand.vmem [shape: f32[2,8,1], index: 8, kind: output, shape index: {}]  }
   0x1   :  { %v13_v0 = vstv %s919_s7 }
   0x2   :  { %14 = vst [vmem:[#allocation3] sm:$0x1] %v13_v0 }
   0x3 LB: > { %s654_s30 = sadd.s32 4294967295, %s745_s29   ;;  %p658_p0 = scmp.ge.s32.totalorder %s745_s29, 1  ;;  %s745_s29 = sphi %s798_s29, %s20_s29  }
   0x4   : > { %p272_p1 = scmp.lt.s32.totalorder %s745_s29, 3 }
   0x6   : > { %p273_p2 = pnand %p658_p0, %p272_p1 }
   0x7   : > { %v662_v1 = vld [vmem:[%s914_s2 + $0x20] sm:$0xff] (!%p273_p2)  ;;  %v663_v2 = vld [vmem:[%s914_s2 + $0x28] sm:$0xff] (!%p273_p2)  ;;  %p815_p3 = scmp.lt.s32.totalorder (!%p273_p2), %s654_s30, 1  ;;  %v747_v4 = vmov (!%p273_p2), 0.0   ;;  %v664_v7 = vld [vmem:[%s914_s2 + $0x30] sm:$0xff] (!%p273_p2)  ;;  %vm323_vm0 = vcmask (!%p273_p2), 261120  }
   0x8   : > { %276 = sbr.rel (%p273_p2) target bundleno = 789 (0x315), region = 52  ;;  %v329_v3 = vld [vmem:[%s914_s2] sm:$0xff] (!%p273_p2)  ;;  %692 = vmatprep.subr.bf16.mxu0 (!%p273_p2), %v747_v4  ;;  %v343_v5 = vpack.c.bf16 (!%p273_p2), %v663_v2, %v662_v1  ;;  %700 = vmatprep.subr.bf16.mxu1 (!%p273_p2), %v747_v4  ;;  %v330_v6 = vld [vmem:[%s914_s2 + $0x8] sm:$0xff] (!%p273_p2)  ;;  %v665_v8 = vld [vmem:[%s914_s2 + $0x38] sm:$0xff] (!%p273_p2)  ;;  %vm325_vm1 = vcmask (!%p273_p2), 254976   ;;  %vm748_vm2 = vmmov (!%p273_p2), 0  }
   0x9   : > { %v334_v9 = vpack.c.bf16 (!%p273_p2), %v330_v6, %v329_v3  ;;  %v331_v10 = vld [vmem:[%s914_s2 + $0x10] sm:$0xff] (!%p273_p2)  ;;  %v332_v11 = vld [vmem:[%s914_s2 + $0x18] sm:$0xff] (!%p273_p2)  ;;  %696 = vmatprep.mubr.msk.bf16.mxu0 (!%p273_p2), %vm748_vm2, %v747_v4  ;;  %704 = vmatprep.mubr.msk.bf16.mxu1 (!%p273_p2), %vm748_vm2, %v747_v4  ;;  %324 = vst.msk [vmem:[#allocation2] sm:$0xff] (!%p273_p2), %vm323_vm0, %v747_v4  ;;  %v344_v12 = vpack.c.bf16 (!%p273_p2), %v665_v8, %v664_v7  ;;  %v668_v15 = vld [vmem:[%s914_s2 + $0x40] sm:$0xff] (!%p273_p2)  ;;  %v749_v45 = vmov (!%p273_p2), 0   ;;  %vm587_vm3 = vcmask (!%p273_p2), 7168  }
   0xa   : > { %326 = vst.msk [vmem:[#allocation2 + $0x8] sm:$0x3] (!%p273_p2), %vm325_vm1, %v747_v4  ;;  %693 = vmatpush3.bf16.msra.mxu0 (!%p273_p2), %v343_v5  ;;  %v335_v13 = vpack.c.bf16 (!%p273_p2), %v332_v11, %v331_v10  ;;  %v669_v16 = vld [vmem:[%s914_s2 + $0x48] sm:$0xff] (!%p273_p2)  ;;  %v670_v22 = vld [vmem:[%s914_s2 + $0x50] sm:$0xff] (!%p273_p2)  ;;  %v671_v23 = vld [vmem:[%s914_s2 + $0x58] sm:$0xff] (!%p273_p2)  ;;  %735 = vset.pattern.permute.xlu1 (!%p273_p2), %v749_v45 }
   0xb   : > { %701 = vmatpush3.bf16.msra.mxu1 (!%p273_p2), %v334_v9  ;;  %694 = vmatprep.subr.bf16.mxu0 (!%p273_p2), %v747_v4  ;;  %v438_v19 = vpack.c.bf16 (!%p273_p2), %v669_v16, %v668_v15  ;;  %v439_v24 = vpack.c.bf16 (!%p273_p2), %v671_v23, %v670_v22  ;;  %v673_v37 = vld [vmem:[%s915_s3] ss:$0 sm:$0xff] (!%p273_p2)  ;;  %v530_v53 = vld [vmem:[%s918_s6 + $0x8] sm:$0xff] (!%p273_p2)  ;;  %v531_v55 = vld [vmem:[%s918_s6 + $0x10] sm:$0xff] (!%p273_p2) }
   0xc   : > { %702 = vmatprep.subr.bf16.mxu1 (!%p273_p2), %v747_v4  ;;  %736 = vset.pattern.permute.xlu0 (!%p273_p2), %v749_v45  ;;  %v529_v52 = vld [vmem:[%s918_s6] sm:$0xff] (!%p273_p2)  ;;  %v532_v56 = vld [vmem:[%s918_s6 + $0x18] sm:$0xff] (!%p273_p2)  ;;  %v676_v6 = vld [vmem:[#allocation3] ss:$0 sm:$0xff] (!%p273_p2) }
   0xd   : > { %v534_v54 = vpack.c.bf16 (!%p273_p2), %v530_v53, %v529_v52  ;;  %v535_v57 = vpack.c.bf16 (!%p273_p2), %v532_v56, %v531_v55  ;;  %v674_v62 = vld [vmem:[%s916_s4] ss:$0 sm:$0xff] (!%p273_p2) }
   0xe   : > { %695 = vmatpush3.bf16.msra.mxu0 (!%p273_p2), %v344_v12  ;;  %v675_v0 = vld [vmem:[%s917_s5] ss:$0 sm:$0xff] (!%p273_p2) }
   0xf   : > { %s923_s30 = smov (!%p815_p3, %s654_s30), 1  ;;  %703 = vmatpush3.bf16.msra.mxu1 %v335_v13  ;;  %708 = vmatprep.subr.bf16.mxu0 %v747_v4 }
  0x10   : > { %s846_s25 = sshll.u32 %s923_s30, 3  ;;  %716 = vmatprep.subr.bf16.mxu1 %v747_v4 }
  0x11   : > { %s311_s28 = scalar_lea.vmem %s912_s0, %s846_s25  ;;  %s315_s19 = scalar_lea.vmem %s913_s1, %s846_s25 }
  0x12   : > { %v321_v14 = vld [vmem:[%s311_s28] sm:$0xff]  ;;  %s319_s13 = scalar_lea.vmem %s920_s8, %s846_s25 }
  0x13   : > { %327 = vst.msk [vmem:[#allocation2 + $0x1] sm:$0xff] %vm323_vm0, %v321_v14  ;;  %v322_v46 = vld [vmem:[%s315_s19] sm:$0xff] }
  0x14   : > { %525 = vperm.xlu1 %735, %v322_v46  }
  0x1a   : > { %v336_v17 = vld [vmem:[#allocation2 + $0x1] sm:$0xff] }
  0x1b   : > { %v328_v18 = vld [vmem:[#allocation2] sm:$0xff]  ;;  %v342_v20 = vpack.c.bf16 %v336_v17, %v336_v17 }
  0x1c   : > { %v333_v21 = vpack.c.bf16 %v328_v18, %v328_v18  ;;  %v431_v25 = vld [vmem:[#allocation2 + $0x2] sm:$0xff] }
  0x1d   : > { %697 = vmatmul.mubr.msk.bf16.vlgmr.msra.gmra.mrb[0].mxu0 %vm323_vm0, %v342_v20  ;;  %v437_v26 = vpack.c.bf16 %v431_v25, %v431_v25 }
  0x1e   : > { %705 = vmatmul.mubr.msk.bf16.vlgmr.msra.gmra.mrb[0].mxu1 %vm323_vm0, %v333_v21  ;;  %709 = vmatpush3.bf16.msra.mxu0 %v438_v19 }
  0x1f   : > { %712 = vmatprep.mubr.msk.bf16.mxu0 %vm748_vm2, %v747_v4  ;;  %710 = vmatprep.subr.bf16.mxu0 %v747_v4 }
  0x20   : > { %720 = vmatprep.mubr.msk.bf16.mxu1 %vm748_vm2, %v747_v4  ;;  %717 = vmatpush3.bf16.msra.mxu1 %v534_v54 }
  0x21   : > { %718 = vmatprep.subr.bf16.mxu1 %v747_v4 }
  0x22   : > { %711 = vmatpush3.bf16.msra.mxu0 %v439_v24 }
  0x24   : > { %719 = vmatpush3.bf16.msra.mxu1 %v535_v57 }
  0x25   : > { %713 = vmatmul.mubr.msk.bf16.vlgmr.msra.gmra.mrb[4].mxu0 %vm323_vm0, %v437_v26 }
  0x93   : > { %v526_v2 = vpop.permute.xlu1 %525 }
  0xf0   : > { %v382_v27 = vpop.f32.mrb[0].mxu0 }
  0xf1   : > { %v425_v28 = vpop.f32.mrb[0].mxu1  ;;  %v698_v30 = vpop.f32.mrb[1].mxu0 }
  0xf2   : > { %v426_v29 = vadd.f32 %v425_v28, %v382_v27  ;;  %v706_v31 = vpop.f32.mrb[1].mxu1  ;;  %v385_v32 = vpop.f32.mrb[2].mxu0 }
  0xf3   : > { %v428_v33 = vpop.f32.mrb[2].mxu1  ;;  %v699_v34 = vpop.f32.mrb[3].mxu0 }
  0xf4   : > { %v707_v35 = vpop.f32.mrb[3].mxu1 }
  0xf8   : > { %v477_v36 = vpop.f32.mrb[4].mxu0 }
  0xf9   : > { %v483_v38 = vadd.f32 %v477_v36, %v426_v29  ;;  %v714_v39 = vpop.f32.mrb[5].mxu0 }
  0xfa   : > { %v480_v40 = vpop.f32.mrb[6].mxu0 }
  0xfb   : > { %v715_v41 = vpop.f32.mrb[7].mxu0  ;;  %v491_v42 = vadd.f32 %v673_v37, %v483_v38 }
  0xfd   : > { %v492_v43 = vmax.f32 %v491_v42, 0.0 }
  0xff   : > { %v493_v44 = vsel %vm323_vm0, %v492_v43, 0.0 }
 0x100   : > { %494 = vadd.xlane.f32.xlu0 %v493_v44 }
 0x18d   : > { %v495_v47 = vpop.xlane.xlu0 %494 }
 0x18e   : > { %v497_v48 = vmul.f32 0.03125, %v495_v47 }
 0x190   : > { %v498_v49 = vsub.f32 %v492_v43, %v497_v48 }
 0x192   : > { %v499_v50 = vmul.f32 %v498_v49, %v498_v49 }
 0x194   : > { %v500_v51 = vsel %vm323_vm0, %v499_v50, 0.0 }
 0x195   : > { %501 = vadd.xlane.f32.xlu0 %v500_v51 }
 0x222   : > { %v502_v58 = vpop.xlane.xlu0 %501 }
 0x223   : > { %v503_v59 = vmul.f32 0.03125, %v502_v58 }
 0x225   : > { %v504_v60 = vadd.f32 1e-05, %v503_v59 }
 0x227   : > { %737 = vrsqrt.f32 %v504_v60 }
 0x231   : > { %v738_v61 = vpop.eup %737 }
 0x232   : > { %v506_v63 = vmul.f32 %v738_v61, %v498_v49 }
 0x234   : > { %v514_v1 = vmul.f32 %v674_v62, %v506_v63 }
 0x236   : > { %v522_v3 = vadd.f32 %v675_v0, %v514_v1 }
 0x238   : > { %v528_v4 = vmul.f32 %v526_v2, %v522_v3 }
 0x23a   : > { %v533_v5 = vpack.c.bf16 %v528_v4, %v528_v4 }
 0x23c   : > { %721 = vmatmul.mubr.msk.bf16.vlgmr.msra.gmra.mrb[4].mxu1 %vm323_vm0, %v533_v5 }
 0x30f   : > { %v580_v7 = vpop.f32.mrb[4].mxu1 }
 0x310   : > { %v581_v8 = vadd.f32 %v676_v6, %v580_v7  ;;  %v722_v9 = vpop.f32.mrb[5].mxu1 }
 0x311   : > { %v583_v10 = vpop.f32.mrb[6].mxu1 }
 0x312   : > { %v586_v11 = vmul.f32 %v581_v8, %v322_v46  ;;  %v723_v12 = vpop.f32.mrb[7].mxu1 }
 0x314   : > { %588 = vst.msk [vmem:[%s319_s13] sm:$0xff] %vm587_vm3, %v586_v11 }
 0x315 PF: > { %s20_s29 = sadd.s32 1, %s745_s29  }
 0x316   : > { %p17_p4 = scmp.ge.s32.totalorder %s20_s29, 4  }
 0x318   :  { %19 = sbr.rel (!%p17_p4) target bundleno = 3 (0x3), region = 87 }

// kernel: prior_encoder_forward.7
= control target key start
LH: loop header
LB: loop body
LE: loop exit
PB: predicated region body
PF: predicated region fallthrough
CT: control target
= control target key end

     0   :  { %s1952_s27 = smov 0   ;;  %s2250_s0 = inlined_call_operand.vmem [shape: f32[2,8,32], index: 0, kind: input, shape index: {}]   ;;  %s2251_s1 = inlined_call_operand.vmem [shape: f32[2,8,1], index: 1, kind: input, shape index: {}]   ;;  %s2252_s2 = inlined_call_operand.vmem [shape: f32[2,6,32], index: 2, kind: input, shape index: {}]   ;;  %s2253_s3 = inlined_call_operand.vmem [shape: f32[2,1,6], index: 3, kind: input, shape index: {}]   ;;  %s2254_s4 = inlined_call_operand.vmem [shape: f32[1,32], index: 4, kind: input, shape index: {}, may-alias: {4,16}]   ;;  %s2255_s5 = inlined_call_operand.vmem [shape: f32[1,32], index: 5, kind: input, shape index: {}, may-alias: {5,13,15,17}]   ;;  %s2256_s6 = inlined_call_operand.vmem [shape: f32[2,32,16], index: 6, kind: input, shape index: {}]   ;;  %s2257_s7 = inlined_call_operand.vmem [shape: f32[2,1,16], index: 7, kind: input, shape index: {}, may-alias: {7,9,11}]   ;;  %s2258_s8 = inlined_call_operand.vmem [shape: f32[2,32,16], index: 8, kind: input, shape index: {}]   ;;  %s2259_s9 = inlined_call_operand.vmem [shape: f32[2,1,16], index: 9, kind: input, shape index: {}, may-alias: {7,9,11}]   ;;  %s2260_s10 = inlined_call_operand.vmem [shape: f32[2,32,16], index: 10, kind: input, shape index: {}]   ;;  %s2261_s11 = inlined_call_operand.vmem [shape: f32[2,1,16], index: 11, kind: input, shape index: {}, may-alias: {7,9,11}]   ;;  %s2262_s12 = inlined_call_operand.vmem [shape: f32[2,16,32], index: 12, kind: input, shape index: {}]   ;;  %s2263_s13 = inlined_call_operand.vmem [shape: f32[1,32], index: 13, kind: input, shape index: {}, may-alias: {5,13,15,17}]   ;;  %s2264_s14 = inlined_call_operand.vmem [shape: f32[3,32,32], index: 14, kind: input, shape index: {}]   ;;  %s2265_s15 = inlined_call_operand.vmem [shape: f32[1,32], index: 15, kind: input, shape index: {}, may-alias: {5,13,15,17}]   ;;  %s2266_s16 = inlined_call_operand.vmem [shape: f32[1,32], index: 16, kind: input, shape index: {}, may-alias: {4,16}]   ;;  %s2267_s17 = inlined_call_operand.vmem [shape: f32[1,32], index: 17, kind: input, shape index: {}, may-alias: {5,13,15,17}]   ;;  %s2268_s18 = inlined_call_operand.vmem [shape: f32[2,8,32], index: 18, kind: output, shape index: {}]  }
   0x1   :  { %2269 = sst [smem:[#allocation3_spill]] %s2250_s0 }
   0x2   :  { %2270 = sst [smem:[#allocation4_spill]] %s2251_s1 }
   0x3   :  { %2271 = sst [smem:[#allocation5_spill]] %s2252_s2 }
   0x4 LB: > { %s1612_s28 = sadd.s32 4294967295, %s1852_s27   ;;  %p1616_p0 = scmp.ge.s32.totalorder %s1852_s27, 1  ;;  %s1852_s27 = sphi %s1952_s27, %s28_s27  }
   0x5   : > { %p537_p1 = scmp.lt.s32.totalorder %s1852_s27, 3 }
   0x7   : > { %p538_p2 = pnand %p1616_p0, %p537_p1 }
   0x8   : > { %p600_p3 = scmp.lt.s32.totalorder (!%p538_p2), %s1612_s28, 1  ;;  %vm626_vm0 = vcmask (!%p538_p2), 261120   ;;  %s2272_s19 = sld [smem:[#allocation3_spill]] (!%p538_p2)  ;;  %v714_v7 = vld [vmem:[%s2258_s8] sm:$0xff] (!%p538_p2)  ;;  %v715_v8 = vld [vmem:[%s2258_s8 + $0x8] sm:$0xff] (!%p538_p2)  ;;  %v1854_v10 = vmov (!%p538_p2), 0.0   ;;  %v875_v59 = vlaneseq (!%p538_p2) }
   0x9   : > { %541 = sbr.rel (%p538_p2) target bundleno = 2833 (0xb11), region = 92  ;;  %v719_v9 = vpack.c.bf16 (!%p538_p2), %v715_v8, %v714_v7  ;;  %1722 = vmatprep.subr.bf16.mxu1 (!%p538_p2), %v1854_v10  ;;  %1321 = vst.msk [vmem:[#allocation2] sm:$0xff] (!%p538_p2), %vm626_vm0, %v1854_v10  ;;  %v716_v11 = vld [vmem:[%s2258_s8 + $0x10] sm:$0xff] (!%p538_p2)  ;;  %v717_v12 = vld [vmem:[%s2258_s8 + $0x18] sm:$0xff] (!%p538_p2)  ;;  %1714 = vmatprep.subr.bf16.mxu0 (!%p538_p2), %v1854_v10  ;;  %v657_v13 = vld [vmem:[%s2256_s6] sm:$0xff] (!%p538_p2)  ;;  %vm1855_vm1 = vmmov (!%p538_p2), 0  }
   0xa   : > { %v720_v14 = vpack.c.bf16 (!%p538_p2), %v717_v12, %v716_v11  ;;  %1726 = vmatprep.mubr.msk.bf16.mxu1 (!%p538_p2), %vm1855_vm1, %v1854_v10  ;;  %v658_v16 = vld [vmem:[%s2256_s6 + $0x8] sm:$0xff] (!%p538_p2)  ;;  %v659_v17 = vld [vmem:[%s2256_s6 + $0x10] sm:$0xff] (!%p538_p2)  ;;  %v660_v19 = vld [vmem:[%s2256_s6 + $0x18] sm:$0xff] (!%p538_p2)  ;;  %1718 = vmatprep.mubr.msk.bf16.mxu0 (!%p538_p2), %vm1855_vm1, %v1854_v10  ;;  %vm826_vm2 = vcmask (!%p538_p2), 130048   ;;  %v876_v61 = vshrl.u32 (!%p538_p2), %v875_v59, 7  ;;  %vm881_vm4 = vcmask (!%p538_p2), 48128  }
   0xb   : > { %1723 = vmatpush3.bf16.msra.mxu1 (!%p538_p2), %v719_v9  ;;  %v662_v18 = vpack.c.bf16 (!%p538_p2), %v658_v16, %v657_v13  ;;  %v663_v21 = vpack.c.bf16 (!%p538_p2), %v660_v19, %v659_v17  ;;  %v1621_v26 = vld [vmem:[%s2254_s4] ss:$0 sm:$0xff] (!%p538_p2)  ;;  %v1632_v42 = vld [vmem:[%s2256_s6 + $0x28] sm:$0xff] (!%p538_p2)  ;;  %v1633_v50 = vld [vmem:[%s2256_s6 + $0x30] sm:$0xff] (!%p538_p2)  ;;  %vm898_vm5 = vcmask (!%p538_p2), 1042432   ;;  %vm1322_vm6 = vcmask (!%p538_p2), 254976  }
   0xc   : > { %1724 = vmatprep.subr.bf16.mxu1 (!%p538_p2), %v1854_v10  ;;  %v1622_v28 = vld [vmem:[%s2255_s5] ss:$0 sm:$0xff] (!%p538_p2)  ;;  %v1634_v51 = vld [vmem:[%s2256_s6 + $0x38] sm:$0xff] (!%p538_p2)  ;;  %v772_v54 = vld [vmem:[%s2260_s10 + $0x8] sm:$0xff] (!%p538_p2)  ;;  %v877_v62 = vsub.s32 (!%p538_p2), 0, %v876_v61  ;;  %s2274_s30 = sld [smem:[#allocation4_spill]] (!%p538_p2) }
   0xd   : > { %1715 = vmatpush3.bf16.msra.mxu0 (!%p538_p2), %v662_v18  ;;  %v1625_v32 = vld [vmem:[%s2259_s9] ss:$0 sm:$0xff] (!%p538_p2)  ;;  %v952_v52 = vpack.c.bf16 (!%p538_p2), %v1634_v51, %v1633_v50  ;;  %v773_v55 = vld [vmem:[%s2260_s10 + $0x10] sm:$0xff] (!%p538_p2)  ;;  %v774_v57 = vld [vmem:[%s2260_s10 + $0x18] sm:$0xff] (!%p538_p2)  ;;  %1323 = vst.msk [vmem:[#allocation2 + $0x8] sm:$0x3] (!%p538_p2), %vm1322_vm6, %v1854_v10 }
   0xe   : > { %1716 = vmatprep.subr.bf16.mxu0 (!%p538_p2), %v1854_v10  ;;  %v1623_v40 = vld [vmem:[%s2257_s7] ss:$0 sm:$0xff] (!%p538_p2)  ;;  %v776_v58 = vpack.c.bf16 (!%p538_p2), %v774_v57, %v773_v55  ;;  %v1647_v55 = vld [vmem:[%s2260_s10 + $0x30] sm:$0xff] (!%p538_p2)  ;;  %v1648_v57 = vld [vmem:[%s2260_s10 + $0x38] sm:$0xff] (!%p538_p2) }
   0xf   : > { %1725 = vmatpush3.bf16.msra.mxu1 (!%p538_p2), %v720_v14  ;;  %v1631_v41 = vld [vmem:[%s2256_s6 + $0x20] sm:$0xff] (!%p538_p2) }
  0x10   : > { %s2276_s28 = smov (!%p600_p3, %s1612_s28), 1  ;;  %1738 = vmatprep.subr.bf16.mxu1 %v1854_v10  ;;  %v951_v47 = vpack.c.bf16 %v1632_v42, %v1631_v41  ;;  %v771_v53 = vld [vmem:[%s2260_s10] sm:$0xff] }
  0x11   : > { %s1963_s29 = sshll.u32 %s2276_s28, 3  ;;  %1717 = vmatpush3.bf16.msra.mxu0 %v663_v21  ;;  %v775_v56 = vpack.c.bf16 %v772_v54, %v771_v53  ;;  %v1643_v42 = vld [vmem:[%s2259_s9 + $0x1] ss:$0 sm:$0xff]  ;;  %v1646_v54 = vld [vmem:[%s2260_s10 + $0x28] sm:$0xff] }
  0x12   : > { %s603_s1 = scalar_lea.vmem %s2272_s19, %s1963_s29  ;;  %s2273_s19 = sld [smem:[#allocation5_spill]]  ;;  %1730 = vmatprep.subr.bf16.mxu0 %v1854_v10  ;;  %v1645_v53 = vld [vmem:[%s2260_s10 + $0x20] sm:$0xff] }
  0x13   : > { %v1969_v0 = vld [vmem:[%s603_s1] sm:$0xff]  ;;  %s607_s0 = scalar_lea.vmem %s2274_s30, %s1963_s29  ;;  %s618_s2 = scalar_lea.vmem %s2268_s18, %s1963_s29 }
  0x14   : > { %v627_v1 = vsel %vm626_vm0, %v1969_v0, 0.0 }
  0x15   : > { %628 = vadd.xlane.f32.xlu0 %v627_v1 }
  0x18   : > { %s611_s1 = scalar_lea.vmem %s2273_s19, %s1963_s29  ;;  %s614_s19 = scalar_lea.vmem %s2253_s3, %s2276_s28 }
  0x19   : > { %v622_v15 = vld [vmem:[%s611_s1] sm:$0x3f] }
  0x1a   : > { %v2012_v20 = vpack.c.bf16 %v622_v15, %v622_v15  ;;  %v623_v60 = vld [vmem:[%s614_s19] sm:$0x1] }
  0x1b   : > { %vm624_vm3 = vcmp.eq.f32.partialorder %v623_v60, 0.0 }
  0x1c   : > { %1727 = vmatmul.mubr.msk.bf16.vlgmr.msra.gmra.mrb[0].mxu1 %vm626_vm0, %v2012_v20  ;;  %v625_v63 = vsel %vm624_vm3, -1e+09, %v1854_v10 }
  0x1d   : > { %1740 = vmatprep.mubr.msk.bf16.mxu1 %vm1855_vm1, %v1854_v10  ;;  %v2081_v1 = vrot.slane %v625_v63, %v877_v62 }
  0xa2   : > { %v629_v2 = vpop.xlane.xlu0 %628 }
  0xa3   : > { %v631_v3 = vmul.f32 0.03125, %v629_v2 }
  0xa5   : > { %v632_v4 = vsub.f32 %v1969_v0, %v631_v3 }
  0xa7   : > { %v633_v5 = vmul.f32 %v632_v4, %v632_v4 }
  0xa9   : > { %v634_v6 = vsel %vm626_vm0, %v633_v5, 0.0 }
  0xaa   : > { %635 = vadd.xlane.f32.xlu0 %v634_v6 }
  0xef   : > { %v765_v33 = vpop.f32.mrb[0].mxu1 }
  0xf0   : > { %v766_v34 = vadd.f32 %v1625_v32, %v765_v33  ;;  %v1728_v35 = vpop.f32.mrb[1].mxu1 }
  0xf1   : > { %v768_v36 = vpop.f32.mrb[2].mxu1  ;;  %v1640_v35 = vld [vmem:[%s2258_s8 + $0x30] sm:$0xff] }
  0xf2   : > { %v825_v37 = vpack.c.bf16 %v766_v34, %v766_v34  ;;  %v1729_v38 = vpop.f32.mrb[3].mxu1  ;;  %v1641_v36 = vld [vmem:[%s2258_s8 + $0x38] sm:$0xff] }
  0xf4   : > { %v831_v39 = vsel %vm826_vm2, %v825_v37, 0  ;;  %v1007_v37 = vpack.c.bf16 %v1641_v36, %v1640_v35 }
  0xf5   : > { %1739 = vmatpush3.bf16.xpose.msra.mxu1 %v831_v39 }
  0xf6   : > { %1750 = vmatprep.subr.bf16.mxu1 %v1854_v10 }
 0x137   : > { %v636_v22 = vpop.xlane.xlu0 %635 }
 0x138   : > { %v637_v23 = vmul.f32 0.03125, %v636_v22 }
 0x13a   : > { %v638_v24 = vadd.f32 1e-05, %v637_v23  ;;  %v1627_v23 = vld [vmem:[%s2261_s11] ss:$0 sm:$0xff] }
 0x13c   : > { %1834 = vrsqrt.f32 %v638_v24 }
 0x146   : > { %v1835_v25 = vpop.eup %1834 }
 0x147   : > { %v640_v27 = vmul.f32 %v1835_v25, %v632_v4 }
 0x149   : > { %v648_v29 = vmul.f32 %v1621_v26, %v640_v27 }
 0x14b   : > { %v656_v30 = vadd.f32 %v1622_v28, %v648_v29  ;;  %v1638_v29 = vld [vmem:[%s2258_s8 + $0x20] sm:$0xff] }
 0x14d   : > { %v661_v31 = vpack.c.bf16 %v656_v30, %v656_v30  ;;  %v1639_v30 = vld [vmem:[%s2258_s8 + $0x28] sm:$0xff] }
 0x14e   : > { %v1006_v33 = vpack.c.bf16 %v1639_v30, %v1638_v29 }
 0x14f   : > { %1719 = vmatmul.mubr.msk.bf16.vlgmr.msra.gmra.mrb[0].mxu0 %vm626_vm0, %v661_v31 }
 0x150   : > { %1734 = vmatprep.mubr.msk.bf16.mxu0 %vm1855_vm1, %v1854_v10  ;;  %1731 = vmatpush3.bf16.msra.mxu0 %v775_v56  ;;  %v1061_v56 = vpack.c.bf16 %v1646_v54, %v1645_v53 }
 0x151   : > { %1732 = vmatprep.subr.bf16.mxu0 %v1854_v10 }
 0x154   : > { %1733 = vmatpush3.bf16.msra.mxu0 %v776_v58  ;;  %v1062_v58 = vpack.c.bf16 %v1648_v57, %v1647_v55 }
 0x155   : > { %1744 = vmatprep.subr.bf16.mxu0 %v1854_v10 }
 0x157   : > { %1735 = vmatmul.mubr.msk.bf16.vlgmr.msra.gmra.mrb[4].mxu0 %vm626_vm0, %v2012_v20 }
 0x158   : > { %1746 = vmatprep.mubr.msk.bf16.mxu0 %vm1855_vm1, %v1854_v10 }
 0x222   : > { %v708_v43 = vpop.f32.mrb[0].mxu0 }
 0x223   : > { %v709_v44 = vadd.f32 %v1623_v40, %v708_v43  ;;  %v1720_v45 = vpop.f32.mrb[1].mxu0 }
 0x224   : > { %v711_v46 = vpop.f32.mrb[2].mxu0 }
 0x225   : > { %v824_v48 = vpack.c.bf16 %v709_v44, %v709_v44  ;;  %v1721_v49 = vpop.f32.mrb[3].mxu0 }
 0x226   : > { %v1636_v49 = vld [vmem:[%s2257_s7 + $0x1] ss:$0 sm:$0xff] }
 0x227   : > { %1741 = vmatmul.mubr.msk.bf16.vlgmr.msra.gmra.mrb[4].mxu1 %vm826_vm2, %v824_v48 }
 0x228   : > { %1751 = vmatpush3.bf16.msra.mxu1 %v951_v47  ;;  %1754 = vmatprep.mubr.msk.bf16.mxu1 %vm1855_vm1, %v1854_v10 }
 0x229   : > { %1752 = vmatprep.subr.bf16.mxu1 %v1854_v10 }
 0x22a   : > { %v818_v19 = vpop.f32.mrb[4].mxu0 }
 0x22b   : > { %v1736_v21 = vpop.f32.mrb[5].mxu0  ;;  %v819_v25 = vadd.f32 %v1627_v23, %v818_v19 }
 0x22c   : > { %1753 = vmatpush3.bf16.msra.mxu1 %v952_v52  ;;  %v821_v22 = vpop.f32.mrb[6].mxu0  ;;  %v942_v21 = vld [vmem:[%s2262_s12] sm:$0xff] }
 0x22d   : > { %1766 = vmatprep.subr.bf16.mxu1 %v1854_v10  ;;  %v1737_v24 = vpop.f32.mrb[7].mxu0  ;;  %v894_v26 = vpack.c.bf16 %v819_v25, %v819_v25  ;;  %v943_v22 = vld [vmem:[%s2262_s12 + $0x8] sm:$0xff] }
 0x22e   : > { %v945_v25 = vpack.c.bf16 %v943_v22, %v942_v21 }
 0x22f   : > { %1755 = vmatmul.mubr.msk.bf16.vlgmr.msra.gmra.mrb[8].mxu1 %vm626_vm0, %v661_v31  ;;  %v900_v27 = vsel %vm898_vm5, %v894_v26, 0 }
 0x230   : > { %1770 = vmatprep.mubr.msk.bf16.mxu1 %vm1855_vm1, %v1854_v10  ;;  %1745 = vmatpush3.bf16.msra.mxu0 %v900_v27 }
 0x231   : > { %1758 = vmatprep.subr.bf16.mxu0 %v1854_v10  ;;  %1767 = vmatpush3.bf16.msra.mxu1 %v1061_v56 }
 0x232   : > { %1768 = vmatprep.subr.bf16.mxu1 %v1854_v10 }
 0x235   : > { %1769 = vmatpush3.bf16.msra.mxu1 %v1062_v58  ;;  %v1665_v58 = vld [vmem:[%s2264_s14 + $0x40] sm:$0xff] }
 0x236   : > { %1780 = vmatprep.subr.bf16.mxu1 %v1854_v10 }
 0x238   : > { %1771 = vmatmul.mubr.msk.bf16.vlgmr.msra.gmra.mrb[12].mxu1 %vm626_vm0, %v2012_v20 }
 0x239   : > { %1782 = vmatprep.mubr.msk.bf16.mxu1 %vm1855_vm1, %v1854_v10 }
 0x2fa   : > { %v867_v2 = vpop.f32.mrb[4].mxu1 }
 0x2fb   : > { %v873_v3 = vmul.f32 0.25, %v867_v2  ;;  %v1742_v4 = vpop.f32.mrb[5].mxu1 }
 0x2fc   : > { %v870_v5 = vpop.f32.mrb[6].mxu1  ;;  %v1650_v4 = vld [vmem:[%s2261_s11 + $0x1] ss:$0 sm:$0xff] }
 0x2fd   : > { %v1743_v6 = vpop.f32.mrb[7].mxu1  ;;  %v880_v7 = vadd.f32 %v2081_v1, %v873_v3 }
 0x2ff   : > { %v882_v8 = vsel %vm881_vm4, %v880_v7, -inf }
 0x300   : > { %883 = vmax.xlane.f32.xlu1 %v882_v8 }
 0x302   : > { %v995_v9 = vpop.f32.mrb[8].mxu1 }
 0x303   : > { %v1756_v11 = vpop.f32.mrb[9].mxu1  ;;  %v996_v51 = vadd.f32 %v1636_v49, %v995_v9 }
 0x304   : > { %v998_v12 = vpop.f32.mrb[10].mxu1 }
 0x305   : > { %v1757_v13 = vpop.f32.mrb[11].mxu1  ;;  %v1111_v52 = vpack.c.bf16 %v996_v51, %v996_v51 }
 0x30b   : > { %v1105_v5 = vpop.f32.mrb[12].mxu1 }
 0x30c   : > { %v1106_v6 = vadd.f32 %v1650_v4, %v1105_v5 }
 0x30e   : > { %v1173_v8 = vpack.c.bf16 %v1106_v6, %v1106_v6 }
 0x310   : > { %v1178_v11 = vsel %vm898_vm5, %v1173_v8, 0 }
 0x311   : > { %1781 = vmatpush3.bf16.msra.mxu1 %v1178_v11 }
 0x312   : > { %1792 = vmatprep.subr.bf16.mxu1 %v1854_v10 }
 0x38d   : > { %v884_v14 = vpop.xlane.xlu1 %883 }
 0x38e   : > { %v885_v15 = vsub.f32 %v880_v7, %v884_v14 }
 0x390   : > { %v886_v16 = vmul.f32 1.442695, %v885_v15 }
 0x392   : > { %1836 = vpow2.f32 %v886_v16  ;;  %v1654_v16 = vld [vmem:[%s2262_s12 + $0x10] sm:$0xff] }
 0x39c   : > { %v1837_v17 = vpop.eup %1836 }
 0x39d   : > { %v888_v18 = vsel %vm881_vm4, %v1837_v17, 0.0 }
 0x39e   : > { %889 = vadd.xlane.f32.xlu1 %v888_v18 }
 0x42b   : > { %v890_v28 = vpop.xlane.xlu1 %889 }
 0x42c   : > { %1838 = vrcp.f32 %v890_v28 }
 0x436   : > { %v1839_v31 = vpop.eup %1838 }
 0x437   : > { %v892_v32 = vmul.f32 %v1839_v31, %v1837_v17  ;;  %v1655_v17 = vld [vmem:[%s2262_s12 + $0x18] sm:$0xff] }
 0x438   : > { %v1224_v18 = vpack.c.bf16 %v1655_v17, %v1654_v16 }
 0x439   : > { %v893_v34 = vpack.c.bf16 %v892_v32, %v892_v32 }
 0x43b   : > { %1747 = vmatmul.mubr.msk.bf16.vlgmr.msra.gmra.mrb[8].mxu0 %vm881_vm4, %v893_v34 }
 0x43c   : > { %1759 = vmatpush3.bf16.msra.mxu0 %v1006_v33  ;;  %1762 = vmatprep.mubr.msk.bf16.mxu0 %vm1855_vm1, %v1854_v10 }
 0x43d   : > { %1760 = vmatprep.subr.bf16.mxu0 %v1854_v10 }
 0x440   : > { %1761 = vmatpush3.bf16.msra.mxu0 %v1007_v37  ;;  %v1659_v37 = vld [vmem:[%s2264_s14 + $0x20] sm:$0xff] }
 0x441   : > { %1774 = vmatprep.subr.bf16.mxu0 %v1854_v10 }
 0x443   : > { %1763 = vmatmul.mubr.msk.bf16.vlgmr.msra.gmra.mrb[12].mxu0 %vm626_vm0, %v2012_v20  ;;  %v1772_v20 = vpop.f32.mrb[13].mxu1 }
 0x444   : > { %1776 = vmatprep.mubr.msk.bf16.mxu0 %vm1855_vm1, %v1854_v10  ;;  %v1108_v7 = vpop.f32.mrb[14].mxu1 }
 0x445   : > { %v1773_v9 = vpop.f32.mrb[15].mxu1 }
 0x50e   : > { %v2112_v38 = vpop.f32.mrb[8].mxu0 }
 0x50f   : > { %v1748_v39 = vpop.f32.mrb[9].mxu0  ;;  %v944_v27 = vpack.c.bf16 %v2112_v38, %v2112_v38  ;;  %v1660_v38 = vld [vmem:[%s2264_s14 + $0x28] sm:$0xff] }
 0x510   : > { %v939_v40 = vpop.f32.mrb[10].mxu0  ;;  %v1326_v39 = vld [vmem:[%s2264_s14] sm:$0xff] }
 0x511   : > { %v1749_v41 = vpop.f32.mrb[11].mxu0  ;;  %v1340_v40 = vpack.c.bf16 %v1660_v38, %v1659_v37  ;;  %v1672_v37 = vld [vmem:[%s2267_s17] ss:$0 sm:$0xff] }
 0x512   : > { %v1327_v41 = vld [vmem:[%s2264_s14 + $0x8] sm:$0xff] }
 0x516   : > { %v1050_v43 = vpop.f32.mrb[12].mxu0 }
 0x517   : > { %v1051_v44 = vadd.f32 %v1643_v42, %v1050_v43  ;;  %v1764_v45 = vpop.f32.mrb[13].mxu0  ;;  %v1661_v42 = vld [vmem:[%s2264_s14 + $0x30] sm:$0xff]  ;;  %v1662_v43 = vld [vmem:[%s2264_s14 + $0x38] sm:$0xff] }
 0x518   : > { %v1053_v46 = vpop.f32.mrb[14].mxu0  ;;  %v1328_v45 = vld [vmem:[%s2264_s14 + $0x10] sm:$0xff] }
 0x519   : > { %v1112_v47 = vpack.c.bf16 %v1051_v44, %v1051_v44  ;;  %v1765_v48 = vpop.f32.mrb[15].mxu0  ;;  %v1331_v44 = vpack.c.bf16 %v1327_v41, %v1326_v39  ;;  %v1329_v46 = vld [vmem:[%s2264_s14 + $0x18] sm:$0xff] }
 0x51a   : > { %v1332_v48 = vpack.c.bf16 %v1329_v46, %v1328_v45 }
 0x51b   : > { %v1117_v50 = vsel %vm826_vm2, %v1112_v47, 0  ;;  %v1341_v47 = vpack.c.bf16 %v1662_v43, %v1661_v42 }
 0x51c   : > { %1775 = vmatpush3.bf16.xpose.msra.mxu0 %v1117_v50  ;;  %v1658_v50 = vld [vmem:[%s2263_s13] ss:$0 sm:$0xff] }
 0x51d   : > { %1786 = vmatprep.subr.bf16.mxu0 %v1854_v10 }
 0x523   : > { %1777 = vmatmul.mubr.msk.bf16.vlgmr.msra.gmra.mrb[16].mxu0 %vm826_vm2, %v1111_v52 }
 0x524   : > { %1788 = vmatprep.mubr.msk.bf16.mxu0 %vm1855_vm1, %v1854_v10  ;;  %1787 = vmatpush3.bf16.msra.mxu0 %v1224_v18 }
 0x525   : > { %1798 = vmatprep.subr.bf16.mxu0 %v1854_v10 }
 0x5f6   : > { %v1153_v59 = vpop.f32.mrb[16].mxu0 }
 0x5f7   : > { %v1159_v60 = vmul.f32 0.25, %v1153_v59  ;;  %v1778_v61 = vpop.f32.mrb[17].mxu0  ;;  %v1666_v59 = vld [vmem:[%s2264_s14 + $0x48] sm:$0xff] }
 0x5f8   : > { %v1156_v62 = vpop.f32.mrb[18].mxu0 }
 0x5f9   : > { %v1779_v63 = vpop.f32.mrb[19].mxu0  ;;  %v1160_v2 = vadd.f32 %v1159_v60, %v2081_v1  ;;  %v1435_v62 = vpack.c.bf16 %v1666_v59, %v1665_v58 }
 0x5fb   : > { %v1161_v3 = vsel %vm881_vm4, %v1160_v2, -inf }
 0x5fc   : > { %1162 = vmax.xlane.f32.xlu0 %v1161_v3  ;;  %v1668_v3 = vld [vmem:[%s2264_s14 + $0x58] sm:$0xff] }
 0x689   : > { %v1163_v12 = vpop.xlane.xlu0 %1162 }
 0x68a   : > { %v1164_v1 = vsub.f32 %v1160_v2, %v1163_v12 }
 0x68c   : > { %v1165_v13 = vmul.f32 1.442695, %v1164_v1 }
 0x68e   : > { %1840 = vpow2.f32 %v1165_v13 }
 0x698   : > { %v1841_v14 = vpop.eup %1840 }
 0x699   : > { %v1167_v15 = vsel %vm881_vm4, %v1841_v14, 0.0 }
 0x69a   : > { %1168 = vadd.xlane.f32.xlu1 %v1167_v15 }
 0x727   : > { %v1169_v19 = vpop.xlane.xlu1 %1168 }
 0x728   : > { %1842 = vrcp.f32 %v1169_v19 }
 0x732   : > { %v1843_v23 = vpop.eup %1842 }
 0x733   : > { %v1171_v24 = vmul.f32 %v1843_v23, %v1841_v14 }
 0x735   : > { %v1172_v26 = vpack.c.bf16 %v1171_v24, %v1171_v24  ;;  %v1856_v24 = vmov 0  }
 0x736   : > { %1833 = vset.pattern.permute.xlu0 %v1856_v24 }
 0x737   : > { %1783 = vmatmul.mubr.msk.bf16.vlgmr.msra.gmra.mrb[16].mxu1 %vm881_vm4, %v1172_v26 }
 0x738   : > { %1793 = vmatpush3.bf16.msra.mxu1 %v945_v25  ;;  %1794 = vmatprep.mubr.msk.bf16.mxu1 %vm1855_vm1, %v1854_v10  ;;  %v621_v25 = vld [vmem:[%s607_s0] sm:$0xff] }
 0x739   : > { %1806 = vmatprep.subr.bf16.mxu1 %v1854_v10 }
 0x73f   : > { %1795 = vmatmul.mubr.msk.bf16.vlgmr.msra.gmra.mrb[20].mxu1 %vm826_vm2, %v944_v27 }
 0x740   : > { %1810 = vmatprep.mubr.msk.bf16.mxu1 %vm1855_vm1, %v1854_v10  ;;  %1807 = vmatpush3.bf16.msra.mxu1 %v1331_v44 }
 0x741   : > { %1808 = vmatprep.subr.bf16.mxu1 %v1854_v10 }
 0x744   : > { %1809 = vmatpush3.bf16.msra.mxu1 %v1332_v48 }
 0x80a   : > { %v1214_v28 = vpop.f32.mrb[16].mxu1 }
 0x80b   : > { %v1223_v29 = vpack.c.bf16 %v1214_v28, %v1214_v28  ;;  %v1784_v30 = vpop.f32.mrb[17].mxu1 }
 0x80c   : > { %v1217_v31 = vpop.f32.mrb[18].mxu1 }
 0x80d   : > { %v1785_v32 = vpop.f32.mrb[19].mxu1  ;;  %1789 = vmatmul.mubr.msk.bf16.vlgmr.msra.gmra.mrb[20].mxu0 %vm826_vm2, %v1223_v29 }
 0x80e   : > { %1802 = vmatprep.mubr.msk.bf16.mxu0 %vm1855_vm1, %v1854_v10  ;;  %1799 = vmatpush3.bf16.msra.mxu0 %v1340_v40 }
 0x80f   : > { %1800 = vmatprep.subr.bf16.mxu0 %v1854_v10 }
 0x812   : > { %v1305_v33 = vpop.f32.mrb[20].mxu1  ;;  %1801 = vmatpush3.bf16.msra.mxu0 %v1341_v47 }
 0x813   : > { %v1796_v34 = vpop.f32.mrb[21].mxu1  ;;  %1814 = vmatprep.subr.bf16.mxu0 %v1854_v10 }
 0x814   : > { %v1308_v35 = vpop.f32.mrb[22].mxu1 }
 0x815   : > { %v1797_v36 = vpop.f32.mrb[23].mxu1  ;;  %v1671_v35 = vld [vmem:[%s2266_s16] ss:$0 sm:$0xff] }
 0x8e0   : > { %v1262_v49 = vpop.f32.mrb[20].mxu0 }
 0x8e1   : > { %v1306_v51 = vadd.f32 %v1305_v33, %v1262_v49  ;;  %v1790_v52 = vpop.f32.mrb[21].mxu0 }
 0x8e2   : > { %v1265_v53 = vpop.f32.mrb[22].mxu0 }
 0x8e3   : > { %v1318_v54 = vadd.f32 %v1658_v50, %v1306_v51  ;;  %v1791_v55 = vpop.f32.mrb[23].mxu0 }
 0x8e5   : > { %v1319_v56 = vadd.f32 %v1318_v54, %v1969_v0  ;;  %v1667_v0 = vld [vmem:[%s2264_s14 + $0x50] sm:$0xff] }
 0x8e6   : > { %v1436_v4 = vpack.c.bf16 %v1668_v3, %v1667_v0 }
 0x8e7   : > { %v1320_v57 = vmul.f32 0.70710677, %v1319_v56 }
 0x8e9   : > { %1324 = vst.msk [vmem:[#allocation2 + $0x1] sm:$0xff] %vm626_vm0, %v1320_v57 }
 0x8f0   : > { %v1333_v60 = vld [vmem:[#allocation2 + $0x1] sm:$0xff] }
 0x8f1   : > { %v1325_v61 = vld [vmem:[#allocation2] sm:$0xff]  ;;  %v1339_v63 = vpack.c.bf16 %v1333_v60, %v1333_v60 }
 0x8f2   : > { %v1330_v2 = vpack.c.bf16 %v1325_v61, %v1325_v61  ;;  %v1428_v5 = vld [vmem:[#allocation2 + $0x2] sm:$0xff] }
 0x8f3   : > { %1803 = vmatmul.mubr.msk.bf16.vlgmr.msra.gmra.mrb[24].mxu0 %vm626_vm0, %v1339_v63  ;;  %v1434_v6 = vpack.c.bf16 %v1428_v5, %v1428_v5 }
 0x8f4   : > { %1811 = vmatmul.mubr.msk.bf16.vlgmr.msra.gmra.mrb[24].mxu1 %vm626_vm0, %v1330_v2  ;;  %1815 = vmatpush3.bf16.msra.mxu0 %v1435_v62 }
 0x8f5   : > { %1818 = vmatprep.mubr.msk.bf16.mxu0 %vm1855_vm1, %v1854_v10  ;;  %1816 = vmatprep.subr.bf16.mxu0 %v1854_v10  ;;  %v1670_v10 = vld [vmem:[%s2265_s15] ss:$0 sm:$0xff] }
 0x8f8   : > { %1817 = vmatpush3.bf16.msra.mxu0 %v1436_v4 }
 0x8fb   : > { %1819 = vmatmul.mubr.msk.bf16.vlgmr.msra.gmra.mrb[28].mxu0 %vm626_vm0, %v1434_v6 }
 0x9c6   : > { %v1379_v20 = vpop.f32.mrb[24].mxu0 }
 0x9c7   : > { %v1422_v7 = vpop.f32.mrb[24].mxu1  ;;  %v1804_v9 = vpop.f32.mrb[25].mxu0 }
 0x9c8   : > { %v1423_v8 = vadd.f32 %v1422_v7, %v1379_v20  ;;  %v1812_v11 = vpop.f32.mrb[25].mxu1  ;;  %v1382_v12 = vpop.f32.mrb[26].mxu0 }
 0x9c9   : > { %v1425_v1 = vpop.f32.mrb[26].mxu1  ;;  %v1805_v13 = vpop.f32.mrb[27].mxu0 }
 0x9ca   : > { %v1813_v14 = vpop.f32.mrb[27].mxu1 }
 0x9ce   : > { %v1474_v15 = vpop.f32.mrb[28].mxu0 }
 0x9cf   : > { %v1480_v16 = vadd.f32 %v1474_v15, %v1423_v8  ;;  %v1820_v17 = vpop.f32.mrb[29].mxu0 }
 0x9d0   : > { %v1477_v18 = vpop.f32.mrb[30].mxu0 }
 0x9d1   : > { %v1488_v19 = vadd.f32 %v1670_v10, %v1480_v16  ;;  %v1821_v21 = vpop.f32.mrb[31].mxu0 }
 0x9d3   : > { %v1489_v22 = vmax.f32 %v1488_v19, 0.0 }
 0x9d5   : > { %v1490_v23 = vsel %vm626_vm0, %v1489_v22, 0.0 }
 0x9d6   : > { %1491 = vadd.xlane.f32.xlu0 %v1490_v23 }
 0x9ec   : > { %1521 = vperm.xlu0 %1833, %v621_v25  }
 0xa63   : > { %v1492_v26 = vpop.xlane.xlu0 %1491 }
 0xa64   : > { %v1493_v27 = vmul.f32 0.03125, %v1492_v26 }
 0xa66   : > { %v1494_v28 = vsub.f32 %v1489_v22, %v1493_v27 }
 0xa68   : > { %v1495_v29 = vmul.f32 %v1494_v28, %v1494_v28 }
 0xa6a   : > { %v1496_v30 = vsel %vm626_vm0, %v1495_v29, 0.0 }
 0xa6b   : > { %1497 = vadd.xlane.f32.xlu1 %v1496_v30  ;;  %v1522_v39 = vpop.permute.xlu0 %1521 }
 0xaf8   : > { %v1498_v31 = vpop.xlane.xlu1 %1497 }
 0xaf9   : > { %v1499_v32 = vmul.f32 0.03125, %v1498_v31 }
 0xafb   : > { %v1500_v33 = vadd.f32 1e-05, %v1499_v32 }
 0xafd   : > { %1844 = vrsqrt.f32 %v1500_v33 }
 0xb07   : > { %v1845_v34 = vpop.eup %1844 }
 0xb08   : > { %v1502_v36 = vmul.f32 %v1845_v34, %v1494_v28 }
 0xb0a   : > { %v1510_v38 = vmul.f32 %v1671_v35, %v1502_v36 }
 0xb0c   : > { %v1518_v40 = vadd.f32 %v1672_v37, %v1510_v38 }
 0xb0e   : > { %v1524_v41 = vmul.f32 %v1522_v39, %v1518_v40 }
 0xb10   : > { %1525 = vst.msk [vmem:[%s618_s2] sm:$0xff] %vm626_vm0, %v1524_v41 }
 0xb11 PF: > { %s28_s27 = sadd.s32 1, %s1852_s27  }
 0xb12   : > { %p25_p4 = scmp.ge.s32.totalorder %s28_s27, 4  }
 0xb14   :  { %27 = sbr.rel (!%p25_p4) target bundleno = 4 (0x4), region = 140 }

// kernel: prior_encoder_forward.6
= control target key start
LH: loop header
LB: loop body
LE: loop exit
PB: predicated region body
PF: predicated region fallthrough
CT: control target
= control target key end

     0   :  { %s4376_s0 = inlined_call_operand.vmem [shape: f32[2,8,32], index: 0, kind: input, shape index: {}]   ;;  %s4377_s1 = inlined_call_operand.vmem [shape: f32[2,1,32], index: 1, kind: input, shape index: {}]   ;;  %s4378_s2 = inlined_call_operand.hbm [shape: f32[2,1,8], index: 2, kind: input, shape index: {}]   ;;  %s4379_s3 = inlined_call_operand.vmem [shape: f32[2,8,1], index: 3, kind: input, shape index: {}]   ;;  %s4380_s4 = inlined_call_operand.vmem [shape: f32[2,2,32,32], index: 4, kind: input, shape index: {}]   ;;  %s4381_s5 = inlined_call_operand.vmem [shape: f32[2,2,1,32], index: 5, kind: input, shape index: {}, may-alias: {5,15}]   ;;  %s4382_s6 = inlined_call_operand.vmem [shape: f32[2,2,32,16], index: 6, kind: input, shape index: {}]   ;;  %s4383_s7 = inlined_call_operand.vmem [shape: f32[2,2,1,16], index: 7, kind: input, shape index: {}, may-alias: {7,9,11}]   ;;  %s4384_s8 = inlined_call_operand.hbm [shape: f32[2,2,32,16], index: 8, kind: input, shape index: {}]   ;;  %s4385_s9 = inlined_call_operand.vmem [shape: f32[2,2,1,16], index: 9, kind: input, shape index: {}, may-alias: {7,9,11}]   ;;  %s4386_s10 = inlined_call_operand.hbm [shape: f32[2,2,32,16], index: 10, kind: input, shape index: {}]   ;;  %s4387_s11 = inlined_call_operand.vmem [shape: f32[2,2,1,16], index: 11, kind: input, shape index: {}, may-alias: {7,9,11}]   ;;  %s4388_s12 = inlined_call_operand.vmem [shape: f32[2,2,16,32], index: 12, kind: input, shape index: {}]   ;;  %s4389_s13 = inlined_call_operand.vmem [shape: f32[2,1,32], index: 13, kind: input, shape index: {}, may-alias: {13,19}]   ;;  %s4390_s14 = inlined_call_operand.hbm [shape: f32[2,2,32,32], index: 14, kind: input, shape index: {}]   ;;  %s4391_s15 = inlined_call_operand.vmem [shape: f32[2,2,1,32], index: 15, kind: input, shape index: {}, may-alias: {5,15}]   ;;  %s4392_s16 = inlined_call_operand.hbm [shape: f32[2,32,64], index: 16, kind: input, shape index: {}]   ;;  %s4393_s17 = inlined_call_operand.vmem [shape: f32[2,1,64], index: 17, kind: input, shape index: {}]   ;;  %s4394_s18 = inlined_call_operand.hbm [shape: f32[2,64,32], index: 18, kind: input, shape index: {}]   ;;  %s4395_s19 = inlined_call_operand.vmem [shape: f32[2,1,32], index: 19, kind: input, shape index: {}, may-alias: {13,19}]   ;;  %s4396_s20 = inlined_call_operand.hbm [shape: f32[2,32,32], index: 20, kind: input, shape index: {}]   ;;  %s4397_s21 = inlined_call_operand.vmem [shape: f32[2,1,32], index: 21, kind: input, shape index: {}]   ;;  %s4398_s22 = inlined_call_operand.vmem [shape: f32[2,8,32], index: 22, kind: output, shape index: {}]  }
   0x1   :  { %4444 = sst [smem:[#allocation44_spill]] %s4376_s0 }
   0x2   :  { %4445 = sst [smem:[#allocation45_spill]] %s4377_s1 }
   0x3   :  { %4446 = sst [smem:[#allocation46_spill]] %s4378_s2 }
   0x4   :  { %4447 = sst [smem:[#allocation47_spill]] %s4379_s3 }
   0x5   :  { %4448 = sst [smem:[#allocation48_spill]] %s4380_s4 }
   0x6   :  { %4449 = sst [smem:[#allocation49_spill]] %s4381_s5 }
   0x7   :  { %4450 = sst [smem:[#allocation50_spill]] %s4382_s6 }
   0x8   :  { %4451 = sst [smem:[#allocation51_spill]] %s4383_s7 }
   0x9   :  { %4452 = sst [smem:[#allocation52_spill]] %s4384_s8 }
   0xa   :  { %4453 = sst [smem:[#allocation53_spill]] %s4385_s9 }
   0xb   :  { %4454 = sst [smem:[#allocation54_spill]] %s4386_s10 }
   0xc   :  { %4455 = sst [smem:[#allocation55_spill]] %s4387_s11 }
   0xd   :  { %4456 = sst [smem:[#allocation56_spill]] %s4388_s12 }
   0xe   :  { %4457 = sst [smem:[#allocation57_spill]] %s4389_s13 }
   0xf   :  { %4458 = sst [smem:[#allocation58_spill]] %s4390_s14 }
  0x10   :  { %4459 = sst [smem:[#allocation59_spill]] %s4391_s15 }
  0x11   :  { %4460 = sst [smem:[#allocation60_spill]] %s4392_s16 }
  0x12   :  { %4461 = sst [smem:[#allocation61_spill]] %s4393_s17 }
  0x13   :  { %4462 = sst [smem:[#allocation62_spill]] %s4394_s18 }
  0x14   :  { %4463 = sst [smem:[#allocation63_spill]] %s4395_s19 }
  0x15   :  { %4464 = sst [smem:[#allocation64_spill]] %s4396_s20 }
  0x16   :  { %4465 = sst [smem:[#allocation65_spill]] %s4397_s21 }
  0x17   :  { %4466 = sst [smem:[#allocation66_spill]] %s4398_s22 }
  0x18   :  { %27 = vsyncpa [#allocation4], 0 }
  0x19   :  { %29 = vsyncpa [#allocation4 + $0x1], 0 }
  0x1a   :  { %30 = vsyncpa [#allocation6], 0 }
  0x1b   :  { %32 = vsyncpa [#allocation6 + $0x1], 0 }
  0x1c   :  { %33 = vsyncpa [#allocation9], 0 }
  0x1d   :  { %35 = vsyncpa [#allocation9 + $0x1], 0 }
  0x1e   :  { %36 = vsyncpa [#allocation12], 0 }
  0x1f   :  { %38 = vsyncpa [#allocation12 + $0x1], 0  ;;  %s3588_s3 = smov 0   ;;  %s3590_s28 = smov 0  }
  0x20   :  { %s3592_s29 = smov 0   ;;  %s3594_s30 = smov 0  }
  0x21   :  { %s3596_s4 = smov 0   ;;  %s3598_s0 = smov 0  }
  0x22   :  { %s3600_s23 = smov 0   ;;  %s3602_s1 = smov 0  }
  0x23   :  { %s3604_s5 = smov 0   ;;  %s3606_s24 = smov 0  }
  0x24   :  { %s3608_s6 = smov 0  }
  0x25 LB: > { %4467 = sst [smem:[#allocation19_spill]] %s3421_s28  ;;  %s4401_s25 = sadd.s32 4294967295, %s3457_s6   ;;  %s3457_s6 = sphi %s3608_s6, %s44_s6   ;;  %s3453_s24 = sphi %s3606_s24, %s4578_s24   ;;  %s3449_s5 = sphi %s3604_s5, %s4577_s5   ;;  %s3445_s1 = sphi %s3602_s1, %s4576_s1   ;;  %s3441_s23 = sphi %s3600_s23, %s4575_s23   ;;  %s3437_s0 = sphi %s3598_s0, %s4574_s0   ;;  %s3433_s4 = sphi %s3596_s4, %s4573_s4   ;;  %s3429_s30 = sphi %s3594_s30, %s4572_s30   ;;  %s3425_s29 = sphi %s3592_s29, %s4571_s29   ;;  %s3421_s28 = sphi %s3590_s28, %s4570_s28   ;;  %s3417_s3 = sphi %s3588_s3, %s4569_s3  }
  0x26   : > { %4468 = sst [smem:[#allocation20_spill]] %s3425_s29  ;;  %p284_p0 = scmp.ne.s32.totalorder %s3421_s28, %s3417_s3 }
  0x27   : > { %4469 = sst [smem:[#allocation21_spill]] %s3433_s4  ;;  %p3645_p1 = scmp.eq.s32.totalorder %s4401_s25, 0 }
  0x28   : > { %4470 = sst [smem:[#allocation22_spill]] %s3437_s0  ;;  %p2672_p2 = scmp.ge.s32.totalorder %s3457_s6, 1 }
  0x29   : > { %4471 = sst [smem:[#allocation23_spill]] %s3441_s23  ;;  %p649_p3 = scmp.lt.s32.totalorder %s3457_s6, 5 }
  0x2a   : > { %4472 = sst [smem:[#allocation24_spill]] %s3445_s1  ;;  %p3653_p4 = por %p284_p0, %p3645_p1 }
  0x2b   : > { %4473 = sst [smem:[#allocation25_spill]] %s3449_s5  ;;  %p3657_p5 = pnand %p2672_p2, %p649_p3 }
  0x2c   : > { %4474 = sst [smem:[#allocation26_spill]] %s3453_s24  ;;  %s3459_s3 = smov [#allocation13]  }
  0x2d   : > { %4475 = sst [smem:[#allocation27_spill]] %s3457_s6  ;;  %s661_s21 = sshll.u32 %s3459_s3, 4  ;;  %s662_s21 = int_to_ptr.vmem [resolvable:$true] %s661_s21 }
  0x2e   : > { %s4476_s26 = scalar_select %p3645_p1, 1, 0 }
  0x2f   : > { %s4478_s2 = scalar_select %p3653_p4, 1, 0 }
  0x30   : > { %4477 = sst [smem:[#allocation28_spill]] %s4476_s26  ;;  %p3005_p6 = pneg %p3657_p5 }
  0x31   : > { %4479 = sst [smem:[#allocation29_spill]] %s4478_s2  ;;  %s4483_s20 = sld [smem:[#allocation64_spill]] }
  0x32   : > { %s4480_s27 = scalar_select %p3657_p5, 1, 0 }
  0x33   : > { %p3665_p7 = pnand %p3005_p6, %p3645_p1 }
  0x34   : > { %4481 = sst [smem:[#allocation30_spill]] %s4480_s27 }
  0x35   : > { %p3145_p10 = pneg %p3665_p7 }
  0x37   : > { %s3143_s17 = scalar_lea.hbm %s4483_s20, 1024 }
  0x38   : > { %p3144_p9 = scmp.ne.s32.totalorder %s4483_s20, %s3143_s17  ;;  %p3150_p13 = scmp.lt.u32.totalorder %s3143_s17, %s4483_s20 }
  0x3a   : > { %p3146_p11 = pnand %p3145_p10, %p3144_p9 }
  0x3c   : > { %p3147_p12 = pneg %p3146_p11 }
  0x3e   : > { %p3152_p0 = pnand %p3150_p13, %p3147_p12 }
  0x40   : > { %3155 = shalt.err (!%p3152_p0)
}
  0x41   : > { %s3156_s11 = scalar_lea.vmem %s662_s21, 1024  ;;  %p3164_p8 = scmp.lt.s32.totalorder %s662_s21, %s662_s21 }
  0x42   : > { %p3157_p2 = scmp.ne.s32.totalorder %s662_s21, %s3156_s11  ;;  %p3165_p4 = scmp.lt.s32.totalorder %s3156_s11, %s3156_s11 }
  0x44   : > { %p3159_p3 = pnand %p3157_p2, %p3145_p10  ;;  %p3166_p5 = por %p3165_p4, %p3164_p8 }
  0x46   : > { %p3160_p6 = pneg %p3159_p3 }
  0x48   : > { %p3167_p1 = pnand %p3166_p5, %p3160_p6 }
  0x4a   : > { %3170 = shalt.err (!%p3167_p1)
}
  0x4b   : > { %s4407_s12 = smov 128   ;;  %s4409_s13 = smov 8  }
  0x4c   : > { %3008 = dma.hbm_to_vmem [thread:$0]  (!%p3665_p7), %s4483_s20, 1024, %s662_s21, [#allocation12], %s4407_s12, %s4407_s12, %s4409_s13  }
  0x4d   : > { %p278_p1 = scmp.ne.s32.totalorder %s3425_s29, %s3421_s28  ;;  %p4412_p4 = scmp.lt.s32.totalorder %s3457_s6, 4 }
  0x4e   : > { %s3694_s19 = sand.u32 1, %s3457_s6   ;;  %p4484_p5 = scmp.eq.s32.totalorder %s3457_s6, 0 }
  0x4f   : > { %s4406_s22 = sand.u32 1, %s3425_s29   ;;  %s3700_s3 = sshll.u32 %s3449_s5, 10 }
  0x50   : > { %p280_p8 = por %p278_p1, %p4484_p5  ;;  %s3704_s25 = sshll.u32 %s4406_s22, 6 }
  0x51   : > { %s4485_s8 = sld [smem:[#allocation52_spill]]  ;;  %s749_s15 = scalar_lea.vmem [#allocation5], %s3704_s25 }
  0x52   : > { %p3714_p7 = pnand %p4412_p4, %p280_p8  ;;  %s756_s17 = sshll.u32 %s749_s15, 4  ;;  %s3719_s17 = int_to_ptr.vmem [resolvable:$true] %s756_s17 }
  0x54   : > { %s4486_s11 = scalar_select %p3714_p7, 1, 0 }
  0x55   : > { %p3726_p10 = pneg %p3714_p7 }
  0x57   : > { %s3710_s21 = scalar_lea.hbm %s4485_s8, %s3700_s3  ;;  %s3176_s20 = scalar_lea.hbm %s4485_s8, 2048 }
  0x58   : > { %s3171_s12 = scalar_lea.hbm %s3710_s21, 1024  ;;  %p3177_p13 = scmp.lt.u32.totalorder %s3710_s21, %s4485_s8 }
  0x59   : > { %p3172_p9 = scmp.ne.s32.totalorder %s3710_s21, %s3171_s12  ;;  %p3178_p0 = scmp.lt.u32.totalorder %s3176_s20, %s3171_s12 }
  0x5a   : > { %p3180_p3 = scmp.lt.u32.totalorder %s3171_s12, %s3710_s21 }
  0x5b   : > { %p3174_p11 = pnand %p3726_p10, %p3172_p9  ;;  %p3179_p2 = por %p3178_p0, %p3177_p13 }
  0x5d   : > { %p3175_p12 = pneg %p3174_p11  ;;  %p3181_p6 = por %p3180_p3, %p3179_p2 }
  0x5f   : > { %p3182_p1 = pnand %p3181_p6, %p3175_p12 }
  0x61   : > { %3185 = shalt.err (!%p3182_p1)
}
  0x62   : > { %s3186_s22 = scalar_lea.vmem %s3719_s17, 1024  ;;  %s3462_s13 = smov [#allocation5]  }
  0x63   : > { %p3187_p5 = scmp.ne.s32.totalorder %s3719_s17, %s3186_s22  ;;  %s3191_s9 = sshll.u32 %s3462_s13, 4  ;;  %s3192_s9 = int_to_ptr.vmem [resolvable:$false] %s3191_s9 }
  0x64   : > { %s3193_s23 = scalar_lea.vmem %s3192_s9, 2048  ;;  %p3194_p11 = scmp.lt.s32.totalorder %s3719_s17, %s3192_s9 }
  0x65   : > { %p3189_p8 = pnand %p3187_p5, %p3726_p10  ;;  %p3195_p4 = scmp.lt.s32.totalorder %s3193_s23, %s3186_s22 }
  0x67   : > { %p3190_p9 = pneg %p3189_p8  ;;  %p3196_p13 = por %p3195_p4, %p3194_p11 }
  0x69   : > { %p3197_p0 = pnand %p3196_p13, %p3190_p9 }
  0x6b   : > { %3200 = shalt.err (!%p3197_p0)
}
  0x6c   : > { %s4488_s20 = smov 8   ;;  %s4489_s12 = smov 128  }
  0x6d   : > { %s4490_s15 = scalar_lea.sflag [#allocation6], %s3694_s19  ;;  %s4491_s14 = sld [smem:[#allocation58_spill]] }
  0x6e   : > { %3015 = dma.hbm_to_vmem [thread:$0]  (!%p3714_p7), %s3710_s21, 1024, %s3719_s17, %s4490_s15, %s4489_s12, %s4489_s12, %s4488_s20  }
  0x6f   : > { %s819_s23 = scalar_lea.vmem [#allocation8], %s3704_s25  ;;  %s4416_s1 = scalar_lea.sflag [#allocation9], %s3694_s19 }
  0x70   : > { %s826_s8 = sshll.u32 %s819_s23, 4  ;;  %s3761_s8 = int_to_ptr.vmem [resolvable:$true] %s826_s8 }
  0x73   : > { %s3758_s22 = scalar_lea.hbm %s4491_s14, %s3700_s3  ;;  %s3206_s15 = scalar_lea.hbm %s4491_s14, 2048 }
  0x74   : > { %s3201_s2 = scalar_lea.hbm %s3758_s22, 1024  ;;  %p3207_p3 = scmp.lt.u32.totalorder %s3758_s22, %s4491_s14 }
  0x75   : > { %p3202_p4 = scmp.ne.s32.totalorder %s3758_s22, %s3201_s2  ;;  %p3208_p6 = scmp.lt.u32.totalorder %s3206_s15, %s3201_s2 }
  0x76   : > { %p3210_p5 = scmp.lt.u32.totalorder %s3201_s2, %s3758_s22 }
  0x77   : > { %p3204_p12 = pnand %p3202_p4, %p3726_p10  ;;  %p3209_p1 = por %p3208_p6, %p3207_p3 }
  0x79   : > { %p3205_p2 = pneg %p3204_p12  ;;  %p3211_p8 = por %p3210_p5, %p3209_p1 }
  0x7b   : > { %p3212_p9 = pnand %p3211_p8, %p3205_p2 }
  0x7d   : > { %3215 = shalt.err (!%p3212_p9)
}
  0x7e   : > { %s3216_s23 = scalar_lea.vmem %s3761_s8, 1024  ;;  %s3463_s17 = smov [#allocation8]  }
  0x7f   : > { %p3217_p11 = scmp.ne.s32.totalorder %s3761_s8, %s3216_s23  ;;  %s3221_s21 = sshll.u32 %s3463_s17, 4  ;;  %s3222_s21 = int_to_ptr.vmem [resolvable:$false] %s3221_s21 }
  0x80   : > { %s3223_s13 = scalar_lea.vmem %s3222_s21, 2048  ;;  %p3224_p4 = scmp.lt.s32.totalorder %s3761_s8, %s3222_s21 }
  0x81   : > { %p3219_p13 = pnand %p3217_p11, %p3726_p10  ;;  %p3225_p12 = scmp.lt.s32.totalorder %s3223_s13, %s3216_s23 }
  0x83   : > { %p3220_p0 = pneg %p3219_p13  ;;  %p3226_p3 = por %p3225_p12, %p3224_p4 }
  0x85   : > { %p3227_p6 = pnand %p3226_p3, %p3220_p0 }
  0x87   : > { %3230 = shalt.err (!%p3227_p6)
}
  0x88   : > { %3021 = dma.hbm_to_vmem [thread:$0]  (!%p3714_p7), %s3758_s22, 1024, %s3761_s8, %s4416_s1, %s4489_s12, %s4489_s12, %s4488_s20  }
  0x89   : > { %s53_s2 = sadd.s32 1, %s3449_s5  ;;  %s56_s15 = sadd.s32 1, %s3453_s24 }
  0x8a   : > { %p54_p2 = scmp.ge.s32.totalorder %s53_s2, 2  ;;  %s115_s9 = sadd.s32 1, %s3437_s0 }
  0x8b   : > { %p122_p1 = scmp.ne.s32.totalorder %s3437_s0, %s3433_s4  ;;  %p128_p5 = scmp.ne.s32.totalorder %s3433_s4, %s3429_s30 }
  0x8c   : > { %s4580_s2 = smov (%p54_p2, %s53_s2), 0  ;;  %s4582_s15 = smov (!%p54_p2, %s56_s15), %s3453_s24 }
  0x8d   : > { %4492 = sst [smem:[#allocation31_spill]] %s4580_s2  ;;  %p4493_p8 = scmp.eq.s32.totalorder %s3457_s6, 0 }
  0x8e   : > { %p4495_p11 = scmp.ne.s32.totalorder %s4476_s26, 0  ;;  %p58_p0 = scmp.ge.s32.totalorder %s4582_s15, 2 }
  0x8f   : > { %p3802_p9 = por %p4493_p8, %p122_p1  ;;  %s268_s30 = ssub.s32 %s3449_s5, %s4580_s2 }
  0x90   : > { %p3808_p13 = por %p4495_p11, %p128_p5  ;;  %p269_p4 = scmp.eq.s32.totalorder %s268_s30, 0 }
  0x91   : > { %s691_s22 = sand.u32 1, %s3437_s0   ;;  %s4584_s15 = smov (%p58_p0, %s4582_s15), 0 }
  0x92   : > { %s4496_s8 = scalar_select %p3808_p13, 1, 0 }
  0x93   : > { %4498 = sst [smem:[#allocation33_spill]] %s4584_s15  ;;  %s4499_s17 = sadd.s32 1, %s3425_s29 }
  0x94   : > { %4497 = sst [smem:[#allocation32_spill]] %s4496_s8  ;;  %s112_s13 = ssub.s32 %s3453_s24, %s4584_s15 }
  0x95   : > { %s3820_s21 = scalar_select %p269_p4, %s3425_s29, %s4499_s17  }
  0x96   : > { %p113_p12 = scmp.eq.s32.totalorder %s112_s13, 0  ;;  %s2675_s1 = sshll.u32 %s3453_s24, 4 }
  0x97   : > { %4500 = sst [smem:[#allocation34_spill]] %s3820_s21  ;;  %s694_s14 = scalar_lea.vmem [#allocation3], %s691_s22 }
  0x98   : > { %s701_s26 = sshll.u32 %s694_s14, 4  ;;  %s4502_s27 = sld [smem:[#allocation46_spill]]  ;;  %s3833_s26 = int_to_ptr.vmem [resolvable:$true] %s701_s26 }
  0x99   : > { %s3826_s28 = scalar_select %p113_p12, %s3437_s0, %s115_s9  }
  0x9a   : > { %p4503_p3 = scmp.lt.s32.totalorder %s3457_s6, 4  ;;  %s4505_s10 = sld [smem:[#allocation54_spill]] }
  0x9b   : > { %4501 = sst [smem:[#allocation35_spill]] %s3826_s28  ;;  %s692_s17 = scalar_lea.sflag [#allocation4], %s691_s22 }
  0x9c   : > { %p3839_p6 = pnand %p4503_p3, %p3802_p9 }
  0x9e   : > { %s3831_s18 = scalar_lea.hbm %s4502_s27, %s2675_s1  ;;  %s777_s1 = scalar_lea.vmem [#allocation7], %s3704_s25 }
  0x9f   : > { %s784_s8 = sshll.u32 %s777_s1, 4  ;;  %s3231_s13 = scalar_lea.hbm %s3831_s18, 16  ;;  %s3850_s8 = int_to_ptr.vmem [resolvable:$true] %s784_s8 }
  0xa0   : > { %s3847_s4 = scalar_lea.hbm %s4505_s10, %s3700_s3  ;;  %p3232_p2 = scmp.ne.s32.totalorder %s3831_s18, %s3231_s13 }
  0xa1   : > { %p3233_p1 = pneg %p3839_p6  ;;  %s3236_s14 = scalar_lea.hbm %s4502_s27, 32 }
  0xa2   : > { %p3237_p9 = scmp.lt.u32.totalorder %s3831_s18, %s4502_s27  ;;  %p3238_p11 = scmp.lt.u32.totalorder %s3236_s14, %s3231_s13 }
  0xa3   : > { %p3234_p5 = pnand %p3233_p1, %p3232_p2  ;;  %p3240_p4 = scmp.lt.u32.totalorder %s3231_s13, %s3831_s18 }
  0xa4   : > { %p3239_p0 = por %p3238_p11, %p3237_p9 }
  0xa5   : > { %p3235_p8 = pneg %p3234_p5 }
  0xa6   : > { %p3241_p12 = por %p3240_p4, %p3239_p0 }
  0xa8   : > { %p3242_p3 = pnand %p3241_p12, %p3235_p8 }
  0xaa   : > { %3245 = shalt.err (!%p3242_p3)
}
  0xab   : > { %s3246_s22 = scalar_lea.vmem %s3833_s26, 16  ;;  %s3464_s15 = smov [#allocation3]  }
  0xac   : > { %p3247_p2 = scmp.ne.s32.totalorder %s3833_s26, %s3246_s22  ;;  %s3251_s1 = sshll.u32 %s3464_s15, 4  ;;  %s3252_s1 = int_to_ptr.vmem [resolvable:$false] %s3251_s1 }
  0xad   : > { %s3253_s2 = scalar_lea.vmem %s3252_s1, 32  ;;  %p3254_p7 = scmp.lt.s32.totalorder %s3833_s26, %s3252_s1 }
  0xae   : > { %p3249_p5 = pnand %p3247_p2, %p3233_p1  ;;  %p3255_p9 = scmp.lt.s32.totalorder %s3253_s2, %s3246_s22 }
  0xb0   : > { %p3250_p13 = pneg %p3249_p5  ;;  %p3256_p11 = por %p3255_p9, %p3254_p7 }
  0xb2   : > { %p3257_p0 = pnand %p3256_p11, %p3250_p13 }
  0xb4   : > { %3260 = shalt.err (!%p3257_p0)
}
  0xb5   : > { %3012 = dma.hbm_to_vmem [thread:$0]  (!%p3839_p6), %s3831_s18, 16, %s3833_s26, %s692_s17  }
  0xb6   : > { %s3261_s13 = scalar_lea.hbm %s3847_s4, 1024  ;;  %s3266_s9 = scalar_lea.hbm %s4505_s10, 2048 }
  0xb7   : > { %p3262_p1 = scmp.ne.s32.totalorder %s3847_s4, %s3261_s13  ;;  %p3267_p7 = scmp.lt.u32.totalorder %s3847_s4, %s4505_s10 }
  0xb8   : > { %p3268_p13 = scmp.lt.u32.totalorder %s3266_s9, %s3261_s13  ;;  %p3270_p3 = scmp.lt.u32.totalorder %s3261_s13, %s3847_s4 }
  0xb9   : > { %p3264_p8 = pnand %p3262_p1, %p3726_p10 }
  0xba   : > { %p3269_p12 = por %p3268_p13, %p3267_p7 }
  0xbb   : > { %p3265_p4 = pneg %p3264_p8 }
  0xbc   : > { %p3271_p2 = por %p3270_p3, %p3269_p12 }
  0xbe   : > { %p3272_p5 = pnand %p3271_p2, %p3265_p4 }
  0xc0   : > { %3275 = shalt.err (!%p3272_p5)
}
  0xc1   : > { %s3276_s18 = scalar_lea.vmem %s3850_s8, 1024  ;;  %s3465_s26 = smov [#allocation7]  }
  0xc2   : > { %p3277_p6 = scmp.ne.s32.totalorder %s3850_s8, %s3276_s18  ;;  %s3281_s30 = sshll.u32 %s3465_s26, 4  ;;  %s3282_s30 = int_to_ptr.vmem [resolvable:$false] %s3281_s30 }
  0xc3   : > { %s3283_s17 = scalar_lea.vmem %s3282_s30, 2048  ;;  %p3284_p0 = scmp.lt.s32.totalorder %s3850_s8, %s3282_s30 }
  0xc4   : > { %p3279_p9 = pnand %p3277_p6, %p3726_p10  ;;  %p3285_p1 = scmp.lt.s32.totalorder %s3283_s17, %s3276_s18 }
  0xc6   : > { %p3280_p11 = pneg %p3279_p9  ;;  %p3286_p8 = por %p3285_p1, %p3284_p0 }
  0xc8   : > { %p3287_p7 = pnand %p3286_p8, %p3280_p11 }
  0xca   : > { %3290 = shalt.err (!%p3287_p7)
}
  0xcb   : > { %p4506_p4 = scmp.ne.s32.totalorder %s4486_s11, 0  ;;  %s4507_s1 = scalar_lea.sflag [#allocation6], %s3694_s19 }
  0xcc   : > { %s4508_s2 = sand.u32 1, %s3425_s29   ;;  %s2776_s23 = sshll.u32 %s3449_s5, 9 }
  0xcd   : > { %3018 = dma.hbm_to_vmem [thread:$0]  (!%p4506_p4), %s3847_s4, 1024, %s3850_s8, %s4507_s1, %s4489_s12, %s4489_s12, %s4488_s20  }
  0xce   : > { %s2685_s13 = sshll.u32 %s4508_s2, 5  ;;  %s4509_s16 = sld [smem:[#allocation60_spill]] }
  0xcf   : > { %s847_s15 = scalar_lea.vmem [#allocation10], %s2685_s13 }
  0xd0   : > { %s854_s18 = sshll.u32 %s847_s15, 4  ;;  %s3911_s18 = int_to_ptr.vmem [resolvable:$true] %s854_s18 }
  0xd4   : > { %s3909_s22 = scalar_lea.hbm %s4509_s16, %s2776_s23  ;;  %s3296_s30 = scalar_lea.hbm %s4509_s16, 1024 }
  0xd5   : > { %s3291_s26 = scalar_lea.hbm %s3909_s22, 512  ;;  %p3297_p2 = scmp.lt.u32.totalorder %s3909_s22, %s4509_s16 }
  0xd6   : > { %p3292_p13 = scmp.ne.s32.totalorder %s3909_s22, %s3291_s26  ;;  %p3298_p5 = scmp.lt.u32.totalorder %s3296_s30, %s3291_s26 }
  0xd7   : > { %p3300_p9 = scmp.lt.u32.totalorder %s3291_s26, %s3909_s22 }
  0xd8   : > { %p3294_p12 = pnand %p3292_p13, %p3726_p10  ;;  %p3299_p6 = por %p3298_p5, %p3297_p2 }
  0xda   : > { %p3295_p3 = pneg %p3294_p12  ;;  %p3301_p11 = por %p3300_p9, %p3299_p6 }
  0xdc   : > { %p3302_p0 = pnand %p3301_p11, %p3295_p3 }
  0xde   : > { %3305 = shalt.err (!%p3302_p0)
}
  0xdf   : > { %s3306_s2 = scalar_lea.vmem %s3911_s18, 512  ;;  %s3466_s13 = smov [#allocation10]  }
  0xe0   : > { %p3307_p1 = scmp.ne.s32.totalorder %s3911_s18, %s3306_s2  ;;  %s3311_s23 = sshll.u32 %s3466_s13, 4  ;;  %s3312_s23 = int_to_ptr.vmem [resolvable:$false] %s3311_s23 }
  0xe1   : > { %s3313_s14 = scalar_lea.vmem %s3312_s23, 1024  ;;  %p3314_p13 = scmp.lt.s32.totalorder %s3911_s18, %s3312_s23 }
  0xe2   : > { %p3309_p8 = pnand %p3307_p1, %p3726_p10  ;;  %p3315_p12 = scmp.lt.s32.totalorder %s3313_s14, %s3306_s2 }
  0xe4   : > { %p3310_p7 = pneg %p3309_p8  ;;  %p3316_p2 = por %p3315_p12, %p3314_p13 }
  0xe6   : > { %p3317_p5 = pnand %p3316_p2, %p3310_p7 }
  0xe8   : > { %3320 = shalt.err (!%p3317_p5)
}
  0xe9   : > { %s4510_s9 = scalar_lea.sflag [#allocation9], %s3694_s19  ;;  %s4511_s4 = sld [smem:[#allocation62_spill]] }
  0xea   : > { %3024 = dma.hbm_to_vmem [thread:$0]  (!%p4506_p4), %s3909_s22, 512, %s3911_s18, %s4510_s9, %s4489_s12, %s4489_s12, %s4488_s20  }
  0xeb   : > { %s874_s17 = scalar_lea.vmem [#allocation11], %s3704_s25  ;;  %s871_s2 = scalar_lea.sflag [#allocation12], %s3694_s19 }
  0xec   : > { %s881_s1 = sshll.u32 %s874_s17, 4  ;;  %s3946_s1 = int_to_ptr.vmem [resolvable:$true] %s881_s1 }
  0xef   : > { %s4512_s8 = smov %s4511_s4  ;;  %s3943_s30 = scalar_lea.hbm %s4511_s4, %s3700_s3 }
  0xf0   : > { %s3321_s13 = scalar_lea.hbm %s3943_s30, 1024  ;;  %s3326_s23 = scalar_lea.hbm %s4512_s8, 2048 }
  0xf1   : > { %p3322_p3 = scmp.ne.s32.totalorder %s3943_s30, %s3321_s13  ;;  %p3327_p11 = scmp.lt.u32.totalorder %s3943_s30, %s4512_s8 }
  0xf2   : > { %p3328_p0 = scmp.lt.u32.totalorder %s3326_s23, %s3321_s13  ;;  %p3330_p8 = scmp.lt.u32.totalorder %s3321_s13, %s3943_s30 }
  0xf3   : > { %p3324_p6 = pnand %p3322_p3, %p3726_p10 }
  0xf4   : > { %p3329_p1 = por %p3328_p0, %p3327_p11 }
  0xf5   : > { %p3325_p9 = pneg %p3324_p6 }
  0xf6   : > { %p3331_p7 = por %p3330_p8, %p3329_p1 }
  0xf8   : > { %p3332_p13 = pnand %p3331_p7, %p3325_p9 }
  0xfa   : > { %3335 = shalt.err (!%p3332_p13)
}
  0xfb   : > { %s3336_s25 = scalar_lea.vmem %s3946_s1, 1024  ;;  %s3467_s9 = smov [#allocation11]  }
  0xfc   : > { %p3337_p12 = scmp.ne.s32.totalorder %s3946_s1, %s3336_s25  ;;  %s3341_s15 = sshll.u32 %s3467_s9, 4  ;;  %s3342_s15 = int_to_ptr.vmem [resolvable:$false] %s3341_s15 }
  0xfd   : > { %s3343_s26 = scalar_lea.vmem %s3342_s15, 2048  ;;  %p3344_p3 = scmp.lt.s32.totalorder %s3946_s1, %s3342_s15 }
  0xfe   : > { %p3339_p2 = pnand %p3337_p12, %p3726_p10  ;;  %p3345_p6 = scmp.lt.s32.totalorder %s3343_s26, %s3336_s25 }
 0x100   : > { %p3340_p5 = pneg %p3339_p2  ;;  %p3346_p11 = por %p3345_p6, %p3344_p3 }
 0x102   : > { %p3347_p0 = pnand %p3346_p11, %p3340_p5 }
 0x104   : > { %3350 = shalt.err (!%p3347_p0)
}
 0x105   : > { %3027 = dma.hbm_to_vmem [thread:$0]  (!%p4506_p4), %s3943_s30, 1024, %s3946_s1, %s871_s2, %s4489_s12, %s4489_s12, %s4488_s20  }
 0x106   : > { %s4513_s7 = sld [smem:[#allocation30_spill]] }
 0x10c   : > { %p4514_p10 = scmp.ne.s32.totalorder %s4513_s7, 0 }
 0x10e   : > { %899 = sbr.rel (%p4514_p10) target bundleno = 3675 (0xe5b), region = 108 }
 0x115   : > { %s4515_s4 = sld [smem:[#allocation21_spill]]  ;;  %s4516_s17 = sld [smem:[#allocation32_spill]] }
 0x11b   : > { %s901_s13 = sand.u32 1, %s4515_s4   ;;  %p4518_p9 = scmp.ne.s32.totalorder %s4516_s17, 0 }
 0x11c   : > { %s902_s22 = scalar_lea.sflag [#allocation4], %s901_s13  ;;  %s3978_s18 = scalar_lea.vmem [#allocation3], %s901_s13 }
 0x11d   : > { %4517 = sst [smem:[#allocation36_spill]] %s3978_s18 }
 0x11e   : > { %3396 = dma.done.wait (%p4518_p9), %s902_s22, 16  }
 0x11f   : > { %3398 = vsyncadd (%p4518_p9), %s902_s22, 4294967280  ;;  %s4519_s11 = sadd.s32 4294967295, %s3457_s6   ;;  %s4520_s19 = sld [smem:[#allocation19_spill]] }
 0x120   : > { %s4521_s23 = sld [smem:[#allocation29_spill]]  ;;  %s909_s3 = sand.u32 1, %s4519_s11  }
 0x121   : > { %s910_s30 = scalar_lea.sflag [#allocation6], %s909_s3 }
 0x125   : > { %s911_s20 = sand.u32 1, %s4520_s19  }
 0x126   : > { %s2692_s12 = sshll.u32 %s911_s20, 6  ;;  %p4522_p4 = scmp.ne.s32.totalorder %s4521_s23, 0 }
 0x127   : > { %s3987_s1 = scalar_lea.vmem [#allocation5], %s2692_s12 }
 0x128   : > { %3400 = dma.done.wait (%p4522_p4), %s910_s30, 2048  }
 0x129   : > { %3402 = vsyncadd (%p4522_p4), %s910_s30, 4294965248  ;;  %s3993_s2 = scalar_lea.vmem [#allocation7], %s2692_s12  ;;  %s928_s14 = scalar_lea.sflag [#allocation9], %s909_s3 }
 0x12a   : > { %4523 = sst [smem:[#allocation37_spill]] %s3993_s2  ;;  %s3995_s25 = scalar_lea.vmem [#allocation8], %s2692_s12 }
 0x12b   : > { %4524 = sst [smem:[#allocation38_spill]] %s3995_s25 }
 0x12c   : > { %3404 = dma.done.wait (%p4522_p4), %s928_s14, 1536  }
 0x12d   : > { %3406 = vsyncadd (%p4522_p4), %s928_s14, 4294965760  ;;  %s2695_s9 = sshll.u32 %s911_s20, 5  ;;  %s946_s26 = scalar_lea.sflag [#allocation12], %s909_s3 }
 0x12e   : > { %s4001_s15 = scalar_lea.vmem [#allocation10], %s2695_s9  ;;  %s4003_s7 = scalar_lea.vmem [#allocation11], %s2692_s12 }
 0x12f   : > { %4525 = sst [smem:[#allocation39_spill]] %s4001_s15 }
 0x130   : > { %4526 = sst [smem:[#allocation40_spill]] %s4003_s7 }
 0x131   : > { %3408 = dma.done.wait (%p4522_p4), %s946_s26, 1024  }
 0x132   : > { %3410 = vsyncadd (%p4522_p4), %s946_s26, 4294966272  ;;  %s4527_s4 = sld [smem:[#allocation28_spill]] }
 0x138   : > { %p4528_p1 = scmp.ne.s32.totalorder %s4527_s4, 0 }
 0x13a   : > { %3412 = dma.done.wait (%p4528_p1), [#allocation12], 1024  }
 0x13b   : > { %3414 = vsyncadd (%p4528_p1), [#allocation12], 4294966272  ;;  %s4529_s17 = sld [smem:[#allocation24_spill]]  ;;  %s4530_s13 = sld [smem:[#allocation23_spill]] }
 0x13c   : > { %s4532_s14 = sld [smem:[#allocation44_spill]]  ;;  %s4534_s28 = sld [smem:[#allocation48_spill]] }
 0x13d   : > { %s4535_s3 = sld [smem:[#allocation49_spill]]  ;;  %s4537_s8 = sld [smem:[#allocation51_spill]] }
 0x13e   : > { %s4539_s5 = sld [smem:[#allocation53_spill]]  ;;  %s4541_s0 = sld [smem:[#allocation55_spill]] }
 0x13f   : > { %s4544_s26 = sld [smem:[#allocation56_spill]]  ;;  %s4545_s29 = sld [smem:[#allocation59_spill]] }
 0x140   : > { %s4546_s7 = sld [smem:[#allocation61_spill]] }
 0x141   : > { %p1092_p8 = scmp.lt.s32.totalorder %s4529_s17, 1  ;;  %p1103_p7 = scmp.lt.s32.totalorder %s4530_s13, 1 }
 0x142   : > { %p2712_p13 = scmp.ne.s32.totalorder %s4530_s13, 0 }
 0x143   : > { %s4586_s17 = smov (!%p1092_p8, %s4529_s17), 1  ;;  %vm1157_vm0 = vcmask (!%p2712_p13), 261120  }
 0x144   : > { %s4019_s22 = scalar_select %p1103_p7, %s4530_s13, 1 }
 0x145   : > { %s4022_s11 = sshll.u32 %s4586_s17, 3 }
 0x146   : > { %s1095_s9 = scalar_lea.vmem %s4532_s14, %s4022_s11  ;;  %s2778_s16 = sshll.u32 %s4019_s22, 6 }
 0x147   : > { %s2702_s27 = sshll.u32 %s4019_s22, 1  ;;  %s4041_s19 = scalar_lea.vmem %s4534_s28, %s2778_s16  ;;  %v1156_v0 = vld [vmem:[%s1095_s9] sm:$0xff] (!%p2712_p13) }
 0x148   : > { %s4046_s20 = scalar_lea.vmem %s4535_s3, %s2702_s27  ;;  %s4536_s14 = sld [smem:[#allocation50_spill]]  ;;  %1158 = vst.msk [vmem:[#allocation2] sm:$0xff] (!%p2712_p13), %vm1157_vm0, %v1156_v0 }
 0x149   : > { %s4056_s10 = scalar_lea.vmem %s4537_s8, %s2702_s27  ;;  %s4061_s28 = scalar_lea.vmem %s4539_s5, %s2702_s27 }
 0x14a   : > { %4538 = sst [smem:[#allocation41_spill]] %s4056_s10  ;;  %s4066_s23 = scalar_lea.vmem %s4541_s0, %s2702_s27 }
 0x14b   : > { %4540 = sst [smem:[#allocation42_spill]] %s4061_s28  ;;  %s2780_s3 = sshll.u32 %s4019_s22, 5 }
 0x14c   : > { %4542 = sst [smem:[#allocation43_spill]] %s4066_s23  ;;  %s4076_s4 = scalar_lea.vmem %s4544_s26, %s2780_s3 }
 0x14d   : > { %s4081_s6 = scalar_lea.vmem %s4545_s29, %s2702_s27  ;;  %s1143_s24 = scalar_lea.vmem %s4546_s7, %s4019_s22 }
 0x14e   : > { %s4051_s21 = scalar_lea.vmem %s4536_s14, %s2778_s16  ;;  %s4547_s28 = sld [smem:[#allocation63_spill]] }
 0x14f   : > { %s4548_s16 = sld [smem:[#allocation66_spill]]  ;;  %1155 = sbr.rel (%p2712_p13) target bundleno = 342 (0x156), region = 140 }
 0x154   : > { %s1146_s2 = scalar_lea.vmem %s4547_s28, %s4019_s22 }
 0x155   : > { %s1150_s30 = scalar_lea.vmem %s4548_s16, %s4022_s11 }
 0x156 PF: > { %v4096_v1 = vld [vmem:[#allocation2] sm:$0xff]  ;;  %vm1172_vm1 = vcmask 261120   ;;  %v1165_v3 = vld [vmem:[%s4041_s19 + $0x8] sm:$0xff]  ;;  %v3468_v5 = vmov 0.0   ;;  %v1166_v9 = vld [vmem:[%s4041_s19 + $0x10] sm:$0xff]  ;;  %vm3469_vm2 = vmmov 0   ;;  %v1279_v45 = vlaneseq }
 0x157   : > { %v1164_v2 = vld [vmem:[%s4041_s19] sm:$0xff]  ;;  %v1265_v4 = vsel %vm1172_vm1, %v4096_v1, 0.0  ;;  %2837 = vmatprep.subr.bf16.mxu0 %v3468_v5  ;;  %2845 = vmatprep.subr.bf16.mxu1 %v3468_v5  ;;  %v2715_v8 = vld [vmem:[%s4041_s19 + $0x28] sm:$0xff]  ;;  %v1167_v11 = vld [vmem:[%s4041_s19 + $0x18] sm:$0xff]  ;;  %s4549_s18 = sld [smem:[#allocation45_spill]]  ;;  %s4552_s13 = sld [smem:[#allocation42_spill]] }
 0x158   : > { %v1169_v6 = vpack.c.bf16 %v1165_v3, %v1164_v2  ;;  %v2714_v7 = vld [vmem:[%s4041_s19 + $0x20] sm:$0xff]  ;;  %1266 = vadd.xlane.f32.xlu0 %v1265_v4  ;;  %2841 = vmatprep.mubr.msk.bf16.mxu0 %vm3469_vm2, %v3468_v5  ;;  %v2716_v12 = vld [vmem:[%s4041_s19 + $0x30] sm:$0xff]  ;;  %v2717_v13 = vld [vmem:[%s4041_s19 + $0x38] sm:$0xff]  ;;  %v1170_v14 = vpack.c.bf16 %v1167_v11, %v1166_v9  ;;  %v1280_v47 = vshrl.u32 %v1279_v45, 7  ;;  %s4554_s9 = sld [smem:[#allocation43_spill]]  ;;  %vm1454_vm3 = vcmask 130048  }
 0x159   : > { %v1221_v10 = vpack.c.bf16 %v2715_v8, %v2714_v7  ;;  %2849 = vmatprep.mubr.msk.bf16.mxu1 %vm3469_vm2, %v3468_v5  ;;  %v1222_v16 = vpack.c.bf16 %v2717_v13, %v2716_v12  ;;  %v1289_v23 = vld [vmem:[%s4051_s21] sm:$0xff]  ;;  %v1290_v24 = vld [vmem:[%s4051_s21 + $0x8] sm:$0xff]  ;;  %v1347_v27 = vld [vmem:[%s3987_s1 + $0x8] sm:$0xff]  ;;  %vm1526_vm4 = vcmask 1043456   ;;  %s4555_s19 = sld [smem:[#allocation36_spill]]  ;;  %vm1509_vm6 = vcmask 64512  }
 0x15a   : > { %2838 = vmatpush3.bf16.msra.mxu0 %v1169_v6  ;;  %v1346_v25 = vld [vmem:[%s3987_s1] sm:$0xff]  ;;  %v1294_v26 = vpack.c.bf16 %v1290_v24, %v1289_v23  ;;  %v1292_v30 = vld [vmem:[%s4051_s21 + $0x18] sm:$0xff]  ;;  %v1349_v33 = vld [vmem:[%s3987_s1 + $0x18] sm:$0xff]  ;;  %v4149_v51 = vsub.s32 0, %v1280_v47  ;;  %s4557_s23 = sld [smem:[#allocation57_spill]]  ;;  %s4559_s14 = sld [smem:[#allocation39_spill]] }
 0x15b   : > { %2846 = vmatpush3.bf16.msra.mxu1 %v1221_v10  ;;  %2839 = vmatprep.subr.bf16.mxu0 %v3468_v5  ;;  %v1350_v28 = vpack.c.bf16 %v1347_v27, %v1346_v25  ;;  %v1291_v29 = vld [vmem:[%s4051_s21 + $0x10] sm:$0xff]  ;;  %v1348_v31 = vld [vmem:[%s3987_s1 + $0x10] sm:$0xff]  ;;  %s4560_s26 = sld [smem:[#allocation40_spill]]  ;;  %vm2138_vm7 = vcmask 523264  }
 0x15c   : > { %2847 = vmatprep.subr.bf16.mxu1 %v3468_v5  ;;  %v1295_v32 = vpack.c.bf16 %v1292_v30, %v1291_v29  ;;  %v1351_v34 = vpack.c.bf16 %v1349_v33, %v1348_v31  ;;  %v1171_v48 = vld [vmem:[%s4046_s20] sm:$0x1]  ;;  %v2718_v49 = vld [vmem:[%s4046_s20 + $0x1] sm:$0x1]  ;;  %s4553_s20 = sld [smem:[#allocation41_spill]]  ;;  %v2730_v30 = vld [vmem:[%s4051_s21 + $0x30] sm:$0xff] }
 0x15d   : > { %s4550_s25 = scalar_lea.vmem %s4549_s18, %s4586_s17  ;;  %s4551_s17 = sld [smem:[#allocation37_spill]]  ;;  %v2722_v3 = vld [vmem:[%s4552_s13] ss:$0 sm:$0xff]  ;;  %v2731_v31 = vld [vmem:[%s4051_s21 + $0x38] sm:$0xff] }
 0x15e   : > { %v1160_v15 = vld [vmem:[%s4550_s25] sm:$0x1]  ;;  %2840 = vmatpush3.bf16.msra.mxu0 %v1170_v14  ;;  %v1580_v33 = vpack.c.bf16 %v2731_v31, %v2730_v30 }
 0x15f   : > { %v4121_v17 = vpack.c.bf16 %v1160_v15, %v1160_v15  ;;  %2848 = vmatpush3.bf16.msra.mxu1 %v1222_v16  ;;  %2853 = vmatprep.subr.bf16.mxu0 %v3468_v5 }
 0x160   : > { %2861 = vmatprep.subr.bf16.mxu1 %v3468_v5  ;;  %s4558_s3 = scalar_lea.vmem %s4557_s23, %s4019_s22 }
 0x161   : > { %2842 = vmatmul.mubr.msk.bf16.vlgmr.msra.gmra.mrb[0].mxu0 %vm1172_vm1, %v4121_v17 }
 0x162   : > { %2850 = vmatmul.mubr.msk.bf16.vlgmr.msra.gmra.mrb[0].mxu1 %vm1172_vm1, %v4121_v17  ;;  %2857 = vmatprep.mubr.msk.bf16.mxu0 %vm3469_vm2, %v3468_v5  ;;  %v2720_v15 = vld [vmem:[%s4553_s20] ss:$0 sm:$0xff] }
 0x163   : > { %2865 = vmatprep.mubr.msk.bf16.mxu1 %vm3469_vm2, %v3468_v5  ;;  %2854 = vmatpush3.bf16.msra.mxu0 %v1294_v26  ;;  %v1399_v58 = vld [vmem:[%s4551_s17] sm:$0xff]  ;;  %v1400_v59 = vld [vmem:[%s4551_s17 + $0x8] sm:$0xff]  ;;  %v1401_v63 = vld [vmem:[%s4551_s17 + $0x10] sm:$0xff] }
 0x164   : > { %2862 = vmatpush3.bf16.msra.mxu1 %v1350_v28  ;;  %2855 = vmatprep.subr.bf16.mxu0 %v3468_v5  ;;  %v1403_v61 = vpack.c.bf16 %v1400_v59, %v1399_v58  ;;  %v1402_v0 = vld [vmem:[%s4551_s17 + $0x18] sm:$0xff] }
 0x165   : > { %2863 = vmatprep.subr.bf16.mxu1 %v3468_v5  ;;  %v1404_v2 = vpack.c.bf16 %v1402_v0, %v1401_v63 }
 0x167   : > { %2856 = vmatpush3.bf16.msra.mxu0 %v1295_v32 }
 0x168   : > { %2864 = vmatpush3.bf16.msra.mxu1 %v1351_v34  ;;  %2869 = vmatprep.subr.bf16.mxu0 %v3468_v5  ;;  %v2742_v34 = vld [vmem:[%s4551_s17 + $0x20] sm:$0xff] }
 0x169   : > { %2877 = vmatprep.subr.bf16.mxu1 %v3468_v5 }
 0x1e5   : > { %v1267_v18 = vpop.xlane.xlu0 %1266 }
 0x1e6   : > { %v1269_v19 = vmul.f32 0.03125, %v1267_v18  ;;  %v2724_v18 = vld [vmem:[%s4554_s9] ss:$0 sm:$0xff] }
 0x1e8   : > { %v1270_v20 = vsub.f32 %v4096_v1, %v1269_v19 }
 0x1ea   : > { %v1271_v21 = vmul.f32 %v1270_v20, %v1270_v20 }
 0x1ec   : > { %v1272_v22 = vsel %vm1172_vm1, %v1271_v21, 0.0  ;;  %v2729_v21 = vld [vmem:[%s4051_s21 + $0x28] sm:$0xff] }
 0x1ed   : > { %1273 = vadd.xlane.f32.xlu0 %v1272_v22 }
 0x234   : > { %v1210_v35 = vpop.f32.mrb[0].mxu0 }
 0x235   : > { %v2843_v36 = vpop.f32.mrb[1].mxu0  ;;  %v1259_v37 = vpop.f32.mrb[0].mxu1  ;;  %v1211_v50 = vadd.f32 %v1210_v35, %v1171_v48  ;;  %v2743_v35 = vld [vmem:[%s4551_s17 + $0x28] sm:$0xff] }
 0x236   : > { %v1213_v38 = vpop.f32.mrb[2].mxu0  ;;  %v2851_v39 = vpop.f32.mrb[1].mxu1  ;;  %v1260_v52 = vadd.f32 %v2718_v49, %v1259_v37  ;;  %v1689_v36 = vpack.c.bf16 %v2743_v35, %v2742_v34  ;;  %v2744_v37 = vld [vmem:[%s4551_s17 + $0x30] sm:$0xff] }
 0x237   : > { %v2844_v40 = vpop.f32.mrb[3].mxu0  ;;  %v1262_v41 = vpop.f32.mrb[2].mxu1  ;;  %v1282_v53 = vrot.slane %v1211_v50, %v4149_v51  ;;  %v2745_v38 = vld [vmem:[%s4551_s17 + $0x38] sm:$0xff] }
 0x238   : > { %v2852_v42 = vpop.f32.mrb[3].mxu1  ;;  %v1287_v56 = vrot.slane %v1260_v52, %v4149_v51  ;;  %v1690_v39 = vpack.c.bf16 %v2745_v38, %v2744_v37  ;;  %v1161_v40 = vld [vmem:[%s4555_s19] sm:$0x1] }
 0x239   : > { %vm1162_vm5 = vcmp.eq.f32.partialorder %v1161_v40, 0.0 }
 0x23a   : > { %v1163_v41 = vsel %vm1162_vm5, -1e+09, %v3468_v5 }
 0x23b   : > { %v4206_v42 = vrot.slane %v1163_v41, %v4149_v51 }
 0x27a   : > { %v1274_v43 = vpop.xlane.xlu0 %1273 }
 0x27b   : > { %v1275_v44 = vmul.f32 0.03125, %v1274_v43 }
 0x27d   : > { %v1276_v46 = vadd.f32 1e-05, %v1275_v44 }
 0x27f   : > { %3127 = vrsqrt.f32 %v1276_v46 }
 0x289   : > { %v3128_v54 = vpop.eup %3127 }
 0x28a   : > { %v1278_v55 = vmul.f32 %v3128_v54, %v1270_v20  ;;  %v2728_v20 = vld [vmem:[%s4051_s21 + $0x20] sm:$0xff]  ;;  %s4556_s21 = sld [smem:[#allocation38_spill]] }
 0x28b   : > { %v1579_v26 = vpack.c.bf16 %v2729_v21, %v2728_v20 }
 0x28c   : > { %v1283_v57 = vmul.f32 %v1282_v53, %v1278_v55  ;;  %v2747_v55 = vld [vmem:[%s4554_s9 + $0x1] ss:$0 sm:$0xff] }
 0x28e   : > { %v1288_v60 = vadd.f32 %v1287_v56, %v1283_v57 }
 0x290   : > { %v4155_v62 = vpack.c.bf16 %v1288_v60, %v1288_v60 }
 0x292   : > { %2858 = vmatmul.mubr.msk.bf16.vlgmr.msra.gmra.mrb[4].mxu0 %vm1172_vm1, %v4155_v62  ;;  %2866 = vmatmul.mubr.msk.bf16.vlgmr.msra.gmra.mrb[4].mxu1 %vm1172_vm1, %v4155_v62 }
 0x293   : > { %2870 = vmatpush3.bf16.msra.mxu0 %v1403_v61  ;;  %2873 = vmatprep.mubr.msk.bf16.mxu0 %vm3469_vm2, %v3468_v5 }
 0x294   : > { %2871 = vmatprep.subr.bf16.mxu0 %v3468_v5  ;;  %2879 = vmatprep.mubr.msk.bf16.mxu1 %vm3469_vm2, %v3468_v5 }
 0x297   : > { %2872 = vmatpush3.bf16.msra.mxu0 %v1404_v2 }
 0x298   : > { %2883 = vmatprep.subr.bf16.mxu0 %v3468_v5 }
 0x29a   : > { %2874 = vmatmul.mubr.msk.bf16.vlgmr.msra.gmra.mrb[8].mxu0 %vm1172_vm1, %v4155_v62 }
 0x29b   : > { %2885 = vmatprep.mubr.msk.bf16.mxu0 %vm3469_vm2, %v3468_v5 }
 0x365   : > { %v1340_v4 = vpop.f32.mrb[4].mxu0  ;;  %v1393_v6 = vpop.f32.mrb[4].mxu1 }
 0x366   : > { %v1394_v7 = vadd.f32 %v2722_v3, %v1393_v6  ;;  %v2859_v8 = vpop.f32.mrb[5].mxu0  ;;  %v2867_v9 = vpop.f32.mrb[5].mxu1  ;;  %v1341_v19 = vadd.f32 %v2720_v15, %v1340_v4  ;;  %v2738_v15 = vld [vmem:[%s3987_s1 + $0x38] sm:$0xff] }
 0x367   : > { %v1343_v10 = vpop.f32.mrb[6].mxu0  ;;  %v1396_v11 = vpop.f32.mrb[6].mxu1  ;;  %v2735_v8 = vld [vmem:[%s3987_s1 + $0x20] sm:$0xff]  ;;  %v2736_v9 = vld [vmem:[%s3987_s1 + $0x28] sm:$0xff] }
 0x368   : > { %v1453_v12 = vpack.c.bf16 %v1394_v7, %v1394_v7  ;;  %v2860_v13 = vpop.f32.mrb[7].mxu0  ;;  %v2868_v14 = vpop.f32.mrb[7].mxu1  ;;  %v1452_v27 = vpack.c.bf16 %v1341_v19, %v1341_v19 }
 0x369   : > { %v2737_v14 = vld [vmem:[%s3987_s1 + $0x30] sm:$0xff] }
 0x36a   : > { %v1459_v16 = vsel %vm1454_vm3, %v1453_v12, 0  ;;  %v1634_v12 = vpack.c.bf16 %v2736_v9, %v2735_v8  ;;  %v2758_v8 = vld [vmem:[%s4556_s21 + $0x28] sm:$0xff]  ;;  %v1950_v9 = vld [vmem:[%s4556_s21 + $0x10] sm:$0xff] }
 0x36b   : > { %2878 = vmatpush3.bf16.xpose.msra.mxu1 %v1459_v16  ;;  %v1635_v16 = vpack.c.bf16 %v2738_v15, %v2737_v14 }
 0x36c   : > { %2889 = vmatprep.subr.bf16.mxu1 %v3468_v5 }
 0x36d   : > { %v1446_v22 = vpop.f32.mrb[8].mxu0 }
 0x36e   : > { %v1447_v23 = vadd.f32 %v2724_v18, %v1446_v22  ;;  %v2875_v24 = vpop.f32.mrb[9].mxu0  ;;  %v2740_v22 = vld [vmem:[%s4552_s13 + $0x1] ss:$0 sm:$0xff] }
 0x36f   : > { %v1449_v25 = vpop.f32.mrb[10].mxu0 }
 0x370   : > { %v1522_v28 = vpack.c.bf16 %v1447_v23, %v1447_v23  ;;  %v2876_v29 = vpop.f32.mrb[11].mxu0 }
 0x371   : > { %v2733_v29 = vld [vmem:[%s4553_s20 + $0x1] ss:$0 sm:$0xff] }
 0x372   : > { %v1528_v32 = vsel %vm1526_vm4, %v1522_v28, 0  ;;  %2880 = vmatmul.mubr.msk.bf16.vlgmr.msra.gmra.mrb[8].mxu1 %vm1454_vm3, %v1452_v27 }
 0x373   : > { %2884 = vmatpush3.bf16.msra.mxu0 %v1528_v32  ;;  %2890 = vmatpush3.bf16.msra.mxu1 %v1579_v26 }
 0x374   : > { %2891 = vmatprep.subr.bf16.mxu1 %v3468_v5  ;;  %2893 = vmatprep.mubr.msk.bf16.mxu1 %vm3469_vm2, %v3468_v5 }
 0x375   : > { %2897 = vmatprep.subr.bf16.mxu0 %v3468_v5 }
 0x377   : > { %2892 = vmatpush3.bf16.msra.mxu1 %v1580_v33 }
 0x378   : > { %2905 = vmatprep.subr.bf16.mxu1 %v3468_v5 }
 0x37a   : > { %2894 = vmatmul.mubr.msk.bf16.vlgmr.msra.gmra.mrb[12].mxu1 %vm1172_vm1, %v4155_v62 }
 0x37b   : > { %2906 = vmatpush3.bf16.msra.mxu1 %v1689_v36  ;;  %2909 = vmatprep.mubr.msk.bf16.mxu1 %vm3469_vm2, %v3468_v5 }
 0x37c   : > { %2907 = vmatprep.subr.bf16.mxu1 %v3468_v5 }
 0x37f   : > { %2908 = vmatpush3.bf16.msra.mxu1 %v1690_v39 }
 0x380   : > { %2919 = vmatprep.subr.bf16.mxu1 %v3468_v5 }
 0x382   : > { %2910 = vmatmul.mubr.msk.bf16.vlgmr.msra.gmra.mrb[16].mxu1 %vm1172_vm1, %v4155_v62 }
 0x383   : > { %2921 = vmatprep.mubr.msk.bf16.mxu1 %vm3469_vm2, %v3468_v5 }
 0x445   : > { %v1495_v43 = vpop.f32.mrb[8].mxu1 }
 0x446   : > { %v1501_v44 = vmul.f32 0.25, %v1495_v43  ;;  %v2881_v45 = vpop.f32.mrb[9].mxu1 }
 0x447   : > { %v1498_v46 = vpop.f32.mrb[10].mxu1  ;;  %v2751_v45 = vld [vmem:[%s4076_s4 + $0x10] sm:$0xff] }
 0x448   : > { %v2882_v47 = vpop.f32.mrb[11].mxu1  ;;  %v1508_v48 = vadd.f32 %v4206_v42, %v1501_v44  ;;  %v2752_v46 = vld [vmem:[%s4076_s4 + $0x18] sm:$0xff] }
 0x449   : > { %v1852_v47 = vpack.c.bf16 %v2752_v46, %v2751_v45  ;;  %v2126_v45 = vld [vmem:[%s4560_s26 + $0x8] sm:$0xff]  ;;  %v2127_v46 = vld [vmem:[%s4560_s26 + $0x10] sm:$0xff] }
 0x44a   : > { %v1510_v49 = vsel %vm1509_vm6, %v1508_v48, -inf }
 0x44b   : > { %1511 = vmax.xlane.f32.xlu1 %v1510_v49  ;;  %v1571_v49 = vld [vmem:[%s4076_s4 + $0x8] sm:$0xff] }
 0x44d   : > { %v1623_v50 = vpop.f32.mrb[12].mxu1 }
 0x44e   : > { %v2895_v52 = vpop.f32.mrb[13].mxu1  ;;  %v1624_v31 = vadd.f32 %v2733_v29, %v1623_v50 }
 0x44f   : > { %v1626_v53 = vpop.f32.mrb[14].mxu1 }
 0x450   : > { %v2896_v54 = vpop.f32.mrb[15].mxu1 }
 0x455   : > { %v1733_v56 = vpop.f32.mrb[16].mxu1 }
 0x456   : > { %v1734_v57 = vadd.f32 %v2747_v55, %v1733_v56  ;;  %v2911_v58 = vpop.f32.mrb[17].mxu1 }
 0x457   : > { %v1736_v59 = vpop.f32.mrb[18].mxu1 }
 0x458   : > { %v1801_v60 = vpack.c.bf16 %v1734_v57, %v1734_v57  ;;  %v2912_v61 = vpop.f32.mrb[19].mxu1 }
 0x45a   : > { %v1806_v63 = vsel %vm1526_vm4, %v1801_v60, 0 }
 0x45b   : > { %2920 = vmatpush3.bf16.msra.mxu1 %v1806_v63 }
 0x45c   : > { %2931 = vmatprep.subr.bf16.mxu1 %v3468_v5 }
 0x4d8   : > { %v1512_v0 = vpop.xlane.xlu1 %1511 }
 0x4d9   : > { %v1513_v2 = vsub.f32 %v1508_v48, %v1512_v0  ;;  %v1570_v48 = vld [vmem:[%s4076_s4] sm:$0xff] }
 0x4da   : > { %v1573_v53 = vpack.c.bf16 %v1571_v49, %v1570_v48 }
 0x4db   : > { %v1514_v3 = vmul.f32 1.442695, %v1513_v2 }
 0x4dd   : > { %3129 = vpow2.f32 %v1514_v3  ;;  %v1948_v3 = vld [vmem:[%s4556_s21] sm:$0xff] }
 0x4e7   : > { %v3130_v4 = vpop.eup %3129 }
 0x4e8   : > { %v1516_v6 = vsel %vm1509_vm6, %v3130_v4, 0.0 }
 0x4e9   : > { %1517 = vadd.xlane.f32.xlu1 %v1516_v6  ;;  %v2757_v6 = vld [vmem:[%s4556_s21 + $0x20] sm:$0xff] }
 0x576   : > { %v1518_v7 = vpop.xlane.xlu1 %1517 }
 0x577   : > { %3131 = vrcp.f32 %v1518_v7 }
 0x581   : > { %v3132_v10 = vpop.eup %3131 }
 0x582   : > { %v1520_v11 = vmul.f32 %v3132_v10, %v3130_v4  ;;  %v1949_v4 = vld [vmem:[%s4556_s21 + $0x8] sm:$0xff]  ;;  %v1951_v10 = vld [vmem:[%s4556_s21 + $0x18] sm:$0xff] }
 0x583   : > { %v1952_v7 = vpack.c.bf16 %v1949_v4, %v1948_v3  ;;  %v1953_v14 = vpack.c.bf16 %v1951_v10, %v1950_v9  ;;  %v2130_v3 = vld [vmem:[%s4560_s26 + $0x28] sm:$0xff]  ;;  %v2763_v9 = vld [vmem:[%s1143_s24] ss:$0 sm:$0xff]  ;;  %s4563_s24 = sld [smem:[#allocation23_spill]] }
 0x584   : > { %v1521_v13 = vpack.c.bf16 %v1520_v11, %v1520_v11  ;;  %v2000_v11 = vpack.c.bf16 %v2758_v8, %v2757_v6  ;;  %v2131_v6 = vld [vmem:[%s4560_s26 + $0x30] sm:$0xff] }
 0x586   : > { %2886 = vmatmul.mubr.msk.bf16.vlgmr.msra.gmra.mrb[12].mxu0 %vm1509_vm6, %v1521_v13  ;;  %v2760_v13 = vld [vmem:[%s4556_s21 + $0x38] sm:$0xff] }
 0x587   : > { %2898 = vmatpush3.bf16.msra.mxu0 %v1634_v12  ;;  %2901 = vmatprep.mubr.msk.bf16.mxu0 %vm3469_vm2, %v3468_v5  ;;  %v2759_v12 = vld [vmem:[%s4556_s21 + $0x30] sm:$0xff] }
 0x588   : > { %2899 = vmatprep.subr.bf16.mxu0 %v3468_v5  ;;  %v2001_v15 = vpack.c.bf16 %v2760_v13, %v2759_v12 }
 0x589   : > { %p2767_p12 = scmp.ne.s32.totalorder %s4563_s24, 1 }
 0x58a   : > { %vm3471_vm8 = vmmov (!%p2767_p12), 0   ;;  %s4564_s0 = sld [smem:[#allocation47_spill]] (!%p2767_p12)  ;;  %s4566_s10 = sld [smem:[#allocation65_spill]] (!%p2767_p12) }
 0x58b   : > { %2900 = vmatpush3.bf16.msra.mxu0 %v1635_v16 }
 0x58c   : > { %2913 = vmatprep.subr.bf16.mxu0 %v3468_v5 }
 0x58e   : > { %2902 = vmatmul.mubr.msk.bf16.vlgmr.msra.gmra.mrb[16].mxu0 %vm1172_vm1, %v4155_v62  ;;  %v1739_v62 = vpack.c.bf16 %v1624_v31, %v1624_v31 }
 0x58f   : > { %2915 = vmatprep.mubr.msk.bf16.mxu0 %vm3469_vm2, %v3468_v5 }
 0x590   : > { %s4565_s15 = scalar_lea.vmem (!%p2767_p12), %s4564_s0, %s4022_s11 }
 0x659   : > { %v1564_v18 = vpop.f32.mrb[12].mxu0 }
 0x65a   : > { %v2887_v19 = vpop.f32.mrb[13].mxu0  ;;  %v1572_v55 = vpack.c.bf16 %v1564_v18, %v1564_v18 }
 0x65b   : > { %v1567_v20 = vpop.f32.mrb[14].mxu0 }
 0x65c   : > { %v2888_v21 = vpop.f32.mrb[15].mxu0  ;;  %v2755_v20 = vld [vmem:[%s4558_s3] ss:$0 sm:$0xff] }
 0x661   : > { %v1678_v23 = vpop.f32.mrb[16].mxu0 }
 0x662   : > { %v1679_v24 = vadd.f32 %v2740_v22, %v1678_v23  ;;  %v2903_v25 = vpop.f32.mrb[17].mxu0 }
 0x663   : > { %v1681_v26 = vpop.f32.mrb[18].mxu0 }
 0x664   : > { %v1740_v27 = vpack.c.bf16 %v1679_v24, %v1679_v24  ;;  %v2904_v28 = vpop.f32.mrb[19].mxu0 }
 0x666   : > { %v1745_v30 = vsel %vm1454_vm3, %v1740_v27, 0 }
 0x667   : > { %2914 = vmatpush3.bf16.xpose.msra.mxu0 %v1745_v30 }
 0x668   : > { %2925 = vmatprep.subr.bf16.mxu0 %v3468_v5 }
 0x66e   : > { %2916 = vmatmul.mubr.msk.bf16.vlgmr.msra.gmra.mrb[20].mxu0 %vm1454_vm3, %v1739_v62 }
 0x66f   : > { %2927 = vmatprep.mubr.msk.bf16.mxu0 %vm3469_vm2, %v3468_v5  ;;  %2926 = vmatpush3.bf16.msra.mxu0 %v1852_v47 }
 0x670   : > { %2937 = vmatprep.subr.bf16.mxu0 %v3468_v5 }
 0x741   : > { %v1781_v32 = vpop.f32.mrb[20].mxu0 }
 0x742   : > { %v1787_v33 = vmul.f32 0.25, %v1781_v32  ;;  %v2917_v34 = vpop.f32.mrb[21].mxu0 }
 0x743   : > { %v1784_v35 = vpop.f32.mrb[22].mxu0 }
 0x744   : > { %v2918_v36 = vpop.f32.mrb[23].mxu0  ;;  %v1788_v37 = vadd.f32 %v1787_v33, %v4206_v42 }
 0x745   : > { %v2067_v36 = vld [vmem:[%s4559_s14] sm:$0xff] }
 0x746   : > { %v1789_v38 = vsel %vm1509_vm6, %v1788_v37, -inf }
 0x747   : > { %1790 = vmax.xlane.f32.xlu0 %v1789_v38 }
 0x7d4   : > { %v1791_v39 = vpop.xlane.xlu0 %1790 }
 0x7d5   : > { %v1792_v40 = vsub.f32 %v1788_v37, %v1791_v39  ;;  %v2068_v37 = vld [vmem:[%s4559_s14 + $0x8] sm:$0xff] }
 0x7d6   : > { %v2072_v39 = vpack.c.bf16 %v2068_v37, %v2067_v36  ;;  %v2315_v36 = vld [vmem:[%s4565_s15] sm:$0xff] (!%p2767_p12)  ;;  %v3472_v37 = vmov (!%p2767_p12), 0  }
 0x7d7   : > { %v1793_v41 = vmul.f32 1.442695, %v1792_v40  ;;  %v2069_v40 = vld [vmem:[%s4559_s14 + $0x10] sm:$0xff]  ;;  %3139 = vset.pattern.permute.xlu1 (!%p2767_p12), %v3472_v37  ;;  %3140 = vset.pattern.permute.xlu0 (!%p2767_p12), %v3472_v37 }
 0x7d9   : > { %3133 = vpow2.f32 %v1793_v41  ;;  %v2070_v41 = vld [vmem:[%s4559_s14 + $0x18] sm:$0xff] }
 0x7e3   : > { %v3134_v43 = vpop.eup %3133 }
 0x7e4   : > { %v1795_v44 = vsel %vm1509_vm6, %v3134_v43, 0.0 }
 0x7e5   : > { %1796 = vadd.xlane.f32.xlu1 %v1795_v44  ;;  %v2125_v44 = vld [vmem:[%s4560_s26] sm:$0xff] }
 0x7e6   : > { %v2134_v47 = vpack.c.bf16 %v2126_v45, %v2125_v44 }
 0x872   : > { %v1797_v42 = vpop.xlane.xlu1 %1796 }
 0x873   : > { %3135 = vrcp.f32 %v1797_v42  ;;  %v2128_v42 = vld [vmem:[%s4560_s26 + $0x18] sm:$0xff] }
 0x874   : > { %v2135_v48 = vpack.c.bf16 %v2128_v42, %v2127_v46 }
 0x87d   : > { %v3136_v50 = vpop.eup %3135 }
 0x87e   : > { %v1799_v52 = vmul.f32 %v3136_v50, %v3134_v43  ;;  %v2073_v43 = vpack.c.bf16 %v2070_v41, %v2069_v40 }
 0x880   : > { %v1800_v54 = vpack.c.bf16 %v1799_v52, %v1799_v52 }
 0x882   : > { %2922 = vmatmul.mubr.msk.bf16.vlgmr.msra.gmra.mrb[20].mxu1 %vm1509_vm6, %v1800_v54  ;;  %v2761_v54 = vld [vmem:[%s4081_s6 + $0x1] sm:$0x1] }
 0x883   : > { %2932 = vmatpush3.bf16.msra.mxu1 %v1573_v53  ;;  %2933 = vmatprep.mubr.msk.bf16.mxu1 %vm3469_vm2, %v3468_v5  ;;  %v1954_v53 = vld [vmem:[%s4081_s6] sm:$0x1] }
 0x884   : > { %2945 = vmatprep.subr.bf16.mxu1 %v3468_v5 }
 0x88a   : > { %2934 = vmatmul.mubr.msk.bf16.vlgmr.msra.gmra.mrb[24].mxu1 %vm1454_vm3, %v1572_v55 }
 0x88b   : > { %2949 = vmatprep.mubr.msk.bf16.mxu1 %vm3469_vm2, %v3468_v5  ;;  %2946 = vmatpush3.bf16.msra.mxu1 %v2000_v11 }
 0x88c   : > { %2947 = vmatprep.subr.bf16.mxu1 %v3468_v5 }
 0x88f   : > { %2948 = vmatpush3.bf16.msra.mxu1 %v2001_v15 }
 0x890   : > { %2961 = vmatprep.subr.bf16.mxu1 %v3468_v5 }
 0x892   : > { %2950 = vmatmul.mubr.msk.bf16.vlgmr.msra.gmra.mrb[28].mxu1 %vm1172_vm1, %v4121_v17 }
 0x893   : > { %2969 = vmatprep.mubr.msk.bf16.mxu1 %vm3469_vm2, %v3468_v5  ;;  %2962 = vmatpush3.bf16.msra.mxu1 %v2134_v47 }
 0x894   : > { %2963 = vmatprep.subr.bf16.mxu1 %v3468_v5 }
 0x897   : > { %2964 = vmatpush3.bf16.msra.mxu1 %v2135_v48 }
 0x898   : > { %2965 = vmatprep.subr.bf16.mxu1 %v3468_v5 }
 0x955   : > { %v1842_v56 = vpop.f32.mrb[20].mxu1 }
 0x956   : > { %v1851_v57 = vpack.c.bf16 %v1842_v56, %v1842_v56  ;;  %v2923_v58 = vpop.f32.mrb[21].mxu1 }
 0x957   : > { %v1845_v59 = vpop.f32.mrb[22].mxu1 }
 0x958   : > { %v2924_v60 = vpop.f32.mrb[23].mxu1  ;;  %2928 = vmatmul.mubr.msk.bf16.vlgmr.msra.gmra.mrb[24].mxu0 %vm1454_vm3, %v1851_v57 }
 0x959   : > { %2941 = vmatprep.mubr.msk.bf16.mxu0 %vm3469_vm2, %v3468_v5  ;;  %2938 = vmatpush3.bf16.msra.mxu0 %v1952_v7  ;;  %v2132_v7 = vld [vmem:[%s4560_s26 + $0x38] sm:$0xff] }
 0x95a   : > { %2939 = vmatprep.subr.bf16.mxu0 %v3468_v5  ;;  %v2137_v8 = vpack.c.bf16 %v2132_v7, %v2131_v6 }
 0x95d   : > { %v1933_v61 = vpop.f32.mrb[24].mxu1  ;;  %2940 = vmatpush3.bf16.msra.mxu0 %v1953_v14 }
 0x95e   : > { %v2935_v63 = vpop.f32.mrb[25].mxu1  ;;  %2953 = vmatprep.subr.bf16.mxu0 %v3468_v5 }
 0x95f   : > { %v1936_v0 = vpop.f32.mrb[26].mxu1 }
 0x960   : > { %v2936_v2 = vpop.f32.mrb[27].mxu1  ;;  %2942 = vmatmul.mubr.msk.bf16.vlgmr.msra.gmra.mrb[28].mxu0 %vm1172_vm1, %v4121_v17 }
 0x961   : > { %2957 = vmatprep.mubr.msk.bf16.mxu0 %vm3469_vm2, %v3468_v5  ;;  %2954 = vmatpush3.bf16.msra.mxu0 %v2072_v39  ;;  %v2129_v2 = vld [vmem:[%s4560_s26 + $0x20] sm:$0xff] }
 0x962   : > { %2955 = vmatprep.subr.bf16.mxu0 %v3468_v5  ;;  %v2136_v4 = vpack.c.bf16 %v2130_v3, %v2129_v2 }
 0x964   : > { %2966 = vmatpush3.bf16.msra.mxu1 %v2136_v4 }
 0x965   : > { %v2038_v33 = vpop.f32.mrb[28].mxu1  ;;  %2956 = vmatpush3.bf16.msra.mxu0 %v2073_v43  ;;  %2967 = vmatprep.subr.bf16.mxu1 %v3468_v5 }
 0x966   : > { %v2951_v34 = vpop.f32.mrb[29].mxu1  ;;  %v2039_v56 = vadd.f32 %v2761_v54, %v2038_v33  ;;  %v2247_v33 = vld [vmem:[#allocation13 + $0x38] sm:$0xff] (!%p2767_p12)  ;;  %v2202_v54 = vld [vmem:[%s4566_s10] sm:$0x1] (!%p2767_p12) }
 0x967   : > { %v2041_v35 = vpop.f32.mrb[30].mxu1 }
 0x968   : > { %v2952_v38 = vpop.f32.mrb[31].mxu1  ;;  %v2065_v60 = vrot.slane %v2039_v56, %v4149_v51  ;;  %2968 = vmatpush3.bf16.msra.mxu1 %v2137_v8 }
 0xa2b   : > { %v1890_v16 = vpop.f32.mrb[24].mxu0 }
 0xa2c   : > { %v1934_v18 = vadd.f32 %v1933_v61, %v1890_v16  ;;  %v2929_v19 = vpop.f32.mrb[25].mxu0 }
 0xa2d   : > { %v1893_v21 = vpop.f32.mrb[26].mxu0 }
 0xa2e   : > { %v1939_v22 = vadd.f32 %v1934_v18, %v4096_v1  ;;  %v2930_v23 = vpop.f32.mrb[27].mxu0  ;;  %v2766_v18 = vld [vmem:[%s1146_s2] ss:$0 sm:$0xff] }
 0xa30   : > { %v4278_v24 = vadd.f32 %v2755_v20, %v1939_v22 }
 0xa32   : > { %v2044_v25 = vsel %vm1172_vm1, %v4278_v24, 0.0 }
 0xa33   : > { %2045 = vadd.xlane.f32.xlu0 %v2044_v25  ;;  %v1989_v1 = vpop.f32.mrb[28].mxu0 }
 0xa34   : > { %v2943_v31 = vpop.f32.mrb[29].mxu0  ;;  %v1990_v55 = vadd.f32 %v1989_v1, %v1954_v53  ;;  %v2245_v1 = vld [vmem:[#allocation13 + $0x28] sm:$0xff] (!%p2767_p12) }
 0xa35   : > { %v1992_v62 = vpop.f32.mrb[30].mxu0  ;;  %v2199_v31 = vld [vmem:[#allocation13 + $0x18] sm:$0xff] (!%p2767_p12) }
 0xa36   : > { %v2944_v32 = vpop.f32.mrb[31].mxu0  ;;  %v2060_v57 = vrot.slane %v1990_v55, %v4149_v51  ;;  %v2769_v55 = vld [vmem:[%s4566_s10 + $0x1] sm:$0x1] (!%p2767_p12) }
 0xa37   : > { %v2246_v32 = vld [vmem:[#allocation13 + $0x30] sm:$0xff] (!%p2767_p12) }
 0xa38   : > { %v2249_v35 = vpack.c.bf16 (!%p2767_p12), %v2247_v33, %v2246_v32 }
 0xac0   : > { %v2046_v26 = vpop.xlane.xlu0 %2045 }
 0xac1   : > { %v2047_v27 = vmul.f32 0.03125, %v2046_v26  ;;  %v2196_v26 = vld [vmem:[#allocation13] sm:$0xff] (!%p2767_p12) }
 0xac3   : > { %v2048_v28 = vsub.f32 %v4278_v24, %v2047_v27  ;;  %v2197_v27 = vld [vmem:[#allocation13 + $0x8] sm:$0xff] (!%p2767_p12) }
 0xac5   : > { %v2049_v29 = vmul.f32 %v2048_v28, %v2048_v28 }
 0xac7   : > { %v2050_v30 = vsel %vm1172_vm1, %v2049_v29, 0.0  ;;  %v3470_v29 = vmov (!%p2767_p12), 0.0  }
 0xac8   : > { %2051 = vadd.xlane.f32.xlu1 %v2050_v30  ;;  %2973 = vmatprep.subr.bf16.mxu0 (!%p2767_p12), %v3470_v29  ;;  %v2200_v30 = vpack.c.bf16 (!%p2767_p12), %v2197_v27, %v2196_v26 }
 0xac9   : > { %2981 = vmatprep.subr.bf16.mxu1 (!%p2767_p12), %v3470_v29 }
 0xad9   : > { %2318 = vperm.xlu1 (!%p2767_p12), %3139, %v2315_v36  }
 0xb55   : > { %v2052_v49 = vpop.xlane.xlu1 %2051 }
 0xb56   : > { %v2053_v50 = vmul.f32 0.03125, %v2052_v49 }
 0xb58   : > { %v2054_v52 = vadd.f32 1e-05, %v2053_v50 }
 0xb5a   : > { %3137 = vrsqrt.f32 %v2054_v52 }
 0xb64   : > { %v3138_v58 = vpop.eup %3137 }
 0xb65   : > { %v2056_v59 = vmul.f32 %v3138_v58, %v2048_v28  ;;  %v2244_v28 = vld [vmem:[#allocation13 + $0x20] sm:$0xff] (!%p2767_p12) }
 0xb66   : > { %v2248_v62 = vpack.c.bf16 (!%p2767_p12), %v2245_v1, %v2244_v28 }
 0xb67   : > { %v2061_v61 = vmul.f32 %v2060_v57, %v2056_v59 }
 0xb69   : > { %v2066_v63 = vadd.f32 %v2065_v60, %v2061_v61 }
 0xb6b   : > { %v2071_v0 = vpack.c.bf16 %v2066_v63, %v2066_v63 }
 0xb6d   : > { %2958 = vmatmul.mubr.msk.bf16.vlgmr.msra.gmra.mrb[32].mxu0 %vm1172_vm1, %v2071_v0  ;;  %v2319_v0 = vpop.permute.xlu1 (!%p2767_p12), %2318 }
 0xb6e   : > { %2977 = vmatprep.mubr.msk.bf16.mxu0 (!%p2767_p12), %vm3471_vm8, %v3470_v29  ;;  %2974 = vmatpush3.bf16.msra.mxu0 (!%p2767_p12), %v2200_v30 }
 0xb6f   : > { %2975 = vmatprep.subr.bf16.mxu0 (!%p2767_p12), %v3470_v29 }
 0xc40   : > { %v2118_v10 = vpop.f32.mrb[32].mxu0 }
 0xc41   : > { %v2119_v11 = vadd.f32 %v2763_v9, %v2118_v10  ;;  %v2959_v12 = vpop.f32.mrb[33].mxu0 }
 0xc42   : > { %v2121_v13 = vpop.f32.mrb[34].mxu0 }
 0xc43   : > { %v2124_v14 = vmax.f32 %v2119_v11, 0.0  ;;  %v2960_v15 = vpop.f32.mrb[35].mxu0 }
 0xc45   : > { %v2133_v16 = vpack.c.bf16 %v2124_v14, %v2124_v14 }
 0xc47   : > { %2970 = vmatmul.mubr.msk.bf16.vlgmr.msra.gmra.mrb[32].mxu1 %vm2138_vm7, %v2133_v16 }
 0xc48   : > { %2985 = vmatprep.mubr.msk.bf16.mxu1 (!%p2767_p12), %vm3471_vm8, %v3470_v29  ;;  %2982 = vmatpush3.bf16.msra.mxu1 (!%p2767_p12), %v2248_v62 }
 0xc49   : > { %2983 = vmatprep.subr.bf16.mxu1 (!%p2767_p12), %v3470_v29 }
 0xc4c   : > { %2984 = vmatpush3.bf16.msra.mxu1 (!%p2767_p12), %v2249_v35 }
 0xc4f   : > { %2986 = vmatmul.mubr.msk.bf16.vlgmr.msra.gmra.mrb[0].mxu1 (!%p2767_p12), %vm1172_vm1, %v4121_v17 }
 0xd19   : > { %2195 = sbr.rel (%p2767_p12) target bundleno = 3675 (0xe5b), region = 144 }
 0xd1a   : > { %v2176_v5 = vpop.f32.mrb[32].mxu1 }
 0xd1b   : > { %v2182_v19 = vadd.f32 %v2176_v5, %v4278_v24  ;;  %v2971_v20 = vpop.f32.mrb[33].mxu1  ;;  %v2198_v24 = vld [vmem:[#allocation13 + $0x10] sm:$0xff] (!%p2767_p12) }
 0xd1c   : > { %v2179_v21 = vpop.f32.mrb[34].mxu1  ;;  %v2201_v34 = vpack.c.bf16 (!%p2767_p12), %v2199_v31, %v2198_v24 }
 0xd1d   : > { %v2190_v22 = vadd.f32 %v2766_v18, %v2182_v19  ;;  %v2972_v23 = vpop.f32.mrb[35].mxu1 }
 0xd1e   : > { %2976 = vmatpush3.bf16.msra.mxu0 (!%p2767_p12), %v2201_v34 }
 0xd1f   : > { %2191 = vst.msk [vmem:[#allocation2] sm:$0xff] %vm1172_vm1, %v2190_v22  ;;  %v2292_v25 = vsel (!%p2767_p12), %vm1172_vm1, %v2190_v22, 0.0 }
 0xd20   : > { %2293 = vadd.xlane.f32.xlu0 %v2292_v25 }
 0xd21   : > { %2978 = vmatmul.mubr.msk.bf16.vlgmr.msra.gmra.mrb[0].mxu0 %vm1172_vm1, %v4121_v17 }
 0xd22   : > { %v2286_v46 = vpop.f32.mrb[0].mxu1 }
 0xd23   : > { %v2987_v47 = vpop.f32.mrb[1].mxu1  ;;  %v2287_v57 = vadd.f32 %v2769_v55, %v2286_v46 }
 0xd24   : > { %v2289_v48 = vpop.f32.mrb[2].mxu1 }
 0xd25   : > { %v2988_v49 = vpop.f32.mrb[3].mxu1  ;;  %v2313_v61 = vrot.slane %v2287_v57, %v4149_v51 }
 0xdad   : > { %v2294_v38 = vpop.xlane.xlu0 %2293 }
 0xdae   : > { %v2295_v39 = vmul.f32 0.03125, %v2294_v38 }
 0xdb0   : > { %v2296_v40 = vsub.f32 %v2190_v22, %v2295_v39 }
 0xdb2   : > { %v2297_v41 = vmul.f32 %v2296_v40, %v2296_v40 }
 0xdb4   : > { %v2298_v43 = vsel %vm1172_vm1, %v2297_v41, 0.0 }
 0xdb5   : > { %2299 = vadd.xlane.f32.xlu0 %v2298_v43 }
 0xdf4   : > { %v2237_v44 = vpop.f32.mrb[0].mxu0 }
 0xdf5   : > { %v2979_v45 = vpop.f32.mrb[1].mxu0  ;;  %v2238_v56 = vadd.f32 %v2237_v44, %v2202_v54 }
 0xdf6   : > { %v2240_v17 = vpop.f32.mrb[2].mxu0 }
 0xdf7   : > { %v2980_v42 = vpop.f32.mrb[3].mxu0  ;;  %v2308_v58 = vrot.slane %v2238_v56, %v4149_v51 }
 0xe42   : > { %v2300_v50 = vpop.xlane.xlu0 %2299 }
 0xe43   : > { %v2301_v52 = vmul.f32 0.03125, %v2300_v50 }
 0xe45   : > { %v2302_v53 = vadd.f32 1e-05, %v2301_v52 }
 0xe47   : > { %3141 = vrsqrt.f32 %v2302_v53 }
 0xe51   : > { %v3142_v59 = vpop.eup %3141 }
 0xe52   : > { %v2304_v60 = vmul.f32 %v3142_v59, %v2296_v40 }
 0xe54   : > { %v2309_v63 = vmul.f32 %v2308_v58, %v2304_v60 }
 0xe56   : > { %v2314_v2 = vadd.f32 %v2313_v61, %v2309_v63 }
 0xe58   : > { %v2321_v3 = vmul.f32 %v2319_v0, %v2314_v2 }
 0xe5a   : > { %2322 = vst.msk [vmem:[%s1150_s30] sm:$0xff] %vm1172_vm1, %v2321_v3 }
 0xe5b PF: > { %s4568_s20 = sld [smem:[#allocation27_spill]]  ;;  %s4569_s3 = sld [smem:[#allocation19_spill]] }
 0xe5c   : > { %s4570_s28 = sld [smem:[#allocation20_spill]]  ;;  %s4572_s30 = sld [smem:[#allocation21_spill]] }
 0xe5d   : > { %s4571_s29 = sld [smem:[#allocation34_spill]]  ;;  %s4573_s4 = sld [smem:[#allocation22_spill]] }
 0xe5e   : > { %s4574_s0 = sld [smem:[#allocation35_spill]]  ;;  %s4575_s23 = sld [smem:[#allocation25_spill]] }
 0xe5f   : > { %s4576_s1 = sld [smem:[#allocation26_spill]]  ;;  %s4577_s5 = sld [smem:[#allocation31_spill]] }
 0xe60   : > { %s4578_s24 = sld [smem:[#allocation33_spill]] }
 0xe61   : > { %s44_s6 = sadd.s32 1, %s4568_s20  }
 0xe62   : > { %p41_p2 = scmp.ge.s32.totalorder %s44_s6, 6  }
 0xe64   :  { %43 = sbr.rel (!%p41_p2) target bundleno = 37 (0x25), region = 276 }
 0xe6b   :  { %2342 = vsyncpa [#allocation4], 1 }
 0xe6c   :  { %2344 = vsyncpa [#allocation4 + $0x1], 1 }
 0xe6d   :  { %2345 = vsyncpa [#allocation6], 1 }
 0xe6e   :  { %2347 = vsyncpa [#allocation6 + $0x1], 1 }
 0xe6f   :  { %2348 = vsyncpa [#allocation9], 1 }
 0xe70   :  { %2350 = vsyncpa [#allocation9 + $0x1], 1 }
 0xe71   :  { %2351 = vsyncpa [#allocation12], 1 }
 0xe72   :  { %2353 = vsyncpa [#allocation12 + $0x1], 1 }

// kernel: custom-call.2
= control target key start
LH: loop header
LB: loop body
LE: loop exit
PB: predicated region body
PF: predicated region fallthrough
CT: control target
= control target key end

     0   :  { %s6_s0 = inlined_call_operand.vmem [shape: u32[2,15], index: 0, kind: output, shape index: {}]  }

// kernel: ne.8
= control target key start
LH: loop header
LB: loop body
LE: loop exit
PB: predicated region body
PF: predicated region fallthrough
CT: control target
= control target key end

     0   :  { %v15_v2 = vmov 0   ;;  %s40_s0 = inlined_call_operand.vmem [shape: f32[2,15], index: 0, kind: input, shape index: {}, may-alias: {0,1}]   ;;  %s41_s1 = inlined_call_operand.vmem [shape: f32[2,15], index: 1, kind: input, shape index: {}, may-alias: {0,1}]   ;;  %s42_s2 = inlined_call_operand.vmem [shape: pred[2,15], index: 2, kind: output, shape index: {}]  }
   0x1   :  { %v3_v0 = vld [vmem:[%s40_s0] sm:$0x3] }
   0x2   :  { %v4_v1 = vld [vmem:[%s41_s1] sm:$0x3] }
   0x3   :  { %vm7_vm0 = vcmp.ne.f32.partialorder %v3_v0, %v4_v1 }
   0x4   :  { %v8_v3 = vsel %vm7_vm0, 1, %v15_v2 }
   0x5   :  { %v10_v4 = vpack.c.b16 %v15_v2, %v8_v3 }
   0x7   :  { %v11_v5 = vpack.c.b8 %v15_v2, %v10_v4 }
   0x9   :  { %13 = vst [vmem:[%s42_s2] sm:$0x1] %v11_v5 }

// kernel: squeeze.11
= control target key start
LH: loop header
LB: loop body
LE: loop exit
PB: predicated region body
PF: predicated region fallthrough
CT: control target
= control target key end

     0   :  { %vm7_vm0 = vcmask 121856   ;;  %s39_s0 = inlined_call_operand.vmem [shape: f32[30], index: 0, kind: input, shape index: {}]   ;;  %s40_s1 = inlined_call_operand.vmem [shape: f32[2,15], index: 1, kind: output, shape index: {}]  }
   0x1   :  { %v4_v0 = vld [vmem:[%s39_s0] sm:$0x1]  ;;  %s22_s0 = smov 113  }
   0x2   :  { %5 = vst [vmem:[#allocation1] sm:$0x1] %v4_v0 }
   0x9   :  { %v9_v1 = vld [vmem:[#allocation1] sm:$0x1]  }
   0xa   :  { %v6_v2 = vld [vmem:[#allocation1] sm:$0x1]   ;;  %10 = vrot.lane.b32.xlu0 %v9_v1, %s22_s0 }
   0xb   :  { %8 = vst.msk [vmem:[#allocation0] sm:$0x1] %vm7_vm0, %v6_v2  }
  0x7c   :  { %v11_v3 = vpop.permute.xlu0 %10  }
  0x7d   :  { %14 = vst.msk [vmem:[#allocation0 + $0x1] sm:$0x1] %vm7_vm0, %v11_v3  }
  0x84   :  { %v18_v4 = vld [vmem:[#allocation0] sm:$0x3] }
  0x85   :  { %20 = vst [vmem:[%s40_s1] sm:$0x3] %v18_v4 }

// kernel: prior_encoder_forward.9
= control target key start
LH: loop header
LB: loop body
LE: loop exit
PB: predicated region body
PF: predicated region fallthrough
CT: control target
= control target key end

     0   :  { %s2070_s27 = smov 0   ;;  %s2401_s0 = inlined_call_operand.vmem [shape: f32[2,15,32], index: 0, kind: input, shape index: {}]   ;;  %s2402_s1 = inlined_call_operand.vmem [shape: f32[2,15,1], index: 1, kind: input, shape index: {}]   ;;  %s2403_s2 = inlined_call_operand.vmem [shape: f32[2,6,32], index: 2, kind: input, shape index: {}]   ;;  %s2404_s3 = inlined_call_operand.vmem [shape: f32[2,1,6], index: 3, kind: input, shape index: {}]   ;;  %s2405_s4 = inlined_call_operand.vmem [shape: f32[1,32], index: 4, kind: input, shape index: {}, may-alias: {4,16}]   ;;  %s2406_s5 = inlined_call_operand.vmem [shape: f32[1,32], index: 5, kind: input, shape index: {}, may-alias: {5,13,15,17}]   ;;  %s2407_s6 = inlined_call_operand.vmem [shape: f32[2,32,16], index: 6, kind: input, shape index: {}]   ;;  %s2408_s7 = inlined_call_operand.vmem [shape: f32[2,1,16], index: 7, kind: input, shape index: {}, may-alias: {7,9,11}]   ;;  %s2409_s8 = inlined_call_operand.vmem [shape: f32[2,32,16], index: 8, kind: input, shape index: {}]   ;;  %s2410_s9 = inlined_call_operand.vmem [shape: f32[2,1,16], index: 9, kind: input, shape index: {}, may-alias: {7,9,11}]   ;;  %s2411_s10 = inlined_call_operand.vmem [shape: f32[2,32,16], index: 10, kind: input, shape index: {}]   ;;  %s2412_s11 = inlined_call_operand.vmem [shape: f32[2,1,16], index: 11, kind: input, shape index: {}, may-alias: {7,9,11}]   ;;  %s2413_s12 = inlined_call_operand.vmem [shape: f32[2,16,32], index: 12, kind: input, shape index: {}]   ;;  %s2414_s13 = inlined_call_operand.vmem [shape: f32[1,32], index: 13, kind: input, shape index: {}, may-alias: {5,13,15,17}]   ;;  %s2415_s14 = inlined_call_operand.vmem [shape: f32[3,32,32], index: 14, kind: input, shape index: {}]   ;;  %s2416_s15 = inlined_call_operand.vmem [shape: f32[1,32], index: 15, kind: input, shape index: {}, may-alias: {5,13,15,17}]   ;;  %s2417_s16 = inlined_call_operand.vmem [shape: f32[1,32], index: 16, kind: input, shape index: {}, may-alias: {4,16}]   ;;  %s2418_s17 = inlined_call_operand.vmem [shape: f32[1,32], index: 17, kind: input, shape index: {}, may-alias: {5,13,15,17}]   ;;  %s2419_s18 = inlined_call_operand.vmem [shape: f32[2,15,32], index: 18, kind: output, shape index: {}]  }
   0x1   :  { %2420 = sst [smem:[#allocation3_spill]] %s2401_s0 }
   0x2   :  { %2421 = sst [smem:[#allocation4_spill]] %s2402_s1 }
   0x3   :  { %2422 = sst [smem:[#allocation5_spill]] %s2403_s2 }
   0x4 LB: > { %s1711_s28 = sadd.s32 4294967295, %s1970_s27   ;;  %p1715_p0 = scmp.ge.s32.totalorder %s1970_s27, 1  ;;  %s1970_s27 = sphi %s2070_s27, %s28_s27  }
   0x5   : > { %p539_p1 = scmp.lt.s32.totalorder %s1970_s27, 3 }
   0x7   : > { %p540_p2 = pnand %p1715_p0, %p539_p1 }
   0x8   : > { %p605_p3 = scmp.lt.s32.totalorder (!%p540_p2), %s1711_s28, 1  ;;  %vm636_vm0 = vcmask (!%p540_p2), 261120   ;;  %s2423_s19 = sld [smem:[#allocation3_spill]] (!%p540_p2)  ;;  %vm640_vm1 = vcmask (!%p540_p2), 260096   ;;  %v741_v14 = vld [vmem:[%s2409_s8] sm:$0xff] (!%p540_p2)  ;;  %v742_v15 = vld [vmem:[%s2409_s8 + $0x8] sm:$0xff] (!%p540_p2) }
   0x9   : > { %543 = sbr.rel (%p540_p2) target bundleno = 2849 (0xb21), region = 92  ;;  %v746_v16 = vpack.c.bf16 (!%p540_p2), %v742_v15, %v741_v14  ;;  %v1972_v17 = vmov (!%p540_p2), 0.0   ;;  %v743_v18 = vld [vmem:[%s2409_s8 + $0x10] sm:$0xff] (!%p540_p2)  ;;  %v744_v19 = vld [vmem:[%s2409_s8 + $0x18] sm:$0xff] (!%p540_p2)  ;;  %vm1973_vm2 = vmmov (!%p540_p2), 0   ;;  %v683_v23 = vld [vmem:[%s2407_s6] sm:$0xff] (!%p540_p2) }
   0xa   : > { %1827 = vmatprep.subr.bf16.mxu1 (!%p540_p2), %v1972_v17  ;;  %1385 = vst.msk [vmem:[#allocation2] sm:$0xff] (!%p540_p2), %vm636_vm0, %v1972_v17  ;;  %1386 = vst.msk [vmem:[#allocation2 + $0x8] sm:$0xff] (!%p540_p2), %vm636_vm0, %v1972_v17  ;;  %1819 = vmatprep.subr.bf16.mxu0 (!%p540_p2), %v1972_v17  ;;  %v747_v20 = vpack.c.bf16 (!%p540_p2), %v744_v19, %v743_v18  ;;  %v684_v24 = vld [vmem:[%s2407_s6 + $0x8] sm:$0xff] (!%p540_p2)  ;;  %v685_v26 = vld [vmem:[%s2407_s6 + $0x10] sm:$0xff] (!%p540_p2)  ;;  %vm853_vm3 = vcmask (!%p540_p2), 130048   ;;  %vm911_vm5 = vcmask (!%p540_p2), 48128  }
   0xb   : > { %1828 = vmatpush3.bf16.msra.mxu1 (!%p540_p2), %v746_v16  ;;  %1831 = vmatprep.mubr.msk.bf16.mxu1 (!%p540_p2), %vm1973_vm2, %v1972_v17  ;;  %v688_v25 = vpack.c.bf16 (!%p540_p2), %v684_v24, %v683_v23  ;;  %v686_v27 = vld [vmem:[%s2407_s6 + $0x18] sm:$0xff] (!%p540_p2)  ;;  %v1723_v37 = vld [vmem:[%s2405_s4] ss:$0 sm:$0xff] (!%p540_p2)  ;;  %v1734_v58 = vld [vmem:[%s2407_s6 + $0x28] sm:$0xff] (!%p540_p2)  ;;  %vm915_vm6 = vcmask (!%p540_p2), 47104   ;;  %vm940_vm7 = vcmask (!%p540_p2), 1042432  }
   0xc   : > { %1829 = vmatprep.subr.bf16.mxu1 (!%p540_p2), %v1972_v17  ;;  %1823 = vmatprep.mubr.msk.bf16.mxu0 (!%p540_p2), %vm1973_vm2, %v1972_v17  ;;  %v689_v28 = vpack.c.bf16 (!%p540_p2), %v686_v27, %v685_v26  ;;  %v1724_v41 = vld [vmem:[%s2406_s5] ss:$0 sm:$0xff] (!%p540_p2)  ;;  %vm1387_vm8 = vcmask (!%p540_p2), 253952   ;;  %s2425_s0 = sld [smem:[#allocation4_spill]] (!%p540_p2) }
   0xd   : > { %1820 = vmatpush3.bf16.msra.mxu0 (!%p540_p2), %v688_v25  ;;  %v1727_v46 = vld [vmem:[%s2410_s9] ss:$0 sm:$0xff] (!%p540_p2)  ;;  %1388 = vst.msk [vmem:[#allocation2 + $0x10] sm:$0x1] (!%p540_p2), %vm1387_vm8, %v1972_v17 }
   0xe   : > { %1821 = vmatprep.subr.bf16.mxu0 (!%p540_p2), %v1972_v17  ;;  %v1725_v54 = vld [vmem:[%s2408_s7] ss:$0 sm:$0xff] (!%p540_p2) }
   0xf   : > { %1830 = vmatpush3.bf16.msra.mxu1 (!%p540_p2), %v747_v20  ;;  %v1733_v57 = vld [vmem:[%s2407_s6 + $0x20] sm:$0xff] (!%p540_p2) }
  0x10   : > { %s2427_s28 = smov (!%p605_p3, %s1711_s28), 1  ;;  %1843 = vmatprep.subr.bf16.mxu1 %v1972_v17  ;;  %v994_v63 = vpack.c.bf16 %v1734_v58, %v1733_v57 }
  0x11   : > { %s2081_s29 = sshll.u32 %s2427_s28, 4  ;;  %s1720_s30 = sshll.u32 %s2427_s28, 3  ;;  %1822 = vmatpush3.bf16.msra.mxu0 %v689_v28 }
  0x12   : > { %s609_s1 = scalar_lea.vmem %s2423_s19, %s2081_s29  ;;  %1835 = vmatprep.subr.bf16.mxu0 %v1972_v17  ;;  %s614_s19 = scalar_lea.vmem %s2425_s0, %s2081_s29 }
  0x13   : > { %v2087_v0 = vld [vmem:[%s609_s1] sm:$0xff]  ;;  %v2089_v1 = vld [vmem:[%s609_s1 + $0x8] sm:$0x7f]  ;;  %s2424_s1 = sld [smem:[#allocation5_spill]]  ;;  %s626_s23 = scalar_lea.vmem %s2419_s18, %s2081_s29 }
  0x14   : > { %v637_v2 = vsel %vm636_vm0, %v2087_v0, 0.0  ;;  %v641_v3 = vsel %vm640_vm1, %v2089_v1, 0.0 }
  0x15   : > { %638 = vadd.xlane.f32.xlu0 %v637_v2 }
  0x19   : > { %642 = vadd.xlane.f32.xlu0 %v641_v3  ;;  %s618_s20 = scalar_lea.vmem %s2424_s1, %s1720_s30  ;;  %v1735_v3 = vld [vmem:[%s2407_s6 + $0x30] sm:$0xff]  ;;  %s621_s1 = scalar_lea.vmem %s2404_s3, %s2427_s28 }
  0x1a   : > { %v632_v21 = vld [vmem:[%s618_s20] sm:$0x3f] }
  0x1b   : > { %v2122_v22 = vpack.c.bf16 %v632_v21, %v632_v21 }
  0x1d   : > { %1832 = vmatmul.mubr.msk.bf16.vlgmr.msra.gmra.mrb[0].mxu1 %vm636_vm0, %v2122_v22 }
  0x1e   : > { %1845 = vmatprep.mubr.msk.bf16.mxu1 %vm1973_vm2, %v1972_v17 }
  0xa2   : > { %v639_v4 = vpop.xlane.xlu0 %638 }
  0xa3   : > { %v645_v5 = vmul.f32 0.03125, %v639_v4  ;;  %v1736_v4 = vld [vmem:[%s2407_s6 + $0x38] sm:$0xff] }
  0xa5   : > { %v647_v6 = vsub.f32 %v2087_v0, %v645_v5  ;;  %v995_v5 = vpack.c.bf16 %v1736_v4, %v1735_v3  ;;  %v1742_v4 = vld [vmem:[%s2409_s8 + $0x30] sm:$0xff] }
  0xa6   : > { %v643_v7 = vpop.xlane.xlu0 %642 }
  0xa7   : > { %v646_v8 = vmul.f32 0.03125, %v643_v7  ;;  %v649_v9 = vmul.f32 %v647_v6, %v647_v6  ;;  %v799_v7 = vld [vmem:[%s2411_s10 + $0x8] sm:$0xff] }
  0xa9   : > { %v648_v10 = vsub.f32 %v2089_v1, %v646_v8  ;;  %v651_v11 = vsel %vm636_vm0, %v649_v9, 0.0  ;;  %v800_v8 = vld [vmem:[%s2411_s10 + $0x10] sm:$0xff] }
  0xaa   : > { %652 = vadd.xlane.f32.xlu1 %v651_v11 }
  0xab   : > { %v650_v12 = vmul.f32 %v648_v10, %v648_v10 }
  0xad   : > { %v654_v13 = vsel %vm640_vm1, %v650_v12, 0.0  ;;  %v904_v12 = vlaneseq }
  0xae   : > { %655 = vadd.xlane.f32.xlu1 %v654_v13  ;;  %v633_v13 = vld [vmem:[%s621_s1] sm:$0x1] }
  0xaf   : > { %v905_v14 = vshrl.u32 %v904_v12, 7  ;;  %vm634_vm4 = vcmp.eq.f32.partialorder %v633_v13, 0.0  ;;  %v1745_v12 = vld [vmem:[%s2410_s9 + $0x1] ss:$0 sm:$0xff] }
  0xb0   : > { %v635_v16 = vsel %vm634_vm4, -1e+09, %v1972_v17 }
  0xb1   : > { %v906_v15 = vsub.s32 0, %v905_v14 }
  0xb3   : > { %v2207_v18 = vrot.slane %v635_v16, %v906_v15 }
  0xf0   : > { %v792_v47 = vpop.f32.mrb[0].mxu1 }
  0xf1   : > { %v793_v48 = vadd.f32 %v1727_v46, %v792_v47  ;;  %v1833_v49 = vpop.f32.mrb[1].mxu1 }
  0xf2   : > { %v795_v50 = vpop.f32.mrb[2].mxu1 }
  0xf3   : > { %v852_v51 = vpack.c.bf16 %v793_v48, %v793_v48  ;;  %v1834_v52 = vpop.f32.mrb[3].mxu1 }
  0xf5   : > { %v858_v53 = vsel %vm853_vm3, %v852_v51, 0  ;;  %v1729_v51 = vld [vmem:[%s2412_s11] ss:$0 sm:$0xff] }
  0xf6   : > { %1844 = vmatpush3.bf16.xpose.msra.mxu1 %v858_v53 }
  0xf7   : > { %1855 = vmatprep.subr.bf16.mxu1 %v1972_v17 }
 0x137   : > { %v653_v29 = vpop.xlane.xlu1 %652 }
 0x138   : > { %v657_v30 = vmul.f32 0.03125, %v653_v29 }
 0x13a   : > { %v659_v31 = vadd.f32 1e-05, %v657_v30  ;;  %v1738_v30 = vld [vmem:[%s2408_s7 + $0x1] ss:$0 sm:$0xff] }
 0x13b   : > { %v656_v32 = vpop.xlane.xlu1 %655 }
 0x13c   : > { %1940 = vrsqrt.f32 %v659_v31  ;;  %v658_v33 = vmul.f32 0.03125, %v656_v32 }
 0x13e   : > { %v660_v34 = vadd.f32 1e-05, %v658_v33 }
 0x140   : > { %1942 = vrsqrt.f32 %v660_v34 }
 0x146   : > { %v1941_v35 = vpop.eup %1940 }
 0x147   : > { %v663_v36 = vmul.f32 %v1941_v35, %v647_v6  ;;  %v798_v6 = vld [vmem:[%s2411_s10] sm:$0xff] }
 0x148   : > { %v802_v9 = vpack.c.bf16 %v799_v7, %v798_v6 }
 0x149   : > { %v672_v40 = vmul.f32 %v1723_v37, %v663_v36 }
 0x14a   : > { %v1943_v38 = vpop.eup %1942 }
 0x14b   : > { %v664_v39 = vmul.f32 %v1943_v38, %v648_v10  ;;  %v681_v43 = vadd.f32 %v1724_v41, %v672_v40  ;;  %v801_v10 = vld [vmem:[%s2411_s10 + $0x18] sm:$0xff] }
 0x14c   : > { %v803_v11 = vpack.c.bf16 %v801_v10, %v800_v8 }
 0x14d   : > { %v673_v42 = vmul.f32 %v1723_v37, %v664_v39 }
 0x14f   : > { %v682_v44 = vadd.f32 %v1724_v41, %v673_v42 }
 0x151   : > { %v687_v45 = vpack.c.bf16 %v682_v44, %v681_v43 }
 0x153   : > { %1824 = vmatmul.mubr.msk.bf16.vlgmr.msra.gmra.mrb[0].mxu0 %vm636_vm0, %v687_v45 }
 0x154   : > { %1839 = vmatprep.mubr.msk.bf16.mxu0 %vm1973_vm2, %v1972_v17  ;;  %1836 = vmatpush3.bf16.msra.mxu0 %v802_v9 }
 0x155   : > { %1837 = vmatprep.subr.bf16.mxu0 %v1972_v17 }
 0x158   : > { %1838 = vmatpush3.bf16.msra.mxu0 %v803_v11 }
 0x159   : > { %1849 = vmatprep.subr.bf16.mxu0 %v1972_v17 }
 0x15b   : > { %1840 = vmatmul.mubr.msk.bf16.vlgmr.msra.gmra.mrb[4].mxu0 %vm636_vm0, %v2122_v22 }
 0x15c   : > { %1851 = vmatprep.mubr.msk.bf16.mxu0 %vm1973_vm2, %v1972_v17 }
 0x226   : > { %v734_v55 = vpop.f32.mrb[0].mxu0 }
 0x227   : > { %v1825_v56 = vpop.f32.mrb[1].mxu0  ;;  %v735_v60 = vadd.f32 %v1725_v54, %v734_v55 }
 0x228   : > { %v737_v59 = vpop.f32.mrb[2].mxu0 }
 0x229   : > { %v738_v61 = vadd.f32 %v1725_v54, %v737_v59  ;;  %v1826_v62 = vpop.f32.mrb[3].mxu0  ;;  %v1740_v59 = vld [vmem:[%s2409_s8 + $0x20] sm:$0xff] }
 0x22b   : > { %v851_v2 = vpack.c.bf16 %v738_v61, %v735_v60  ;;  %v1741_v60 = vld [vmem:[%s2409_s8 + $0x28] sm:$0xff] }
 0x22d   : > { %1846 = vmatmul.mubr.msk.bf16.vlgmr.msra.gmra.mrb[4].mxu1 %vm853_vm3, %v851_v2  ;;  %v1050_v2 = vpack.c.bf16 %v1741_v60, %v1740_v59 }
 0x22e   : > { %1856 = vmatpush3.bf16.msra.mxu1 %v994_v63  ;;  %1859 = vmatprep.mubr.msk.bf16.mxu1 %vm1973_vm2, %v1972_v17  ;;  %v845_v48 = vpop.f32.mrb[4].mxu0 }
 0x22f   : > { %1857 = vmatprep.subr.bf16.mxu1 %v1972_v17  ;;  %v1841_v49 = vpop.f32.mrb[5].mxu0  ;;  %v846_v53 = vadd.f32 %v1729_v51, %v845_v48 }
 0x230   : > { %v848_v50 = vpop.f32.mrb[6].mxu0 }
 0x231   : > { %v1842_v52 = vpop.f32.mrb[7].mxu0  ;;  %v936_v54 = vpack.c.bf16 %v846_v53, %v846_v53  ;;  %v1752_v50 = vld [vmem:[%s2412_s11 + $0x1] ss:$0 sm:$0xff] }
 0x232   : > { %1858 = vmatpush3.bf16.msra.mxu1 %v995_v5  ;;  %v1743_v5 = vld [vmem:[%s2409_s8 + $0x38] sm:$0xff] }
 0x233   : > { %1871 = vmatprep.subr.bf16.mxu1 %v1972_v17  ;;  %v942_v55 = vsel %vm940_vm7, %v936_v54, 0  ;;  %v1051_v6 = vpack.c.bf16 %v1743_v5, %v1742_v4 }
 0x234   : > { %1850 = vmatpush3.bf16.msra.mxu0 %v942_v55  ;;  %v1756_v55 = vld [vmem:[%s2413_s12 + $0x10] sm:$0xff] }
 0x235   : > { %1860 = vmatmul.mubr.msk.bf16.vlgmr.msra.gmra.mrb[8].mxu1 %vm636_vm0, %v687_v45  ;;  %1863 = vmatprep.subr.bf16.mxu0 %v1972_v17 }
 0x236   : > { %1875 = vmatprep.mubr.msk.bf16.mxu1 %vm1973_vm2, %v1972_v17 }
 0x300   : > { %v894_v19 = vpop.f32.mrb[4].mxu1 }
 0x301   : > { %v901_v20 = vmul.f32 0.25, %v894_v19  ;;  %v1847_v21 = vpop.f32.mrb[5].mxu1 }
 0x302   : > { %v897_v23 = vpop.f32.mrb[6].mxu1 }
 0x303   : > { %v902_v24 = vmul.f32 0.25, %v897_v23  ;;  %v1848_v25 = vpop.f32.mrb[7].mxu1  ;;  %v909_v26 = vadd.f32 %v2207_v18, %v901_v20  ;;  %v1747_v23 = vld [vmem:[%s2411_s10 + $0x20] sm:$0xff] }
 0x304   : > { %v1749_v25 = vld [vmem:[%s2411_s10 + $0x30] sm:$0xff] }
 0x305   : > { %v912_v27 = vsel %vm911_vm5, %v909_v26, -inf  ;;  %v910_v28 = vadd.f32 %v2207_v18, %v902_v24  ;;  %v1748_v24 = vld [vmem:[%s2411_s10 + $0x28] sm:$0xff] }
 0x306   : > { %913 = vmax.xlane.f32.xlu0 %v912_v27  ;;  %v1750_v27 = vld [vmem:[%s2411_s10 + $0x38] sm:$0xff] }
 0x307   : > { %v916_v29 = vsel %vm915_vm6, %v910_v28, -inf }
 0x308   : > { %917 = vmax.xlane.f32.xlu1 %v916_v29  ;;  %v1038_v31 = vpop.f32.mrb[8].mxu1 }
 0x309   : > { %v1861_v32 = vpop.f32.mrb[9].mxu1  ;;  %v2216_v34 = vadd.f32 %v1738_v30, %v1038_v31 }
 0x30a   : > { %v1041_v33 = vpop.f32.mrb[10].mxu1 }
 0x30b   : > { %v2218_v35 = vadd.f32 %v1738_v30, %v1041_v33  ;;  %v1862_v36 = vpop.f32.mrb[11].mxu1 }
 0x30d   : > { %v1155_v37 = vpack.c.bf16 %v2218_v35, %v2216_v34 }
 0x393   : > { %v914_v38 = vpop.xlane.xlu0 %913 }
 0x394   : > { %v919_v39 = vsub.f32 %v909_v26, %v914_v38  ;;  %v1105_v26 = vpack.c.bf16 %v1748_v24, %v1747_v23  ;;  %v1763_v23 = vld [vmem:[%s2415_s14 + $0x30] sm:$0xff]  ;;  %v1764_v24 = vld [vmem:[%s2415_s14 + $0x38] sm:$0xff] }
 0x395   : > { %v918_v40 = vpop.xlane.xlu1 %917 }
 0x396   : > { %v921_v41 = vmul.f32 1.442695, %v919_v39  ;;  %v920_v42 = vsub.f32 %v910_v28, %v918_v40  ;;  %1872 = vmatpush3.bf16.msra.mxu1 %v1105_v26  ;;  %v1106_v28 = vpack.c.bf16 %v1750_v27, %v1749_v25  ;;  %v1395_v26 = vld [vmem:[%s2415_s14 + $0x10] sm:$0xff]  ;;  %v1396_v27 = vld [vmem:[%s2415_s14 + $0x18] sm:$0xff] }
 0x397   : > { %1873 = vmatprep.subr.bf16.mxu1 %v1972_v17 }
 0x398   : > { %1944 = vpow2.f32 %v921_v41  ;;  %v923_v43 = vmul.f32 1.442695, %v920_v42 }
 0x39a   : > { %1946 = vpow2.f32 %v923_v43  ;;  %1874 = vmatpush3.bf16.msra.mxu1 %v1106_v28  ;;  %v1409_v28 = vpack.c.bf16 %v1764_v24, %v1763_v23 }
 0x39b   : > { %1885 = vmatprep.subr.bf16.mxu1 %v1972_v17 }
 0x39d   : > { %1876 = vmatmul.mubr.msk.bf16.vlgmr.msra.gmra.mrb[12].mxu1 %vm636_vm0, %v2122_v22 }
 0x39e   : > { %1887 = vmatprep.mubr.msk.bf16.mxu1 %vm1973_vm2, %v1972_v17 }
 0x3a2   : > { %v1945_v44 = vpop.eup %1944 }
 0x3a3   : > { %v925_v45 = vsel %vm911_vm5, %v1945_v44, 0.0 }
 0x3a4   : > { %v1947_v46 = vpop.eup %1946  ;;  %926 = vadd.xlane.f32.xlu0 %v925_v45 }
 0x3a5   : > { %v928_v47 = vsel %vm915_vm6, %v1947_v46, 0.0 }
 0x3a6   : > { %929 = vadd.xlane.f32.xlu1 %v928_v47 }
 0x431   : > { %v927_v56 = vpop.xlane.xlu0 %926 }
 0x432   : > { %1948 = vrcp.f32 %v927_v56  ;;  %v1757_v56 = vld [vmem:[%s2413_s12 + $0x18] sm:$0xff] }
 0x433   : > { %v930_v57 = vpop.xlane.xlu1 %929 }
 0x434   : > { %1950 = vrcp.f32 %v930_v57  ;;  %v1283_v57 = vpack.c.bf16 %v1757_v56, %v1756_v55 }
 0x43c   : > { %v1949_v58 = vpop.eup %1948 }
 0x43d   : > { %v933_v62 = vmul.f32 %v1949_v58, %v1945_v44 }
 0x43e   : > { %v1951_v61 = vpop.eup %1950 }
 0x43f   : > { %v934_v63 = vmul.f32 %v1951_v61, %v1947_v46  ;;  %v985_v61 = vld [vmem:[%s2413_s12] sm:$0xff] }
 0x441   : > { %v935_v3 = vpack.c.bf16 %v934_v63, %v933_v62  ;;  %v986_v62 = vld [vmem:[%s2413_s12 + $0x8] sm:$0xff] }
 0x442   : > { %v988_v4 = vpack.c.bf16 %v986_v62, %v985_v61 }
 0x443   : > { %1852 = vmatmul.mubr.msk.bf16.vlgmr.msra.gmra.mrb[8].mxu0 %vm911_vm5, %v935_v3 }
 0x444   : > { %1864 = vmatpush3.bf16.msra.mxu0 %v1050_v2  ;;  %1867 = vmatprep.mubr.msk.bf16.mxu0 %vm1973_vm2, %v1972_v17 }
 0x445   : > { %1865 = vmatprep.subr.bf16.mxu0 %v1972_v17 }
 0x448   : > { %1866 = vmatpush3.bf16.msra.mxu0 %v1051_v6 }
 0x449   : > { %1879 = vmatprep.subr.bf16.mxu0 %v1972_v17 }
 0x44b   : > { %1868 = vmatmul.mubr.msk.bf16.vlgmr.msra.gmra.mrb[12].mxu0 %vm636_vm0, %v2122_v22 }
 0x44c   : > { %1881 = vmatprep.mubr.msk.bf16.mxu0 %vm1973_vm2, %v1972_v17 }
 0x516   : > { %v2250_v7 = vpop.f32.mrb[8].mxu0 }
 0x517   : > { %v1853_v8 = vpop.f32.mrb[9].mxu0 }
 0x518   : > { %v2252_v9 = vpop.f32.mrb[10].mxu0 }
 0x519   : > { %v987_v10 = vpack.c.bf16 %v2252_v9, %v2250_v7  ;;  %v1854_v11 = vpop.f32.mrb[11].mxu0  ;;  %v1761_v7 = vld [vmem:[%s2415_s14 + $0x20] sm:$0xff]  ;;  %v1762_v9 = vld [vmem:[%s2415_s14 + $0x28] sm:$0xff] }
 0x51e   : > { %v1094_v13 = vpop.f32.mrb[12].mxu0 }
 0x51f   : > { %v1095_v14 = vadd.f32 %v1745_v12, %v1094_v13  ;;  %v1869_v15 = vpop.f32.mrb[13].mxu0 }
 0x520   : > { %v1097_v16 = vpop.f32.mrb[14].mxu0 }
 0x521   : > { %v1156_v19 = vpack.c.bf16 %v1095_v14, %v1095_v14  ;;  %v1870_v20 = vpop.f32.mrb[15].mxu0 }
 0x522   : > { %v1408_v20 = vpack.c.bf16 %v1762_v9, %v1761_v7 }
 0x523   : > { %v1161_v21 = vsel %vm853_vm3, %v1156_v19, 0 }
 0x524   : > { %1880 = vmatpush3.bf16.xpose.msra.mxu0 %v1161_v21  ;;  %v1394_v21 = vld [vmem:[%s2415_s14 + $0x8] sm:$0xff] }
 0x525   : > { %1891 = vmatprep.subr.bf16.mxu0 %v1972_v17 }
 0x52b   : > { %1882 = vmatmul.mubr.msk.bf16.vlgmr.msra.gmra.mrb[16].mxu0 %vm853_vm3, %v1155_v37 }
 0x52c   : > { %1893 = vmatprep.mubr.msk.bf16.mxu0 %vm1973_vm2, %v1972_v17  ;;  %1892 = vmatpush3.bf16.msra.mxu0 %v1283_v57 }
 0x52d   : > { %1903 = vmatprep.subr.bf16.mxu0 %v1972_v17 }
 0x5fe   : > { %v1197_v29 = vpop.f32.mrb[16].mxu0 }
 0x5ff   : > { %v1204_v30 = vmul.f32 0.25, %v1197_v29  ;;  %v1883_v31 = vpop.f32.mrb[17].mxu0  ;;  %v1399_v29 = vpack.c.bf16 %v1396_v27, %v1395_v26 }
 0x600   : > { %v1200_v32 = vpop.f32.mrb[18].mxu0  ;;  %v1760_v31 = vld [vmem:[%s2414_s13] ss:$0 sm:$0xff] }
 0x601   : > { %v1205_v33 = vmul.f32 0.25, %v1200_v32  ;;  %v1884_v34 = vpop.f32.mrb[19].mxu0  ;;  %v1206_v35 = vadd.f32 %v1204_v30, %v2207_v18 }
 0x603   : > { %v1208_v36 = vsel %vm911_vm5, %v1206_v35, -inf  ;;  %v1207_v37 = vadd.f32 %v1205_v33, %v2207_v18  ;;  %v1149_v18 = vpop.f32.mrb[12].mxu1 }
 0x604   : > { %1209 = vmax.xlane.f32.xlu0 %v1208_v36  ;;  %v1877_v48 = vpop.f32.mrb[13].mxu1  ;;  %v1150_v52 = vadd.f32 %v1752_v50, %v1149_v18 }
 0x605   : > { %v1211_v38 = vsel %vm915_vm6, %v1207_v37, -inf  ;;  %v1152_v49 = vpop.f32.mrb[14].mxu1  ;;  %v1769_v48 = vld [vmem:[%s2415_s14 + $0x50] sm:$0xff] }
 0x606   : > { %1212 = vmax.xlane.f32.xlu1 %v1211_v38  ;;  %v1878_v51 = vpop.f32.mrb[15].mxu1  ;;  %v1231_v53 = vpack.c.bf16 %v1150_v52, %v1150_v52  ;;  %v1770_v49 = vld [vmem:[%s2415_s14 + $0x58] sm:$0xff] }
 0x607   : > { %v1507_v50 = vpack.c.bf16 %v1770_v49, %v1769_v48 }
 0x608   : > { %v1236_v54 = vsel %vm940_vm7, %v1231_v53, 0 }
 0x609   : > { %1886 = vmatpush3.bf16.msra.mxu1 %v1236_v54 }
 0x60a   : > { %1897 = vmatprep.subr.bf16.mxu1 %v1972_v17 }
 0x691   : > { %v1210_v22 = vpop.xlane.xlu0 %1209 }
 0x692   : > { %v1214_v39 = vsub.f32 %v1206_v35, %v1210_v22 }
 0x693   : > { %v1213_v40 = vpop.xlane.xlu1 %1212 }
 0x694   : > { %v1216_v41 = vmul.f32 1.442695, %v1214_v39  ;;  %v1215_v42 = vsub.f32 %v1207_v37, %v1213_v40 }
 0x696   : > { %1952 = vpow2.f32 %v1216_v41  ;;  %v1218_v43 = vmul.f32 1.442695, %v1215_v42  ;;  %v1767_v42 = vld [vmem:[%s2415_s14 + $0x40] sm:$0xff] }
 0x698   : > { %1954 = vpow2.f32 %v1218_v43  ;;  %v1768_v43 = vld [vmem:[%s2415_s14 + $0x48] sm:$0xff] }
 0x6a0   : > { %v1953_v44 = vpop.eup %1952 }
 0x6a1   : > { %v1220_v45 = vsel %vm911_vm5, %v1953_v44, 0.0 }
 0x6a2   : > { %v1955_v46 = vpop.eup %1954  ;;  %1221 = vadd.xlane.f32.xlu0 %v1220_v45 }
 0x6a3   : > { %v1223_v47 = vsel %vm915_vm6, %v1955_v46, 0.0 }
 0x6a4   : > { %1224 = vadd.xlane.f32.xlu1 %v1223_v47  ;;  %v1506_v47 = vpack.c.bf16 %v1768_v43, %v1767_v42 }
 0x72f   : > { %v1222_v58 = vpop.xlane.xlu0 %1221 }
 0x730   : > { %1956 = vrcp.f32 %v1222_v58 }
 0x731   : > { %v1225_v59 = vpop.xlane.xlu1 %1224 }
 0x732   : > { %1958 = vrcp.f32 %v1225_v59 }
 0x73a   : > { %v1957_v60 = vpop.eup %1956 }
 0x73b   : > { %v1228_v2 = vmul.f32 %v1957_v60, %v1953_v44 }
 0x73c   : > { %v1959_v63 = vpop.eup %1958 }
 0x73d   : > { %v1229_v3 = vmul.f32 %v1959_v63, %v1955_v46 }
 0x73f   : > { %v1230_v5 = vpack.c.bf16 %v1229_v3, %v1228_v2 }
 0x741   : > { %1888 = vmatmul.mubr.msk.bf16.vlgmr.msra.gmra.mrb[16].mxu1 %vm911_vm5, %v1230_v5 }
 0x742   : > { %1898 = vmatpush3.bf16.msra.mxu1 %v988_v4  ;;  %1899 = vmatprep.mubr.msk.bf16.mxu1 %vm1973_vm2, %v1972_v17 }
 0x743   : > { %1911 = vmatprep.subr.bf16.mxu1 %v1972_v17 }
 0x749   : > { %1900 = vmatmul.mubr.msk.bf16.vlgmr.msra.gmra.mrb[20].mxu1 %vm853_vm3, %v987_v10  ;;  %v1393_v10 = vld [vmem:[%s2415_s14] sm:$0xff] }
 0x74a   : > { %1915 = vmatprep.mubr.msk.bf16.mxu1 %vm1973_vm2, %v1972_v17  ;;  %v1398_v25 = vpack.c.bf16 %v1394_v21, %v1393_v10 }
 0x74c   : > { %1912 = vmatpush3.bf16.msra.mxu1 %v1398_v25 }
 0x74d   : > { %1913 = vmatprep.subr.bf16.mxu1 %v1972_v17 }
 0x750   : > { %1914 = vmatpush3.bf16.msra.mxu1 %v1399_v29  ;;  %v630_v29 = vld [vmem:[%s614_s19] sm:$0xff] }
 0x814   : > { %v1272_v6 = vpop.f32.mrb[16].mxu1 }
 0x815   : > { %v1889_v8 = vpop.f32.mrb[17].mxu1 }
 0x816   : > { %v1275_v11 = vpop.f32.mrb[18].mxu1 }
 0x817   : > { %v1282_v12 = vpack.c.bf16 %v1275_v11, %v1272_v6  ;;  %v1890_v13 = vpop.f32.mrb[19].mxu1 }
 0x819   : > { %1894 = vmatmul.mubr.msk.bf16.vlgmr.msra.gmra.mrb[20].mxu0 %vm853_vm3, %v1282_v12 }
 0x81a   : > { %1907 = vmatprep.mubr.msk.bf16.mxu0 %vm1973_vm2, %v1972_v17  ;;  %1904 = vmatpush3.bf16.msra.mxu0 %v1408_v20 }
 0x81b   : > { %1905 = vmatprep.subr.bf16.mxu0 %v1972_v17 }
 0x81c   : > { %v1365_v14 = vpop.f32.mrb[20].mxu1 }
 0x81d   : > { %v1901_v15 = vpop.f32.mrb[21].mxu1 }
 0x81e   : > { %v1368_v16 = vpop.f32.mrb[22].mxu1  ;;  %1906 = vmatpush3.bf16.msra.mxu0 %v1409_v28  ;;  %v631_v28 = vld [vmem:[%s614_s19 + $0x8] sm:$0x7f] }
 0x81f   : > { %v1902_v19 = vpop.f32.mrb[23].mxu1  ;;  %1919 = vmatprep.subr.bf16.mxu0 %v1972_v17 }
 0x820   : > { %v1974_v19 = vmov 0  }
 0x821   : > { %1938 = vset.pattern.permute.xlu0 %v1974_v19  ;;  %1939 = vset.pattern.permute.xlu1 %v1974_v19 }
 0x8ec   : > { %v1321_v30 = vpop.f32.mrb[20].mxu0 }
 0x8ed   : > { %v1366_v32 = vadd.f32 %v1365_v14, %v1321_v30  ;;  %v1895_v33 = vpop.f32.mrb[21].mxu0 }
 0x8ee   : > { %v1324_v34 = vpop.f32.mrb[22].mxu0 }
 0x8ef   : > { %v1379_v35 = vadd.f32 %v1760_v31, %v1366_v32  ;;  %v1369_v36 = vadd.f32 %v1368_v16, %v1324_v34  ;;  %v1896_v37 = vpop.f32.mrb[23].mxu0 }
 0x8f0   : > { %v1773_v37 = vld [vmem:[%s2417_s16] ss:$0 sm:$0xff] }
 0x8f1   : > { %v1381_v38 = vadd.f32 %v1379_v35, %v2087_v0  ;;  %v1380_v22 = vadd.f32 %v1760_v31, %v1369_v36 }
 0x8f3   : > { %v1383_v39 = vmul.f32 0.70710677, %v1381_v38  ;;  %v1382_v40 = vadd.f32 %v1380_v22, %v2089_v1 }
 0x8f5   : > { %1389 = vst.msk [vmem:[#allocation2 + $0x1] sm:$0xff] %vm636_vm0, %v1383_v39  ;;  %v1384_v41 = vmul.f32 0.70710677, %v1382_v40  ;;  %v1774_v39 = vld [vmem:[%s2418_s17] ss:$0 sm:$0xff] }
 0x8f7   : > { %1390 = vst.msk [vmem:[#allocation2 + $0x9] sm:$0x7f] %vm640_vm1, %v1384_v41 }
 0x8fc   : > { %v1400_v44 = vld [vmem:[#allocation2 + $0x1] sm:$0xff] }
 0x8fd   : > { %v1391_v0 = vld [vmem:[#allocation2] sm:$0xff] }
 0x8fe   : > { %v1401_v45 = vld [vmem:[#allocation2 + $0x9] sm:$0x7f] }
 0x8ff   : > { %v1392_v46 = vld [vmem:[#allocation2 + $0x8] sm:$0x7f]  ;;  %v1407_v18 = vpack.c.bf16 %v1401_v45, %v1400_v44 }
 0x900   : > { %v1397_v1 = vpack.c.bf16 %v1392_v46, %v1391_v0  ;;  %v1498_v51 = vld [vmem:[#allocation2 + $0x2] sm:$0xff]  ;;  %v1499_v52 = vld [vmem:[#allocation2 + $0xa] sm:$0x7f] }
 0x901   : > { %1908 = vmatmul.mubr.msk.bf16.vlgmr.msra.gmra.mrb[24].mxu0 %vm636_vm0, %v1407_v18  ;;  %v1505_v53 = vpack.c.bf16 %v1499_v52, %v1498_v51 }
 0x902   : > { %1916 = vmatmul.mubr.msk.bf16.vlgmr.msra.gmra.mrb[24].mxu1 %vm636_vm0, %v1397_v1  ;;  %1920 = vmatpush3.bf16.msra.mxu0 %v1506_v47 }
 0x903   : > { %1923 = vmatprep.mubr.msk.bf16.mxu0 %vm1973_vm2, %v1972_v17  ;;  %1921 = vmatprep.subr.bf16.mxu0 %v1972_v17  ;;  %v1772_v17 = vld [vmem:[%s2416_s15] ss:$0 sm:$0xff] }
 0x906   : > { %1922 = vmatpush3.bf16.msra.mxu0 %v1507_v50 }
 0x909   : > { %1924 = vmatmul.mubr.msk.bf16.vlgmr.msra.gmra.mrb[28].mxu0 %vm636_vm0, %v1505_v53 }
 0x9d4   : > { %v1447_v54 = vpop.f32.mrb[24].mxu0 }
 0x9d5   : > { %v1491_v55 = vpop.f32.mrb[24].mxu1  ;;  %v1909_v57 = vpop.f32.mrb[25].mxu0 }
 0x9d6   : > { %v1492_v56 = vadd.f32 %v1491_v55, %v1447_v54  ;;  %v1917_v58 = vpop.f32.mrb[25].mxu1  ;;  %v1450_v59 = vpop.f32.mrb[26].mxu0 }
 0x9d7   : > { %v1494_v60 = vpop.f32.mrb[26].mxu1  ;;  %v1910_v62 = vpop.f32.mrb[27].mxu0 }
 0x9d8   : > { %v1495_v61 = vadd.f32 %v1494_v60, %v1450_v59  ;;  %v1918_v63 = vpop.f32.mrb[27].mxu1 }
 0x9dc   : > { %v1545_v2 = vpop.f32.mrb[28].mxu0 }
 0x9dd   : > { %v1552_v3 = vadd.f32 %v1545_v2, %v1492_v56  ;;  %v1925_v4 = vpop.f32.mrb[29].mxu0 }
 0x9de   : > { %v1548_v5 = vpop.f32.mrb[30].mxu0 }
 0x9df   : > { %v1561_v6 = vadd.f32 %v1772_v17, %v1552_v3  ;;  %v1553_v8 = vadd.f32 %v1548_v5, %v1495_v61  ;;  %v1926_v11 = vpop.f32.mrb[31].mxu0 }
 0x9e1   : > { %v1562_v12 = vadd.f32 %v1772_v17, %v1553_v8  ;;  %v1563_v13 = vmax.f32 %v1561_v6, 0.0 }
 0x9e3   : > { %v1565_v14 = vsel %vm636_vm0, %v1563_v13, 0.0  ;;  %v1564_v15 = vmax.f32 %v1562_v12, 0.0 }
 0x9e4   : > { %1566 = vadd.xlane.f32.xlu0 %v1565_v14 }
 0x9e5   : > { %v1568_v16 = vsel %vm640_vm1, %v1564_v15, 0.0 }
 0x9e6   : > { %1569 = vadd.xlane.f32.xlu1 %v1568_v16 }
 0xa71   : > { %v1567_v7 = vpop.xlane.xlu0 %1566 }
 0xa72   : > { %v1571_v9 = vmul.f32 0.03125, %v1567_v7 }
 0xa73   : > { %v1570_v10 = vpop.xlane.xlu1 %1569 }
 0xa74   : > { %v1573_v20 = vsub.f32 %v1563_v13, %v1571_v9  ;;  %v1572_v21 = vmul.f32 0.03125, %v1570_v10 }
 0xa76   : > { %v1574_v23 = vsub.f32 %v1564_v15, %v1572_v21  ;;  %v1575_v24 = vmul.f32 %v1573_v20, %v1573_v20 }
 0xa78   : > { %v1577_v25 = vsel %vm636_vm0, %v1575_v24, 0.0  ;;  %v1576_v26 = vmul.f32 %v1574_v23, %v1574_v23 }
 0xa79   : > { %1578 = vadd.xlane.f32.xlu0 %v1577_v25 }
 0xa7a   : > { %v1580_v27 = vsel %vm640_vm1, %v1576_v26, 0.0 }
 0xa7b   : > { %1581 = vadd.xlane.f32.xlu1 %v1580_v27 }
 0xa8c   : > { %1616 = vperm.xlu1 %1939, %v631_v28  }
 0xa8f   : > { %1611 = vperm.xlu0 %1938, %v630_v29  }
 0xb06   : > { %v1579_v30 = vpop.xlane.xlu0 %1578 }
 0xb07   : > { %v1583_v31 = vmul.f32 0.03125, %v1579_v30 }
 0xb08   : > { %v1582_v32 = vpop.xlane.xlu1 %1581 }
 0xb09   : > { %v1585_v33 = vadd.f32 1e-05, %v1583_v31  ;;  %v1584_v34 = vmul.f32 0.03125, %v1582_v32 }
 0xb0b   : > { %1960 = vrsqrt.f32 %v1585_v33  ;;  %v1586_v35 = vadd.f32 1e-05, %v1584_v34 }
 0xb0c   : > { %v1617_v45 = vpop.permute.xlu1 %1616 }
 0xb0d   : > { %1962 = vrsqrt.f32 %v1586_v35 }
 0xb0e   : > { %v1612_v42 = vpop.permute.xlu0 %1611 }
 0xb15   : > { %v1961_v36 = vpop.eup %1960 }
 0xb16   : > { %v1589_v38 = vmul.f32 %v1961_v36, %v1573_v20 }
 0xb17   : > { %v1963_v22 = vpop.eup %1962 }
 0xb18   : > { %v1598_v40 = vmul.f32 %v1773_v37, %v1589_v38  ;;  %v1590_v41 = vmul.f32 %v1963_v22, %v1574_v23 }
 0xb1a   : > { %v1607_v43 = vadd.f32 %v1774_v39, %v1598_v40  ;;  %v1599_v44 = vmul.f32 %v1773_v37, %v1590_v41 }
 0xb1c   : > { %v1619_v0 = vmul.f32 %v1612_v42, %v1607_v43  ;;  %v1608_v46 = vadd.f32 %v1774_v39, %v1599_v44 }
 0xb1e   : > { %1621 = vst.msk [vmem:[%s626_s23] sm:$0xff] %vm636_vm0, %v1619_v0  ;;  %v1620_v47 = vmul.f32 %v1617_v45, %v1608_v46 }
 0xb20   : > { %1622 = vst.msk [vmem:[%s626_s23 + $0x8] sm:$0x7f] %vm640_vm1, %v1620_v47 }
 0xb21 PF: > { %s28_s27 = sadd.s32 1, %s1970_s27  }
 0xb22   : > { %p25_p4 = scmp.ge.s32.totalorder %s28_s27, 4  }
 0xb24   :  { %27 = sbr.rel (!%p25_p4) target bundleno = 4 (0x4), region = 140 }

// kernel: prior_encoder_forward.11
= control target key start
LH: loop header
LB: loop body
LE: loop exit
PB: predicated region body
PF: predicated region fallthrough
CT: control target
= control target key end

     0   :  { %s372_s12 = smov 0   ;;  %s395_s0 = inlined_call_operand.vmem [shape: f32[2,15,32], index: 0, kind: input, shape index: {}]   ;;  %s396_s1 = inlined_call_operand.vmem [shape: f32[2,15,32], index: 1, kind: input, shape index: {}]   ;;  %s397_s2 = inlined_call_operand.vmem [shape: f32[2,15,1], index: 2, kind: input, shape index: {}]   ;;  %s398_s3 = inlined_call_operand.vmem [shape: f32[2,15,32], index: 3, kind: output, shape index: {}]  }
   0x1 LB: > { %s314_s13 = sadd.s32 4294967295, %s349_s12   ;;  %p318_p0 = scmp.ge.s32.totalorder %s349_s12, 1  ;;  %s349_s12 = sphi %s372_s12, %s13_s12  }
   0x2   : > { %p157_p1 = scmp.lt.s32.totalorder %s349_s12, 3 }
   0x4   : > { %p158_p2 = pnand %p318_p0, %p157_p1 }
   0x5   : > { %p191_p3 = scmp.lt.s32.totalorder (!%p158_p2), %s314_s13, 1  ;;  %v351_v0 = vmov (!%p158_p2), 0   ;;  %vm231_vm0 = vcmask (!%p158_p2), 261120   ;;  %vm233_vm1 = vcmask (!%p158_p2), 260096  }
   0x6   : > { %161 = sbr.rel (%p158_p2) target bundleno = 152 (0x98), region = 32  ;;  %342 = vset.pattern.permute.xlu0 (!%p158_p2), %v351_v0 }
   0xd   : > { %s400_s13 = smov (!%p191_p3, %s314_s13), 1 }
   0xe   : > { %s329_s14 = sshll.u32 %s400_s13, 4 }
   0xf   : > { %s205_s17 = scalar_lea.vmem %s397_s2, %s329_s14  ;;  %s195_s20 = scalar_lea.vmem %s395_s0, %s329_s14 }
  0x10   : > { %v217_v1 = vld [vmem:[%s205_s17] sm:$0xff]  ;;  %v218_v2 = vld [vmem:[%s205_s17 + $0x8] sm:$0x7f]  ;;  %s200_s23 = scalar_lea.vmem %s396_s1, %s329_s14  ;;  %s210_s26 = scalar_lea.vmem %s398_s3, %s329_s14 }
  0x11   : > { %221 = vperm.xlu0 %342, %v217_v1   ;;  %v211_v3 = vld [vmem:[%s195_s20] sm:$0xff]  ;;  %v212_v6 = vld [vmem:[%s195_s20 + $0x8] sm:$0x7f] }
  0x12   : > { %v213_v4 = vld [vmem:[%s200_s23] sm:$0xff]  ;;  %v214_v7 = vld [vmem:[%s200_s23 + $0x8] sm:$0x7f] }
  0x13   : > { %v215_v5 = vadd.f32 %v213_v4, %v211_v3  ;;  %v216_v10 = vadd.f32 %v214_v7, %v212_v6 }
  0x15   : > { %226 = vperm.xlu0 %342, %v218_v2  }
  0x90   : > { %v222_v8 = vpop.permute.xlu0 %221 }
  0x91   : > { %v229_v9 = vmul.f32 %v222_v8, %v215_v5 }
  0x93   : > { %232 = vst.msk [vmem:[%s210_s26] sm:$0xff] %vm231_vm0, %v229_v9 }
  0x94   : > { %v227_v11 = vpop.permute.xlu0 %226 }
  0x95   : > { %v230_v12 = vmul.f32 %v227_v11, %v216_v10 }
  0x97   : > { %234 = vst.msk [vmem:[%s210_s26 + $0x8] sm:$0x7f] %vm233_vm1, %v230_v12 }
  0x98 PF: > { %s13_s12 = sadd.s32 1, %s349_s12  }
  0x99   : > { %p10_p4 = scmp.ge.s32.totalorder %s13_s12, 4  }
  0x9b   :  { %12 = sbr.rel (!%p10_p4) target bundleno = 1 (0x1), region = 68 }

// kernel: prior_encoder_forward.10
= control target key start
LH: loop header
LB: loop body
LE: loop exit
PB: predicated region body
PF: predicated region fallthrough
CT: control target
= control target key end

     0   :  { %s855_s29 = smov 0   ;;  %s974_s0 = inlined_call_operand.vmem [shape: f32[2,15,32], index: 0, kind: input, shape index: {}]   ;;  %s975_s1 = inlined_call_operand.vmem [shape: f32[2,15,1], index: 1, kind: input, shape index: {}]   ;;  %s976_s2 = inlined_call_operand.vmem [shape: f32[3,32,32], index: 2, kind: input, shape index: {}]   ;;  %s977_s3 = inlined_call_operand.vmem [shape: f32[1,32], index: 3, kind: input, shape index: {}, may-alias: {3,5}]   ;;  %s978_s4 = inlined_call_operand.vmem [shape: f32[1,32], index: 4, kind: input, shape index: {}]   ;;  %s979_s5 = inlined_call_operand.vmem [shape: f32[1,32], index: 5, kind: input, shape index: {}, may-alias: {3,5}]   ;;  %s980_s6 = inlined_call_operand.vmem [shape: f32[32,1], index: 6, kind: input, shape index: {}]   ;;  %s981_s7 = inlined_call_operand.<no memory space> [shape: f32[1,1], index: 7, kind: input, shape index: {}]   ;;  %s982_s8 = inlined_call_operand.vmem [shape: f32[2,15,1], index: 8, kind: output, shape index: {}]  }
   0x1   :  { %v13_v0 = vstv %s981_s7 }
   0x2   :  { %14 = vst [vmem:[#allocation3] sm:$0x1] %v13_v0 }
   0x3 LB: > { %s703_s30 = sadd.s32 4294967295, %s802_s29   ;;  %p707_p0 = scmp.ge.s32.totalorder %s802_s29, 1  ;;  %s802_s29 = sphi %s855_s29, %s20_s29  }
   0x4   : > { %p274_p1 = scmp.lt.s32.totalorder %s802_s29, 3 }
   0x6   : > { %p275_p2 = pnand %p707_p0, %p274_p1 }
   0x7   : > { %v714_v1 = vld [vmem:[%s976_s2 + $0x20] sm:$0xff] (!%p275_p2)  ;;  %v715_v2 = vld [vmem:[%s976_s2 + $0x28] sm:$0xff] (!%p275_p2)  ;;  %p872_p3 = scmp.lt.s32.totalorder (!%p275_p2), %s703_s30, 1  ;;  %v804_v4 = vmov (!%p275_p2), 0.0   ;;  %v716_v7 = vld [vmem:[%s976_s2 + $0x30] sm:$0xff] (!%p275_p2)  ;;  %vm333_vm0 = vcmask (!%p275_p2), 261120  }
   0x8   : > { %278 = sbr.rel (%p275_p2) target bundleno = 796 (0x31c), region = 52  ;;  %v343_v3 = vld [vmem:[%s976_s2] sm:$0xff] (!%p275_p2)  ;;  %747 = vmatprep.subr.bf16.mxu0 (!%p275_p2), %v804_v4  ;;  %v358_v5 = vpack.c.bf16 (!%p275_p2), %v715_v2, %v714_v1  ;;  %755 = vmatprep.subr.bf16.mxu1 (!%p275_p2), %v804_v4  ;;  %v344_v6 = vld [vmem:[%s976_s2 + $0x8] sm:$0xff] (!%p275_p2)  ;;  %v717_v8 = vld [vmem:[%s976_s2 + $0x38] sm:$0xff] (!%p275_p2)  ;;  %vm336_vm1 = vcmask (!%p275_p2), 253952   ;;  %vm805_vm2 = vmmov (!%p275_p2), 0  }
   0x9   : > { %v348_v9 = vpack.c.bf16 (!%p275_p2), %v344_v6, %v343_v3  ;;  %v345_v10 = vld [vmem:[%s976_s2 + $0x10] sm:$0xff] (!%p275_p2)  ;;  %v346_v11 = vld [vmem:[%s976_s2 + $0x18] sm:$0xff] (!%p275_p2)  ;;  %751 = vmatprep.mubr.msk.bf16.mxu0 (!%p275_p2), %vm805_vm2, %v804_v4  ;;  %759 = vmatprep.mubr.msk.bf16.mxu1 (!%p275_p2), %vm805_vm2, %v804_v4  ;;  %334 = vst.msk [vmem:[#allocation2] sm:$0xff] (!%p275_p2), %vm333_vm0, %v804_v4  ;;  %335 = vst.msk [vmem:[#allocation2 + $0x8] sm:$0xff] (!%p275_p2), %vm333_vm0, %v804_v4  ;;  %v359_v12 = vpack.c.bf16 (!%p275_p2), %v717_v8, %v716_v7  ;;  %vm339_vm3 = vcmask (!%p275_p2), 260096   ;;  %v806_v54 = vmov (!%p275_p2), 0  }
   0xa   : > { %337 = vst.msk [vmem:[#allocation2 + $0x10] sm:$0x1] (!%p275_p2), %vm336_vm1, %v804_v4  ;;  %748 = vmatpush3.bf16.msra.mxu0 (!%p275_p2), %v358_v5  ;;  %v349_v13 = vpack.c.bf16 (!%p275_p2), %v346_v11, %v345_v10  ;;  %v720_v16 = vld [vmem:[%s976_s2 + $0x40] sm:$0xff] (!%p275_p2)  ;;  %v721_v17 = vld [vmem:[%s976_s2 + $0x48] sm:$0xff] (!%p275_p2)  ;;  %v722_v24 = vld [vmem:[%s976_s2 + $0x50] sm:$0xff] (!%p275_p2)  ;;  %790 = vset.pattern.permute.xlu0 (!%p275_p2), %v806_v54  ;;  %vm632_vm4 = vcmask (!%p275_p2), 7168  }
   0xb   : > { %756 = vmatpush3.bf16.msra.mxu1 (!%p275_p2), %v348_v9  ;;  %749 = vmatprep.subr.bf16.mxu0 (!%p275_p2), %v804_v4  ;;  %v456_v21 = vpack.c.bf16 (!%p275_p2), %v721_v17, %v720_v16  ;;  %v723_v25 = vld [vmem:[%s976_s2 + $0x58] sm:$0xff] (!%p275_p2)  ;;  %v725_v42 = vld [vmem:[%s977_s3] ss:$0 sm:$0xff] (!%p275_p2)  ;;  %v573_v5 = vld [vmem:[%s980_s6 + $0x8] sm:$0xff] (!%p275_p2)  ;;  %vm634_vm5 = vcmask (!%p275_p2), 6144  }
   0xc   : > { %757 = vmatprep.subr.bf16.mxu1 (!%p275_p2), %v804_v4  ;;  %v457_v27 = vpack.c.bf16 (!%p275_p2), %v723_v25, %v722_v24  ;;  %791 = vset.pattern.permute.xlu1 (!%p275_p2), %v806_v54  ;;  %v572_v3 = vld [vmem:[%s980_s6] sm:$0xff] (!%p275_p2)  ;;  %v574_v7 = vld [vmem:[%s980_s6 + $0x10] sm:$0xff] (!%p275_p2)  ;;  %v575_v8 = vld [vmem:[%s980_s6 + $0x18] sm:$0xff] (!%p275_p2) }
   0xd   : > { %v577_v6 = vpack.c.bf16 (!%p275_p2), %v573_v5, %v572_v3  ;;  %v578_v9 = vpack.c.bf16 (!%p275_p2), %v575_v8, %v574_v7 }
   0xe   : > { %750 = vmatpush3.bf16.msra.mxu0 (!%p275_p2), %v359_v12 }
   0xf   : > { %s985_s30 = smov (!%p872_p3, %s703_s30), 1  ;;  %758 = vmatpush3.bf16.msra.mxu1 %v349_v13  ;;  %763 = vmatprep.subr.bf16.mxu0 %v804_v4 }
  0x10   : > { %s905_s25 = sshll.u32 %s985_s30, 4  ;;  %771 = vmatprep.subr.bf16.mxu1 %v804_v4 }
  0x11   : > { %s317_s28 = scalar_lea.vmem %s974_s0, %s905_s25  ;;  %s322_s19 = scalar_lea.vmem %s975_s1, %s905_s25 }
  0x12   : > { %v329_v14 = vld [vmem:[%s317_s28] sm:$0xff]  ;;  %v330_v15 = vld [vmem:[%s317_s28 + $0x8] sm:$0x7f]  ;;  %s327_s13 = scalar_lea.vmem %s982_s8, %s905_s25 }
  0x13   : > { %338 = vst.msk [vmem:[#allocation2 + $0x1] sm:$0xff] %vm333_vm0, %v329_v14  ;;  %v331_v55 = vld [vmem:[%s322_s19] sm:$0xff]  ;;  %v332_v2 = vld [vmem:[%s322_s19 + $0x8] sm:$0x7f] }
  0x14   : > { %340 = vst.msk [vmem:[#allocation2 + $0x9] sm:$0x7f] %vm339_vm3, %v330_v15 }
  0x1a   : > { %v350_v18 = vld [vmem:[#allocation2 + $0x1] sm:$0xff] }
  0x1b   : > { %v351_v19 = vld [vmem:[#allocation2 + $0x9] sm:$0x7f]  ;;  %v341_v20 = vld [vmem:[#allocation2] sm:$0xff] }
  0x1c   : > { %v357_v22 = vpack.c.bf16 %v351_v19, %v350_v18  ;;  %v342_v23 = vld [vmem:[#allocation2 + $0x8] sm:$0x7f] }
  0x1d   : > { %v347_v26 = vpack.c.bf16 %v342_v23, %v341_v20  ;;  %v448_v28 = vld [vmem:[#allocation2 + $0x2] sm:$0xff]  ;;  %v449_v29 = vld [vmem:[#allocation2 + $0xa] sm:$0x7f]  ;;  %v727_v20 = vld [vmem:[%s979_s5] ss:$0 sm:$0xff] }
  0x1e   : > { %752 = vmatmul.mubr.msk.bf16.vlgmr.msra.gmra.mrb[0].mxu0 %vm333_vm0, %v357_v22  ;;  %v455_v30 = vpack.c.bf16 %v449_v29, %v448_v28 }
  0x1f   : > { %760 = vmatmul.mubr.msk.bf16.vlgmr.msra.gmra.mrb[0].mxu1 %vm333_vm0, %v347_v26  ;;  %764 = vmatpush3.bf16.msra.mxu0 %v456_v21 }
  0x20   : > { %765 = vmatprep.subr.bf16.mxu0 %v804_v4  ;;  %767 = vmatprep.mubr.msk.bf16.mxu0 %vm805_vm2, %v804_v4 }
  0x21   : > { %775 = vmatprep.mubr.msk.bf16.mxu1 %vm805_vm2, %v804_v4  ;;  %772 = vmatpush3.bf16.msra.mxu1 %v577_v6 }
  0x22   : > { %773 = vmatprep.subr.bf16.mxu1 %v804_v4  ;;  %v726_v4 = vld [vmem:[%s978_s4] ss:$0 sm:$0xff] }
  0x23   : > { %766 = vmatpush3.bf16.msra.mxu0 %v457_v27 }
  0x25   : > { %774 = vmatpush3.bf16.msra.mxu1 %v578_v9 }
  0x26   : > { %768 = vmatmul.mubr.msk.bf16.vlgmr.msra.gmra.mrb[4].mxu0 %vm333_vm0, %v455_v30  ;;  %v728_v30 = vld [vmem:[#allocation3] ss:$0 sm:$0xff] }
  0xf1   : > { %v397_v31 = vpop.f32.mrb[0].mxu0 }
  0xf2   : > { %v441_v32 = vpop.f32.mrb[0].mxu1  ;;  %v753_v33 = vpop.f32.mrb[1].mxu0 }
  0xf3   : > { %v442_v34 = vadd.f32 %v441_v32, %v397_v31  ;;  %v761_v35 = vpop.f32.mrb[1].mxu1  ;;  %v400_v36 = vpop.f32.mrb[2].mxu0 }
  0xf4   : > { %v444_v37 = vpop.f32.mrb[2].mxu1  ;;  %v754_v38 = vpop.f32.mrb[3].mxu0 }
  0xf5   : > { %v445_v39 = vadd.f32 %v444_v37, %v400_v36  ;;  %v762_v40 = vpop.f32.mrb[3].mxu1 }
  0xf9   : > { %v495_v41 = vpop.f32.mrb[4].mxu0 }
  0xfa   : > { %v502_v43 = vadd.f32 %v495_v41, %v442_v34  ;;  %v769_v44 = vpop.f32.mrb[5].mxu0 }
  0xfb   : > { %v498_v45 = vpop.f32.mrb[6].mxu0 }
  0xfc   : > { %v503_v46 = vadd.f32 %v498_v45, %v445_v39  ;;  %v770_v47 = vpop.f32.mrb[7].mxu0  ;;  %v511_v48 = vadd.f32 %v725_v42, %v502_v43 }
  0xfe   : > { %v512_v49 = vadd.f32 %v725_v42, %v503_v46  ;;  %v513_v50 = vmax.f32 %v511_v48, 0.0 }
 0x100   : > { %v515_v51 = vsel %vm333_vm0, %v513_v50, 0.0  ;;  %v514_v52 = vmax.f32 %v512_v49, 0.0 }
 0x101   : > { %516 = vadd.xlane.f32.xlu0 %v515_v51 }
 0x102   : > { %v518_v53 = vsel %vm339_vm3, %v514_v52, 0.0 }
 0x105   : > { %519 = vadd.xlane.f32.xlu0 %v518_v53 }
 0x11b   : > { %562 = vperm.xlu0 %790, %v331_v55  }
 0x18e   : > { %v517_v56 = vpop.xlane.xlu0 %516 }
 0x18f   : > { %v522_v57 = vmul.f32 0.03125, %v517_v56 }
 0x191   : > { %v524_v58 = vsub.f32 %v513_v50, %v522_v57 }
 0x192   : > { %v520_v59 = vpop.xlane.xlu0 %519 }
 0x193   : > { %v523_v60 = vmul.f32 0.03125, %v520_v59  ;;  %v526_v61 = vmul.f32 %v524_v58, %v524_v58 }
 0x195   : > { %v525_v62 = vsub.f32 %v514_v52, %v523_v60  ;;  %v528_v63 = vsel %vm333_vm0, %v526_v61, 0.0 }
 0x196   : > { %529 = vadd.xlane.f32.xlu1 %v528_v63 }
 0x197   : > { %v527_v0 = vmul.f32 %v525_v62, %v525_v62 }
 0x199   : > { %v531_v1 = vsel %vm339_vm3, %v527_v0, 0.0 }
 0x19a   : > { %532 = vadd.xlane.f32.xlu1 %v531_v1  ;;  %v563_v24 = vpop.permute.xlu0 %562 }
 0x1ab   : > { %567 = vperm.xlu1 %791, %v332_v2  }
 0x223   : > { %v530_v10 = vpop.xlane.xlu1 %529 }
 0x224   : > { %v534_v11 = vmul.f32 0.03125, %v530_v10 }
 0x226   : > { %v536_v12 = vadd.f32 1e-05, %v534_v11 }
 0x227   : > { %v533_v13 = vpop.xlane.xlu1 %532 }
 0x228   : > { %792 = vrsqrt.f32 %v536_v12  ;;  %v535_v14 = vmul.f32 0.03125, %v533_v13 }
 0x22a   : > { %v537_v15 = vadd.f32 1e-05, %v535_v14 }
 0x22b   : > { %v568_v25 = vpop.permute.xlu1 %567 }
 0x22c   : > { %794 = vrsqrt.f32 %v537_v15 }
 0x232   : > { %v793_v16 = vpop.eup %792 }
 0x233   : > { %v540_v17 = vmul.f32 %v793_v16, %v524_v58 }
 0x235   : > { %v549_v18 = vmul.f32 %v726_v4, %v540_v17 }
 0x236   : > { %v795_v19 = vpop.eup %794 }
 0x237   : > { %v541_v21 = vmul.f32 %v795_v19, %v525_v62  ;;  %v558_v22 = vadd.f32 %v727_v20, %v549_v18 }
 0x239   : > { %v550_v23 = vmul.f32 %v726_v4, %v541_v21  ;;  %v570_v27 = vmul.f32 %v563_v24, %v558_v22 }
 0x23b   : > { %v559_v26 = vadd.f32 %v727_v20, %v550_v23 }
 0x23d   : > { %v571_v28 = vmul.f32 %v568_v25, %v559_v26 }
 0x23f   : > { %v576_v29 = vpack.c.bf16 %v571_v28, %v570_v27 }
 0x241   : > { %776 = vmatmul.mubr.msk.bf16.vlgmr.msra.gmra.mrb[4].mxu1 %vm333_vm0, %v576_v29 }
 0x314   : > { %v623_v31 = vpop.f32.mrb[4].mxu1 }
 0x315   : > { %v624_v32 = vadd.f32 %v728_v30, %v623_v31  ;;  %v777_v33 = vpop.f32.mrb[5].mxu1 }
 0x316   : > { %v626_v34 = vpop.f32.mrb[6].mxu1 }
 0x317   : > { %v630_v35 = vmul.f32 %v624_v32, %v331_v55  ;;  %v627_v36 = vadd.f32 %v728_v30, %v626_v34  ;;  %v778_v37 = vpop.f32.mrb[7].mxu1 }
 0x319   : > { %633 = vst.msk [vmem:[%s327_s13] sm:$0xff] %vm632_vm4, %v630_v35  ;;  %v631_v38 = vmul.f32 %v627_v36, %v332_v2 }
 0x31b   : > { %635 = vst.msk [vmem:[%s327_s13 + $0x8] sm:$0x7f] %vm634_vm5, %v631_v38 }
 0x31c PF: > { %s20_s29 = sadd.s32 1, %s802_s29  }
 0x31d   : > { %p17_p4 = scmp.ge.s32.totalorder %s20_s29, 4  }
 0x31f   :  { %19 = sbr.rel (!%p17_p4) target bundleno = 3 (0x3), region = 87 }

</bundles_post_ra>
